<compile_context>
chip_gen: v7x
topology: tpu7x:2x2x1
jax: 0.10.0
libtpu: 0.0.40
codegen_flags: <defaults>
</compile_context>

<pallas_src>
import functools

import numpy as np
import jax
import jax.numpy as jnp
from jax import lax
from jax.experimental import pallas as pl
from jax.experimental.pallas import tpu as pltpu

LRELU_SLOPE = 0.2
BN_EPS = 1e-5
KSIZE = 4
STRIDE = 2
LANE = 128
N_TAPS = KSIZE * KSIZE


def _round_up(x, m):
    return (x + m - 1) // m * m


def _out_hw(h):
    return (h - KSIZE) // STRIDE + 1


# ----------------------------- Pallas kernel ------------------------------- #

def _bn_lrelu(y, gb, m_real):
    """Single-pass training-mode BatchNorm + LeakyReLU(0.2), all in f32.

    y: (Mpad, 128) f32 whose first `m_real` rows are real and whose padded rows
    are exactly zero pre-BN (so they do not perturb the statistics when we
    divide by m_real).  gb: (2, 128) f32 = [gamma; beta], zero on padded lanes.
    """
    inv_m = 1.0 / float(m_real)
    s1 = jnp.sum(y, axis=0, keepdims=True)
    s2 = jnp.sum(y * y, axis=0, keepdims=True)
    mean = s1 * inv_m
    var = jnp.maximum(s2 * inv_m - mean * mean, 0.0)   # biased var (PyTorch train)
    scale = gb[0:1, :] * lax.rsqrt(var + BN_EPS)       # gamma / sqrt(var+eps)
    shift = gb[1:2, :] - mean * scale                  # beta  - mean*scale
    yn = y * scale + shift
    return jnp.where(yn > 0, yn, LRELU_SLOPE * yn)


def _conv_block(act_bf16, idx, w_cat_ref):
    """Stride-2 4x4 VALID conv of a row-major (rows, 128)-laid-out activation.

    act_bf16 : (m_in_pad, 128) bf16, real channels in lanes [0, c_in).
    idx      : (m_out_pad, N_TAPS) int32; idx[r, t] = row of `act` feeding
               output row r at tap t (-1 for padded output rows -> zero mask).
    w_cat_ref: (N_TAPS * c_in, 128) bf16 tightly tap-concatenated weights.
    Returns the pre-BN conv output (m_out_pad, 128) in f32.
    """
    c_in = w_cat_ref.shape[0] // N_TAPS
    m_in_pad = act_bf16.shape[0]
    m_out_pad = idx.shape[0]
    # Row-id per column, hoisted out of the tap loop (no per-iter broadcast).
    col = lax.broadcasted_iota(jnp.int32, (m_out_pad, m_in_pad), 1)
    y = jnp.zeros((m_out_pad, LANE), jnp.float32)
    for t in range(N_TAPS):
        # In-VMEM 0/1 selection mask (exact in bf16) — replaces the old multi-MiB
        # HBM gather matrices.
        mask = jnp.where(col == idx[:, t:t + 1], 1.0, 0.0).astype(jnp.bfloat16)
        rows = jnp.dot(mask, act_bf16, preferred_element_type=jnp.float32)
        taps = rows[:, :c_in].astype(jnp.bfloat16)       # exact (copies of bf16 vals)
        w_t = w_cat_ref[t * c_in:(t + 1) * c_in, :]      # tight (c_in, 128) slice
        y = y + jnp.dot(taps, w_t, preferred_element_type=jnp.float32)
    return y


def _fused_disc_kernel(p1_ref, w1_ref, gb1_ref,
                       idx2_ref, w2_ref, gb2_ref,
                       idx3_ref, w3_ref, b3_ref,
                       o_ref, *, m1_real, m2_real):
    # ---- block 1: conv (host im2col -> one matmul) + BN + LeakyReLU ----
    y1 = jnp.dot(p1_ref[...], w1_ref[...], preferred_element_type=jnp.float32)
    a1 = _bn_lrelu(y1, gb1_ref[...], m1_real).astype(jnp.bfloat16)

    # ---- block 2: conv via in-kernel masked row-gather + BN + LeakyReLU ----
    y2 = _conv_block(a1, idx2_ref[...], w2_ref)
    a2 = _bn_lrelu(y2, gb2_ref[...], m2_real).astype(jnp.bfloat16)

    # ---- block 3 (final): conv + bias, no BN / activation ----
    y3 = _conv_block(a2, idx3_ref[...], w3_ref)
    o_ref[...] = y3 + b3_ref[...]


def _fused_forward(p1, w1, gb1, idx2, w2, gb2, idx3, w3, b3,
                   *, m1_real, m2_real):
    kern = functools.partial(_fused_disc_kernel,
                             m1_real=m1_real, m2_real=m2_real)
    m3_pad = idx3.shape[0]
    return pl.pallas_call(
        kern,
        out_shape=jax.ShapeDtypeStruct((m3_pad, LANE), jnp.float32),
        in_specs=[pl.BlockSpec(memory_space=pltpu.MemorySpace.VMEM)
                  for _ in range(9)],
        out_specs=pl.BlockSpec(memory_space=pltpu.MemorySpace.VMEM),
    )(p1, w1, gb1, idx2, w2, gb2, idx3, w3, b3)


# ------------------------------ host-side glue ------------------------------ #

def _im2col_l1(x_nhwc, m_pad, k_pad):
    """(N,H,W,C) -> zero-padded bf16 patch matrix (m_pad, k_pad); cols [kh,kw,c]."""
    n, h, w, c = x_nhwc.shape
    oh, ow = _out_hw(h), _out_hw(w)
    pieces = []
    for kh in range(KSIZE):
        for kw in range(KSIZE):
            pieces.append(
                x_nhwc[:, kh:kh + STRIDE * (oh - 1) + 1:STRIDE,
                          kw:kw + STRIDE * (ow - 1) + 1:STRIDE, :])
    p = jnp.stack(pieces, axis=3).reshape(n * oh * ow, N_TAPS * c)
    p = jnp.pad(p, ((0, m_pad - n * oh * ow), (0, k_pad - N_TAPS * c)))
    return p.astype(jnp.bfloat16)


def _gather_idx(n, ih, iw, m_out_pad):
    """Row-index table: idx[r, t] = input row feeding output row r at tap t."""
    oh, ow = _out_hw(ih), _out_hw(iw)
    idx = np.full((m_out_pad, N_TAPS), -1, dtype=np.int32)   # -1 => padded row
    for b in range(n):
        for y in range(oh):
            for x in range(ow):
                r = (b * oh + y) * ow + x
                for kh in range(KSIZE):
                    for kw in range(KSIZE):
                        idx[r, kh * KSIZE + kw] = \
                            (b * ih + STRIDE * y + kh) * iw + (STRIDE * x + kw)
    return jnp.asarray(idx)


def _pack_w_l1(w_oihw, k_pad, n_pad):
    """(Cout,Cin,KH,KW) -> (k_pad, n_pad) bf16; rows ordered [kh,kw,cin]."""
    cout, cin, kh, kw = w_oihw.shape
    wk = jnp.transpose(w_oihw, (2, 3, 1, 0)).reshape(kh * kw * cin, cout)
    wk = jnp.pad(wk, ((0, k_pad - kh * kw * cin), (0, n_pad - cout)))
    return wk.astype(jnp.bfloat16)


def _pack_w_tapcat(w_oihw, n_pad):
    """(Cout,Cin,KH,KW) -> tight tap-concat (KH*KW*Cin, n_pad) bf16 (row t*Cin+ci)."""
    cout, cin, kh, kw = w_oihw.shape
    wt = jnp.transpose(w_oihw, (2, 3, 1, 0)).reshape(kh * kw * cin, cout)
    return jnp.pad(wt, ((0, 0), (0, n_pad - cout))).astype(jnp.bfloat16)


def _pack_gb(gamma, beta, c_pad):
    c = gamma.shape[-1]
    gb = jnp.stack([gamma.reshape(c), beta.reshape(c)], axis=0)
    return jnp.pad(gb, ((0, 0), (0, c_pad - c)))


def _pack_bias(b, c_pad):
    c = b.shape[-1]
    return jnp.pad(b.reshape(1, c), ((0, 0), (0, c_pad - c)))


def init_params(key, im_chan=1, hidden_dim=16):
    """PyTorch-default-like init: uniform conv weights/bias, BN gamma=1, beta=0."""
    chans = [(im_chan, hidden_dim),
             (hidden_dim, hidden_dim * 2),
             (hidden_dim * 2, 1)]
    blocks = []
    for cin, cout in chans:
        key, kw_, kb_ = jax.random.split(key, 3)
        fan_in = cin * KSIZE * KSIZE
        bound = 1.0 / float(np.sqrt(fan_in))
        blocks.append({
            "w_oihw": jax.random.uniform(kw_, (cout, cin, KSIZE, KSIZE),
                                         jnp.float32, -bound, bound),
            "b": jax.random.uniform(kb_, (cout,), jnp.float32, -bound, bound),
            "gamma": jnp.ones((cout,), jnp.float32),
            "beta": jnp.zeros((cout,), jnp.float32),
        })
    return {"blocks": blocks}


def dcgan_discriminator_forward(x_nchw, params):
    """Equivalent of DCGAN_Discriminator.forward; input is NCHW like PyTorch."""
    n, c_in, h, w = x_nchw.shape
    b1, b2, b3 = params["blocks"]
    cout3 = b3["w_oihw"].shape[0]

    oh1, ow1 = _out_hw(h), _out_hw(w)
    oh2, ow2 = _out_hw(oh1), _out_hw(ow1)
    oh3, ow3 = _out_hw(oh2), _out_hw(ow2)
    m1, m2, m3 = n * oh1 * ow1, n * oh2 * ow2, n * oh3 * ow3
    m1p = _round_up(m1, 16)          # multiple of 16 rows (bf16 sublane packing)
    m2p = _round_up(m2, 16)
    m3p = _round_up(m3, 8)
    k1p = _round_up(N_TAPS * c_in, LANE)

    x_nhwc = jnp.transpose(x_nchw, (0, 2, 3, 1)).astype(jnp.float32)
    p1 = _im2col_l1(x_nhwc, m1p, k1p)

    # Conv bias is dropped for the BN blocks (exactly cancelled by BN's mean
    # subtraction); only the final block keeps its bias.
    w1 = _pack_w_l1(b1["w_oihw"], k1p, LANE)
    gb1 = _pack_gb(b1["gamma"], b1["beta"], LANE)
    w2 = _pack_w_tapcat(b2["w_oihw"], LANE)      # (16*hidden,      128) bf16
    gb2 = _pack_gb(b2["gamma"], b2["beta"], LANE)
    w3 = _pack_w_tapcat(b3["w_oihw"], LANE)      # (16*2*hidden,    128) bf16
    bias3 = _pack_bias(b3["b"], LANE)

    # Tiny trace-time constant index tables (replace the old 3 MiB gather mats).
    idx2 = _gather_idx(n, oh1, ow1, m2p)
    idx3 = _gather_idx(n, oh2, ow2, m3p)

    out_p = _fused_forward(p1, w1, gb1, idx2, w2, gb2, idx3, w3, bias3,
                           m1_real=m1, m2_real=m2)

    out = out_p[:m3, :cout3].reshape(n, oh3, ow3, cout3)
    # PyTorch: disc_pred.view(len(disc_pred), -1) on an NCHW tensor.
    return jnp.transpose(out, (0, 3, 1, 2)).reshape(n, -1)


# --------------------------- pure-JAX reference ----------------------------- #

def reference_forward(x_nchw, params):
    x = x_nchw.astype(jnp.float32)
    n_blocks = len(params["blocks"])
    for i, block in enumerate(params["blocks"]):
        final = (i == n_blocks - 1)
        y = jax.lax.conv_general_dilated(
            x, block["w_oihw"], window_strides=(STRIDE, STRIDE), padding="VALID",
            dimension_numbers=("NCHW", "OIHW", "NCHW"),
            precision=jax.lax.Precision.HIGHEST)
        y = y + block["b"].reshape(1, -1, 1, 1)
        if not final:
            mean = jnp.mean(y, axis=(0, 2, 3), keepdims=True)
            var = jnp.mean((y - mean) ** 2, axis=(0, 2, 3), keepdims=True)
            y = (y - mean) / jnp.sqrt(var + BN_EPS)
            y = block["gamma"].reshape(1, -1, 1, 1) * y \
                + block["beta"].reshape(1, -1, 1, 1)
            y = jnp.where(y > 0, y, LRELU_SLOPE * y)
        x = y
    return x.reshape(x.shape[0], -1)


# --------------------------------- main ------------------------------------ #

if __name__ == "__main__":
    key = jax.random.PRNGKey(0)
    k_img, k_par = jax.random.split(key)

    # Module-consistent small shapes: batch=2, im_chan=1, 28x28 (MNIST-like),
    # hidden_dim=16 (module default).  Spatial path: 28 -> 13 -> 5 -> 1.
    batch, im_chan, hidden_dim, hw = 2, 1, 16, 28
    x = jax.random.normal(k_img, (batch, im_chan, hw, hw), jnp.float32)
    params = init_params(k_par, im_chan=im_chan, hidden_dim=hidden_dim)

    fwd = jax.jit(dcgan_discriminator_forward)
    out = jax.block_until_ready(fwd(x, params))

    ref = jax.block_until_ready(reference_forward(x, params))
    assert out.shape == (batch, 1), out.shape
    # bf16 matmul operands (per perf review) vs. an f32-HIGHEST reference:
    # BN re-normalizes each block, so the end-to-end error stays ~1e-2 relative.
    assert jnp.allclose(out, ref, atol=2e-2, rtol=2e-2), (out, ref)

    print("KERNEL_OK")
</pallas_src>

<mosaic_0001>
module attributes {stable_mosaic.version = 11 : i64} {
  func.func @_fused_disc_kernel(%arg0: memref<352x128xbf16, #tpu.memory_space<vmem>>, %arg1: memref<128x128xbf16, #tpu.memory_space<vmem>>, %arg2: memref<2x128xf32, #tpu.memory_space<vmem>>, %arg3: memref<64x16xi32, #tpu.memory_space<vmem>>, %arg4: memref<256x128xbf16, #tpu.memory_space<vmem>>, %arg5: memref<2x128xf32, #tpu.memory_space<vmem>>, %arg6: memref<8x16xi32, #tpu.memory_space<vmem>>, %arg7: memref<512x128xbf16, #tpu.memory_space<vmem>>, %arg8: memref<1x128xf32, #tpu.memory_space<vmem>>, %arg9: memref<8x128xf32, #tpu.memory_space<vmem>>) attributes {dimension_semantics = [], scalar_prefetch = 0 : i64, scratch_operands = 0 : i64, tpu.core_type = #tpu.core_type<tc>} {
    %c0 = arith.constant 0 : index
    %c0_0 = arith.constant 0 : index
    %0 = vector.load %arg0[%c0, %c0_0] : memref<352x128xbf16, #tpu.memory_space<vmem>>, vector<352x128xbf16>
    %c0_1 = arith.constant 0 : index
    %c0_2 = arith.constant 0 : index
    %1 = vector.load %arg1[%c0_1, %c0_2] : memref<128x128xbf16, #tpu.memory_space<vmem>>, vector<128x128xbf16>
    %cst = arith.constant dense<0.000000e+00> : vector<352x128xf32>
    %2 = tpu.matmul %0, %1, %cst {dimension_numbers = #tpu.dot_dimension_numbers<[1], [0], [0], [1], [0, 0, 1, 1], [], []>} : vector<352x128xbf16>, vector<128x128xbf16>, vector<352x128xf32> -> vector<352x128xf32>
    %c0_3 = arith.constant 0 : index
    %c0_4 = arith.constant 0 : index
    %3 = vector.load %arg2[%c0_3, %c0_4] : memref<2x128xf32, #tpu.memory_space<vmem>>, vector<2x128xf32>
    %cst_5 = arith.constant dense<0.000000e+00> : vector<128xf32>
    %4 = vector.multi_reduction <add>, %2, %cst_5 [0] : vector<352x128xf32> to vector<128xf32>
    %5 = vector.shape_cast %4 : vector<128xf32> to vector<1x128xf32>
    %6 = arith.mulf %2, %2 : vector<352x128xf32>
    %cst_6 = arith.constant dense<0.000000e+00> : vector<128xf32>
    %7 = vector.multi_reduction <add>, %6, %cst_6 [0] : vector<352x128xf32> to vector<128xf32>
    %8 = vector.shape_cast %7 : vector<128xf32> to vector<1x128xf32>
    %cst_7 = arith.constant 2.958580e-03 : f32
    %9 = vector.broadcast %cst_7 : f32 to vector<1x128xf32>
    %10 = arith.mulf %5, %9 : vector<1x128xf32>
    %cst_8 = arith.constant 2.958580e-03 : f32
    %11 = vector.broadcast %cst_8 : f32 to vector<1x128xf32>
    %12 = arith.mulf %8, %11 : vector<1x128xf32>
    %13 = arith.mulf %10, %10 : vector<1x128xf32>
    %14 = arith.subf %12, %13 : vector<1x128xf32>
    %cst_9 = arith.constant 0.000000e+00 : f32
    %15 = vector.broadcast %cst_9 : f32 to vector<1x128xf32>
    %16 = arith.maximumf %14, %15 : vector<1x128xf32>
    %17 = vector.extract_strided_slice %3 {offsets = [0, 0], sizes = [1, 128], strides = [1, 1]} : vector<2x128xf32> to vector<1x128xf32>
    %cst_10 = arith.constant 9.99999974E-6 : f32
    %18 = vector.broadcast %cst_10 : f32 to vector<1x128xf32>
    %19 = arith.addf %16, %18 : vector<1x128xf32>
    %20 = math.rsqrt %19 : vector<1x128xf32>
    %21 = arith.mulf %17, %20 : vector<1x128xf32>
    %22 = vector.extract_strided_slice %3 {offsets = [1, 0], sizes = [1, 128], strides = [1, 1]} : vector<2x128xf32> to vector<1x128xf32>
    %23 = arith.mulf %10, %21 : vector<1x128xf32>
    %24 = arith.subf %22, %23 : vector<1x128xf32>
    %25 = vector.broadcast %21 : vector<1x128xf32> to vector<352x128xf32>
    %26 = arith.mulf %2, %25 : vector<352x128xf32>
    %27 = vector.broadcast %24 : vector<1x128xf32> to vector<352x128xf32>
    %28 = arith.addf %26, %27 : vector<352x128xf32>
    %cst_11 = arith.constant 0.000000e+00 : f32
    %29 = vector.broadcast %cst_11 : f32 to vector<352x128xf32>
    %30 = arith.cmpf ogt, %28, %29 : vector<352x128xf32>
    %cst_12 = arith.constant 2.000000e-01 : f32
    %31 = vector.broadcast %cst_12 : f32 to vector<352x128xf32>
    %32 = arith.mulf %31, %28 : vector<352x128xf32>
    %33 = arith.select %30, %28, %32 : vector<352x128xi1>, vector<352x128xf32>
    %34 = arith.truncf %33 : vector<352x128xf32> to vector<352x128xbf16>
    %c0_13 = arith.constant 0 : index
    %c0_14 = arith.constant 0 : index
    %35 = vector.load %arg3[%c0_13, %c0_14] : memref<64x16xi32, #tpu.memory_space<vmem>>, vector<64x16xi32>
    %36 = tpu.iota {dimensions = array<i32: 1>} : vector<64x352xi32>
    %cst_15 = arith.constant 0.000000e+00 : f32
    %37 = vector.broadcast %cst_15 : f32 to vector<64x128xf32>
    %38 = vector.extract_strided_slice %35 {offsets = [0, 0], sizes = [64, 1], strides = [1, 1]} : vector<64x16xi32> to vector<64x1xi32>
    %39 = vector.broadcast %38 : vector<64x1xi32> to vector<64x352xi32>
    %40 = arith.cmpi eq, %36, %39 : vector<64x352xi32>
    %cst_16 = arith.constant 1.000000e+00 : f32
    %cst_17 = arith.constant 0.000000e+00 : f32
    %41 = vector.broadcast %cst_16 : f32 to vector<64x352xf32>
    %42 = vector.broadcast %cst_17 : f32 to vector<64x352xf32>
    %43 = arith.select %40, %41, %42 : vector<64x352xi1>, vector<64x352xf32>
    %44 = arith.truncf %43 : vector<64x352xf32> to vector<64x352xbf16>
    %cst_18 = arith.constant dense<0.000000e+00> : vector<64x128xf32>
    %45 = tpu.matmul %44, %34, %cst_18 {dimension_numbers = #tpu.dot_dimension_numbers<[1], [0], [0], [1], [0, 0, 1, 1], [], []>} : vector<64x352xbf16>, vector<352x128xbf16>, vector<64x128xf32> -> vector<64x128xf32>
    %46 = vector.extract_strided_slice %45 {offsets = [0, 0], sizes = [64, 16], strides = [1, 1]} : vector<64x128xf32> to vector<64x16xf32>
    %47 = arith.truncf %46 : vector<64x16xf32> to vector<64x16xbf16>
    %c0_19 = arith.constant 0 : index
    %c0_20 = arith.constant 0 : index
    %48 = vector.load %arg4[%c0_19, %c0_20] : memref<256x128xbf16, #tpu.memory_space<vmem>>, vector<16x128xbf16>
    %cst_21 = arith.constant dense<0.000000e+00> : vector<64x128xf32>
    %49 = tpu.matmul %47, %48, %cst_21 {dimension_numbers = #tpu.dot_dimension_numbers<[1], [0], [0], [1], [0, 0, 1, 1], [], []>} : vector<64x16xbf16>, vector<16x128xbf16>, vector<64x128xf32> -> vector<64x128xf32>
    %50 = arith.addf %37, %49 : vector<64x128xf32>
    %51 = vector.extract_strided_slice %35 {offsets = [0, 1], sizes = [64, 1], strides = [1, 1]} : vector<64x16xi32> to vector<64x1xi32>
    %52 = vector.broadcast %51 : vector<64x1xi32> to vector<64x352xi32>
    %53 = arith.cmpi eq, %36, %52 : vector<64x352xi32>
    %cst_22 = arith.constant 1.000000e+00 : f32
    %cst_23 = arith.constant 0.000000e+00 : f32
    %54 = vector.broadcast %cst_22 : f32 to vector<64x352xf32>
    %55 = vector.broadcast %cst_23 : f32 to vector<64x352xf32>
    %56 = arith.select %53, %54, %55 : vector<64x352xi1>, vector<64x352xf32>
    %57 = arith.truncf %56 : vector<64x352xf32> to vector<64x352xbf16>
    %cst_24 = arith.constant dense<0.000000e+00> : vector<64x128xf32>
    %58 = tpu.matmul %57, %34, %cst_24 {dimension_numbers = #tpu.dot_dimension_numbers<[1], [0], [0], [1], [0, 0, 1, 1], [], []>} : vector<64x352xbf16>, vector<352x128xbf16>, vector<64x128xf32> -> vector<64x128xf32>
    %59 = vector.extract_strided_slice %58 {offsets = [0, 0], sizes = [64, 16], strides = [1, 1]} : vector<64x128xf32> to vector<64x16xf32>
    %60 = arith.truncf %59 : vector<64x16xf32> to vector<64x16xbf16>
    %c16 = arith.constant 16 : index
    %c0_25 = arith.constant 0 : index
    %61 = vector.load %arg4[%c16, %c0_25] : memref<256x128xbf16, #tpu.memory_space<vmem>>, vector<16x128xbf16>
    %cst_26 = arith.constant dense<0.000000e+00> : vector<64x128xf32>
    %62 = tpu.matmul %60, %61, %cst_26 {dimension_numbers = #tpu.dot_dimension_numbers<[1], [0], [0], [1], [0, 0, 1, 1], [], []>} : vector<64x16xbf16>, vector<16x128xbf16>, vector<64x128xf32> -> vector<64x128xf32>
    %63 = arith.addf %50, %62 : vector<64x128xf32>
    %64 = vector.extract_strided_slice %35 {offsets = [0, 2], sizes = [64, 1], strides = [1, 1]} : vector<64x16xi32> to vector<64x1xi32>
    %65 = vector.broadcast %64 : vector<64x1xi32> to vector<64x352xi32>
    %66 = arith.cmpi eq, %36, %65 : vector<64x352xi32>
    %cst_27 = arith.constant 1.000000e+00 : f32
    %cst_28 = arith.constant 0.000000e+00 : f32
    %67 = vector.broadcast %cst_27 : f32 to vector<64x352xf32>
    %68 = vector.broadcast %cst_28 : f32 to vector<64x352xf32>
    %69 = arith.select %66, %67, %68 : vector<64x352xi1>, vector<64x352xf32>
    %70 = arith.truncf %69 : vector<64x352xf32> to vector<64x352xbf16>
    %cst_29 = arith.constant dense<0.000000e+00> : vector<64x128xf32>
    %71 = tpu.matmul %70, %34, %cst_29 {dimension_numbers = #tpu.dot_dimension_numbers<[1], [0], [0], [1], [0, 0, 1, 1], [], []>} : vector<64x352xbf16>, vector<352x128xbf16>, vector<64x128xf32> -> vector<64x128xf32>
    %72 = vector.extract_strided_slice %71 {offsets = [0, 0], sizes = [64, 16], strides = [1, 1]} : vector<64x128xf32> to vector<64x16xf32>
    %73 = arith.truncf %72 : vector<64x16xf32> to vector<64x16xbf16>
    %c32 = arith.constant 32 : index
    %c0_30 = arith.constant 0 : index
    %74 = vector.load %arg4[%c32, %c0_30] : memref<256x128xbf16, #tpu.memory_space<vmem>>, vector<16x128xbf16>
    %cst_31 = arith.constant dense<0.000000e+00> : vector<64x128xf32>
    %75 = tpu.matmul %73, %74, %cst_31 {dimension_numbers = #tpu.dot_dimension_numbers<[1], [0], [0], [1], [0, 0, 1, 1], [], []>} : vector<64x16xbf16>, vector<16x128xbf16>, vector<64x128xf32> -> vector<64x128xf32>
    %76 = arith.addf %63, %75 : vector<64x128xf32>
    %77 = vector.extract_strided_slice %35 {offsets = [0, 3], sizes = [64, 1], strides = [1, 1]} : vector<64x16xi32> to vector<64x1xi32>
    %78 = vector.broadcast %77 : vector<64x1xi32> to vector<64x352xi32>
    %79 = arith.cmpi eq, %36, %78 : vector<64x352xi32>
    %cst_32 = arith.constant 1.000000e+00 : f32
    %cst_33 = arith.constant 0.000000e+00 : f32
    %80 = vector.broadcast %cst_32 : f32 to vector<64x352xf32>
    %81 = vector.broadcast %cst_33 : f32 to vector<64x352xf32>
    %82 = arith.select %79, %80, %81 : vector<64x352xi1>, vector<64x352xf32>
    %83 = arith.truncf %82 : vector<64x352xf32> to vector<64x352xbf16>
    %cst_34 = arith.constant dense<0.000000e+00> : vector<64x128xf32>
    %84 = tpu.matmul %83, %34, %cst_34 {dimension_numbers = #tpu.dot_dimension_numbers<[1], [0], [0], [1], [0, 0, 1, 1], [], []>} : vector<64x352xbf16>, vector<352x128xbf16>, vector<64x128xf32> -> vector<64x128xf32>
    %85 = vector.extract_strided_slice %84 {offsets = [0, 0], sizes = [64, 16], strides = [1, 1]} : vector<64x128xf32> to vector<64x16xf32>
    %86 = arith.truncf %85 : vector<64x16xf32> to vector<64x16xbf16>
    %c48 = arith.constant 48 : index
    %c0_35 = arith.constant 0 : index
    %87 = vector.load %arg4[%c48, %c0_35] : memref<256x128xbf16, #tpu.memory_space<vmem>>, vector<16x128xbf16>
    %cst_36 = arith.constant dense<0.000000e+00> : vector<64x128xf32>
    %88 = tpu.matmul %86, %87, %cst_36 {dimension_numbers = #tpu.dot_dimension_numbers<[1], [0], [0], [1], [0, 0, 1, 1], [], []>} : vector<64x16xbf16>, vector<16x128xbf16>, vector<64x128xf32> -> vector<64x128xf32>
    %89 = arith.addf %76, %88 : vector<64x128xf32>
    %90 = vector.extract_strided_slice %35 {offsets = [0, 4], sizes = [64, 1], strides = [1, 1]} : vector<64x16xi32> to vector<64x1xi32>
    %91 = vector.broadcast %90 : vector<64x1xi32> to vector<64x352xi32>
    %92 = arith.cmpi eq, %36, %91 : vector<64x352xi32>
    %cst_37 = arith.constant 1.000000e+00 : f32
    %cst_38 = arith.constant 0.000000e+00 : f32
    %93 = vector.broadcast %cst_37 : f32 to vector<64x352xf32>
    %94 = vector.broadcast %cst_38 : f32 to vector<64x352xf32>
    %95 = arith.select %92, %93, %94 : vector<64x352xi1>, vector<64x352xf32>
    %96 = arith.truncf %95 : vector<64x352xf32> to vector<64x352xbf16>
    %cst_39 = arith.constant dense<0.000000e+00> : vector<64x128xf32>
    %97 = tpu.matmul %96, %34, %cst_39 {dimension_numbers = #tpu.dot_dimension_numbers<[1], [0], [0], [1], [0, 0, 1, 1], [], []>} : vector<64x352xbf16>, vector<352x128xbf16>, vector<64x128xf32> -> vector<64x128xf32>
    %98 = vector.extract_strided_slice %97 {offsets = [0, 0], sizes = [64, 16], strides = [1, 1]} : vector<64x128xf32> to vector<64x16xf32>
    %99 = arith.truncf %98 : vector<64x16xf32> to vector<64x16xbf16>
    %c64 = arith.constant 64 : index
    %c0_40 = arith.constant 0 : index
    %100 = vector.load %arg4[%c64, %c0_40] : memref<256x128xbf16, #tpu.memory_space<vmem>>, vector<16x128xbf16>
    %cst_41 = arith.constant dense<0.000000e+00> : vector<64x128xf32>
    %101 = tpu.matmul %99, %100, %cst_41 {dimension_numbers = #tpu.dot_dimension_numbers<[1], [0], [0], [1], [0, 0, 1, 1], [], []>} : vector<64x16xbf16>, vector<16x128xbf16>, vector<64x128xf32> -> vector<64x128xf32>
    %102 = arith.addf %89, %101 : vector<64x128xf32>
    %103 = vector.extract_strided_slice %35 {offsets = [0, 5], sizes = [64, 1], strides = [1, 1]} : vector<64x16xi32> to vector<64x1xi32>
    %104 = vector.broadcast %103 : vector<64x1xi32> to vector<64x352xi32>
    %105 = arith.cmpi eq, %36, %104 : vector<64x352xi32>
    %cst_42 = arith.constant 1.000000e+00 : f32
    %cst_43 = arith.constant 0.000000e+00 : f32
    %106 = vector.broadcast %cst_42 : f32 to vector<64x352xf32>
    %107 = vector.broadcast %cst_43 : f32 to vector<64x352xf32>
    %108 = arith.select %105, %106, %107 : vector<64x352xi1>, vector<64x352xf32>
    %109 = arith.truncf %108 : vector<64x352xf32> to vector<64x352xbf16>
    %cst_44 = arith.constant dense<0.000000e+00> : vector<64x128xf32>
    %110 = tpu.matmul %109, %34, %cst_44 {dimension_numbers = #tpu.dot_dimension_numbers<[1], [0], [0], [1], [0, 0, 1, 1], [], []>} : vector<64x352xbf16>, vector<352x128xbf16>, vector<64x128xf32> -> vector<64x128xf32>
    %111 = vector.extract_strided_slice %110 {offsets = [0, 0], sizes = [64, 16], strides = [1, 1]} : vector<64x128xf32> to vector<64x16xf32>
    %112 = arith.truncf %111 : vector<64x16xf32> to vector<64x16xbf16>
    %c80 = arith.constant 80 : index
    %c0_45 = arith.constant 0 : index
    %113 = vector.load %arg4[%c80, %c0_45] : memref<256x128xbf16, #tpu.memory_space<vmem>>, vector<16x128xbf16>
    %cst_46 = arith.constant dense<0.000000e+00> : vector<64x128xf32>
    %114 = tpu.matmul %112, %113, %cst_46 {dimension_numbers = #tpu.dot_dimension_numbers<[1], [0], [0], [1], [0, 0, 1, 1], [], []>} : vector<64x16xbf16>, vector<16x128xbf16>, vector<64x128xf32> -> vector<64x128xf32>
    %115 = arith.addf %102, %114 : vector<64x128xf32>
    %116 = vector.extract_strided_slice %35 {offsets = [0, 6], sizes = [64, 1], strides = [1, 1]} : vector<64x16xi32> to vector<64x1xi32>
    %117 = vector.broadcast %116 : vector<64x1xi32> to vector<64x352xi32>
    %118 = arith.cmpi eq, %36, %117 : vector<64x352xi32>
    %cst_47 = arith.constant 1.000000e+00 : f32
    %cst_48 = arith.constant 0.000000e+00 : f32
    %119 = vector.broadcast %cst_47 : f32 to vector<64x352xf32>
    %120 = vector.broadcast %cst_48 : f32 to vector<64x352xf32>
    %121 = arith.select %118, %119, %120 : vector<64x352xi1>, vector<64x352xf32>
    %122 = arith.truncf %121 : vector<64x352xf32> to vector<64x352xbf16>
    %cst_49 = arith.constant dense<0.000000e+00> : vector<64x128xf32>
    %123 = tpu.matmul %122, %34, %cst_49 {dimension_numbers = #tpu.dot_dimension_numbers<[1], [0], [0], [1], [0, 0, 1, 1], [], []>} : vector<64x352xbf16>, vector<352x128xbf16>, vector<64x128xf32> -> vector<64x128xf32>
    %124 = vector.extract_strided_slice %123 {offsets = [0, 0], sizes = [64, 16], strides = [1, 1]} : vector<64x128xf32> to vector<64x16xf32>
    %125 = arith.truncf %124 : vector<64x16xf32> to vector<64x16xbf16>
    %c96 = arith.constant 96 : index
    %c0_50 = arith.constant 0 : index
    %126 = vector.load %arg4[%c96, %c0_50] : memref<256x128xbf16, #tpu.memory_space<vmem>>, vector<16x128xbf16>
    %cst_51 = arith.constant dense<0.000000e+00> : vector<64x128xf32>
    %127 = tpu.matmul %125, %126, %cst_51 {dimension_numbers = #tpu.dot_dimension_numbers<[1], [0], [0], [1], [0, 0, 1, 1], [], []>} : vector<64x16xbf16>, vector<16x128xbf16>, vector<64x128xf32> -> vector<64x128xf32>
    %128 = arith.addf %115, %127 : vector<64x128xf32>
    %129 = vector.extract_strided_slice %35 {offsets = [0, 7], sizes = [64, 1], strides = [1, 1]} : vector<64x16xi32> to vector<64x1xi32>
    %130 = vector.broadcast %129 : vector<64x1xi32> to vector<64x352xi32>
    %131 = arith.cmpi eq, %36, %130 : vector<64x352xi32>
    %cst_52 = arith.constant 1.000000e+00 : f32
    %cst_53 = arith.constant 0.000000e+00 : f32
    %132 = vector.broadcast %cst_52 : f32 to vector<64x352xf32>
    %133 = vector.broadcast %cst_53 : f32 to vector<64x352xf32>
    %134 = arith.select %131, %132, %133 : vector<64x352xi1>, vector<64x352xf32>
    %135 = arith.truncf %134 : vector<64x352xf32> to vector<64x352xbf16>
    %cst_54 = arith.constant dense<0.000000e+00> : vector<64x128xf32>
    %136 = tpu.matmul %135, %34, %cst_54 {dimension_numbers = #tpu.dot_dimension_numbers<[1], [0], [0], [1], [0, 0, 1, 1], [], []>} : vector<64x352xbf16>, vector<352x128xbf16>, vector<64x128xf32> -> vector<64x128xf32>
    %137 = vector.extract_strided_slice %136 {offsets = [0, 0], sizes = [64, 16], strides = [1, 1]} : vector<64x128xf32> to vector<64x16xf32>
    %138 = arith.truncf %137 : vector<64x16xf32> to vector<64x16xbf16>
    %c112 = arith.constant 112 : index
    %c0_55 = arith.constant 0 : index
    %139 = vector.load %arg4[%c112, %c0_55] : memref<256x128xbf16, #tpu.memory_space<vmem>>, vector<16x128xbf16>
    %cst_56 = arith.constant dense<0.000000e+00> : vector<64x128xf32>
    %140 = tpu.matmul %138, %139, %cst_56 {dimension_numbers = #tpu.dot_dimension_numbers<[1], [0], [0], [1], [0, 0, 1, 1], [], []>} : vector<64x16xbf16>, vector<16x128xbf16>, vector<64x128xf32> -> vector<64x128xf32>
    %141 = arith.addf %128, %140 : vector<64x128xf32>
    %142 = vector.extract_strided_slice %35 {offsets = [0, 8], sizes = [64, 1], strides = [1, 1]} : vector<64x16xi32> to vector<64x1xi32>
    %143 = vector.broadcast %142 : vector<64x1xi32> to vector<64x352xi32>
    %144 = arith.cmpi eq, %36, %143 : vector<64x352xi32>
    %cst_57 = arith.constant 1.000000e+00 : f32
    %cst_58 = arith.constant 0.000000e+00 : f32
    %145 = vector.broadcast %cst_57 : f32 to vector<64x352xf32>
    %146 = vector.broadcast %cst_58 : f32 to vector<64x352xf32>
    %147 = arith.select %144, %145, %146 : vector<64x352xi1>, vector<64x352xf32>
    %148 = arith.truncf %147 : vector<64x352xf32> to vector<64x352xbf16>
    %cst_59 = arith.constant dense<0.000000e+00> : vector<64x128xf32>
    %149 = tpu.matmul %148, %34, %cst_59 {dimension_numbers = #tpu.dot_dimension_numbers<[1], [0], [0], [1], [0, 0, 1, 1], [], []>} : vector<64x352xbf16>, vector<352x128xbf16>, vector<64x128xf32> -> vector<64x128xf32>
    %150 = vector.extract_strided_slice %149 {offsets = [0, 0], sizes = [64, 16], strides = [1, 1]} : vector<64x128xf32> to vector<64x16xf32>
    %151 = arith.truncf %150 : vector<64x16xf32> to vector<64x16xbf16>
    %c128 = arith.constant 128 : index
    %c0_60 = arith.constant 0 : index
    %152 = vector.load %arg4[%c128, %c0_60] : memref<256x128xbf16, #tpu.memory_space<vmem>>, vector<16x128xbf16>
    %cst_61 = arith.constant dense<0.000000e+00> : vector<64x128xf32>
    %153 = tpu.matmul %151, %152, %cst_61 {dimension_numbers = #tpu.dot_dimension_numbers<[1], [0], [0], [1], [0, 0, 1, 1], [], []>} : vector<64x16xbf16>, vector<16x128xbf16>, vector<64x128xf32> -> vector<64x128xf32>
    %154 = arith.addf %141, %153 : vector<64x128xf32>
    %155 = vector.extract_strided_slice %35 {offsets = [0, 9], sizes = [64, 1], strides = [1, 1]} : vector<64x16xi32> to vector<64x1xi32>
    %156 = vector.broadcast %155 : vector<64x1xi32> to vector<64x352xi32>
    %157 = arith.cmpi eq, %36, %156 : vector<64x352xi32>
    %cst_62 = arith.constant 1.000000e+00 : f32
    %cst_63 = arith.constant 0.000000e+00 : f32
    %158 = vector.broadcast %cst_62 : f32 to vector<64x352xf32>
    %159 = vector.broadcast %cst_63 : f32 to vector<64x352xf32>
    %160 = arith.select %157, %158, %159 : vector<64x352xi1>, vector<64x352xf32>
    %161 = arith.truncf %160 : vector<64x352xf32> to vector<64x352xbf16>
    %cst_64 = arith.constant dense<0.000000e+00> : vector<64x128xf32>
    %162 = tpu.matmul %161, %34, %cst_64 {dimension_numbers = #tpu.dot_dimension_numbers<[1], [0], [0], [1], [0, 0, 1, 1], [], []>} : vector<64x352xbf16>, vector<352x128xbf16>, vector<64x128xf32> -> vector<64x128xf32>
    %163 = vector.extract_strided_slice %162 {offsets = [0, 0], sizes = [64, 16], strides = [1, 1]} : vector<64x128xf32> to vector<64x16xf32>
    %164 = arith.truncf %163 : vector<64x16xf32> to vector<64x16xbf16>
    %c144 = arith.constant 144 : index
    %c0_65 = arith.constant 0 : index
    %165 = vector.load %arg4[%c144, %c0_65] : memref<256x128xbf16, #tpu.memory_space<vmem>>, vector<16x128xbf16>
    %cst_66 = arith.constant dense<0.000000e+00> : vector<64x128xf32>
    %166 = tpu.matmul %164, %165, %cst_66 {dimension_numbers = #tpu.dot_dimension_numbers<[1], [0], [0], [1], [0, 0, 1, 1], [], []>} : vector<64x16xbf16>, vector<16x128xbf16>, vector<64x128xf32> -> vector<64x128xf32>
    %167 = arith.addf %154, %166 : vector<64x128xf32>
    %168 = vector.extract_strided_slice %35 {offsets = [0, 10], sizes = [64, 1], strides = [1, 1]} : vector<64x16xi32> to vector<64x1xi32>
    %169 = vector.broadcast %168 : vector<64x1xi32> to vector<64x352xi32>
    %170 = arith.cmpi eq, %36, %169 : vector<64x352xi32>
    %cst_67 = arith.constant 1.000000e+00 : f32
    %cst_68 = arith.constant 0.000000e+00 : f32
    %171 = vector.broadcast %cst_67 : f32 to vector<64x352xf32>
    %172 = vector.broadcast %cst_68 : f32 to vector<64x352xf32>
    %173 = arith.select %170, %171, %172 : vector<64x352xi1>, vector<64x352xf32>
    %174 = arith.truncf %173 : vector<64x352xf32> to vector<64x352xbf16>
    %cst_69 = arith.constant dense<0.000000e+00> : vector<64x128xf32>
    %175 = tpu.matmul %174, %34, %cst_69 {dimension_numbers = #tpu.dot_dimension_numbers<[1], [0], [0], [1], [0, 0, 1, 1], [], []>} : vector<64x352xbf16>, vector<352x128xbf16>, vector<64x128xf32> -> vector<64x128xf32>
    %176 = vector.extract_strided_slice %175 {offsets = [0, 0], sizes = [64, 16], strides = [1, 1]} : vector<64x128xf32> to vector<64x16xf32>
    %177 = arith.truncf %176 : vector<64x16xf32> to vector<64x16xbf16>
    %c160 = arith.constant 160 : index
    %c0_70 = arith.constant 0 : index
    %178 = vector.load %arg4[%c160, %c0_70] : memref<256x128xbf16, #tpu.memory_space<vmem>>, vector<16x128xbf16>
    %cst_71 = arith.constant dense<0.000000e+00> : vector<64x128xf32>
    %179 = tpu.matmul %177, %178, %cst_71 {dimension_numbers = #tpu.dot_dimension_numbers<[1], [0], [0], [1], [0, 0, 1, 1], [], []>} : vector<64x16xbf16>, vector<16x128xbf16>, vector<64x128xf32> -> vector<64x128xf32>
    %180 = arith.addf %167, %179 : vector<64x128xf32>
    %181 = vector.extract_strided_slice %35 {offsets = [0, 11], sizes = [64, 1], strides = [1, 1]} : vector<64x16xi32> to vector<64x1xi32>
    %182 = vector.broadcast %181 : vector<64x1xi32> to vector<64x352xi32>
    %183 = arith.cmpi eq, %36, %182 : vector<64x352xi32>
    %cst_72 = arith.constant 1.000000e+00 : f32
    %cst_73 = arith.constant 0.000000e+00 : f32
    %184 = vector.broadcast %cst_72 : f32 to vector<64x352xf32>
    %185 = vector.broadcast %cst_73 : f32 to vector<64x352xf32>
    %186 = arith.select %183, %184, %185 : vector<64x352xi1>, vector<64x352xf32>
    %187 = arith.truncf %186 : vector<64x352xf32> to vector<64x352xbf16>
    %cst_74 = arith.constant dense<0.000000e+00> : vector<64x128xf32>
    %188 = tpu.matmul %187, %34, %cst_74 {dimension_numbers = #tpu.dot_dimension_numbers<[1], [0], [0], [1], [0, 0, 1, 1], [], []>} : vector<64x352xbf16>, vector<352x128xbf16>, vector<64x128xf32> -> vector<64x128xf32>
    %189 = vector.extract_strided_slice %188 {offsets = [0, 0], sizes = [64, 16], strides = [1, 1]} : vector<64x128xf32> to vector<64x16xf32>
    %190 = arith.truncf %189 : vector<64x16xf32> to vector<64x16xbf16>
    %c176 = arith.constant 176 : index
    %c0_75 = arith.constant 0 : index
    %191 = vector.load %arg4[%c176, %c0_75] : memref<256x128xbf16, #tpu.memory_space<vmem>>, vector<16x128xbf16>
    %cst_76 = arith.constant dense<0.000000e+00> : vector<64x128xf32>
    %192 = tpu.matmul %190, %191, %cst_76 {dimension_numbers = #tpu.dot_dimension_numbers<[1], [0], [0], [1], [0, 0, 1, 1], [], []>} : vector<64x16xbf16>, vector<16x128xbf16>, vector<64x128xf32> -> vector<64x128xf32>
    %193 = arith.addf %180, %192 : vector<64x128xf32>
    %194 = vector.extract_strided_slice %35 {offsets = [0, 12], sizes = [64, 1], strides = [1, 1]} : vector<64x16xi32> to vector<64x1xi32>
    %195 = vector.broadcast %194 : vector<64x1xi32> to vector<64x352xi32>
    %196 = arith.cmpi eq, %36, %195 : vector<64x352xi32>
    %cst_77 = arith.constant 1.000000e+00 : f32
    %cst_78 = arith.constant 0.000000e+00 : f32
    %197 = vector.broadcast %cst_77 : f32 to vector<64x352xf32>
    %198 = vector.broadcast %cst_78 : f32 to vector<64x352xf32>
    %199 = arith.select %196, %197, %198 : vector<64x352xi1>, vector<64x352xf32>
    %200 = arith.truncf %199 : vector<64x352xf32> to vector<64x352xbf16>
    %cst_79 = arith.constant dense<0.000000e+00> : vector<64x128xf32>
    %201 = tpu.matmul %200, %34, %cst_79 {dimension_numbers = #tpu.dot_dimension_numbers<[1], [0], [0], [1], [0, 0, 1, 1], [], []>} : vector<64x352xbf16>, vector<352x128xbf16>, vector<64x128xf32> -> vector<64x128xf32>
    %202 = vector.extract_strided_slice %201 {offsets = [0, 0], sizes = [64, 16], strides = [1, 1]} : vector<64x128xf32> to vector<64x16xf32>
    %203 = arith.truncf %202 : vector<64x16xf32> to vector<64x16xbf16>
    %c192 = arith.constant 192 : index
    %c0_80 = arith.constant 0 : index
    %204 = vector.load %arg4[%c192, %c0_80] : memref<256x128xbf16, #tpu.memory_space<vmem>>, vector<16x128xbf16>
    %cst_81 = arith.constant dense<0.000000e+00> : vector<64x128xf32>
    %205 = tpu.matmul %203, %204, %cst_81 {dimension_numbers = #tpu.dot_dimension_numbers<[1], [0], [0], [1], [0, 0, 1, 1], [], []>} : vector<64x16xbf16>, vector<16x128xbf16>, vector<64x128xf32> -> vector<64x128xf32>
    %206 = arith.addf %193, %205 : vector<64x128xf32>
    %207 = vector.extract_strided_slice %35 {offsets = [0, 13], sizes = [64, 1], strides = [1, 1]} : vector<64x16xi32> to vector<64x1xi32>
    %208 = vector.broadcast %207 : vector<64x1xi32> to vector<64x352xi32>
    %209 = arith.cmpi eq, %36, %208 : vector<64x352xi32>
    %cst_82 = arith.constant 1.000000e+00 : f32
    %cst_83 = arith.constant 0.000000e+00 : f32
    %210 = vector.broadcast %cst_82 : f32 to vector<64x352xf32>
    %211 = vector.broadcast %cst_83 : f32 to vector<64x352xf32>
    %212 = arith.select %209, %210, %211 : vector<64x352xi1>, vector<64x352xf32>
    %213 = arith.truncf %212 : vector<64x352xf32> to vector<64x352xbf16>
    %cst_84 = arith.constant dense<0.000000e+00> : vector<64x128xf32>
    %214 = tpu.matmul %213, %34, %cst_84 {dimension_numbers = #tpu.dot_dimension_numbers<[1], [0], [0], [1], [0, 0, 1, 1], [], []>} : vector<64x352xbf16>, vector<352x128xbf16>, vector<64x128xf32> -> vector<64x128xf32>
    %215 = vector.extract_strided_slice %214 {offsets = [0, 0], sizes = [64, 16], strides = [1, 1]} : vector<64x128xf32> to vector<64x16xf32>
    %216 = arith.truncf %215 : vector<64x16xf32> to vector<64x16xbf16>
    %c208 = arith.constant 208 : index
    %c0_85 = arith.constant 0 : index
    %217 = vector.load %arg4[%c208, %c0_85] : memref<256x128xbf16, #tpu.memory_space<vmem>>, vector<16x128xbf16>
    %cst_86 = arith.constant dense<0.000000e+00> : vector<64x128xf32>
    %218 = tpu.matmul %216, %217, %cst_86 {dimension_numbers = #tpu.dot_dimension_numbers<[1], [0], [0], [1], [0, 0, 1, 1], [], []>} : vector<64x16xbf16>, vector<16x128xbf16>, vector<64x128xf32> -> vector<64x128xf32>
    %219 = arith.addf %206, %218 : vector<64x128xf32>
    %220 = vector.extract_strided_slice %35 {offsets = [0, 14], sizes = [64, 1], strides = [1, 1]} : vector<64x16xi32> to vector<64x1xi32>
    %221 = vector.broadcast %220 : vector<64x1xi32> to vector<64x352xi32>
    %222 = arith.cmpi eq, %36, %221 : vector<64x352xi32>
    %cst_87 = arith.constant 1.000000e+00 : f32
    %cst_88 = arith.constant 0.000000e+00 : f32
    %223 = vector.broadcast %cst_87 : f32 to vector<64x352xf32>
    %224 = vector.broadcast %cst_88 : f32 to vector<64x352xf32>
    %225 = arith.select %222, %223, %224 : vector<64x352xi1>, vector<64x352xf32>
    %226 = arith.truncf %225 : vector<64x352xf32> to vector<64x352xbf16>
    %cst_89 = arith.constant dense<0.000000e+00> : vector<64x128xf32>
    %227 = tpu.matmul %226, %34, %cst_89 {dimension_numbers = #tpu.dot_dimension_numbers<[1], [0], [0], [1], [0, 0, 1, 1], [], []>} : vector<64x352xbf16>, vector<352x128xbf16>, vector<64x128xf32> -> vector<64x128xf32>
    %228 = vector.extract_strided_slice %227 {offsets = [0, 0], sizes = [64, 16], strides = [1, 1]} : vector<64x128xf32> to vector<64x16xf32>
    %229 = arith.truncf %228 : vector<64x16xf32> to vector<64x16xbf16>
    %c224 = arith.constant 224 : index
    %c0_90 = arith.constant 0 : index
    %230 = vector.load %arg4[%c224, %c0_90] : memref<256x128xbf16, #tpu.memory_space<vmem>>, vector<16x128xbf16>
    %cst_91 = arith.constant dense<0.000000e+00> : vector<64x128xf32>
    %231 = tpu.matmul %229, %230, %cst_91 {dimension_numbers = #tpu.dot_dimension_numbers<[1], [0], [0], [1], [0, 0, 1, 1], [], []>} : vector<64x16xbf16>, vector<16x128xbf16>, vector<64x128xf32> -> vector<64x128xf32>
    %232 = arith.addf %219, %231 : vector<64x128xf32>
    %233 = vector.extract_strided_slice %35 {offsets = [0, 15], sizes = [64, 1], strides = [1, 1]} : vector<64x16xi32> to vector<64x1xi32>
    %234 = vector.broadcast %233 : vector<64x1xi32> to vector<64x352xi32>
    %235 = arith.cmpi eq, %36, %234 : vector<64x352xi32>
    %cst_92 = arith.constant 1.000000e+00 : f32
    %cst_93 = arith.constant 0.000000e+00 : f32
    %236 = vector.broadcast %cst_92 : f32 to vector<64x352xf32>
    %237 = vector.broadcast %cst_93 : f32 to vector<64x352xf32>
    %238 = arith.select %235, %236, %237 : vector<64x352xi1>, vector<64x352xf32>
    %239 = arith.truncf %238 : vector<64x352xf32> to vector<64x352xbf16>
    %cst_94 = arith.constant dense<0.000000e+00> : vector<64x128xf32>
    %240 = tpu.matmul %239, %34, %cst_94 {dimension_numbers = #tpu.dot_dimension_numbers<[1], [0], [0], [1], [0, 0, 1, 1], [], []>} : vector<64x352xbf16>, vector<352x128xbf16>, vector<64x128xf32> -> vector<64x128xf32>
    %241 = vector.extract_strided_slice %240 {offsets = [0, 0], sizes = [64, 16], strides = [1, 1]} : vector<64x128xf32> to vector<64x16xf32>
    %242 = arith.truncf %241 : vector<64x16xf32> to vector<64x16xbf16>
    %c240 = arith.constant 240 : index
    %c0_95 = arith.constant 0 : index
    %243 = vector.load %arg4[%c240, %c0_95] : memref<256x128xbf16, #tpu.memory_space<vmem>>, vector<16x128xbf16>
    %cst_96 = arith.constant dense<0.000000e+00> : vector<64x128xf32>
    %244 = tpu.matmul %242, %243, %cst_96 {dimension_numbers = #tpu.dot_dimension_numbers<[1], [0], [0], [1], [0, 0, 1, 1], [], []>} : vector<64x16xbf16>, vector<16x128xbf16>, vector<64x128xf32> -> vector<64x128xf32>
    %245 = arith.addf %232, %244 : vector<64x128xf32>
    %c0_97 = arith.constant 0 : index
    %c0_98 = arith.constant 0 : index
    %246 = vector.load %arg5[%c0_97, %c0_98] : memref<2x128xf32, #tpu.memory_space<vmem>>, vector<2x128xf32>
    %cst_99 = arith.constant dense<0.000000e+00> : vector<128xf32>
    %247 = vector.multi_reduction <add>, %245, %cst_99 [0] : vector<64x128xf32> to vector<128xf32>
    %248 = vector.shape_cast %247 : vector<128xf32> to vector<1x128xf32>
    %249 = arith.mulf %245, %245 : vector<64x128xf32>
    %cst_100 = arith.constant dense<0.000000e+00> : vector<128xf32>
    %250 = vector.multi_reduction <add>, %249, %cst_100 [0] : vector<64x128xf32> to vector<128xf32>
    %251 = vector.shape_cast %250 : vector<128xf32> to vector<1x128xf32>
    %cst_101 = arith.constant 2.000000e-02 : f32
    %252 = vector.broadcast %cst_101 : f32 to vector<1x128xf32>
    %253 = arith.mulf %248, %252 : vector<1x128xf32>
    %cst_102 = arith.constant 2.000000e-02 : f32
    %254 = vector.broadcast %cst_102 : f32 to vector<1x128xf32>
    %255 = arith.mulf %251, %254 : vector<1x128xf32>
    %256 = arith.mulf %253, %253 : vector<1x128xf32>
    %257 = arith.subf %255, %256 : vector<1x128xf32>
    %cst_103 = arith.constant 0.000000e+00 : f32
    %258 = vector.broadcast %cst_103 : f32 to vector<1x128xf32>
    %259 = arith.maximumf %257, %258 : vector<1x128xf32>
    %260 = vector.extract_strided_slice %246 {offsets = [0, 0], sizes = [1, 128], strides = [1, 1]} : vector<2x128xf32> to vector<1x128xf32>
    %cst_104 = arith.constant 9.99999974E-6 : f32
    %261 = vector.broadcast %cst_104 : f32 to vector<1x128xf32>
    %262 = arith.addf %259, %261 : vector<1x128xf32>
    %263 = math.rsqrt %262 : vector<1x128xf32>
    %264 = arith.mulf %260, %263 : vector<1x128xf32>
    %265 = vector.extract_strided_slice %246 {offsets = [1, 0], sizes = [1, 128], strides = [1, 1]} : vector<2x128xf32> to vector<1x128xf32>
    %266 = arith.mulf %253, %264 : vector<1x128xf32>
    %267 = arith.subf %265, %266 : vector<1x128xf32>
    %268 = vector.broadcast %264 : vector<1x128xf32> to vector<64x128xf32>
    %269 = arith.mulf %245, %268 : vector<64x128xf32>
    %270 = vector.broadcast %267 : vector<1x128xf32> to vector<64x128xf32>
    %271 = arith.addf %269, %270 : vector<64x128xf32>
    %cst_105 = arith.constant 0.000000e+00 : f32
    %272 = vector.broadcast %cst_105 : f32 to vector<64x128xf32>
    %273 = arith.cmpf ogt, %271, %272 : vector<64x128xf32>
    %cst_106 = arith.constant 2.000000e-01 : f32
    %274 = vector.broadcast %cst_106 : f32 to vector<64x128xf32>
    %275 = arith.mulf %274, %271 : vector<64x128xf32>
    %276 = arith.select %273, %271, %275 : vector<64x128xi1>, vector<64x128xf32>
    %277 = arith.truncf %276 : vector<64x128xf32> to vector<64x128xbf16>
    %c0_107 = arith.constant 0 : index
    %c0_108 = arith.constant 0 : index
    %278 = vector.load %arg6[%c0_107, %c0_108] : memref<8x16xi32, #tpu.memory_space<vmem>>, vector<8x16xi32>
    %279 = tpu.iota {dimensions = array<i32: 1>} : vector<8x64xi32>
    %cst_109 = arith.constant 0.000000e+00 : f32
    %280 = vector.broadcast %cst_109 : f32 to vector<8x128xf32>
    %281 = vector.extract_strided_slice %278 {offsets = [0, 0], sizes = [8, 1], strides = [1, 1]} : vector<8x16xi32> to vector<8x1xi32>
    %282 = vector.broadcast %281 : vector<8x1xi32> to vector<8x64xi32>
    %283 = arith.cmpi eq, %279, %282 : vector<8x64xi32>
    %cst_110 = arith.constant 1.000000e+00 : f32
    %cst_111 = arith.constant 0.000000e+00 : f32
    %284 = vector.broadcast %cst_110 : f32 to vector<8x64xf32>
    %285 = vector.broadcast %cst_111 : f32 to vector<8x64xf32>
    %286 = arith.select %283, %284, %285 : vector<8x64xi1>, vector<8x64xf32>
    %287 = arith.truncf %286 : vector<8x64xf32> to vector<8x64xbf16>
    %cst_112 = arith.constant dense<0.000000e+00> : vector<8x128xf32>
    %288 = tpu.matmul %287, %277, %cst_112 {dimension_numbers = #tpu.dot_dimension_numbers<[1], [0], [0], [1], [0, 0, 1, 1], [], []>} : vector<8x64xbf16>, vector<64x128xbf16>, vector<8x128xf32> -> vector<8x128xf32>
    %289 = vector.extract_strided_slice %288 {offsets = [0, 0], sizes = [8, 32], strides = [1, 1]} : vector<8x128xf32> to vector<8x32xf32>
    %290 = arith.truncf %289 : vector<8x32xf32> to vector<8x32xbf16>
    %c0_113 = arith.constant 0 : index
    %c0_114 = arith.constant 0 : index
    %291 = vector.load %arg7[%c0_113, %c0_114] : memref<512x128xbf16, #tpu.memory_space<vmem>>, vector<32x128xbf16>
    %cst_115 = arith.constant dense<0.000000e+00> : vector<8x128xf32>
    %292 = tpu.matmul %290, %291, %cst_115 {dimension_numbers = #tpu.dot_dimension_numbers<[1], [0], [0], [1], [0, 0, 1, 1], [], []>} : vector<8x32xbf16>, vector<32x128xbf16>, vector<8x128xf32> -> vector<8x128xf32>
    %293 = arith.addf %280, %292 : vector<8x128xf32>
    %294 = vector.extract_strided_slice %278 {offsets = [0, 1], sizes = [8, 1], strides = [1, 1]} : vector<8x16xi32> to vector<8x1xi32>
    %295 = vector.broadcast %294 : vector<8x1xi32> to vector<8x64xi32>
    %296 = arith.cmpi eq, %279, %295 : vector<8x64xi32>
    %cst_116 = arith.constant 1.000000e+00 : f32
    %cst_117 = arith.constant 0.000000e+00 : f32
    %297 = vector.broadcast %cst_116 : f32 to vector<8x64xf32>
    %298 = vector.broadcast %cst_117 : f32 to vector<8x64xf32>
    %299 = arith.select %296, %297, %298 : vector<8x64xi1>, vector<8x64xf32>
    %300 = arith.truncf %299 : vector<8x64xf32> to vector<8x64xbf16>
    %cst_118 = arith.constant dense<0.000000e+00> : vector<8x128xf32>
    %301 = tpu.matmul %300, %277, %cst_118 {dimension_numbers = #tpu.dot_dimension_numbers<[1], [0], [0], [1], [0, 0, 1, 1], [], []>} : vector<8x64xbf16>, vector<64x128xbf16>, vector<8x128xf32> -> vector<8x128xf32>
    %302 = vector.extract_strided_slice %301 {offsets = [0, 0], sizes = [8, 32], strides = [1, 1]} : vector<8x128xf32> to vector<8x32xf32>
    %303 = arith.truncf %302 : vector<8x32xf32> to vector<8x32xbf16>
    %c32_119 = arith.constant 32 : index
    %c0_120 = arith.constant 0 : index
    %304 = vector.load %arg7[%c32_119, %c0_120] : memref<512x128xbf16, #tpu.memory_space<vmem>>, vector<32x128xbf16>
    %cst_121 = arith.constant dense<0.000000e+00> : vector<8x128xf32>
    %305 = tpu.matmul %303, %304, %cst_121 {dimension_numbers = #tpu.dot_dimension_numbers<[1], [0], [0], [1], [0, 0, 1, 1], [], []>} : vector<8x32xbf16>, vector<32x128xbf16>, vector<8x128xf32> -> vector<8x128xf32>
    %306 = arith.addf %293, %305 : vector<8x128xf32>
    %307 = vector.extract_strided_slice %278 {offsets = [0, 2], sizes = [8, 1], strides = [1, 1]} : vector<8x16xi32> to vector<8x1xi32>
    %308 = vector.broadcast %307 : vector<8x1xi32> to vector<8x64xi32>
    %309 = arith.cmpi eq, %279, %308 : vector<8x64xi32>
    %cst_122 = arith.constant 1.000000e+00 : f32
    %cst_123 = arith.constant 0.000000e+00 : f32
    %310 = vector.broadcast %cst_122 : f32 to vector<8x64xf32>
    %311 = vector.broadcast %cst_123 : f32 to vector<8x64xf32>
    %312 = arith.select %309, %310, %311 : vector<8x64xi1>, vector<8x64xf32>
    %313 = arith.truncf %312 : vector<8x64xf32> to vector<8x64xbf16>
    %cst_124 = arith.constant dense<0.000000e+00> : vector<8x128xf32>
    %314 = tpu.matmul %313, %277, %cst_124 {dimension_numbers = #tpu.dot_dimension_numbers<[1], [0], [0], [1], [0, 0, 1, 1], [], []>} : vector<8x64xbf16>, vector<64x128xbf16>, vector<8x128xf32> -> vector<8x128xf32>
    %315 = vector.extract_strided_slice %314 {offsets = [0, 0], sizes = [8, 32], strides = [1, 1]} : vector<8x128xf32> to vector<8x32xf32>
    %316 = arith.truncf %315 : vector<8x32xf32> to vector<8x32xbf16>
    %c64_125 = arith.constant 64 : index
    %c0_126 = arith.constant 0 : index
    %317 = vector.load %arg7[%c64_125, %c0_126] : memref<512x128xbf16, #tpu.memory_space<vmem>>, vector<32x128xbf16>
    %cst_127 = arith.constant dense<0.000000e+00> : vector<8x128xf32>
    %318 = tpu.matmul %316, %317, %cst_127 {dimension_numbers = #tpu.dot_dimension_numbers<[1], [0], [0], [1], [0, 0, 1, 1], [], []>} : vector<8x32xbf16>, vector<32x128xbf16>, vector<8x128xf32> -> vector<8x128xf32>
    %319 = arith.addf %306, %318 : vector<8x128xf32>
    %320 = vector.extract_strided_slice %278 {offsets = [0, 3], sizes = [8, 1], strides = [1, 1]} : vector<8x16xi32> to vector<8x1xi32>
    %321 = vector.broadcast %320 : vector<8x1xi32> to vector<8x64xi32>
    %322 = arith.cmpi eq, %279, %321 : vector<8x64xi32>
    %cst_128 = arith.constant 1.000000e+00 : f32
    %cst_129 = arith.constant 0.000000e+00 : f32
    %323 = vector.broadcast %cst_128 : f32 to vector<8x64xf32>
    %324 = vector.broadcast %cst_129 : f32 to vector<8x64xf32>
    %325 = arith.select %322, %323, %324 : vector<8x64xi1>, vector<8x64xf32>
    %326 = arith.truncf %325 : vector<8x64xf32> to vector<8x64xbf16>
    %cst_130 = arith.constant dense<0.000000e+00> : vector<8x128xf32>
    %327 = tpu.matmul %326, %277, %cst_130 {dimension_numbers = #tpu.dot_dimension_numbers<[1], [0], [0], [1], [0, 0, 1, 1], [], []>} : vector<8x64xbf16>, vector<64x128xbf16>, vector<8x128xf32> -> vector<8x128xf32>
    %328 = vector.extract_strided_slice %327 {offsets = [0, 0], sizes = [8, 32], strides = [1, 1]} : vector<8x128xf32> to vector<8x32xf32>
    %329 = arith.truncf %328 : vector<8x32xf32> to vector<8x32xbf16>
    %c96_131 = arith.constant 96 : index
    %c0_132 = arith.constant 0 : index
    %330 = vector.load %arg7[%c96_131, %c0_132] : memref<512x128xbf16, #tpu.memory_space<vmem>>, vector<32x128xbf16>
    %cst_133 = arith.constant dense<0.000000e+00> : vector<8x128xf32>
    %331 = tpu.matmul %329, %330, %cst_133 {dimension_numbers = #tpu.dot_dimension_numbers<[1], [0], [0], [1], [0, 0, 1, 1], [], []>} : vector<8x32xbf16>, vector<32x128xbf16>, vector<8x128xf32> -> vector<8x128xf32>
    %332 = arith.addf %319, %331 : vector<8x128xf32>
    %333 = vector.extract_strided_slice %278 {offsets = [0, 4], sizes = [8, 1], strides = [1, 1]} : vector<8x16xi32> to vector<8x1xi32>
    %334 = vector.broadcast %333 : vector<8x1xi32> to vector<8x64xi32>
    %335 = arith.cmpi eq, %279, %334 : vector<8x64xi32>
    %cst_134 = arith.constant 1.000000e+00 : f32
    %cst_135 = arith.constant 0.000000e+00 : f32
    %336 = vector.broadcast %cst_134 : f32 to vector<8x64xf32>
    %337 = vector.broadcast %cst_135 : f32 to vector<8x64xf32>
    %338 = arith.select %335, %336, %337 : vector<8x64xi1>, vector<8x64xf32>
    %339 = arith.truncf %338 : vector<8x64xf32> to vector<8x64xbf16>
    %cst_136 = arith.constant dense<0.000000e+00> : vector<8x128xf32>
    %340 = tpu.matmul %339, %277, %cst_136 {dimension_numbers = #tpu.dot_dimension_numbers<[1], [0], [0], [1], [0, 0, 1, 1], [], []>} : vector<8x64xbf16>, vector<64x128xbf16>, vector<8x128xf32> -> vector<8x128xf32>
    %341 = vector.extract_strided_slice %340 {offsets = [0, 0], sizes = [8, 32], strides = [1, 1]} : vector<8x128xf32> to vector<8x32xf32>
    %342 = arith.truncf %341 : vector<8x32xf32> to vector<8x32xbf16>
    %c128_137 = arith.constant 128 : index
    %c0_138 = arith.constant 0 : index
    %343 = vector.load %arg7[%c128_137, %c0_138] : memref<512x128xbf16, #tpu.memory_space<vmem>>, vector<32x128xbf16>
    %cst_139 = arith.constant dense<0.000000e+00> : vector<8x128xf32>
    %344 = tpu.matmul %342, %343, %cst_139 {dimension_numbers = #tpu.dot_dimension_numbers<[1], [0], [0], [1], [0, 0, 1, 1], [], []>} : vector<8x32xbf16>, vector<32x128xbf16>, vector<8x128xf32> -> vector<8x128xf32>
    %345 = arith.addf %332, %344 : vector<8x128xf32>
    %346 = vector.extract_strided_slice %278 {offsets = [0, 5], sizes = [8, 1], strides = [1, 1]} : vector<8x16xi32> to vector<8x1xi32>
    %347 = vector.broadcast %346 : vector<8x1xi32> to vector<8x64xi32>
    %348 = arith.cmpi eq, %279, %347 : vector<8x64xi32>
    %cst_140 = arith.constant 1.000000e+00 : f32
    %cst_141 = arith.constant 0.000000e+00 : f32
    %349 = vector.broadcast %cst_140 : f32 to vector<8x64xf32>
    %350 = vector.broadcast %cst_141 : f32 to vector<8x64xf32>
    %351 = arith.select %348, %349, %350 : vector<8x64xi1>, vector<8x64xf32>
    %352 = arith.truncf %351 : vector<8x64xf32> to vector<8x64xbf16>
    %cst_142 = arith.constant dense<0.000000e+00> : vector<8x128xf32>
    %353 = tpu.matmul %352, %277, %cst_142 {dimension_numbers = #tpu.dot_dimension_numbers<[1], [0], [0], [1], [0, 0, 1, 1], [], []>} : vector<8x64xbf16>, vector<64x128xbf16>, vector<8x128xf32> -> vector<8x128xf32>
    %354 = vector.extract_strided_slice %353 {offsets = [0, 0], sizes = [8, 32], strides = [1, 1]} : vector<8x128xf32> to vector<8x32xf32>
    %355 = arith.truncf %354 : vector<8x32xf32> to vector<8x32xbf16>
    %c160_143 = arith.constant 160 : index
    %c0_144 = arith.constant 0 : index
    %356 = vector.load %arg7[%c160_143, %c0_144] : memref<512x128xbf16, #tpu.memory_space<vmem>>, vector<32x128xbf16>
    %cst_145 = arith.constant dense<0.000000e+00> : vector<8x128xf32>
    %357 = tpu.matmul %355, %356, %cst_145 {dimension_numbers = #tpu.dot_dimension_numbers<[1], [0], [0], [1], [0, 0, 1, 1], [], []>} : vector<8x32xbf16>, vector<32x128xbf16>, vector<8x128xf32> -> vector<8x128xf32>
    %358 = arith.addf %345, %357 : vector<8x128xf32>
    %359 = vector.extract_strided_slice %278 {offsets = [0, 6], sizes = [8, 1], strides = [1, 1]} : vector<8x16xi32> to vector<8x1xi32>
    %360 = vector.broadcast %359 : vector<8x1xi32> to vector<8x64xi32>
    %361 = arith.cmpi eq, %279, %360 : vector<8x64xi32>
    %cst_146 = arith.constant 1.000000e+00 : f32
    %cst_147 = arith.constant 0.000000e+00 : f32
    %362 = vector.broadcast %cst_146 : f32 to vector<8x64xf32>
    %363 = vector.broadcast %cst_147 : f32 to vector<8x64xf32>
    %364 = arith.select %361, %362, %363 : vector<8x64xi1>, vector<8x64xf32>
    %365 = arith.truncf %364 : vector<8x64xf32> to vector<8x64xbf16>
    %cst_148 = arith.constant dense<0.000000e+00> : vector<8x128xf32>
    %366 = tpu.matmul %365, %277, %cst_148 {dimension_numbers = #tpu.dot_dimension_numbers<[1], [0], [0], [1], [0, 0, 1, 1], [], []>} : vector<8x64xbf16>, vector<64x128xbf16>, vector<8x128xf32> -> vector<8x128xf32>
    %367 = vector.extract_strided_slice %366 {offsets = [0, 0], sizes = [8, 32], strides = [1, 1]} : vector<8x128xf32> to vector<8x32xf32>
    %368 = arith.truncf %367 : vector<8x32xf32> to vector<8x32xbf16>
    %c192_149 = arith.constant 192 : index
    %c0_150 = arith.constant 0 : index
    %369 = vector.load %arg7[%c192_149, %c0_150] : memref<512x128xbf16, #tpu.memory_space<vmem>>, vector<32x128xbf16>
    %cst_151 = arith.constant dense<0.000000e+00> : vector<8x128xf32>
    %370 = tpu.matmul %368, %369, %cst_151 {dimension_numbers = #tpu.dot_dimension_numbers<[1], [0], [0], [1], [0, 0, 1, 1], [], []>} : vector<8x32xbf16>, vector<32x128xbf16>, vector<8x128xf32> -> vector<8x128xf32>
    %371 = arith.addf %358, %370 : vector<8x128xf32>
    %372 = vector.extract_strided_slice %278 {offsets = [0, 7], sizes = [8, 1], strides = [1, 1]} : vector<8x16xi32> to vector<8x1xi32>
    %373 = vector.broadcast %372 : vector<8x1xi32> to vector<8x64xi32>
    %374 = arith.cmpi eq, %279, %373 : vector<8x64xi32>
    %cst_152 = arith.constant 1.000000e+00 : f32
    %cst_153 = arith.constant 0.000000e+00 : f32
    %375 = vector.broadcast %cst_152 : f32 to vector<8x64xf32>
    %376 = vector.broadcast %cst_153 : f32 to vector<8x64xf32>
    %377 = arith.select %374, %375, %376 : vector<8x64xi1>, vector<8x64xf32>
    %378 = arith.truncf %377 : vector<8x64xf32> to vector<8x64xbf16>
    %cst_154 = arith.constant dense<0.000000e+00> : vector<8x128xf32>
    %379 = tpu.matmul %378, %277, %cst_154 {dimension_numbers = #tpu.dot_dimension_numbers<[1], [0], [0], [1], [0, 0, 1, 1], [], []>} : vector<8x64xbf16>, vector<64x128xbf16>, vector<8x128xf32> -> vector<8x128xf32>
    %380 = vector.extract_strided_slice %379 {offsets = [0, 0], sizes = [8, 32], strides = [1, 1]} : vector<8x128xf32> to vector<8x32xf32>
    %381 = arith.truncf %380 : vector<8x32xf32> to vector<8x32xbf16>
    %c224_155 = arith.constant 224 : index
    %c0_156 = arith.constant 0 : index
    %382 = vector.load %arg7[%c224_155, %c0_156] : memref<512x128xbf16, #tpu.memory_space<vmem>>, vector<32x128xbf16>
    %cst_157 = arith.constant dense<0.000000e+00> : vector<8x128xf32>
    %383 = tpu.matmul %381, %382, %cst_157 {dimension_numbers = #tpu.dot_dimension_numbers<[1], [0], [0], [1], [0, 0, 1, 1], [], []>} : vector<8x32xbf16>, vector<32x128xbf16>, vector<8x128xf32> -> vector<8x128xf32>
    %384 = arith.addf %371, %383 : vector<8x128xf32>
    %385 = vector.extract_strided_slice %278 {offsets = [0, 8], sizes = [8, 1], strides = [1, 1]} : vector<8x16xi32> to vector<8x1xi32>
    %386 = vector.broadcast %385 : vector<8x1xi32> to vector<8x64xi32>
    %387 = arith.cmpi eq, %279, %386 : vector<8x64xi32>
    %cst_158 = arith.constant 1.000000e+00 : f32
    %cst_159 = arith.constant 0.000000e+00 : f32
    %388 = vector.broadcast %cst_158 : f32 to vector<8x64xf32>
    %389 = vector.broadcast %cst_159 : f32 to vector<8x64xf32>
    %390 = arith.select %387, %388, %389 : vector<8x64xi1>, vector<8x64xf32>
    %391 = arith.truncf %390 : vector<8x64xf32> to vector<8x64xbf16>
    %cst_160 = arith.constant dense<0.000000e+00> : vector<8x128xf32>
    %392 = tpu.matmul %391, %277, %cst_160 {dimension_numbers = #tpu.dot_dimension_numbers<[1], [0], [0], [1], [0, 0, 1, 1], [], []>} : vector<8x64xbf16>, vector<64x128xbf16>, vector<8x128xf32> -> vector<8x128xf32>
    %393 = vector.extract_strided_slice %392 {offsets = [0, 0], sizes = [8, 32], strides = [1, 1]} : vector<8x128xf32> to vector<8x32xf32>
    %394 = arith.truncf %393 : vector<8x32xf32> to vector<8x32xbf16>
    %c256 = arith.constant 256 : index
    %c0_161 = arith.constant 0 : index
    %395 = vector.load %arg7[%c256, %c0_161] : memref<512x128xbf16, #tpu.memory_space<vmem>>, vector<32x128xbf16>
    %cst_162 = arith.constant dense<0.000000e+00> : vector<8x128xf32>
    %396 = tpu.matmul %394, %395, %cst_162 {dimension_numbers = #tpu.dot_dimension_numbers<[1], [0], [0], [1], [0, 0, 1, 1], [], []>} : vector<8x32xbf16>, vector<32x128xbf16>, vector<8x128xf32> -> vector<8x128xf32>
    %397 = arith.addf %384, %396 : vector<8x128xf32>
    %398 = vector.extract_strided_slice %278 {offsets = [0, 9], sizes = [8, 1], strides = [1, 1]} : vector<8x16xi32> to vector<8x1xi32>
    %399 = vector.broadcast %398 : vector<8x1xi32> to vector<8x64xi32>
    %400 = arith.cmpi eq, %279, %399 : vector<8x64xi32>
    %cst_163 = arith.constant 1.000000e+00 : f32
    %cst_164 = arith.constant 0.000000e+00 : f32
    %401 = vector.broadcast %cst_163 : f32 to vector<8x64xf32>
    %402 = vector.broadcast %cst_164 : f32 to vector<8x64xf32>
    %403 = arith.select %400, %401, %402 : vector<8x64xi1>, vector<8x64xf32>
    %404 = arith.truncf %403 : vector<8x64xf32> to vector<8x64xbf16>
    %cst_165 = arith.constant dense<0.000000e+00> : vector<8x128xf32>
    %405 = tpu.matmul %404, %277, %cst_165 {dimension_numbers = #tpu.dot_dimension_numbers<[1], [0], [0], [1], [0, 0, 1, 1], [], []>} : vector<8x64xbf16>, vector<64x128xbf16>, vector<8x128xf32> -> vector<8x128xf32>
    %406 = vector.extract_strided_slice %405 {offsets = [0, 0], sizes = [8, 32], strides = [1, 1]} : vector<8x128xf32> to vector<8x32xf32>
    %407 = arith.truncf %406 : vector<8x32xf32> to vector<8x32xbf16>
    %c288 = arith.constant 288 : index
    %c0_166 = arith.constant 0 : index
    %408 = vector.load %arg7[%c288, %c0_166] : memref<512x128xbf16, #tpu.memory_space<vmem>>, vector<32x128xbf16>
    %cst_167 = arith.constant dense<0.000000e+00> : vector<8x128xf32>
    %409 = tpu.matmul %407, %408, %cst_167 {dimension_numbers = #tpu.dot_dimension_numbers<[1], [0], [0], [1], [0, 0, 1, 1], [], []>} : vector<8x32xbf16>, vector<32x128xbf16>, vector<8x128xf32> -> vector<8x128xf32>
    %410 = arith.addf %397, %409 : vector<8x128xf32>
    %411 = vector.extract_strided_slice %278 {offsets = [0, 10], sizes = [8, 1], strides = [1, 1]} : vector<8x16xi32> to vector<8x1xi32>
    %412 = vector.broadcast %411 : vector<8x1xi32> to vector<8x64xi32>
    %413 = arith.cmpi eq, %279, %412 : vector<8x64xi32>
    %cst_168 = arith.constant 1.000000e+00 : f32
    %cst_169 = arith.constant 0.000000e+00 : f32
    %414 = vector.broadcast %cst_168 : f32 to vector<8x64xf32>
    %415 = vector.broadcast %cst_169 : f32 to vector<8x64xf32>
    %416 = arith.select %413, %414, %415 : vector<8x64xi1>, vector<8x64xf32>
    %417 = arith.truncf %416 : vector<8x64xf32> to vector<8x64xbf16>
    %cst_170 = arith.constant dense<0.000000e+00> : vector<8x128xf32>
    %418 = tpu.matmul %417, %277, %cst_170 {dimension_numbers = #tpu.dot_dimension_numbers<[1], [0], [0], [1], [0, 0, 1, 1], [], []>} : vector<8x64xbf16>, vector<64x128xbf16>, vector<8x128xf32> -> vector<8x128xf32>
    %419 = vector.extract_strided_slice %418 {offsets = [0, 0], sizes = [8, 32], strides = [1, 1]} : vector<8x128xf32> to vector<8x32xf32>
    %420 = arith.truncf %419 : vector<8x32xf32> to vector<8x32xbf16>
    %c320 = arith.constant 320 : index
    %c0_171 = arith.constant 0 : index
    %421 = vector.load %arg7[%c320, %c0_171] : memref<512x128xbf16, #tpu.memory_space<vmem>>, vector<32x128xbf16>
    %cst_172 = arith.constant dense<0.000000e+00> : vector<8x128xf32>
    %422 = tpu.matmul %420, %421, %cst_172 {dimension_numbers = #tpu.dot_dimension_numbers<[1], [0], [0], [1], [0, 0, 1, 1], [], []>} : vector<8x32xbf16>, vector<32x128xbf16>, vector<8x128xf32> -> vector<8x128xf32>
    %423 = arith.addf %410, %422 : vector<8x128xf32>
    %424 = vector.extract_strided_slice %278 {offsets = [0, 11], sizes = [8, 1], strides = [1, 1]} : vector<8x16xi32> to vector<8x1xi32>
    %425 = vector.broadcast %424 : vector<8x1xi32> to vector<8x64xi32>
    %426 = arith.cmpi eq, %279, %425 : vector<8x64xi32>
    %cst_173 = arith.constant 1.000000e+00 : f32
    %cst_174 = arith.constant 0.000000e+00 : f32
    %427 = vector.broadcast %cst_173 : f32 to vector<8x64xf32>
    %428 = vector.broadcast %cst_174 : f32 to vector<8x64xf32>
    %429 = arith.select %426, %427, %428 : vector<8x64xi1>, vector<8x64xf32>
    %430 = arith.truncf %429 : vector<8x64xf32> to vector<8x64xbf16>
    %cst_175 = arith.constant dense<0.000000e+00> : vector<8x128xf32>
    %431 = tpu.matmul %430, %277, %cst_175 {dimension_numbers = #tpu.dot_dimension_numbers<[1], [0], [0], [1], [0, 0, 1, 1], [], []>} : vector<8x64xbf16>, vector<64x128xbf16>, vector<8x128xf32> -> vector<8x128xf32>
    %432 = vector.extract_strided_slice %431 {offsets = [0, 0], sizes = [8, 32], strides = [1, 1]} : vector<8x128xf32> to vector<8x32xf32>
    %433 = arith.truncf %432 : vector<8x32xf32> to vector<8x32xbf16>
    %c352 = arith.constant 352 : index
    %c0_176 = arith.constant 0 : index
    %434 = vector.load %arg7[%c352, %c0_176] : memref<512x128xbf16, #tpu.memory_space<vmem>>, vector<32x128xbf16>
    %cst_177 = arith.constant dense<0.000000e+00> : vector<8x128xf32>
    %435 = tpu.matmul %433, %434, %cst_177 {dimension_numbers = #tpu.dot_dimension_numbers<[1], [0], [0], [1], [0, 0, 1, 1], [], []>} : vector<8x32xbf16>, vector<32x128xbf16>, vector<8x128xf32> -> vector<8x128xf32>
    %436 = arith.addf %423, %435 : vector<8x128xf32>
    %437 = vector.extract_strided_slice %278 {offsets = [0, 12], sizes = [8, 1], strides = [1, 1]} : vector<8x16xi32> to vector<8x1xi32>
    %438 = vector.broadcast %437 : vector<8x1xi32> to vector<8x64xi32>
    %439 = arith.cmpi eq, %279, %438 : vector<8x64xi32>
    %cst_178 = arith.constant 1.000000e+00 : f32
    %cst_179 = arith.constant 0.000000e+00 : f32
    %440 = vector.broadcast %cst_178 : f32 to vector<8x64xf32>
    %441 = vector.broadcast %cst_179 : f32 to vector<8x64xf32>
    %442 = arith.select %439, %440, %441 : vector<8x64xi1>, vector<8x64xf32>
    %443 = arith.truncf %442 : vector<8x64xf32> to vector<8x64xbf16>
    %cst_180 = arith.constant dense<0.000000e+00> : vector<8x128xf32>
    %444 = tpu.matmul %443, %277, %cst_180 {dimension_numbers = #tpu.dot_dimension_numbers<[1], [0], [0], [1], [0, 0, 1, 1], [], []>} : vector<8x64xbf16>, vector<64x128xbf16>, vector<8x128xf32> -> vector<8x128xf32>
    %445 = vector.extract_strided_slice %444 {offsets = [0, 0], sizes = [8, 32], strides = [1, 1]} : vector<8x128xf32> to vector<8x32xf32>
    %446 = arith.truncf %445 : vector<8x32xf32> to vector<8x32xbf16>
    %c384 = arith.constant 384 : index
    %c0_181 = arith.constant 0 : index
    %447 = vector.load %arg7[%c384, %c0_181] : memref<512x128xbf16, #tpu.memory_space<vmem>>, vector<32x128xbf16>
    %cst_182 = arith.constant dense<0.000000e+00> : vector<8x128xf32>
    %448 = tpu.matmul %446, %447, %cst_182 {dimension_numbers = #tpu.dot_dimension_numbers<[1], [0], [0], [1], [0, 0, 1, 1], [], []>} : vector<8x32xbf16>, vector<32x128xbf16>, vector<8x128xf32> -> vector<8x128xf32>
    %449 = arith.addf %436, %448 : vector<8x128xf32>
    %450 = vector.extract_strided_slice %278 {offsets = [0, 13], sizes = [8, 1], strides = [1, 1]} : vector<8x16xi32> to vector<8x1xi32>
    %451 = vector.broadcast %450 : vector<8x1xi32> to vector<8x64xi32>
    %452 = arith.cmpi eq, %279, %451 : vector<8x64xi32>
    %cst_183 = arith.constant 1.000000e+00 : f32
    %cst_184 = arith.constant 0.000000e+00 : f32
    %453 = vector.broadcast %cst_183 : f32 to vector<8x64xf32>
    %454 = vector.broadcast %cst_184 : f32 to vector<8x64xf32>
    %455 = arith.select %452, %453, %454 : vector<8x64xi1>, vector<8x64xf32>
    %456 = arith.truncf %455 : vector<8x64xf32> to vector<8x64xbf16>
    %cst_185 = arith.constant dense<0.000000e+00> : vector<8x128xf32>
    %457 = tpu.matmul %456, %277, %cst_185 {dimension_numbers = #tpu.dot_dimension_numbers<[1], [0], [0], [1], [0, 0, 1, 1], [], []>} : vector<8x64xbf16>, vector<64x128xbf16>, vector<8x128xf32> -> vector<8x128xf32>
    %458 = vector.extract_strided_slice %457 {offsets = [0, 0], sizes = [8, 32], strides = [1, 1]} : vector<8x128xf32> to vector<8x32xf32>
    %459 = arith.truncf %458 : vector<8x32xf32> to vector<8x32xbf16>
    %c416 = arith.constant 416 : index
    %c0_186 = arith.constant 0 : index
    %460 = vector.load %arg7[%c416, %c0_186] : memref<512x128xbf16, #tpu.memory_space<vmem>>, vector<32x128xbf16>
    %cst_187 = arith.constant dense<0.000000e+00> : vector<8x128xf32>
    %461 = tpu.matmul %459, %460, %cst_187 {dimension_numbers = #tpu.dot_dimension_numbers<[1], [0], [0], [1], [0, 0, 1, 1], [], []>} : vector<8x32xbf16>, vector<32x128xbf16>, vector<8x128xf32> -> vector<8x128xf32>
    %462 = arith.addf %449, %461 : vector<8x128xf32>
    %463 = vector.extract_strided_slice %278 {offsets = [0, 14], sizes = [8, 1], strides = [1, 1]} : vector<8x16xi32> to vector<8x1xi32>
    %464 = vector.broadcast %463 : vector<8x1xi32> to vector<8x64xi32>
    %465 = arith.cmpi eq, %279, %464 : vector<8x64xi32>
    %cst_188 = arith.constant 1.000000e+00 : f32
    %cst_189 = arith.constant 0.000000e+00 : f32
    %466 = vector.broadcast %cst_188 : f32 to vector<8x64xf32>
    %467 = vector.broadcast %cst_189 : f32 to vector<8x64xf32>
    %468 = arith.select %465, %466, %467 : vector<8x64xi1>, vector<8x64xf32>
    %469 = arith.truncf %468 : vector<8x64xf32> to vector<8x64xbf16>
    %cst_190 = arith.constant dense<0.000000e+00> : vector<8x128xf32>
    %470 = tpu.matmul %469, %277, %cst_190 {dimension_numbers = #tpu.dot_dimension_numbers<[1], [0], [0], [1], [0, 0, 1, 1], [], []>} : vector<8x64xbf16>, vector<64x128xbf16>, vector<8x128xf32> -> vector<8x128xf32>
    %471 = vector.extract_strided_slice %470 {offsets = [0, 0], sizes = [8, 32], strides = [1, 1]} : vector<8x128xf32> to vector<8x32xf32>
    %472 = arith.truncf %471 : vector<8x32xf32> to vector<8x32xbf16>
    %c448 = arith.constant 448 : index
    %c0_191 = arith.constant 0 : index
    %473 = vector.load %arg7[%c448, %c0_191] : memref<512x128xbf16, #tpu.memory_space<vmem>>, vector<32x128xbf16>
    %cst_192 = arith.constant dense<0.000000e+00> : vector<8x128xf32>
    %474 = tpu.matmul %472, %473, %cst_192 {dimension_numbers = #tpu.dot_dimension_numbers<[1], [0], [0], [1], [0, 0, 1, 1], [], []>} : vector<8x32xbf16>, vector<32x128xbf16>, vector<8x128xf32> -> vector<8x128xf32>
    %475 = arith.addf %462, %474 : vector<8x128xf32>
    %476 = vector.extract_strided_slice %278 {offsets = [0, 15], sizes = [8, 1], strides = [1, 1]} : vector<8x16xi32> to vector<8x1xi32>
    %477 = vector.broadcast %476 : vector<8x1xi32> to vector<8x64xi32>
    %478 = arith.cmpi eq, %279, %477 : vector<8x64xi32>
    %cst_193 = arith.constant 1.000000e+00 : f32
    %cst_194 = arith.constant 0.000000e+00 : f32
    %479 = vector.broadcast %cst_193 : f32 to vector<8x64xf32>
    %480 = vector.broadcast %cst_194 : f32 to vector<8x64xf32>
    %481 = arith.select %478, %479, %480 : vector<8x64xi1>, vector<8x64xf32>
    %482 = arith.truncf %481 : vector<8x64xf32> to vector<8x64xbf16>
    %cst_195 = arith.constant dense<0.000000e+00> : vector<8x128xf32>
    %483 = tpu.matmul %482, %277, %cst_195 {dimension_numbers = #tpu.dot_dimension_numbers<[1], [0], [0], [1], [0, 0, 1, 1], [], []>} : vector<8x64xbf16>, vector<64x128xbf16>, vector<8x128xf32> -> vector<8x128xf32>
    %484 = vector.extract_strided_slice %483 {offsets = [0, 0], sizes = [8, 32], strides = [1, 1]} : vector<8x128xf32> to vector<8x32xf32>
    %485 = arith.truncf %484 : vector<8x32xf32> to vector<8x32xbf16>
    %c480 = arith.constant 480 : index
    %c0_196 = arith.constant 0 : index
    %486 = vector.load %arg7[%c480, %c0_196] : memref<512x128xbf16, #tpu.memory_space<vmem>>, vector<32x128xbf16>
    %cst_197 = arith.constant dense<0.000000e+00> : vector<8x128xf32>
    %487 = tpu.matmul %485, %486, %cst_197 {dimension_numbers = #tpu.dot_dimension_numbers<[1], [0], [0], [1], [0, 0, 1, 1], [], []>} : vector<8x32xbf16>, vector<32x128xbf16>, vector<8x128xf32> -> vector<8x128xf32>
    %488 = arith.addf %475, %487 : vector<8x128xf32>
    %c0_198 = arith.constant 0 : index
    %c0_199 = arith.constant 0 : index
    %489 = vector.load %arg8[%c0_198, %c0_199] : memref<1x128xf32, #tpu.memory_space<vmem>>, vector<1x128xf32>
    %490 = vector.broadcast %489 : vector<1x128xf32> to vector<8x128xf32>
    %491 = arith.addf %488, %490 : vector<8x128xf32>
    %c0_200 = arith.constant 0 : index
    %c0_201 = arith.constant 0 : index
    %492 = vector.load %arg9[%c0_200, %c0_201] : memref<8x128xf32, #tpu.memory_space<vmem>>, vector<8x128xf32>
    tpu.vector_store %arg9[%c0_200, %c0_201], %491 {strides = array<i32>} : memref<8x128xf32, #tpu.memory_space<vmem>>, vector<8x128xf32>,
    return
  }
}

</mosaic_0001>

<bundles_post_ra>
// kernel: dcgan_discriminator_forward.1
= control target key start
LH: loop header
LB: loop body
LE: loop exit
PB: predicated region body
PF: predicated region fallthrough
CT: control target
= control target key end

     0   :  { %v14766_v30 = vmov 0   ;;  %v14765_v39 = vmov 1   ;;  %v14764_v40 = vmov 2   ;;  %v14762_v55 = vmov 3   ;;  %s14752_s1 = inlined_call_operand.vmem [shape: bf16[128,128], index: 1, kind: input, shape index: {}]   ;;  %s14753_s0 = inlined_call_operand.vmem [shape: bf16[352,128], index: 0, kind: input, shape index: {}]   ;;  %s14754_s3 = inlined_call_operand.vmem [shape: s32[64,16], index: 3, kind: input, shape index: {}]   ;;  %s14755_s2 = inlined_call_operand.vmem [shape: f32[2,128], index: 2, kind: input, shape index: {}]   ;;  %s14756_s4 = inlined_call_operand.vmem [shape: bf16[256,128], index: 4, kind: input, shape index: {}]   ;;  %s14757_s6 = inlined_call_operand.vmem [shape: s32[8,16], index: 6, kind: input, shape index: {}]   ;;  %s14758_s7 = inlined_call_operand.vmem [shape: bf16[512,128], index: 7, kind: input, shape index: {}]   ;;  %s14759_s5 = inlined_call_operand.vmem [shape: f32[2,128], index: 5, kind: input, shape index: {}]   ;;  %s14760_s8 = inlined_call_operand.vmem [shape: f32[1,128], index: 8, kind: input, shape index: {}]   ;;  %s14761_s9 = inlined_call_operand.vmem [shape: f32[8,128], index: 9, kind: output, shape index: {}]  }
   0x1   :  { %v10509_v0 = vld [vmem:[%s14752_s1] sm:$0xff]   ;;  %v10510_v1 = vld [vmem:[%s14752_s1 + $0x8] sm:$0xff]   ;;  %v10511_v2 = vld [vmem:[%s14752_s1 + $0x10] sm:$0xff]   ;;  %10461 = vset.pattern.permute.xlu1 %v14766_v30  ;;  %10460 = vset.pattern.permute.xlu0 %v14766_v30  ;;  %vm14798_vm2 = vcmask 785408  }
   0x2   :  { %9461 = vmatprep.subr.bf16.mxu0 %v10509_v0  ;;  %v10512_v3 = vld [vmem:[%s14752_s1 + $0x18] sm:$0xff]   ;;  %v10517_v4 = vld [vmem:[%s14753_s0] sm:$0xff]   ;;  %v10514_v6 = vld [vmem:[%s14752_s1 + $0x28] sm:$0xff]  }
   0x3   :  { %9462 = vmatpush3.bf16.msra.mxu0 %v10509_v0  ;;  %9477 = vmatprep.mubr.bf16.mxu0 %v10517_v4  ;;  %v10513_v5 = vld [vmem:[%s14752_s1 + $0x20] sm:$0xff]   ;;  %v10515_v7 = vld [vmem:[%s14752_s1 + $0x30] sm:$0xff]   ;;  %v10516_v8 = vld [vmem:[%s14752_s1 + $0x38] sm:$0xff]  }
   0x4   :  { %9463 = vmatprep.subr.bf16.mxu0 %v10510_v1  ;;  %v10518_v9 = vld [vmem:[%s14753_s0 + $0x8] sm:$0xff]   ;;  %v10519_v10 = vld [vmem:[%s14753_s0 + $0x10] sm:$0xff]   ;;  %v10520_v11 = vld [vmem:[%s14753_s0 + $0x18] sm:$0xff]  }
   0x5   :  { %v10521_v12 = vld [vmem:[%s14753_s0 + $0x20] sm:$0xff]   ;;  %v10522_v13 = vld [vmem:[%s14753_s0 + $0x28] sm:$0xff]   ;;  %v10523_v14 = vld [vmem:[%s14753_s0 + $0x30] sm:$0xff]  }
   0x6   :  { %v10524_v15 = vld [vmem:[%s14753_s0 + $0x38] sm:$0xff]   ;;  %v10525_v16 = vld [vmem:[%s14753_s0 + $0x40] sm:$0xff]   ;;  %v10526_v17 = vld [vmem:[%s14753_s0 + $0x48] sm:$0xff]  }
   0x7   :  { %9464 = vmatpush3.bf16.msra.mxu0 %v10510_v1  ;;  %v10527_v18 = vld [vmem:[%s14753_s0 + $0x50] sm:$0xff]   ;;  %v10528_v19 = vld [vmem:[%s14753_s0 + $0x58] sm:$0xff]   ;;  %v10529_v20 = vld [vmem:[%s14753_s0 + $0x60] sm:$0xff]  }
   0x8   :  { %9465 = vmatprep.subr.bf16.mxu0 %v10511_v2  ;;  %v10530_v21 = vld [vmem:[%s14753_s0 + $0x68] sm:$0xff]   ;;  %v10531_v22 = vld [vmem:[%s14753_s0 + $0x70] sm:$0xff]   ;;  %v10532_v23 = vld [vmem:[%s14753_s0 + $0x78] sm:$0xff]  }
   0x9   :  { %v10533_v24 = vld [vmem:[%s14753_s0 + $0x80] sm:$0xff]   ;;  %v10534_v25 = vld [vmem:[%s14753_s0 + $0x88] sm:$0xff]   ;;  %v10535_v26 = vld [vmem:[%s14753_s0 + $0x90] sm:$0xff]  }
   0xa   :  { %v10536_v27 = vld [vmem:[%s14753_s0 + $0x98] sm:$0xff]   ;;  %v10537_v28 = vld [vmem:[%s14753_s0 + $0xa0] sm:$0xff]   ;;  %v10538_v29 = vld [vmem:[%s14753_s0 + $0xa8] sm:$0xff]  }
   0xb   :  { %9466 = vmatpush3.bf16.msra.mxu0 %v10511_v2  ;;  %v10779_v31 = vld [vmem:[%s14754_s3 + $0x10] sm:$0xff]  ;;  %v10784_v32 = vld [vmem:[%s14754_s3] sm:$0xff]  ;;  %v10791_v33 = vld [vmem:[%s14754_s3 + $0x18] sm:$0xff] }
   0xc   :  { %9467 = vmatprep.subr.bf16.mxu0 %v10512_v3  ;;  %907 = vperm.xlu1 %10461, %v10779_v31   ;;  %v10796_v34 = vld [vmem:[%s14754_s3 + $0x8] sm:$0xff]  ;;  %v10808_v36 = vld [vmem:[%s14754_s3 + $0x20] sm:$0xff]  ;;  %v10815_v37 = vld [vmem:[%s14754_s3 + $0x38] sm:$0xff] }
   0xd   :  { %901 = vperm.xlu0 %10460, %v10784_v32   ;;  %v10803_v35 = vld [vmem:[%s14754_s3 + $0x28] sm:$0xff]  ;;  %v10820_v38 = vld [vmem:[%s14754_s3 + $0x30] sm:$0xff] }
   0xf   :  { %9468 = vmatpush3.bf16.msra.mxu0 %v10512_v3 }
  0x10   :  { %9469 = vmatprep.subr.bf16.mxu0 %v10513_v5  ;;  %910 = vperm.xlu1 %10461, %v10791_v33  }
  0x11   :  { %904 = vperm.xlu0 %10460, %v10796_v34  }
  0x13   :  { %9470 = vmatpush3.bf16.msra.mxu0 %v10513_v5 }
  0x14   :  { %9471 = vmatprep.subr.bf16.mxu0 %v10514_v6  ;;  %916 = vperm.xlu1 %10461, %v10803_v35  }
  0x15   :  { %913 = vperm.xlu0 %10460, %v10808_v36  }
  0x17   :  { %9472 = vmatpush3.bf16.msra.mxu0 %v10514_v6 }
  0x18   :  { %9473 = vmatprep.subr.bf16.mxu0 %v10515_v7  ;;  %922 = vperm.xlu1 %10461, %v10815_v37  }
  0x19   :  { %919 = vperm.xlu0 %10460, %v10820_v38  }
  0x1b   :  { %9474 = vmatpush3.bf16.msra.mxu0 %v10515_v7 }
  0x1c   :  { %9475 = vmatprep.subr.bf16.mxu0 %v10516_v8  ;;  %10463 = vset.pattern.permute.xlu1 %v14765_v39 }
  0x1d   :  { %10462 = vset.pattern.permute.xlu0 %v14765_v39  ;;  %1137 = vperm.xlu1 %10463, %v10796_v34  }
  0x1e   :  { %1134 = vperm.xlu0 %10462, %v10784_v32  }
  0x1f   :  { %9476 = vmatpush3.bf16.msra.mxu0 %v10516_v8 }
  0x21   :  { %1140 = vperm.xlu1 %10463, %v10779_v31  }
  0x22   :  { %9478 = vmatmul.mubr.bf16.vlgmr.msra.gmra.mrb[0].mxu0 %v10518_v9  ;;  %1143 = vperm.xlu0 %10462, %v10791_v33  }
  0x23   :  { %9481 = vmatprep.mubr.bf16.mxu0 %v10519_v10 }
  0x25   :  { %1146 = vperm.xlu1 %10463, %v10808_v36  }
  0x26   :  { %1149 = vperm.xlu0 %10462, %v10803_v35  }
  0x29   :  { %1152 = vperm.xlu1 %10463, %v10820_v38  }
  0x2a   :  { %9482 = vmatmul.mubr.bf16.gmra.mrb[4].mxu0 %v10520_v11  ;;  %1155 = vperm.xlu0 %10462, %v10815_v37  }
  0x2b   :  { %9485 = vmatprep.mubr.bf16.mxu0 %v10521_v12 }
  0x2d   :  { %10464 = vset.pattern.permute.xlu1 %v14764_v40 }
  0x2e   :  { %10465 = vset.pattern.permute.xlu0 %v14764_v40  ;;  %1533 = vperm.xlu1 %10464, %v10784_v32  }
  0x2f   :  { %1536 = vperm.xlu0 %10465, %v10796_v34  }
  0x32   :  { %9486 = vmatmul.mubr.bf16.gmra.mrb[8].mxu0 %v10522_v13  ;;  %1539 = vperm.xlu1 %10464, %v10779_v31  }
  0x33   :  { %9489 = vmatprep.mubr.bf16.mxu0 %v10523_v14  ;;  %1545 = vperm.xlu0 %10465, %v10808_v36  }
  0x36   :  { %1542 = vperm.xlu1 %10464, %v10791_v33  }
  0x37   :  { %1551 = vperm.xlu0 %10465, %v10820_v38  }
  0x3a   :  { %9490 = vmatmul.mubr.bf16.gmra.mrb[12].mxu0 %v10524_v15  ;;  %1548 = vperm.xlu1 %10464, %v10803_v35  }
  0x3b   :  { %9493 = vmatprep.mubr.bf16.mxu0 %v10525_v16  ;;  %10466 = vset.pattern.permute.xlu0 %v14762_v55 }
  0x3c   :  { %1856 = vperm.xlu0 %10466, %v10784_v32  }
  0x3e   :  { %1554 = vperm.xlu1 %10464, %v10815_v37  }
  0x40   :  { %1865 = vperm.xlu0 %10466, %v10791_v33  }
  0x42   :  { %9494 = vmatmul.mubr.bf16.gmra.mrb[16].mxu0 %v10526_v17  ;;  %10467 = vset.pattern.permute.xlu1 %v14762_v55 }
  0x43   :  { %9497 = vmatprep.mubr.bf16.mxu0 %v10527_v18  ;;  %1859 = vperm.xlu1 %10467, %v10796_v34  }
  0x44   :  { %1871 = vperm.xlu0 %10466, %v10803_v35  }
  0x47   :  { %1862 = vperm.xlu1 %10467, %v10779_v31  }
  0x48   :  { %1877 = vperm.xlu0 %10466, %v10815_v37  }
  0x4a   :  { %9498 = vmatmul.mubr.bf16.gmra.mrb[20].mxu0 %v10528_v19 }
  0x4b   :  { %9501 = vmatprep.mubr.bf16.mxu0 %v10529_v20  ;;  %1868 = vperm.xlu1 %10467, %v10808_v36  }
  0x4f   :  { %1874 = vperm.xlu1 %10467, %v10820_v38  }
  0x52   :  { %9502 = vmatmul.mubr.bf16.gmra.mrb[24].mxu0 %v10530_v21 }
  0x53   :  { %9505 = vmatprep.mubr.bf16.mxu0 %v10531_v22 }
  0x5a   :  { %9506 = vmatmul.mubr.bf16.gmra.mrb[28].mxu0 %v10532_v23 }
  0x5b   :  { %9509 = vmatprep.mubr.bf16.mxu0 %v10533_v24 }
  0x62   :  { %9510 = vmatmul.mubr.bf16.gmra.mrb[32].mxu0 %v10534_v25 }
  0x63   :  { %9513 = vmatprep.mubr.bf16.mxu0 %v10535_v26 }
  0x6a   :  { %9514 = vmatmul.mubr.bf16.gmra.mrb[36].mxu0 %v10536_v27 }
  0x6b   :  { %9517 = vmatprep.mubr.bf16.mxu0 %v10537_v28 }
  0x72   :  { %9518 = vmatmul.mubr.bf16.gmra.mrb[40].mxu0 %v10538_v29 }
  0xf5   :  { %v10844_v41 = vpop.f32.mrb[0].mxu0 }
  0xf6   :  { %v10846_v42 = vpop.f32.mrb[1].mxu0  ;;  %v534_v48 = vmul.f32 %v10844_v41, %v10844_v41 }
  0xf7   :  { %v10848_v43 = vpop.f32.mrb[2].mxu0  ;;  %v532_v45 = vmul.f32 %v10846_v42, %v10846_v42 }
  0xf8   :  { %v10850_v44 = vpop.f32.mrb[3].mxu0  ;;  %v535_v51 = vmul.f32 %v10848_v43, %v10848_v43 }
  0xf9   :  { %v483_v46 = vadd.f32 %v10850_v44, %v10846_v42  ;;  %v533_v47 = vmul.f32 %v10850_v44, %v10850_v44 }
  0xfb   :  { %v484_v49 = vadd.f32 %v10844_v41, %v483_v46  ;;  %v576_v50 = vadd.f32 %v533_v47, %v532_v45 }
  0xfd   :  { %v577_v52 = vadd.f32 %v576_v50, %v534_v48  ;;  %v10863_v53 = vpop.f32.mrb[4].mxu0  ;;  %v485_v54 = vadd.f32 %v10848_v43, %v484_v49 }
  0xfe   :  { %v10868_v56 = vpop.f32.mrb[5].mxu0  ;;  %v538_v1 = vmul.f32 %v10863_v53, %v10863_v53 }
  0xff   :  { %v486_v57 = vadd.f32 %v485_v54, %v10868_v56  ;;  %v536_v58 = vmul.f32 %v10868_v56, %v10868_v56  ;;  %v578_v59 = vadd.f32 %v577_v52, %v535_v51  ;;  %v10875_v60 = vpop.f32.mrb[6].mxu0 }
 0x100   :  { %v10877_v61 = vpop.f32.mrb[7].mxu0  ;;  %v539_v4 = vmul.f32 %v10875_v60, %v10875_v60 }
 0x101   :  { %v579_v62 = vadd.f32 %v578_v59, %v536_v58  ;;  %v487_v63 = vadd.f32 %v486_v57, %v10877_v61  ;;  %v537_v0 = vmul.f32 %v10877_v61, %v10877_v61 }
 0x103   :  { %v488_v2 = vadd.f32 %v10863_v53, %v487_v63  ;;  %v580_v3 = vadd.f32 %v579_v62, %v537_v0 }
 0x105   :  { %v581_v5 = vadd.f32 %v580_v3, %v538_v1  ;;  %v10889_v6 = vpop.f32.mrb[8].mxu0  ;;  %v489_v7 = vadd.f32 %v10875_v60, %v488_v2 }
 0x106   :  { %v10892_v8 = vpop.f32.mrb[9].mxu0  ;;  %v542_v17 = vmul.f32 %v10889_v6, %v10889_v6 }
 0x107   :  { %v490_v9 = vadd.f32 %v489_v7, %v10892_v8  ;;  %v540_v10 = vmul.f32 %v10892_v8, %v10892_v8  ;;  %v582_v11 = vadd.f32 %v581_v5, %v539_v4  ;;  %v10899_v12 = vpop.f32.mrb[10].mxu0 }
 0x108   :  { %v10901_v13 = vpop.f32.mrb[11].mxu0  ;;  %v543_v20 = vmul.f32 %v10899_v12, %v10899_v12 }
 0x109   :  { %v583_v14 = vadd.f32 %v582_v11, %v540_v10  ;;  %v491_v15 = vadd.f32 %v490_v9, %v10901_v13  ;;  %v541_v16 = vmul.f32 %v10901_v13, %v10901_v13 }
 0x10b   :  { %v492_v18 = vadd.f32 %v10889_v6, %v491_v15  ;;  %v584_v19 = vadd.f32 %v583_v14, %v541_v16 }
 0x10d   :  { %v585_v21 = vadd.f32 %v584_v19, %v542_v17  ;;  %v10913_v22 = vpop.f32.mrb[12].mxu0  ;;  %v493_v23 = vadd.f32 %v10899_v12, %v492_v18 }
 0x10e   :  { %v10916_v24 = vpop.f32.mrb[13].mxu0  ;;  %v546_v48 = vmul.f32 %v10913_v22, %v10913_v22 }
 0x10f   :  { %v494_v25 = vadd.f32 %v493_v23, %v10916_v24  ;;  %v544_v26 = vmul.f32 %v10916_v24, %v10916_v24  ;;  %v586_v27 = vadd.f32 %v585_v21, %v543_v20  ;;  %v10921_v28 = vpop.f32.mrb[14].mxu0 }
 0x110   :  { %v10923_v29 = vpop.f32.mrb[15].mxu0  ;;  %v547_v51 = vmul.f32 %v10921_v28, %v10921_v28 }
 0x111   :  { %v587_v45 = vadd.f32 %v586_v27, %v544_v26  ;;  %v495_v46 = vadd.f32 %v494_v25, %v10923_v29  ;;  %v545_v47 = vmul.f32 %v10923_v29, %v10923_v29 }
 0x113   :  { %v496_v49 = vadd.f32 %v10913_v22, %v495_v46  ;;  %v588_v50 = vadd.f32 %v587_v45, %v545_v47 }
 0x115   :  { %v589_v52 = vadd.f32 %v588_v50, %v546_v48  ;;  %v10933_v54 = vpop.f32.mrb[16].mxu0  ;;  %v497_v57 = vadd.f32 %v10921_v28, %v496_v49 }
 0x116   :  { %v10936_v58 = vpop.f32.mrb[17].mxu0  ;;  %v550_v5 = vmul.f32 %v10933_v54, %v10933_v54 }
 0x117   :  { %v498_v59 = vadd.f32 %v497_v57, %v10936_v58  ;;  %v548_v62 = vmul.f32 %v10936_v58, %v10936_v58  ;;  %v590_v63 = vadd.f32 %v589_v52, %v547_v51  ;;  %v10941_v0 = vpop.f32.mrb[18].mxu0 }
 0x118   :  { %v10943_v1 = vpop.f32.mrb[19].mxu0  ;;  %v551_v10 = vmul.f32 %v10941_v0, %v10941_v0 }
 0x119   :  { %v591_v2 = vadd.f32 %v590_v63, %v548_v62  ;;  %v499_v3 = vadd.f32 %v498_v59, %v10943_v1  ;;  %v549_v4 = vmul.f32 %v10943_v1, %v10943_v1  ;;  %v14763_v63 = vmov 4  }
 0x11a   :  { %10468 = vset.pattern.permute.xlu1 %v14763_v63  ;;  %10469 = vset.pattern.permute.xlu0 %v14763_v63 }
 0x11b   :  { %v500_v7 = vadd.f32 %v10933_v54, %v499_v3  ;;  %v592_v9 = vadd.f32 %v591_v2, %v549_v4  ;;  %2179 = vperm.xlu1 %10468, %v10784_v32   ;;  %2182 = vperm.xlu0 %10469, %v10796_v34  }
 0x11d   :  { %v593_v11 = vadd.f32 %v592_v9, %v550_v5  ;;  %v10953_v14 = vpop.f32.mrb[20].mxu0  ;;  %v501_v15 = vadd.f32 %v10941_v0, %v500_v7 }
 0x11e   :  { %v10956_v16 = vpop.f32.mrb[21].mxu0  ;;  %v554_v27 = vmul.f32 %v10953_v14, %v10953_v14 }
 0x11f   :  { %v502_v17 = vadd.f32 %v501_v15, %v10956_v16  ;;  %v552_v18 = vmul.f32 %v10956_v16, %v10956_v16  ;;  %v594_v19 = vadd.f32 %v593_v11, %v551_v10  ;;  %v10961_v20 = vpop.f32.mrb[22].mxu0  ;;  %2185 = vperm.xlu1 %10468, %v10779_v31   ;;  %2191 = vperm.xlu0 %10469, %v10808_v36  }
 0x120   :  { %v10963_v21 = vpop.f32.mrb[23].mxu0  ;;  %v555_v47 = vmul.f32 %v10961_v20, %v10961_v20 }
 0x121   :  { %v595_v23 = vadd.f32 %v594_v19, %v552_v18  ;;  %v503_v25 = vadd.f32 %v502_v17, %v10963_v21  ;;  %v553_v26 = vmul.f32 %v10963_v21, %v10963_v21 }
 0x123   :  { %v504_v45 = vadd.f32 %v10953_v14, %v503_v25  ;;  %v596_v46 = vadd.f32 %v595_v23, %v553_v26  ;;  %2188 = vperm.xlu1 %10468, %v10791_v33   ;;  %2197 = vperm.xlu0 %10469, %v10820_v38  }
 0x125   :  { %v597_v48 = vadd.f32 %v596_v46, %v554_v27  ;;  %v10973_v49 = vpop.f32.mrb[24].mxu0  ;;  %v505_v50 = vadd.f32 %v10961_v20, %v504_v45 }
 0x126   :  { %v10976_v51 = vpop.f32.mrb[25].mxu0  ;;  %v558_v7 = vmul.f32 %v10973_v49, %v10973_v49 }
 0x127   :  { %v506_v52 = vadd.f32 %v505_v50, %v10976_v51  ;;  %v556_v57 = vmul.f32 %v10976_v51, %v10976_v51  ;;  %v598_v59 = vadd.f32 %v597_v48, %v555_v47  ;;  %v10981_v62 = vpop.f32.mrb[26].mxu0  ;;  %v11016_v50 = vpop.permute.xlu1 %907  ;;  %2194 = vperm.xlu1 %10468, %v10803_v35  }
 0x128   :  { %v10985_v2 = vpop.f32.mrb[27].mxu0  ;;  %v559_v11 = vmul.f32 %v10981_v62, %v10981_v62  ;;  %14973 = vst [vmem:[#allocation2_spill] sm:$0xff] %v11016_v50 }
 0x129   :  { %v599_v3 = vadd.f32 %v598_v59, %v556_v57  ;;  %v507_v4 = vadd.f32 %v506_v52, %v10985_v2  ;;  %v557_v5 = vmul.f32 %v10985_v2, %v10985_v2  ;;  %v11018_v52 = vpop.permute.xlu0 %901 }
 0x12a   :  { %14974 = vst [vmem:[#allocation3_spill] sm:$0xff] %v11018_v52 }
 0x12b   :  { %v508_v9 = vadd.f32 %v10973_v49, %v507_v4  ;;  %v600_v10 = vadd.f32 %v599_v3, %v557_v5  ;;  %2200 = vperm.xlu1 %10468, %v10815_v37  }
 0x12d   :  { %v601_v15 = vadd.f32 %v600_v10, %v558_v7  ;;  %v10999_v17 = vpop.f32.mrb[28].mxu0  ;;  %v509_v18 = vadd.f32 %v10981_v62, %v508_v9  ;;  %v11029_v10 = vpop.permute.xlu1 %910 }
 0x12e   :  { %v11002_v19 = vpop.f32.mrb[29].mxu0  ;;  %v562_v57 = vmul.f32 %v10999_v17, %v10999_v17  ;;  %14976 = vst [vmem:[#allocation5_spill] sm:$0xff] %v11029_v10 }
 0x12f   :  { %v510_v23 = vadd.f32 %v509_v18, %v11002_v19  ;;  %v560_v25 = vmul.f32 %v11002_v19, %v11002_v19  ;;  %v602_v26 = vadd.f32 %v601_v15, %v559_v11  ;;  %v11007_v27 = vpop.f32.mrb[30].mxu0  ;;  %v11033_v15 = vpop.permute.xlu0 %904 }
 0x130   :  { %v11009_v45 = vpop.f32.mrb[31].mxu0  ;;  %v563_v4 = vmul.f32 %v11007_v27, %v11007_v27  ;;  %14977 = vst [vmem:[#allocation6_spill] sm:$0xff] %v11033_v15 }
 0x131   :  { %v603_v46 = vadd.f32 %v602_v26, %v560_v25  ;;  %v511_v47 = vadd.f32 %v510_v23, %v11009_v45  ;;  %v561_v48 = vmul.f32 %v11009_v45, %v11009_v45 }
 0x133   :  { %v512_v59 = vadd.f32 %v10999_v17, %v511_v47  ;;  %v604_v3 = vadd.f32 %v603_v46, %v561_v48  ;;  %v14767_v47 = vlaneseq  ;;  %v11051_v55 = vpop.permute.xlu0 %913 }
 0x134   :  { %14982 = vst [vmem:[#allocation11_spill] sm:$0xff] %v11051_v55 }
 0x135   :  { %v605_v5 = vadd.f32 %v604_v3, %v562_v57  ;;  %v11026_v7 = vpop.f32.mrb[32].mxu0  ;;  %v513_v9 = vadd.f32 %v11007_v27, %v512_v59  ;;  %v11046_v3 = vpop.permute.xlu1 %916 }
 0x136   :  { %14975 = vst [vmem:[#allocation4_spill] sm:$0xff] %v11026_v7  ;;  %v11031_v11 = vpop.f32.mrb[33].mxu0  ;;  %14980 = vst [vmem:[#allocation9_spill] sm:$0xff] %v11046_v3 }
 0x137   :  { %v514_v18 = vadd.f32 %v513_v9, %v11031_v11  ;;  %v564_v23 = vmul.f32 %v11031_v11, %v11031_v11  ;;  %v606_v25 = vadd.f32 %v605_v5, %v563_v4  ;;  %v11038_v26 = vpop.f32.mrb[34].mxu0  ;;  %v11049_v9 = vand.u32 127, %v14767_v47  ;;  %v11068_v3 = vpop.permute.xlu0 %919 }
 0x138   :  { %14978 = vst [vmem:[#allocation7_spill] sm:$0xff] %v11038_v26  ;;  %v11040_v46 = vpop.f32.mrb[35].mxu0  ;;  %v566_v4 = vmul.f32 %v11026_v7, %v11026_v7  ;;  %14987 = vst [vmem:[#allocation16_spill] sm:$0xff] %v11068_v3 }
 0x139   :  { %14979 = vst [vmem:[#allocation8_spill] sm:$0xff] %v11040_v46  ;;  %v607_v48 = vadd.f32 %v606_v25, %v564_v23  ;;  %v515_v57 = vadd.f32 %v514_v18, %v11040_v46  ;;  %v565_v59 = vmul.f32 %v11040_v46, %v11040_v46  ;;  %14981 = vst [vmem:[#allocation10_spill] sm:$0xff] %v11049_v9  ;;  %v11061_v39 = vpop.permute.xlu1 %922  ;;  %v11066_v47 = vadd.s32 256, %v11049_v9 }
 0x13a   :  { %v567_v23 = vmul.f32 %v11038_v26, %v11038_v26  ;;  %14984 = vst [vmem:[#allocation13_spill] sm:$0xff] %v11061_v39  ;;  %v14801_v46 = vmov 5  }
 0x13b   :  { %v516_v5 = vadd.f32 %v11026_v7, %v515_v57  ;;  %v608_v63 = vadd.f32 %v607_v48, %v565_v59  ;;  %14986 = vst [vmem:[#allocation15_spill] sm:$0xff] %v11066_v47  ;;  %v11087_v3 = vpop.permute.xlu0 %1134  ;;  %10471 = vset.pattern.permute.xlu1 %v14801_v46  ;;  %10470 = vset.pattern.permute.xlu0 %v14801_v46 }
 0x13c   :  { %14991 = vst [vmem:[#allocation20_spill] sm:$0xff] %v11087_v3  ;;  %vm1159_vm1 = vcmp.eq.s32.totalorder %v11066_v47, %v11087_v3  ;;  %2505 = vperm.xlu1 %10471, %v10796_v34   ;;  %2502 = vperm.xlu0 %10470, %v10784_v32   ;;  %v14994_v32 = vlaneseq }
 0x13d   :  { %v609_v18 = vadd.f32 %v608_v63, %v566_v4  ;;  %v11058_v25 = vpop.f32.mrb[36].mxu0  ;;  %v517_v40 = vadd.f32 %v11038_v26, %v516_v5  ;;  %v11080_v10 = vpop.permute.xlu1 %1137 }
 0x13e   :  { %14983 = vst [vmem:[#allocation12_spill] sm:$0xff] %v11058_v25  ;;  %v11063_v30 = vpop.f32.mrb[37].mxu0  ;;  %14990 = vst [vmem:[#allocation19_spill] sm:$0xff] %v11080_v10  ;;  %vm1162_vm0 = vcmp.eq.s32.totalorder %v11066_v47, %v11080_v10  ;;  %v14784_v10 = vmov 0.0   ;;  %v11131_v34 = vshrl.u32 %v14994_v32, 7 }
 0x13f   :  { %14985 = vst [vmem:[#allocation14_spill] sm:$0xff] %v11063_v30  ;;  %v518_v57 = vadd.f32 %v517_v40, %v11063_v30  ;;  %v568_v48 = vmul.f32 %v11063_v30, %v11063_v30  ;;  %v610_v59 = vadd.f32 %v609_v18, %v567_v23  ;;  %v11073_v63 = vpop.f32.mrb[38].mxu0  ;;  %v570_v40 = vmul.f32 %v11058_v25, %v11058_v25 }
 0x140   :  { %14988 = vst [vmem:[#allocation17_spill] sm:$0xff] %v11073_v63  ;;  %v11075_v4 = vpop.f32.mrb[39].mxu0  ;;  %v1183_v30 = vsel %vm1159_vm1, 1.0, %v14784_v10  ;;  %2508 = vperm.xlu1 %10471, %v10779_v31   ;;  %2511 = vperm.xlu0 %10470, %v10791_v33   ;;  %14995 = vst [vmem:[#allocation23_spill] sm:$0xff] %v11131_v34  ;;  %v482_v31 = vld [vmem:[%s14755_s2] sm:$0x3] }
 0x141   :  { %14989 = vst [vmem:[#allocation18_spill] sm:$0xff] %v11075_v4  ;;  %v611_v5 = vadd.f32 %v610_v59, %v568_v48  ;;  %v519_v39 = vadd.f32 %v518_v57, %v11075_v4  ;;  %v569_v55 = vmul.f32 %v11075_v4, %v11075_v4  ;;  %v571_v48 = vmul.f32 %v11073_v63, %v11073_v63 }
 0x142   :  { %v1186_v4 = vsel %vm1162_vm0, 1.0, %v14784_v10  ;;  %v11107_v10 = vadd.s32 128, %v11049_v9  ;;  %v14800_v33 = vsub.s32 0, %v11131_v34 }
 0x143   :  { %v520_v23 = vadd.f32 %v11058_v25, %v519_v39  ;;  %v612_v18 = vadd.f32 %v611_v5, %v569_v55 }
 0x144   :  { %14993 = vst [vmem:[#allocation22_spill] sm:$0xff] %v11107_v10  ;;  %vm925_vm3 = vcmp.eq.s32.totalorder %v11107_v10, %v11018_v52  ;;  %vm928_vm4 = vcmp.eq.s32.totalorder %v11107_v10, %v11033_v15  ;;  %2514 = vperm.xlu1 %10471, %v10808_v36   ;;  %2517 = vperm.xlu0 %10470, %v10803_v35  }
 0x145   :  { %v613_v57 = vadd.f32 %v612_v18, %v570_v40  ;;  %v11093_v59 = vpop.f32.mrb[40].mxu0  ;;  %v521_v50 = vadd.f32 %v11073_v63, %v520_v23  ;;  %v1207_v18 = vpack.c.bf16 %v1186_v4, %v1183_v30  ;;  %vm7958_vm5 = vmpackc.low %vm928_vm4, %vm925_vm3 }
 0x146   :  { %14992 = vst [vmem:[#allocation21_spill] sm:$0xff] %v11093_v59  ;;  %v11098_v39 = vpop.f32.mrb[41].mxu0 }
 0x147   :  { %v522_v55 = vadd.f32 %v521_v50, %v11098_v39  ;;  %v572_v5 = vmul.f32 %v11098_v39, %v11098_v39  ;;  %v614_v25 = vadd.f32 %v613_v57, %v571_v48  ;;  %v11103_v26 = vpop.f32.mrb[42].mxu0  ;;  %9553 = vmatprep.mubr.msk.bf16.mxu0 %vm14798_vm2, %v1207_v18  ;;  %v574_v50 = vmul.f32 %v11093_v59, %v11093_v59 }
 0x148   :  { %v470_v40 = vpop.f32.mrb[43].mxu0  ;;  %v575_v30 = vmul.f32 %v11103_v26, %v11103_v26  ;;  %v14802_v48 = vmov 1.0|1.0   ;;  %2520 = vperm.xlu1 %10471, %v10820_v38   ;;  %2523 = vperm.xlu0 %10470, %v10815_v37  }
 0x149   :  { %v615_v3 = vadd.f32 %v614_v25, %v572_v5  ;;  %v523_v23 = vadd.f32 %v522_v55, %v470_v40  ;;  %v573_v47 = vmul.f32 %v470_v40, %v470_v40  ;;  %7959 = vmatprep.mubr.msk.bf16.mxu1 %vm7958_vm5, %v14802_v48 }
 0x14b   :  { %v524_v63 = vadd.f32 %v11093_v59, %v523_v23  ;;  %v616_v7 = vadd.f32 %v615_v3, %v573_v47 }
 0x14d   :  { %v525_v25 = vadd.f32 %v11103_v26, %v524_v63  ;;  %v617_v4 = vadd.f32 %v616_v7, %v574_v50 }
 0x14f   :  { %v526_v57 = vrot.slane %v525_v25, 4  ;;  %v618_v55 = vadd.f32 %v617_v4, %v575_v30 }
 0x151   :  { %v527_v5 = vadd.f32 %v526_v57, %v525_v25  ;;  %v619_v47 = vrot.slane %v618_v55, 4 }
 0x153   :  { %v528_v3 = vrot.slane %v527_v5, 2  ;;  %v620_v18 = vadd.f32 %v619_v47, %v618_v55 }
 0x155   :  { %v529_v23 = vadd.f32 %v528_v3, %v527_v5  ;;  %v621_v9 = vrot.slane %v620_v18, 2 }
 0x157   :  { %v530_v52 = vrot.slane %v529_v23, 1  ;;  %v622_v15 = vadd.f32 %v621_v9, %v620_v18 }
 0x159   :  { %v531_v10 = vadd.f32 %v530_v52, %v529_v23  ;;  %v623_v59 = vrot.slane %v622_v15, 1 }
 0x15b   :  { %v624_v7 = vadd.f32 %v623_v59, %v622_v15  ;;  %v625_v63 = vmul.f32 0.00295858, %v531_v10  ;;  %v14799_v59 = vsub.s32 1, %v11131_v34 }
 0x15d   :  { %v626_v50 = vmul.f32 0.00295858, %v624_v7  ;;  %v627_v30 = vmul.f32 %v625_v63, %v625_v63 }
 0x15f   :  { %v628_v9 = vsub.f32 %v626_v50, %v627_v30 }
 0x161   :  { %v629_v52 = vmax.f32 %v628_v9, 0.0 }
 0x163   :  { %v630_v25 = vadd.f32 1e-05, %v629_v52 }
 0x165   :  { %10587 = vrsqrt.f32 %v630_v25 }
 0x16f   :  { %v10588_v10 = vpop.eup %10587 }
 0x170   :  { %v632_v15 = vmul.f32 %v10588_v10, %v482_v31  ;;  %v14998_v10 = vld [vmem:[#allocation4_spill] sm:$0xff] }
 0x172   :  { %v633_v36 = vmul.f32 %v632_v15, %v625_v63  ;;  %v641_v35 = vrot.slane %v632_v15, %v14800_v33  ;;  %v14999_v15 = vld [vmem:[#allocation7_spill] sm:$0xff] }
 0x174   :  { %v635_v38 = vrot.slane %v633_v36, 7  ;;  %v682_v37 = vmul.f32 %v641_v35, %v11098_v39  ;;  %v683_v4 = vmul.f32 %v641_v35, %v470_v40  ;;  %v642_v57 = vmul.f32 %v641_v35, %v10846_v42  ;;  %v15000_v36 = vld [vmem:[#allocation14_spill] sm:$0xff] }
 0x175   :  { %v643_v55 = vmul.f32 %v641_v35, %v10850_v44  ;;  %v644_v5 = vmul.f32 %v10844_v41, %v641_v35  ;;  %v645_v47 = vmul.f32 %v10848_v43, %v641_v35  ;;  %v646_v3 = vmul.f32 %v641_v35, %v10868_v56 }
 0x176   :  { %v637_v18 = vsub.f32 %v482_v31, %v635_v38  ;;  %v647_v23 = vmul.f32 %v641_v35, %v10877_v61  ;;  %v648_v7 = vmul.f32 %v10863_v53, %v641_v35  ;;  %v649_v63 = vmul.f32 %v10875_v60, %v641_v35  ;;  %v14997_v31 = vld [vmem:[#allocation8_spill] sm:$0xff]  ;;  %v15001_v38 = vld [vmem:[#allocation18_spill] sm:$0xff] }
 0x177   :  { %v650_v39 = vmul.f32 %v641_v35, %v10892_v8  ;;  %v651_v40 = vmul.f32 %v641_v35, %v10901_v13  ;;  %v652_v42 = vmul.f32 %v10889_v6, %v641_v35  ;;  %v653_v44 = vmul.f32 %v10899_v12, %v641_v35 }
 0x178   :  { %v11155_v41 = vrot.slane %v637_v18, %v14799_v59  ;;  %v654_v43 = vmul.f32 %v641_v35, %v10916_v24  ;;  %v655_v56 = vmul.f32 %v641_v35, %v10923_v29  ;;  %v656_v53 = vmul.f32 %v10913_v22, %v641_v35  ;;  %v15003_v18 = vld [vmem:[#allocation17_spill] sm:$0xff] }
 0x179   :  { %v657_v60 = vmul.f32 %v10921_v28, %v641_v35  ;;  %v658_v61 = vmul.f32 %v641_v35, %v10936_v58  ;;  %v659_v8 = vmul.f32 %v641_v35, %v10943_v1  ;;  %v660_v6 = vmul.f32 %v10933_v54, %v641_v35 }
 0x17a   :  { %v730_v12 = vadd.f32 %v11155_v41, %v682_v37  ;;  %v731_v13 = vadd.f32 %v11155_v41, %v683_v4  ;;  %v661_v50 = vmul.f32 %v10941_v0, %v641_v35  ;;  %v662_v24 = vmul.f32 %v641_v35, %v10956_v16  ;;  %v15002_v4 = vld [vmem:[#allocation12_spill] sm:$0xff] }
 0x17b   :  { %v663_v29 = vmul.f32 %v641_v35, %v10963_v21  ;;  %v664_v22 = vmul.f32 %v10953_v14, %v641_v35  ;;  %v665_v28 = vmul.f32 %v10961_v20, %v641_v35  ;;  %v666_v58 = vmul.f32 %v641_v35, %v10976_v51 }
 0x17c   :  { %vm774_vm6 = vcmp.gt.f32.partialorder %v730_v12, 0.0  ;;  %vm775_vm7 = vcmp.gt.f32.partialorder %v731_v13, 0.0  ;;  %v818_v1 = vmul.f32 0.2, %v730_v12  ;;  %v819_v54 = vmul.f32 0.2, %v731_v13 }
 0x17d   :  { %v667_v30 = vmul.f32 %v641_v35, %v10985_v2  ;;  %v668_v9 = vmul.f32 %v10973_v49, %v641_v35  ;;  %v669_v0 = vmul.f32 %v10981_v62, %v641_v35  ;;  %v670_v16 = vmul.f32 %v641_v35, %v11002_v19 }
 0x17e   :  { %v862_v52 = vsel %vm774_vm6, %v730_v12, %v818_v1  ;;  %v863_v21 = vsel %vm775_vm7, %v731_v13, %v819_v54  ;;  %v671_v14 = vmul.f32 %v641_v35, %v11009_v45  ;;  %v672_v20 = vmul.f32 %v10999_v17, %v641_v35  ;;  %v15004_v12 = vld [vmem:[#allocation21_spill] sm:$0xff] }
 0x17f   :  { %v11178_v25 = vpack.c.bf16 %v863_v21, %v862_v52  ;;  %v673_v51 = vmul.f32 %v11007_v27, %v641_v35  ;;  %v674_v32 = vmul.f32 %v641_v35, %v11031_v11  ;;  %v675_v2 = vmul.f32 %v641_v35, %v14997_v31 }
 0x180   :  { %v676_v49 = vmul.f32 %v14998_v10, %v641_v35  ;;  %v677_v62 = vmul.f32 %v14999_v15, %v641_v35  ;;  %v678_v19 = vmul.f32 %v641_v35, %v15000_v36  ;;  %v679_v37 = vmul.f32 %v641_v35, %v15001_v38 }
 0x181   :  { %14996 = vst [vmem:[#allocation24_spill] sm:$0xff] %v11178_v25  ;;  %v680_v45 = vmul.f32 %v15002_v4, %v641_v35  ;;  %v681_v17 = vmul.f32 %v15003_v18, %v641_v35  ;;  %v684_v13 = vmul.f32 %v15004_v12, %v641_v35  ;;  %v685_v27 = vmul.f32 %v11103_v26, %v641_v35 }
 0x182   :  { %v11192_v11 = vadd.f32 %v11155_v41, %v642_v57  ;;  %v11195_v1 = vadd.f32 %v11155_v41, %v643_v55  ;;  %v11198_v54 = vadd.f32 %v11155_v41, %v644_v5  ;;  %v11201_v52 = vadd.f32 %v11155_v41, %v645_v47 }
 0x183   :  { %v11204_v21 = vadd.f32 %v11155_v41, %v646_v3  ;;  %v11207_v31 = vadd.f32 %v11155_v41, %v647_v23  ;;  %v11210_v26 = vadd.f32 %v11155_v41, %v648_v7  ;;  %v11213_v35 = vadd.f32 %v11155_v41, %v649_v63 }
 0x184   :  { %v11216_v57 = vadd.f32 %v11155_v41, %v650_v39  ;;  %v11219_v55 = vadd.f32 %v11155_v41, %v651_v40  ;;  %v11222_v5 = vadd.f32 %v11155_v41, %v652_v42  ;;  %v11225_v47 = vadd.f32 %v11155_v41, %v653_v44 }
 0x185   :  { %v11228_v3 = vadd.f32 %v11155_v41, %v654_v43  ;;  %v11231_v23 = vadd.f32 %v11155_v41, %v655_v56  ;;  %v11234_v7 = vadd.f32 %v11155_v41, %v656_v53  ;;  %v11237_v63 = vadd.f32 %v11155_v41, %v657_v60 }
 0x186   :  { %v11240_v39 = vadd.f32 %v11155_v41, %v658_v61  ;;  %v11243_v40 = vadd.f32 %v11155_v41, %v659_v8  ;;  %v11246_v42 = vadd.f32 %v11155_v41, %v660_v6  ;;  %v11249_v44 = vadd.f32 %v11155_v41, %v661_v50 }
 0x187   :  { %v11252_v43 = vadd.f32 %v11155_v41, %v662_v24  ;;  %v11255_v56 = vadd.f32 %v11155_v41, %v663_v29  ;;  %v11258_v53 = vadd.f32 %v11155_v41, %v664_v22  ;;  %v11261_v60 = vadd.f32 %v11155_v41, %v665_v28 }
 0x188   :  { %v11264_v61 = vadd.f32 %v11155_v41, %v666_v58  ;;  %v11267_v8 = vadd.f32 %v11155_v41, %v667_v30  ;;  %v11270_v6 = vadd.f32 %v11155_v41, %v668_v9  ;;  %v11273_v50 = vadd.f32 %v11155_v41, %v669_v0 }
 0x189   :  { %v11276_v24 = vadd.f32 %v11155_v41, %v670_v16  ;;  %v11279_v29 = vadd.f32 %v11155_v41, %v671_v14  ;;  %v11282_v22 = vadd.f32 %v11155_v41, %v672_v20  ;;  %v11285_v28 = vadd.f32 %v11155_v41, %v673_v51 }
 0x18a   :  { %v11288_v58 = vadd.f32 %v11155_v41, %v674_v32  ;;  %v11291_v30 = vadd.f32 %v11155_v41, %v675_v2  ;;  %v11294_v9 = vadd.f32 %v11155_v41, %v676_v49  ;;  %v11297_v0 = vadd.f32 %v11155_v41, %v677_v62 }
 0x18b   :  { %15005 = vst [vmem:[#allocation8_spill] sm:$0xff] %v11276_v24  ;;  %15006 = vst [vmem:[#allocation4_spill] sm:$0xff] %v11279_v29  ;;  %v11300_v16 = vadd.f32 %v11155_v41, %v678_v19  ;;  %v11303_v14 = vadd.f32 %v11155_v41, %v679_v37  ;;  %v11306_v20 = vadd.f32 %v11155_v41, %v680_v45  ;;  %vm734_vm8 = vcmp.gt.f32.partialorder %v11192_v11, 0.0 }
 0x18c   :  { %15007 = vst [vmem:[#allocation7_spill] sm:$0xff] %v11282_v22  ;;  %15008 = vst [vmem:[#allocation14_spill] sm:$0xff] %v11285_v28  ;;  %v11309_v51 = vadd.f32 %v11155_v41, %v681_v17  ;;  %v11312_v32 = vadd.f32 %v11155_v41, %v684_v13  ;;  %v11315_v2 = vadd.f32 %v11155_v41, %v685_v27  ;;  %vm735_vm9 = vcmp.gt.f32.partialorder %v11195_v1, 0.0 }
 0x18d   :  { %15009 = vst [vmem:[#allocation18_spill] sm:$0xff] %v11288_v58  ;;  %15010 = vst [vmem:[#allocation12_spill] sm:$0xff] %v11294_v9  ;;  %vm736_vm10 = vcmp.gt.f32.partialorder %v11198_v54, 0.0  ;;  %vm737_vm11 = vcmp.gt.f32.partialorder %v11201_v52, 0.0  ;;  %vm738_vm12 = vcmp.gt.f32.partialorder %v11204_v21, 0.0  ;;  %vm739_vm13 = vcmp.gt.f32.partialorder %v11207_v31, 0.0 }
 0x18e   :  { %15011 = vst [vmem:[#allocation17_spill] sm:$0xff] %v11297_v0  ;;  %15012 = vst [vmem:[#allocation21_spill] sm:$0xff] %v11315_v2  ;;  %vm740_vm14 = vcmp.gt.f32.partialorder %v11210_v26, 0.0  ;;  %vm741_vm15 = vcmp.gt.f32.partialorder %v11213_v35, 0.0  ;;  %vm742_vm0 = vcmp.gt.f32.partialorder %v11216_v57, 0.0  ;;  %vm743_vm1 = vcmp.gt.f32.partialorder %v11219_v55, 0.0 }
 0x18f   :  { %v778_v41 = vmul.f32 0.2, %v11192_v11  ;;  %v779_v10 = vmul.f32 0.2, %v11195_v1  ;;  %v780_v49 = vmul.f32 0.2, %v11198_v54 }
 0x190   :  { %vm744_vm3 = vcmp.gt.f32.partialorder %v11222_v5, 0.0  ;;  %v781_v15 = vmul.f32 0.2, %v11201_v52  ;;  %v782_v62 = vmul.f32 0.2, %v11204_v21  ;;  %vm745_vm4 = vcmp.gt.f32.partialorder %v11225_v47, 0.0 }
 0x191   :  { %v783_v36 = vmul.f32 0.2, %v11207_v31  ;;  %v784_v19 = vmul.f32 0.2, %v11210_v26  ;;  %v785_v38 = vmul.f32 0.2, %v11213_v35  ;;  %v11343_v4 = vsel %vm734_vm8, %v11192_v11, %v778_v41 }
 0x192   :  { %v11338_v37 = vmul.f32 0.2, %v11216_v57  ;;  %15013 = vst [vmem:[#allocation25_spill] sm:$0xff] %v11343_v4  ;;  %vm746_vm5 = vcmp.gt.f32.partialorder %v11228_v3, 0.0  ;;  %v787_v45 = vmul.f32 0.2, %v11219_v55  ;;  %v11359_v12 = vsel %vm735_vm9, %v11195_v1, %v779_v10 }
 0x193   :  { %v11351_v18 = vmul.f32 0.2, %v11222_v5  ;;  %v11354_v17 = vmul.f32 0.2, %v11225_v47  ;;  %15014 = vst [vmem:[#allocation26_spill] sm:$0xff] %v11359_v12  ;;  %vm750_vm8 = vcmp.gt.f32.partialorder %v11240_v39, 0.0  ;;  %v11377_v1 = vsel %vm736_vm10, %v11198_v54, %v780_v49 }
 0x194   :  { %v11366_v13 = vmul.f32 0.2, %v11228_v3  ;;  %v11369_v27 = vmul.f32 0.2, %v11231_v23  ;;  %v11372_v11 = vmul.f32 0.2, %v11234_v7  ;;  %v11389_v33 = vsel %vm737_vm11, %v11201_v52, %v781_v15 }
 0x195   :  { %15015 = vst [vmem:[#allocation27_spill] sm:$0xff] %v11377_v1  ;;  %vm757_vm6 = vcmp.gt.f32.partialorder %v11261_v60, 0.0  ;;  %v793_v41 = vmul.f32 0.2, %v11237_v63  ;;  %v794_v10 = vmul.f32 0.2, %v11240_v39  ;;  %v11401_v48 = vsel %vm738_vm12, %v11204_v21, %v782_v62 }
 0x196   :  { %v795_v59 = vmul.f32 0.2, %v11243_v40  ;;  %15016 = vst [vmem:[#allocation28_spill] sm:$0xff] %v11389_v33  ;;  %vm761_vm2 = vcmp.gt.f32.partialorder %v11273_v50, 0.0  ;;  %v796_v54 = vmul.f32 0.2, %v11246_v42  ;;  %v11413_v25 = vsel %vm739_vm13, %v11207_v31, %v783_v36 }
 0x197   :  { %v797_v49 = vmul.f32 0.2, %v11249_v44  ;;  %v798_v46 = vmul.f32 0.2, %v11252_v43  ;;  %15017 = vst [vmem:[#allocation29_spill] sm:$0xff] %v11401_v48  ;;  %vm765_vm7 = vcmp.gt.f32.partialorder %v11285_v28, 0.0  ;;  %v828_v33 = vsel %vm740_vm14, %v11210_v26, %v784_v19 }
 0x198   :  { %v799_v52 = vmul.f32 0.2, %v11255_v56  ;;  %v800_v15 = vmul.f32 0.2, %v11258_v53  ;;  %v801_v34 = vmul.f32 0.2, %v11261_v60  ;;  %v829_v1 = vsel %vm741_vm15, %v11213_v35, %v785_v38 }
 0x199   :  { %15018 = vst [vmem:[#allocation30_spill] sm:$0xff] %v11413_v25  ;;  %vm769_vm9 = vcmp.gt.f32.partialorder %v11297_v0, 0.0  ;;  %v802_v21 = vmul.f32 0.2, %v11264_v61  ;;  %v803_v62 = vmul.f32 0.2, %v11267_v8  ;;  %v830_v4 = vsel %vm742_vm0, %v11216_v57, %v11338_v37 }
 0x19a   :  { %v804_v48 = vmul.f32 0.2, %v11270_v6  ;;  %vm771_vm12 = vcmp.gt.f32.partialorder %v11303_v14, 0.0  ;;  %vm772_vm11 = vcmp.gt.f32.partialorder %v11306_v20, 0.0  ;;  %vm773_vm10 = vcmp.gt.f32.partialorder %v11309_v51, 0.0 }
 0x19b   :  { %v805_v31 = vmul.f32 0.2, %v11273_v50  ;;  %v806_v36 = vmul.f32 0.2, %v11276_v24  ;;  %v807_v25 = vmul.f32 0.2, %v11279_v29  ;;  %v831_v38 = vsel %vm743_vm1, %v11219_v55, %v787_v45 }
 0x19c   :  { %vm776_vm14 = vcmp.gt.f32.partialorder %v11312_v32, 0.0  ;;  %vm777_vm13 = vcmp.gt.f32.partialorder %v11315_v2, 0.0  ;;  %v808_v26 = vmul.f32 0.2, %v11282_v22  ;;  %v809_v19 = vmul.f32 0.2, %v11285_v28 }
 0x19d   :  { %v810_v12 = vmul.f32 0.2, %v11288_v58  ;;  %v811_v29 = vmul.f32 0.2, %v11291_v30  ;;  %v812_v24 = vmul.f32 0.2, %v11294_v9  ;;  %v832_v57 = vsel %vm744_vm3, %v11222_v5, %v11351_v18 }
 0x19e   :  { %v813_v35 = vmul.f32 0.2, %v11297_v0  ;;  %v814_v22 = vmul.f32 0.2, %v11300_v16  ;;  %v815_v28 = vmul.f32 0.2, %v11303_v14  ;;  %v833_v55 = vsel %vm745_vm4, %v11225_v47, %v11354_v17 }
 0x19f   :  { %v816_v58 = vmul.f32 0.2, %v11306_v20  ;;  %v817_v37 = vmul.f32 0.2, %v11309_v51  ;;  %v820_v9 = vmul.f32 0.2, %v11312_v32  ;;  %v834_v45 = vsel %vm746_vm5, %v11228_v3, %v11366_v13 }
 0x1a0   :  { %v821_v0 = vmul.f32 0.2, %v11315_v2  ;;  %vm15019_vm15 = vcmp.gt.f32.partialorder %v11231_v23, 0.0  ;;  %vm15020_vm0 = vcmp.gt.f32.partialorder %v11234_v7, 0.0  ;;  %vm15021_vm1 = vcmp.gt.f32.partialorder %v11237_v63, 0.0  ;;  %v15037_v17 = vld [vmem:[#allocation14_spill] sm:$0xff] }
 0x1a1   :  { %v835_v5 = vsel %vm15019_vm15, %v11231_v23, %v11369_v27  ;;  %v836_v18 = vsel %vm15020_vm0, %v11234_v7, %v11372_v11  ;;  %v837_v2 = vsel %vm15021_vm1, %v11237_v63, %v793_v41  ;;  %v838_v47 = vsel %vm750_vm8, %v11240_v39, %v794_v10  ;;  %v15041_v27 = vld [vmem:[#allocation12_spill] sm:$0xff]  ;;  %v15043_v11 = vld [vmem:[#allocation17_spill] sm:$0xff] }
 0x1a2   :  { %vm15022_vm3 = vcmp.gt.f32.partialorder %v11243_v40, 0.0  ;;  %vm15023_vm4 = vcmp.gt.f32.partialorder %v11246_v42, 0.0  ;;  %vm15024_vm5 = vcmp.gt.f32.partialorder %v11249_v44, 0.0  ;;  %vm15025_vm15 = vcmp.gt.f32.partialorder %v11252_v43, 0.0 }
 0x1a3   :  { %v839_v3 = vsel %vm15022_vm3, %v11243_v40, %v795_v59  ;;  %v840_v23 = vsel %vm15023_vm4, %v11246_v42, %v796_v54  ;;  %v841_v7 = vsel %vm15024_vm5, %v11249_v44, %v797_v49  ;;  %v842_v63 = vsel %vm15025_vm15, %v11252_v43, %v798_v46  ;;  %v15045_v54 = vld [vmem:[#allocation21_spill] sm:$0xff]  ;;  %v15047_v49 = vld [vmem:[#allocation26_spill] sm:$0xff] }
 0x1a4   :  { %vm15026_vm0 = vcmp.gt.f32.partialorder %v11255_v56, 0.0  ;;  %vm15027_vm8 = vcmp.gt.f32.partialorder %v11258_v53, 0.0  ;;  %v845_v40 = vsel %vm757_vm6, %v11261_v60, %v801_v34  ;;  %vm15028_vm1 = vcmp.gt.f32.partialorder %v11264_v61, 0.0 }
 0x1a5   :  { %v843_v39 = vsel %vm15026_vm0, %v11255_v56, %v799_v52  ;;  %v844_v59 = vsel %vm15027_vm8, %v11258_v53, %v800_v15  ;;  %v846_v42 = vsel %vm15028_vm1, %v11264_v61, %v802_v21  ;;  %vm15029_vm3 = vcmp.gt.f32.partialorder %v11267_v8, 0.0  ;;  %v15031_v56 = vld [vmem:[#allocation8_spill] sm:$0xff]  ;;  %v15035_v61 = vld [vmem:[#allocation7_spill] sm:$0xff] }
 0x1a6   :  { %v847_v46 = vsel %vm15029_vm3, %v11267_v8, %v803_v62  ;;  %vm15030_vm4 = vcmp.gt.f32.partialorder %v11270_v6, 0.0  ;;  %v849_v43 = vsel %vm761_vm2, %v11273_v50, %v805_v31  ;;  %vm15032_vm5 = vcmp.gt.f32.partialorder %v15031_v56, 0.0  ;;  %v15033_v53 = vld [vmem:[#allocation4_spill] sm:$0xff] }
 0x1a7   :  { %v848_v44 = vsel %vm15030_vm4, %v11270_v6, %v804_v48  ;;  %v850_v34 = vsel %vm15032_vm5, %v15031_v56, %v806_v36  ;;  %vm15034_vm6 = vcmp.gt.f32.partialorder %v15033_v53, 0.0  ;;  %vm15036_vm15 = vcmp.gt.f32.partialorder %v15035_v61, 0.0  ;;  %v15038_v6 = vld [vmem:[#allocation18_spill] sm:$0xff] }
 0x1a8   :  { %v851_v60 = vsel %vm15034_vm6, %v15033_v53, %v807_v25  ;;  %v852_v8 = vsel %vm15036_vm15, %v15035_v61, %v808_v26  ;;  %v853_v48 = vsel %vm765_vm7, %v15037_v17, %v809_v19  ;;  %vm15039_vm0 = vcmp.gt.f32.partialorder %v15038_v6, 0.0 }
 0x1a9   :  { %v854_v50 = vsel %vm15039_vm0, %v15038_v6, %v810_v12  ;;  %vm15040_vm2 = vcmp.gt.f32.partialorder %v11291_v30, 0.0  ;;  %vm15042_vm8 = vcmp.gt.f32.partialorder %v15041_v27, 0.0  ;;  %v857_v41 = vsel %vm769_vm9, %v15043_v11, %v813_v35  ;;  %v11702_v6 = vld [vmem:[%s14754_s3 + $0x38] sm:$0xff]  ;;  %v15064_v11 = vld [vmem:[#allocation22_spill] sm:$0xff] }
 0x1aa   :  { %v855_v13 = vsel %vm15040_vm2, %v11291_v30, %v811_v29  ;;  %v856_v25 = vsel %vm15042_vm8, %v15041_v27, %v812_v24  ;;  %vm15044_vm1 = vcmp.gt.f32.partialorder %v11300_v16, 0.0  ;;  %v859_v12 = vsel %vm771_vm12, %v11303_v14, %v815_v28  ;;  %v15048_v28 = vld [vmem:[#allocation27_spill] sm:$0xff]  ;;  %v15049_v14 = vld [vmem:[#allocation28_spill] sm:$0xff] }
 0x1ab   :  { %v858_v10 = vsel %vm15044_vm1, %v11300_v16, %v814_v22  ;;  %v860_v29 = vsel %vm772_vm11, %v11306_v20, %v816_v58  ;;  %v861_v24 = vsel %vm773_vm10, %v11309_v51, %v817_v37  ;;  %v864_v30 = vsel %vm776_vm14, %v11312_v32, %v820_v9  ;;  %v15046_v16 = vld [vmem:[#allocation25_spill] sm:$0xff]  ;;  %v15051_v20 = vld [vmem:[#allocation30_spill] sm:$0xff] }
 0x1ac   :  { %v865_v22 = vsel %vm777_vm13, %v15045_v54, %v821_v0  ;;  %v11559_v52 = vpack.c.bf16 %v15047_v49, %v15046_v16  ;;  %v11563_v15 = vpack.c.bf16 %v15049_v14, %v15048_v28  ;;  %v15050_v58 = vld [vmem:[#allocation29_spill] sm:$0xff]  ;;  %v11569_v51 = vpack.c.bf16 %v829_v1, %v828_v33  ;;  %v15072_v16 = vld [vmem:[#allocation11_spill] sm:$0xff] }
 0x1ad   :  { %v11567_v21 = vpack.c.bf16 %v15051_v20, %v15050_v58  ;;  %v11571_v62 = vpack.c.bf16 %v831_v38, %v830_v4  ;;  %v11573_v9 = vpack.c.bf16 %v833_v55, %v832_v57  ;;  %v11575_v32 = vpack.c.bf16 %v835_v5, %v834_v45  ;;  %v11618_v5 = vld [vmem:[%s14754_s3] sm:$0xff]  ;;  %v15073_v49 = vld [vmem:[#allocation9_spill] sm:$0xff]  ;;  %v15075_v58 = vld [vmem:[#allocation16_spill] sm:$0xff] }
 0x1ae   :  { %v11577_v0 = vpack.c.bf16 %v837_v2, %v836_v18  ;;  %v11579_v31 = vpack.c.bf16 %v839_v3, %v838_v47  ;;  %v11581_v36 = vpack.c.bf16 %v841_v7, %v840_v23  ;;  %v11583_v26 = vpack.c.bf16 %v843_v39, %v842_v63  ;;  %v11625_v18 = vld [vmem:[%s14754_s3 + $0x8] sm:$0xff]  ;;  %v11634_v47 = vld [vmem:[%s14754_s3 + $0x10] sm:$0xff]  ;;  %v11638_v3 = vpop.permute.xlu1 %1140  ;;  %v11640_v23 = vpop.permute.xlu0 %1143  ;;  %v11645_v7 = vld [vmem:[%s14754_s3 + $0x20] sm:$0xff] }
 0x1af   :  { %15052 = vst [vmem:[#allocation8_spill] sm:$0xff] %v11573_v9  ;;  %15053 = vst [vmem:[#allocation4_spill] sm:$0xff] %v11575_v32  ;;  %v11585_v19 = vpack.c.bf16 %v845_v40, %v844_v59  ;;  %v11587_v35 = vpack.c.bf16 %v847_v46, %v846_v42  ;;  %v11589_v33 = vpack.c.bf16 %v849_v43, %v848_v44  ;;  %v14825_v45 = vmov 6   ;;  %v11654_v63 = vld [vmem:[%s14754_s3 + $0x18] sm:$0xff]  ;;  %v11665_v40 = vld [vmem:[%s14754_s3 + $0x30] sm:$0xff] }
 0x1b0   :  { %15054 = vst [vmem:[#allocation7_spill] sm:$0xff] %v11577_v0  ;;  %v11591_v4 = vpack.c.bf16 %v851_v60, %v850_v34  ;;  %v11593_v1 = vpack.c.bf16 %v853_v48, %v852_v8  ;;  %v11595_v38 = vpack.c.bf16 %v855_v13, %v854_v50  ;;  %v11597_v2 = vpack.c.bf16 %v857_v41, %v856_v25  ;;  %v15057_v42 = vld [vmem:[#allocation24_spill] sm:$0xff]  ;;  %v15058_v46 = vld [vmem:[#allocation15_spill] sm:$0xff]  ;;  %v15063_v25 = vld [vmem:[#allocation2_spill] sm:$0xff] }
 0x1b1   :  { %8453 = vmatprep.subr.bf16.mxu1 %v11579_v31  ;;  %v11600_v57 = vpack.c.bf16 %v859_v12, %v858_v10  ;;  %v11602_v37 = vpack.c.bf16 %v861_v24, %v860_v29  ;;  %v11604_v55 = vpack.c.bf16 %v865_v22, %v864_v30  ;;  %10472 = vset.pattern.permute.xlu1 %v14825_v45  ;;  %v11682_v44 = vld [vmem:[%s14754_s3 + $0x28] sm:$0xff]  ;;  %v15059_v43 = vmov 0.0   ;;  %v15065_v41 = vld [vmem:[#allocation5_spill] sm:$0xff]  ;;  %v15068_v24 = vld [vmem:[#allocation10_spill] sm:$0xff] }
 0x1b2   :  { %15055 = vst [vmem:[#allocation14_spill] sm:$0xff] %v11591_v4  ;;  %15056 = vst [vmem:[#allocation18_spill] sm:$0xff] %v11593_v1  ;;  %8454 = vmatpush3.bf16.msra.mxu1 %v11559_v52  ;;  %9541 = vmatprep.subr.bf16.mxu0 %v11595_v38  ;;  %v11658_v39 = vpop.permute.xlu1 %1146  ;;  %v11660_v59 = vpop.permute.xlu0 %1149  ;;  %vm1165_vm7 = vcmp.eq.s32.totalorder %v15058_v46, %v11638_v3  ;;  %vm1168_vm9 = vcmp.eq.s32.totalorder %v15058_v46, %v11640_v23  ;;  %v14827_v53 = vmov 7   ;;  %vm15060_vm14 = vcmask 785408   ;;  %v15067_v29 = vld [vmem:[#allocation3_spill] sm:$0xff]  ;;  %v15069_v30 = vld [vmem:[#allocation6_spill] sm:$0xff] }
 0x1b3   :  { %8455 = vmatprep.subr.bf16.mxu1 %v11581_v36  ;;  %9542 = vmatpush3.bf16.msra.mxu0 %v11595_v38  ;;  %vm1171_vm10 = vcmp.eq.s32.totalorder %v15058_v46, %v11658_v39  ;;  %vm1174_vm11 = vcmp.eq.s32.totalorder %v15058_v46, %v11660_v59  ;;  %v1189_v56 = vsel %vm1165_vm7, 1.0, %v15059_v43  ;;  %v1192_v34 = vsel %vm1168_vm9, 1.0, %v15059_v43  ;;  %vm15066_vm5 = vmmov %vm15060_vm14  ;;  %v15076_v20 = vld [vmem:[#allocation13_spill] sm:$0xff] }
 0x1b4   :  { %9543 = vmatprep.subr.bf16.mxu0 %v11597_v2  ;;  %10473 = vset.pattern.permute.xlu0 %v14825_v45  ;;  %v1195_v60 = vsel %vm1171_vm10, 1.0, %v15059_v43  ;;  %v1198_v61 = vsel %vm1174_vm11, 1.0, %v15059_v43  ;;  %v1210_v48 = vpack.c.bf16 %v1192_v34, %v1189_v56  ;;  %vm931_vm3 = vcmp.eq.s32.totalorder %v15064_v11, %v15063_v25  ;;  %vm15071_vm9 = vmmov %vm15066_vm5 }
 0x1b5   :  { %2825 = vperm.xlu1 %10472, %v11618_v5   ;;  %2828 = vperm.xlu0 %10473, %v11625_v18   ;;  %v1213_v50 = vpack.c.bf16 %v1198_v61, %v1195_v60  ;;  %vm934_vm4 = vcmp.eq.s32.totalorder %v15064_v11, %v15065_v41  ;;  %vm924_vm6 = vcmp.eq.s32.totalorder %v15068_v24, %v15067_v29  ;;  %v15070_v22 = vmov 1.0|1.0  }
 0x1b6   :  { %8456 = vmatpush3.bf16.msra.mxu1 %v11563_v15  ;;  %v11694_v8 = vpop.permute.xlu1 %1152  ;;  %v11696_v17 = vpop.permute.xlu0 %1155  ;;  %vm927_vm15 = vcmp.eq.s32.totalorder %v15068_v24, %v15069_v30  ;;  %vm7962_vm8 = vmpackc.low %vm934_vm4, %vm931_vm3  ;;  %vm930_vm10 = vcmp.eq.s32.totalorder %v15068_v24, %v15063_v25  ;;  %vm933_vm11 = vcmp.eq.s32.totalorder %v15068_v24, %v15065_v41  ;;  %v14824_v28 = vmov 8  }
 0x1b7   :  { %8457 = vmatprep.subr.bf16.mxu1 %v11583_v26  ;;  %9544 = vmatpush3.bf16.msra.mxu0 %v11597_v2  ;;  %vm1177_vm12 = vcmp.eq.s32.totalorder %v15058_v46, %v11694_v8  ;;  %vm1180_vm13 = vcmp.eq.s32.totalorder %v15058_v46, %v11696_v17  ;;  %vm7960_vm1 = vmpackc.low %vm927_vm15, %vm924_vm6  ;;  %vm936_vm4 = vcmp.eq.s32.totalorder %v15068_v24, %v15072_v16 }
 0x1b8   :  { %9545 = vmatprep.subr.bf16.mxu0 %v11600_v57  ;;  %v1201_v10 = vsel %vm1177_vm12, 1.0, %v15059_v43  ;;  %v1204_v12 = vsel %vm1180_vm13, 1.0, %v15059_v43  ;;  %vm937_vm12 = vcmp.eq.s32.totalorder %v15064_v11, %v15072_v16  ;;  %vm940_vm13 = vcmp.eq.s32.totalorder %v15064_v11, %v15073_v49 }
 0x1b9   :  { %2831 = vperm.xlu1 %10472, %v11634_v47   ;;  %2837 = vperm.xlu0 %10473, %v11645_v7   ;;  %v1216_v54 = vpack.c.bf16 %v1204_v12, %v1201_v10  ;;  %vm7966_vm3 = vmpackc.low %vm940_vm13, %vm937_vm12  ;;  %vm943_vm6 = vcmp.eq.s32.totalorder %v15064_v11, %v15075_v58  ;;  %vm946_vm15 = vcmp.eq.s32.totalorder %v15064_v11, %v15076_v20 }
 0x1ba   :  { %8458 = vmatpush3.bf16.msra.mxu1 %v11567_v21  ;;  %v11715_v13 = vpop.permute.xlu1 %1533  ;;  %v11717_v27 = vpop.permute.xlu0 %1536 }
 0x1bb   :  { %8459 = vmatprep.subr.bf16.mxu1 %v11585_v19  ;;  %9546 = vmatpush3.bf16.msra.mxu0 %v11600_v57  ;;  %15061 = vst [vmem:[#allocation12_spill] sm:$0xff] %v11715_v13  ;;  %15062 = vst [vmem:[#allocation17_spill] sm:$0xff] %v11717_v27  ;;  %vm1557_vm0 = vcmp.eq.s32.totalorder %v15064_v11, %v11715_v13  ;;  %vm1560_vm2 = vcmp.eq.s32.totalorder %v15064_v11, %v11717_v27 }
 0x1bc   :  { %9547 = vmatprep.subr.bf16.mxu0 %v11602_v37  ;;  %vm8008_vm7 = vmpackc.low %vm1560_vm2, %vm1557_vm0 }
 0x1bd   :  { %2834 = vperm.xlu1 %10472, %v11654_v63   ;;  %2843 = vperm.xlu0 %10473, %v11665_v40   ;;  %vm7970_vm2 = vmpackc.low %vm946_vm15, %vm943_vm6  ;;  %vm941_vm15 = vcmp.eq.s32.totalorder %v15058_v46, %v15073_v49 }
 0x1be   :  { %8460 = vmatpush3.bf16.msra.mxu1 %v11569_v51  ;;  %v11777_v14 = vpop.permute.xlu1 %1539  ;;  %v965_v10 = vsel %vm941_vm15, 1.0, %v15059_v43 }
 0x1bf   :  { %8461 = vmatprep.subr.bf16.mxu1 %v11587_v35  ;;  %9548 = vmatpush3.bf16.msra.mxu0 %v11602_v37  ;;  %15074 = vst [vmem:[#allocation21_spill] sm:$0xff] %v11777_v14  ;;  %vm1563_vm12 = vcmp.eq.s32.totalorder %v15064_v11, %v11777_v14 }
 0x1c0   :  { %9549 = vmatprep.subr.bf16.mxu0 %v15057_v42 }
 0x1c1   :  { %2840 = vperm.xlu1 %10472, %v11682_v44   ;;  %10474 = vset.pattern.permute.xlu0 %v14827_v53 }
 0x1c2   :  { %8462 = vmatpush3.bf16.msra.mxu1 %v11571_v62  ;;  %3148 = vperm.xlu0 %10474, %v11618_v5   ;;  %v11797_v56 = vpop.permute.xlu1 %1542 }
 0x1c3   :  { %8463 = vmatprep.subr.bf16.mxu1 %v11589_v33  ;;  %9550 = vmatpush3.bf16.msra.mxu0 %v15057_v42  ;;  %15077 = vst [vmem:[#allocation25_spill] sm:$0xff] %v11797_v56  ;;  %vm1566_vm13 = vcmp.eq.s32.totalorder %v15064_v11, %v11797_v56 }
 0x1c4   :  { %9551 = vmatprep.subr.bf16.mxu0 %v11604_v55  ;;  %vm8012_vm6 = vmpackc.low %vm1566_vm13, %vm1563_vm12  ;;  %vm944_vm12 = vcmp.eq.s32.totalorder %v15058_v46, %v15075_v58 }
 0x1c5   :  { %2846 = vperm.xlu1 %10472, %v11702_v6  }
 0x1c6   :  { %8464 = vmatpush3.bf16.msra.mxu1 %v11573_v9  ;;  %3157 = vperm.xlu0 %10474, %v11654_v63  }
 0x1c7   :  { %8465 = vmatprep.subr.bf16.mxu1 %v11591_v4  ;;  %9552 = vmatpush3.bf16.msra.mxu0 %v11604_v55 }
 0x1c8   :  { %8563 = vmatprep.subr.bf16.mxu0 %v11579_v31 }
 0x1c9   :  { %10475 = vset.pattern.permute.xlu1 %v14827_v53 }
 0x1ca   :  { %8466 = vmatpush3.bf16.msra.mxu1 %v11575_v32  ;;  %9554 = vmatmul.mubr.msk.bf16.vlgmr.msra.gmra.mrb[44].mxu0 %vm15060_vm14, %v1210_v48  ;;  %vm7964_vm14 = vmpackc.low %vm933_vm11, %vm930_vm10  ;;  %vm1556_vm10 = vcmp.eq.s32.totalorder %v15068_v24, %v11715_v13  ;;  %vm1559_vm11 = vcmp.eq.s32.totalorder %v15068_v24, %v11717_v27  ;;  %v11835_v48 = vpop.permute.xlu1 %1548 }
 0x1cb   :  { %8467 = vmatprep.subr.bf16.mxu1 %v11593_v1  ;;  %8564 = vmatpush3.bf16.msra.mxu0 %v11559_v52  ;;  %15079 = vst [vmem:[#allocation26_spill] sm:$0xff] %v11835_v48  ;;  %vm1571_vm15 = vcmp.eq.s32.totalorder %v15068_v24, %v11835_v48 }
 0x1cc   :  { %9557 = vmatprep.mubr.msk.bf16.mxu0 %vm15066_vm5, %v1213_v50  ;;  %8565 = vmatprep.subr.bf16.mxu0 %v11581_v36  ;;  %vm939_vm5 = vcmp.eq.s32.totalorder %v15068_v24, %v15073_v49  ;;  %v11837_v50 = vpop.permute.xlu0 %1545 }
 0x1cd   :  { %3151 = vperm.xlu1 %10475, %v11625_v18   ;;  %3163 = vperm.xlu0 %10474, %v11682_v44   ;;  %vm7968_vm0 = vmpackc.low %vm939_vm5, %vm936_vm4  ;;  %vm932_vm4 = vcmp.eq.s32.totalorder %v15058_v46, %v15063_v25  ;;  %vm935_vm5 = vcmp.eq.s32.totalorder %v15058_v46, %v15065_v41  ;;  %15080 = vst [vmem:[#allocation27_spill] sm:$0xff] %v11837_v50 }
 0x1ce   :  { %8468 = vmatpush3.bf16.msra.mxu1 %v11577_v0  ;;  %v956_v25 = vsel %vm932_vm4, 1.0, %v15059_v43  ;;  %v959_v41 = vsel %vm935_vm5, 1.0, %v15059_v43 }
 0x1cf   :  { %9521 = vmatprep.subr.bf16.mxu1 %v11595_v38  ;;  %8566 = vmatpush3.bf16.msra.mxu0 %v11563_v15 }
 0x1d0   :  { %8567 = vmatprep.subr.bf16.mxu0 %v11583_v26 }
 0x1d1   :  { %7961 = vmatmul.mubr.msk.bf16.vlgmr.msra.gmra.mrb[0].mxu1 %vm7960_vm1, %v15070_v22  ;;  %3154 = vperm.xlu1 %10475, %v11634_v47   ;;  %vm929_vm1 = vcmp.eq.s32.totalorder %v15058_v46, %v15069_v30 }
 0x1d2   :  { %9522 = vmatpush3.bf16.msra.mxu1 %v11595_v38  ;;  %7963 = vmatprep.mubr.msk.bf16.mxu1 %vm7962_vm8, %v15070_v22  ;;  %vm926_vm8 = vcmp.eq.s32.totalorder %v15058_v46, %v15067_v29  ;;  %v953_v60 = vsel %vm929_vm1, 1.0, %v15059_v43  ;;  %vm1565_vm1 = vcmp.eq.s32.totalorder %v15068_v24, %v11797_v56  ;;  %v977_v29 = vpack.c.bf16 %v959_v41, %v956_v25 }
 0x1d3   :  { %9523 = vmatprep.subr.bf16.mxu1 %v11597_v2  ;;  %9558 = vmatmul.mubr.msk.bf16.gmra.mrb[48].mxu0 %vm15071_vm9, %v1216_v54  ;;  %vm945_vm9 = vcmp.eq.s32.totalorder %v15068_v24, %v15076_v20  ;;  %v950_v34 = vsel %vm926_vm8, 1.0, %v15059_v43  ;;  %vm1562_vm8 = vcmp.eq.s32.totalorder %v15068_v24, %v11777_v14  ;;  %v11866_v54 = vpop.permute.xlu1 %1554 }
 0x1d4   :  { %8568 = vmatpush3.bf16.msra.mxu0 %v11567_v21  ;;  %8009 = vmatprep.mubr.msk.bf16.mxu0 %vm8008_vm7, %v15070_v22  ;;  %vm942_vm7 = vcmp.eq.s32.totalorder %v15068_v24, %v15075_v58  ;;  %v974_v61 = vpack.c.bf16 %v953_v60, %v950_v34  ;;  %15083 = vst [vmem:[#allocation28_spill] sm:$0xff] %v11866_v54  ;;  %v968_v58 = vsel %vm944_vm12, 1.0, %v15059_v43  ;;  %v15086_v34 = vld [vmem:[#allocation19_spill] sm:$0xff]  ;;  %v14823_v60 = vmov 9  }
 0x1d5   :  { %8569 = vmatprep.subr.bf16.mxu0 %v11585_v19  ;;  %3169 = vperm.xlu0 %10474, %v11702_v6   ;;  %vm1161_vm5 = vcmp.eq.s32.totalorder %v15064_v11, %v15086_v34 }
 0x1d6   :  { %9524 = vmatpush3.bf16.msra.mxu1 %v11597_v2  ;;  %3160 = vperm.xlu1 %10475, %v11645_v7  }
 0x1d7   :  { %9525 = vmatprep.subr.bf16.mxu1 %v11600_v57  ;;  %v11899_v25 = vpop.permute.xlu1 %1859 }
 0x1d8   :  { %8570 = vmatpush3.bf16.msra.mxu0 %v11569_v51  ;;  %15088 = vst [vmem:[#allocation30_spill] sm:$0xff] %v11899_v25 }
 0x1d9   :  { %8571 = vmatprep.subr.bf16.mxu0 %v11587_v35  ;;  %7965 = vmatmul.mubr.msk.bf16.gmra.mrb[4].mxu1 %vm7964_vm14, %v15070_v22  ;;  %vm7972_vm14 = vmpackc.low %vm945_vm9, %vm942_vm7  ;;  %vm1569_vm7 = vcmp.eq.s32.totalorder %v15064_v11, %v11837_v50  ;;  %vm1572_vm9 = vcmp.eq.s32.totalorder %v15064_v11, %v11835_v48 }
 0x1da   :  { %7967 = vmatprep.mubr.msk.bf16.mxu1 %vm7966_vm3, %v15070_v22  ;;  %9526 = vmatpush3.bf16.msra.mxu1 %v11600_v57  ;;  %vm8010_vm3 = vmpackc.low %vm1559_vm11, %vm1556_vm10  ;;  %vm947_vm11 = vcmp.eq.s32.totalorder %v15058_v46, %v15076_v20  ;;  %v15085_v20 = vld [vmem:[#allocation20_spill] sm:$0xff] }
 0x1db   :  { %9527 = vmatprep.subr.bf16.mxu1 %v11602_v37  ;;  %10477 = vset.pattern.permute.xlu0 %v14824_v28  ;;  %vm8014_vm10 = vmpackc.low %vm1565_vm1, %vm1562_vm8  ;;  %v971_v49 = vsel %vm947_vm11, 1.0, %v15059_v43  ;;  %vm1158_vm4 = vcmp.eq.s32.totalorder %v15064_v11, %v15085_v20  ;;  %vm1577_vm11 = vcmp.eq.s32.totalorder %v15068_v24, %v11866_v54 }
 0x1dc   :  { %8572 = vmatpush3.bf16.msra.mxu0 %v11571_v62  ;;  %3474 = vperm.xlu0 %10477, %v11625_v18   ;;  %vm7978_vm8 = vmpackc.low %vm1161_vm5, %vm1158_vm4  ;;  %vm1882_vm4 = vcmp.eq.s32.totalorder %v15068_v24, %v11899_v25 }
 0x1dd   :  { %8573 = vmatprep.subr.bf16.mxu0 %v11589_v33  ;;  %3166 = vperm.xlu1 %10475, %v11665_v40  }
 0x1de   :  { %9528 = vmatpush3.bf16.msra.mxu1 %v11602_v37 }
 0x1df   :  { %9529 = vmatprep.subr.bf16.mxu1 %v15057_v42 }
 0x1e0   :  { %8574 = vmatpush3.bf16.msra.mxu0 %v11573_v9  ;;  %3483 = vperm.xlu0 %10477, %v11645_v7  }
 0x1e1   :  { %8575 = vmatprep.subr.bf16.mxu0 %v11591_v4  ;;  %7969 = vmatmul.mubr.msk.bf16.gmra.mrb[8].mxu1 %vm7968_vm0, %v15070_v22  ;;  %vm938_vm0 = vcmp.eq.s32.totalorder %v15058_v46, %v15072_v16  ;;  %v11868_v16 = vpop.permute.xlu0 %1551 }
 0x1e2   :  { %7971 = vmatprep.mubr.msk.bf16.mxu1 %vm7970_vm2, %v15070_v22  ;;  %9530 = vmatpush3.bf16.msra.mxu1 %v15057_v42  ;;  %vm15078_vm2 = vcmask 785408   ;;  %v962_v12 = vsel %vm938_vm0, 1.0, %v15059_v43  ;;  %15084 = vst [vmem:[#allocation29_spill] sm:$0xff] %v11868_v16  ;;  %vm1575_vm0 = vcmp.eq.s32.totalorder %v15064_v11, %v11868_v16 }
 0x1e3   :  { %9531 = vmatprep.subr.bf16.mxu1 %v11604_v55  ;;  %10476 = vset.pattern.permute.xlu1 %v14824_v28  ;;  %v980_v30 = vpack.c.bf16 %v965_v10, %v962_v12  ;;  %vm15081_vm13 = vmmov %vm15078_vm2  ;;  %v11925_v10 = vpop.permute.xlu1 %1862 }
 0x1e4   :  { %8576 = vmatpush3.bf16.msra.mxu0 %v11575_v32  ;;  %3471 = vperm.xlu1 %10476, %v11618_v5   ;;  %15090 = vst [vmem:[#allocation2_spill] sm:$0xff] %v11925_v10 }
 0x1e5   :  { %8577 = vmatprep.subr.bf16.mxu0 %v11593_v1  ;;  %3489 = vperm.xlu0 %10477, %v11665_v40   ;;  %v11901_v41 = vpop.permute.xlu0 %1856 }
 0x1e6   :  { %9532 = vmatpush3.bf16.msra.mxu1 %v11604_v55  ;;  %15089 = vst [vmem:[#allocation24_spill] sm:$0xff] %v11901_v41  ;;  %vm1880_vm12 = vcmp.eq.s32.totalorder %v15064_v11, %v11901_v41  ;;  %vm1879_vm5 = vcmp.eq.s32.totalorder %v15068_v24, %v11901_v41 }
 0x1e7   :  { %8503 = vmatprep.subr.bf16.mxu1 %v11579_v31 }
 0x1e8   :  { %8578 = vmatpush3.bf16.msra.mxu0 %v11577_v0  ;;  %3477 = vperm.xlu1 %10476, %v11634_v47  }
 0x1e9   :  { %8618 = vmatprep.subr.bf16.mxu0 %v11579_v31  ;;  %7973 = vmatmul.mubr.msk.bf16.gmra.mrb[12].mxu1 %vm7972_vm14, %v15070_v22  ;;  %vm8016_vm14 = vmpackc.low %vm1572_vm9, %vm1569_vm7  ;;  %v11927_v12 = vpop.permute.xlu0 %1865 }
 0x1ea   :  { %9533 = vmatprep.mubr.msk.bf16.mxu1 %vm15078_vm2, %v974_v61  ;;  %10478 = vset.pattern.permute.xlu0 %v14823_v60  ;;  %v983_v61 = vpack.c.bf16 %v971_v49, %v968_v58  ;;  %15091 = vst [vmem:[#allocation5_spill] sm:$0xff] %v11927_v12 }
 0x1eb   :  { %8011 = vmatmul.mubr.msk.bf16.vlgmr.msra.gmra.mrb[52].mxu0 %vm8010_vm3, %v15070_v22  ;;  %vm15082_vm3 = vmmov %vm15078_vm2  ;;  %vm1578_vm2 = vcmp.eq.s32.totalorder %v15064_v11, %v11866_v54  ;;  %3794 = vperm.xlu0 %10478, %v11618_v5  }
 0x1ec   :  { %8619 = vmatpush3.bf16.msra.mxu0 %v11559_v52  ;;  %8013 = vmatprep.mubr.msk.bf16.mxu0 %vm8012_vm6, %v15070_v22  ;;  %vm1568_vm6 = vcmp.eq.s32.totalorder %v15068_v24, %v11837_v50  ;;  %vm15087_vm7 = vmmov %vm15082_vm3 }
 0x1ed   :  { %8620 = vmatprep.subr.bf16.mxu0 %v11581_v36  ;;  %3480 = vperm.xlu1 %10476, %v11654_v63   ;;  %vm8018_vm1 = vmpackc.low %vm1571_vm15, %vm1568_vm6  ;;  %vm1886_vm6 = vcmp.eq.s32.totalorder %v15064_v11, %v11925_v10  ;;  %vm1889_vm15 = vcmp.eq.s32.totalorder %v15064_v11, %v11927_v12 }
 0x1ee   :  { %vm8020_vm9 = vmpackc.low %vm1578_vm2, %vm1575_vm0 }
 0x1ef   :  { %3803 = vperm.xlu0 %10478, %v11654_v63   ;;  %vm8035_vm0 = vmpackc.low %vm1882_vm4, %vm1879_vm5 }
 0x1f0   :  { %8621 = vmatpush3.bf16.msra.mxu0 %v11563_v15  ;;  %vm8037_vm2 = vmpackc.low %vm1889_vm15, %vm1886_vm6  ;;  %vm1163_vm6 = vcmp.eq.s32.totalorder %v15068_v24, %v11638_v3  ;;  %vm1166_vm15 = vcmp.eq.s32.totalorder %v15068_v24, %v11640_v23 }
 0x1f1   :  { %8622 = vmatprep.subr.bf16.mxu0 %v11583_v26  ;;  %9534 = vmatmul.mubr.msk.bf16.vlgmr.msra.gmra.mrb[16].mxu1 %vm15081_vm13, %v977_v29  ;;  %vm1883_vm13 = vcmp.eq.s32.totalorder %v15064_v11, %v11899_v25  ;;  %v11944_v29 = vpop.permute.xlu1 %1868 }
 0x1f2   :  { %8504 = vmatpush3.bf16.msra.mxu1 %v11559_v52  ;;  %9537 = vmatprep.mubr.msk.bf16.mxu1 %vm15082_vm3, %v980_v30  ;;  %vm8033_vm3 = vmpackc.low %vm1883_vm13, %vm1880_vm12  ;;  %15092 = vst [vmem:[#allocation3_spill] sm:$0xff] %v11944_v29  ;;  %v11957_v30 = vpop.permute.xlu0 %1871 }
 0x1f3   :  { %8015 = vmatmul.mubr.msk.bf16.gmra.mrb[56].mxu0 %vm8014_vm10, %v15070_v22  ;;  %8505 = vmatprep.subr.bf16.mxu1 %v11581_v36  ;;  %vm1574_vm10 = vcmp.eq.s32.totalorder %v15068_v24, %v11868_v16  ;;  %15093 = vst [vmem:[#allocation6_spill] sm:$0xff] %v11957_v30  ;;  %vm1895_vm13 = vcmp.eq.s32.totalorder %v15064_v11, %v11957_v30 }
 0x1f4   :  { %8623 = vmatpush3.bf16.msra.mxu0 %v11567_v21  ;;  %8017 = vmatprep.mubr.msk.bf16.mxu0 %vm8016_vm14, %v15070_v22  ;;  %vm8022_vm14 = vmpackc.low %vm1577_vm11, %vm1574_vm10  ;;  %vm1885_vm10 = vcmp.eq.s32.totalorder %v15068_v24, %v11925_v10  ;;  %vm1888_vm11 = vcmp.eq.s32.totalorder %v15068_v24, %v11927_v12 }
 0x1f5   :  { %8624 = vmatprep.subr.bf16.mxu0 %v11585_v19  ;;  %3486 = vperm.xlu1 %10476, %v11682_v44   ;;  %v11959_v49 = vpop.permute.xlu1 %1874  ;;  %vm8039_vm4 = vmpackc.low %vm1888_vm11, %vm1885_vm10 }
 0x1f6   :  { %8506 = vmatpush3.bf16.msra.mxu1 %v11563_v15  ;;  %3809 = vperm.xlu0 %10478, %v11682_v44   ;;  %15094 = vst [vmem:[#allocation11_spill] sm:$0xff] %v11959_v49  ;;  %vm1898_vm10 = vcmp.eq.s32.totalorder %v15064_v11, %v11959_v49 }
 0x1f7   :  { %8507 = vmatprep.subr.bf16.mxu1 %v11583_v26 }
 0x1f8   :  { %8625 = vmatpush3.bf16.msra.mxu0 %v11569_v51 }
 0x1f9   :  { %8626 = vmatprep.subr.bf16.mxu0 %v11587_v35  ;;  %9538 = vmatmul.mubr.msk.bf16.gmra.mrb[20].mxu1 %vm15087_vm7, %v983_v61  ;;  %vm1164_vm7 = vcmp.eq.s32.totalorder %v15064_v11, %v11638_v3  ;;  %v11978_v58 = vpop.permute.xlu1 %2179 }
 0x1fa   :  { %8508 = vmatpush3.bf16.msra.mxu1 %v11567_v21  ;;  %7979 = vmatprep.mubr.msk.bf16.mxu1 %vm7978_vm8, %v15070_v22  ;;  %vm1160_vm8 = vcmp.eq.s32.totalorder %v15068_v24, %v15086_v34 }
 0x1fb   :  { %8019 = vmatmul.mubr.msk.bf16.gmra.mrb[60].mxu0 %vm8018_vm1, %v15070_v22  ;;  %8509 = vmatprep.subr.bf16.mxu1 %v11585_v19  ;;  %vm1157_vm1 = vcmp.eq.s32.totalorder %v15068_v24, %v15085_v20  ;;  %v11989_v20 = vpop.permute.xlu0 %1877 }
 0x1fc   :  { %8627 = vmatpush3.bf16.msra.mxu0 %v11571_v62  ;;  %8021 = vmatprep.mubr.msk.bf16.mxu0 %vm8020_vm9, %v15070_v22  ;;  %vm1167_vm9 = vcmp.eq.s32.totalorder %v15064_v11, %v11640_v23  ;;  %vm7980_vm12 = vmpackc.low %vm1160_vm8, %vm1157_vm1  ;;  %15095 = vst [vmem:[#allocation9_spill] sm:$0xff] %v11989_v20  ;;  %vm1894_vm8 = vcmp.eq.s32.totalorder %v15068_v24, %v11957_v30  ;;  %v14826_v23 = vmov 10  }
 0x1fd   :  { %8628 = vmatprep.subr.bf16.mxu0 %v11589_v33  ;;  %3492 = vperm.xlu1 %10476, %v11702_v6   ;;  %vm1891_vm1 = vcmp.eq.s32.totalorder %v15068_v24, %v11944_v29  ;;  %v12002_v3 = vpop.permute.xlu1 %2185 }
 0x1fe   :  { %8510 = vmatpush3.bf16.msra.mxu1 %v11569_v51  ;;  %3815 = vperm.xlu0 %10478, %v11702_v6  }
 0x1ff   :  { %8511 = vmatprep.subr.bf16.mxu1 %v11587_v35  ;;  %v12021_v34 = vpop.permute.xlu0 %2182 }
 0x200   :  { %8629 = vmatpush3.bf16.msra.mxu0 %v11573_v9 }
 0x201   :  { %8630 = vmatprep.subr.bf16.mxu0 %v11591_v4  ;;  %10479 = vset.pattern.permute.xlu1 %v14823_v60  ;;  %v12023_v61 = vpop.permute.xlu1 %2188 }
 0x202   :  { %8512 = vmatpush3.bf16.msra.mxu1 %v11571_v62  ;;  %3797 = vperm.xlu1 %10479, %v11625_v18  }
 0x203   :  { %8023 = vmatmul.mubr.msk.bf16.gmra.mrb[64].mxu0 %vm8022_vm14, %v15070_v22  ;;  %8513 = vmatprep.subr.bf16.mxu1 %v11589_v33  ;;  %vm1892_vm14 = vcmp.eq.s32.totalorder %v15064_v11, %v11944_v29 }
 0x204   :  { %8631 = vmatpush3.bf16.msra.mxu0 %v11575_v32  ;;  %8034 = vmatprep.mubr.msk.bf16.mxu0 %vm8033_vm3, %v15070_v22  ;;  %vm7982_vm3 = vmpackc.low %vm1167_vm9, %vm1164_vm7  ;;  %vm1901_vm9 = vcmp.eq.s32.totalorder %v15064_v11, %v11989_v20 }
 0x205   :  { %8632 = vmatprep.subr.bf16.mxu0 %v11593_v1  ;;  %vm8041_vm5 = vmpackc.low %vm1895_vm13, %vm1892_vm14  ;;  %10481 = vset.pattern.permute.xlu0 %v14826_v23  ;;  %vm1169_vm14 = vcmp.eq.s32.totalorder %v15068_v24, %v11658_v39 }
 0x206   :  { %8514 = vmatpush3.bf16.msra.mxu1 %v11573_v9  ;;  %3800 = vperm.xlu1 %10479, %v11634_v47   ;;  %vm7984_vm7 = vmpackc.low %vm1166_vm15, %vm1163_vm6  ;;  %vm1900_vm6 = vcmp.eq.s32.totalorder %v15068_v24, %v11989_v20  ;;  %vm1897_vm15 = vcmp.eq.s32.totalorder %v15068_v24, %v11959_v49 }
 0x207   :  { %8515 = vmatprep.subr.bf16.mxu1 %v11591_v4  ;;  %4120 = vperm.xlu0 %10481, %v11625_v18   ;;  %vm8045_vm13 = vmpackc.low %vm1901_vm9, %vm1898_vm10  ;;  %vm2202_vm10 = vcmp.eq.s32.totalorder %v15068_v24, %v11978_v58 }
 0x208   :  { %8633 = vmatpush3.bf16.msra.mxu0 %v11577_v0 }
 0x209   :  { %8673 = vmatprep.subr.bf16.mxu0 %v11579_v31 }
 0x20a   :  { %8516 = vmatpush3.bf16.msra.mxu1 %v11575_v32  ;;  %3806 = vperm.xlu1 %10479, %v11645_v7  }
 0x20b   :  { %8036 = vmatmul.mubr.msk.bf16.vlgmr.msra.gmra.mrb[68].mxu0 %vm8035_vm0, %v15070_v22  ;;  %8517 = vmatprep.subr.bf16.mxu1 %v11593_v1  ;;  %vm1170_vm0 = vcmp.eq.s32.totalorder %v15064_v11, %v11658_v39  ;;  %v12042_v39 = vpop.permute.xlu1 %2194 }
 0x20c   :  { %8674 = vmatpush3.bf16.msra.mxu0 %v11559_v52  ;;  %8038 = vmatprep.mubr.msk.bf16.mxu0 %vm8037_vm2, %v15070_v22  ;;  %vm1173_vm2 = vcmp.eq.s32.totalorder %v15064_v11, %v11660_v59 }
 0x20d   :  { %8675 = vmatprep.subr.bf16.mxu0 %v11581_v36  ;;  %vm7986_vm11 = vmpackc.low %vm1173_vm2, %vm1170_vm0  ;;  %4129 = vperm.xlu0 %10481, %v11645_v7   ;;  %vm2206_vm2 = vcmp.eq.s32.totalorder %v15064_v11, %v12021_v34 }
 0x20e   :  { %8518 = vmatpush3.bf16.msra.mxu1 %v11577_v0  ;;  %3812 = vperm.xlu1 %10479, %v11665_v40  }
 0x210   :  { %8676 = vmatpush3.bf16.msra.mxu0 %v11563_v15 }
 0x211   :  { %8677 = vmatprep.subr.bf16.mxu0 %v11583_v26  ;;  %7981 = vmatmul.mubr.msk.bf16.vlgmr.msra.gmra.mrb[24].mxu1 %vm7980_vm12, %v15070_v22  ;;  %vm8043_vm12 = vmpackc.low %vm1894_vm8, %vm1891_vm1  ;;  %vm2203_vm8 = vcmp.eq.s32.totalorder %v15064_v11, %v11978_v58 }
 0x212   :  { %7983 = vmatprep.mubr.msk.bf16.mxu1 %vm7982_vm3, %v15070_v22  ;;  %10480 = vset.pattern.permute.xlu1 %v14826_v23  ;;  %vm1172_vm3 = vcmp.eq.s32.totalorder %v15068_v24, %v11660_v59  ;;  %vm8058_vm9 = vmpackc.low %vm2206_vm2, %vm2203_vm8  ;;  %v12051_v59 = vpop.permute.xlu1 %2200  ;;  %vm2218_vm8 = vcmp.eq.s32.totalorder %v15064_v11, %v12042_v39 }
 0x213   :  { %8040 = vmatmul.mubr.msk.bf16.gmra.mrb[72].mxu0 %vm8039_vm4, %v15070_v22  ;;  %4117 = vperm.xlu1 %10480, %v11618_v5   ;;  %vm1176_vm4 = vcmp.eq.s32.totalorder %v15064_v11, %v11694_v8  ;;  %vm7988_vm0 = vmpackc.low %vm1172_vm3, %vm1169_vm14  ;;  %vm2209_vm14 = vcmp.eq.s32.totalorder %v15064_v11, %v12002_v3  ;;  %vm2212_vm3 = vcmp.eq.s32.totalorder %v15064_v11, %v12023_v61 }
 0x214   :  { %8678 = vmatpush3.bf16.msra.mxu0 %v11567_v21  ;;  %8042 = vmatprep.mubr.msk.bf16.mxu0 %vm8041_vm5, %v15070_v22  ;;  %vm1179_vm5 = vcmp.eq.s32.totalorder %v15064_v11, %v11696_v17 }
 0x215   :  { %8679 = vmatprep.subr.bf16.mxu0 %v11585_v19  ;;  %vm7990_vm1 = vmpackc.low %vm1179_vm5, %vm1176_vm4  ;;  %4135 = vperm.xlu0 %10481, %v11665_v40  }
 0x216   :  { %v12069_v60 = vpop.permute.xlu1 %2505 }
 0x217   :  { %4123 = vperm.xlu1 %10480, %v11634_v47   ;;  %15096 = vst [vmem:[#allocation16_spill] sm:$0xff] %v12069_v60 }
 0x218   :  { %8680 = vmatpush3.bf16.msra.mxu0 %v11569_v51 }
 0x219   :  { %8681 = vmatprep.subr.bf16.mxu0 %v11587_v35  ;;  %7985 = vmatmul.mubr.msk.bf16.gmra.mrb[28].mxu1 %vm7984_vm7, %v15070_v22  ;;  %vm8047_vm7 = vmpackc.low %vm1900_vm6, %vm1897_vm15  ;;  %vm2208_vm15 = vcmp.eq.s32.totalorder %v15068_v24, %v12002_v3 }
 0x21a   :  { %7987 = vmatprep.mubr.msk.bf16.mxu1 %vm7986_vm11, %v15070_v22  ;;  %vm2205_vm11 = vcmp.eq.s32.totalorder %v15068_v24, %v12021_v34  ;;  %vm8062_vm6 = vmpackc.low %vm2212_vm3, %vm2209_vm14  ;;  %v12085_v28 = vpop.permute.xlu1 %2508  ;;  %vm2204_vm3 = vcmp.eq.s32.totalorder %v15058_v46, %v11978_v58 }
 0x21b   :  { %8044 = vmatmul.mubr.msk.bf16.gmra.mrb[76].mxu0 %vm8043_vm12, %v15070_v22  ;;  %4126 = vperm.xlu1 %10480, %v11654_v63   ;;  %vm1175_vm12 = vcmp.eq.s32.totalorder %v15068_v24, %v11694_v8  ;;  %vm8060_vm4 = vmpackc.low %vm2205_vm11, %vm2202_vm10  ;;  %v2192_v8 = vpop.permute.xlu0 %2191  ;;  %15097 = vst [vmem:[#allocation13_spill] sm:$0xff] %v12085_v28  ;;  %vm2217_vm10 = vcmp.eq.s32.totalorder %v15068_v24, %v12042_v39  ;;  %v2228_v29 = vsel %vm2204_vm3, 1.0, %v15059_v43 }
 0x21c   :  { %8682 = vmatpush3.bf16.msra.mxu0 %v11571_v62  ;;  %8046 = vmatprep.mubr.msk.bf16.mxu0 %vm8045_vm13, %v15070_v22  ;;  %vm1178_vm13 = vcmp.eq.s32.totalorder %v15068_v24, %v11696_v17  ;;  %vm2215_vm2 = vcmp.eq.s32.totalorder %v15064_v11, %v2192_v8 }
 0x21d   :  { %8683 = vmatprep.subr.bf16.mxu0 %v11589_v33  ;;  %vm7992_vm5 = vmpackc.low %vm1178_vm13, %vm1175_vm12  ;;  %vm2224_vm12 = vcmp.eq.s32.totalorder %v15064_v11, %v12051_v59 }
 0x21e   :  { %v12094_v23 = vpop.permute.xlu1 %2514 }
 0x21f   :  { %4132 = vperm.xlu1 %10480, %v11682_v44   ;;  %v12083_v17 = vpop.permute.xlu0 %2197  ;;  %15099 = vst [vmem:[#allocation19_spill] sm:$0xff] %v12094_v23 }
 0x220   :  { %8684 = vmatpush3.bf16.msra.mxu0 %v11573_v9  ;;  %vm2221_vm11 = vcmp.eq.s32.totalorder %v15064_v11, %v12083_v17 }
 0x221   :  { %8685 = vmatprep.subr.bf16.mxu0 %v11591_v4  ;;  %7989 = vmatmul.mubr.msk.bf16.gmra.mrb[32].mxu1 %vm7988_vm0, %v15070_v22  ;;  %vm2211_vm0 = vcmp.eq.s32.totalorder %v15068_v24, %v12023_v61  ;;  %vm8070_vm14 = vmpackc.low %vm2224_vm12, %vm2221_vm11  ;;  %vm2530_vm11 = vcmp.eq.s32.totalorder %v15058_v46, %v12069_v60 }
 0x222   :  { %7991 = vmatprep.mubr.msk.bf16.mxu1 %vm7990_vm1, %v15070_v22  ;;  %vm8064_vm1 = vmpackc.low %vm2211_vm0, %vm2208_vm15  ;;  %v12109_v20 = vpop.permute.xlu1 %2520  ;;  %vm2210_vm0 = vcmp.eq.s32.totalorder %v15058_v46, %v12002_v3 }
 0x223   :  { %8048 = vmatmul.mubr.msk.bf16.gmra.mrb[80].mxu0 %vm8047_vm7, %v15070_v22  ;;  %4138 = vperm.xlu1 %10480, %v11702_v6   ;;  %vm8066_vm7 = vmpackc.low %vm2218_vm8, %vm2215_vm2  ;;  %v12092_v45 = vpop.permute.xlu0 %2502  ;;  %15101 = vst [vmem:[#allocation32_spill] sm:$0xff] %v12109_v20  ;;  %vm2213_vm2 = vcmp.eq.s32.totalorder %v15058_v46, %v12023_v61  ;;  %vm2219_vm8 = vcmp.eq.s32.totalorder %v15058_v46, %v12042_v39 }
 0x224   :  { %8686 = vmatpush3.bf16.msra.mxu0 %v11575_v32  ;;  %8059 = vmatprep.mubr.msk.bf16.mxu0 %vm8058_vm9, %v15070_v22  ;;  %15098 = vst [vmem:[#allocation20_spill] sm:$0xff] %v12092_v45  ;;  %vm2214_vm9 = vcmp.eq.s32.totalorder %v15068_v24, %v2192_v8  ;;  %v2243_v3 = vsel %vm2219_vm8, 1.0, %v15059_v43  ;;  %vm2527_vm12 = vcmp.eq.s32.totalorder %v15058_v46, %v12092_v45 }
 0x225   :  { %8687 = vmatprep.subr.bf16.mxu0 %v11593_v1  ;;  %vm8068_vm13 = vmpackc.low %vm2217_vm10, %vm2214_vm9  ;;  %vm2225_vm9 = vcmp.eq.s32.totalorder %v15058_v46, %v12051_v59  ;;  %vm2222_vm10 = vcmp.eq.s32.totalorder %v15058_v46, %v12083_v17 }
 0x227   :  { %v12107_v53 = vpop.permute.xlu0 %2511 }
 0x228   :  { %8688 = vmatpush3.bf16.msra.mxu0 %v11577_v0  ;;  %15100 = vst [vmem:[#allocation31_spill] sm:$0xff] %v12107_v53 }
 0x229   :  { %9641 = vmatprep.subr.bf16.mxu0 %v11595_v38  ;;  %7993 = vmatmul.mubr.msk.bf16.gmra.mrb[36].mxu1 %vm7992_vm5, %v15070_v22  ;;  %vm2220_vm5 = vcmp.eq.s32.totalorder %v15068_v24, %v12083_v17  ;;  %v2554_v17 = vsel %vm2530_vm11, 1.0, %v15059_v43 }
 0x22b   :  { %8061 = vmatmul.mubr.msk.bf16.vlgmr.msra.gmra.mrb[84].mxu0 %vm8060_vm4, %v15070_v22  ;;  %vm2207_vm4 = vcmp.eq.s32.totalorder %v15058_v46, %v12021_v34  ;;  %v12118_v49 = vpop.permute.xlu0 %2517 }
 0x22c   :  { %9642 = vmatpush3.bf16.msra.mxu0 %v11595_v38  ;;  %8063 = vmatprep.mubr.msk.bf16.mxu0 %vm8062_vm6, %v15070_v22  ;;  %15102 = vst [vmem:[#allocation33_spill] sm:$0xff] %v12118_v49  ;;  %v2231_v12 = vsel %vm2207_vm4, 1.0, %v15059_v43  ;;  %vm2223_vm6 = vcmp.eq.s32.totalorder %v15068_v24, %v12051_v59  ;;  %v2249_v59 = vsel %vm2225_vm9, 1.0, %v15059_v43 }
 0x22d   :  { %9643 = vmatprep.subr.bf16.mxu0 %v11597_v2  ;;  %v2252_v58 = vpack.c.bf16 %v2231_v12, %v2228_v29  ;;  %vm8072_vm15 = vmpackc.low %vm2223_vm6, %vm2220_vm5  ;;  %v2234_v12 = vsel %vm2210_vm0, 1.0, %v15059_v43  ;;  %v2237_v29 = vsel %vm2213_vm2, 1.0, %v15059_v43  ;;  %vm2533_vm5 = vcmp.eq.s32.totalorder %v15058_v46, %v12085_v28 }
 0x22e   :  { %v2255_v25 = vpack.c.bf16 %v2237_v29, %v2234_v12  ;;  %v14841_v12 = vmov 11   ;;  %v2246_v29 = vsel %vm2222_vm10, 1.0, %v15059_v43  ;;  %vm2536_vm6 = vcmp.eq.s32.totalorder %v15058_v46, %v12107_v53 }
 0x22f   :  { %v12137_v34 = vpop.permute.xlu0 %2523  ;;  %10483 = vset.pattern.permute.xlu1 %v14841_v12  ;;  %10482 = vset.pattern.permute.xlu0 %v14841_v12  ;;  %vm2542_vm0 = vcmp.eq.s32.totalorder %v15058_v46, %v12118_v49  ;;  %vm2545_vm2 = vcmp.eq.s32.totalorder %v15058_v46, %v12109_v20  ;;  %v12305_v20 = vld [vmem:[%s14754_s3 + $0x30] sm:$0xff] }
 0x230   :  { %9644 = vmatpush3.bf16.msra.mxu0 %v11597_v2  ;;  %15104 = vst [vmem:[#allocation35_spill] sm:$0xff] %v12137_v34  ;;  %4443 = vperm.xlu1 %10483, %v11625_v18   ;;  %vm2548_vm8 = vcmp.eq.s32.totalorder %v15058_v46, %v12137_v34  ;;  %v12311_v34 = vld [vmem:[%s14754_s3 + $0x28] sm:$0xff] }
 0x231   :  { %9645 = vmatprep.subr.bf16.mxu0 %v11600_v57  ;;  %4440 = vperm.xlu0 %10482, %v11618_v5  }
 0x233   :  { %8065 = vmatmul.mubr.msk.bf16.gmra.mrb[88].mxu0 %vm8064_vm1, %v15070_v22  ;;  %vm2216_vm1 = vcmp.eq.s32.totalorder %v15058_v46, %v2192_v8 }
 0x234   :  { %9646 = vmatpush3.bf16.msra.mxu0 %v11600_v57  ;;  %8067 = vmatprep.mubr.msk.bf16.mxu0 %vm8066_vm7, %v15070_v22  ;;  %v12120_v30 = vpop.permute.xlu1 %2825  ;;  %vm15106_vm7 = vcmask 785408   ;;  %v2240_v61 = vsel %vm2216_vm1, 1.0, %v15059_v43  ;;  %v12150_v41 = vpop.permute.xlu0 %2828 }
 0x235   :  { %9647 = vmatprep.subr.bf16.mxu0 %v11602_v37  ;;  %15103 = vst [vmem:[#allocation34_spill] sm:$0xff] %v12120_v30  ;;  %15107 = vst [vmem:[#allocation37_spill] sm:$0xff] %v12150_v41  ;;  %v2258_v39 = vpack.c.bf16 %v2243_v3, %v2240_v61  ;;  %v2551_v3 = vsel %vm2527_vm12, 1.0, %v15059_v43  ;;  %v2261_v61 = vpack.c.bf16 %v2249_v59, %v2246_v29  ;;  %4446 = vperm.xlu1 %10483, %v11634_v47  }
 0x236   :  { %4449 = vperm.xlu0 %10482, %v11654_v63   ;;  %vm15115_vm3 = vmmov %vm15106_vm7  ;;  %vm2852_vm12 = vcmp.eq.s32.totalorder %v15064_v11, %v12150_v41 }
 0x237   :  { %vm15116_vm4 = vmmov %vm15115_vm3 }
 0x238   :  { %9648 = vmatpush3.bf16.msra.mxu0 %v11602_v37  ;;  %v12139_v10 = vpop.permute.xlu1 %2831  ;;  %v12158_v8 = vpop.permute.xlu0 %2837  ;;  %vm15120_vm9 = vmmov %vm15115_vm3 }
 0x239   :  { %9649 = vmatprep.subr.bf16.mxu0 %v15057_v42  ;;  %15105 = vst [vmem:[#allocation36_spill] sm:$0xff] %v12139_v10  ;;  %15109 = vst [vmem:[#allocation39_spill] sm:$0xff] %v12158_v8  ;;  %4452 = vperm.xlu1 %10483, %v11645_v7  }
 0x23a   :  { %4455 = vperm.xlu0 %10482, %v11682_v44   ;;  %v2557_v44 = vsel %vm2533_vm5, 1.0, %v15059_v43  ;;  %vm2851_vm5 = vcmp.eq.s32.totalorder %v15068_v24, %v12150_v41 }
 0x23b   :  { %8069 = vmatmul.mubr.msk.bf16.gmra.mrb[92].mxu0 %vm8068_vm13, %v15070_v22  ;;  %vm15110_vm13 = vmmov %vm15106_vm7 }
 0x23c   :  { %9650 = vmatpush3.bf16.msra.mxu0 %v15057_v42  ;;  %8071 = vmatprep.mubr.msk.bf16.mxu0 %vm8070_vm14, %v15070_v22  ;;  %v12152_v16 = vpop.permute.xlu1 %2834  ;;  %vm15112_vm14 = vmmov %vm15106_vm7 }
 0x23d   :  { %9651 = vmatprep.subr.bf16.mxu0 %v11604_v55  ;;  %15108 = vst [vmem:[#allocation38_spill] sm:$0xff] %v12152_v16  ;;  %4458 = vperm.xlu1 %10483, %v11665_v40  }
 0x23e   :  { %4461 = vperm.xlu0 %10482, %v11702_v6  }
 0x240   :  { %9652 = vmatpush3.bf16.msra.mxu0 %v11604_v55 }
 0x241   :  { %9671 = vmatprep.subr.bf16.mxu0 %v11595_v38 }
 0x243   :  { %8073 = vmatmul.mubr.msk.bf16.gmra.mrb[96].mxu0 %vm8072_vm15, %v15070_v22  ;;  %vm2539_vm15 = vcmp.eq.s32.totalorder %v15058_v46, %v12094_v23 }
 0x244   :  { %9653 = vmatprep.mubr.msk.bf16.mxu0 %vm15106_vm7, %v2252_v58  ;;  %v12165_v58 = vpop.permute.xlu1 %2840  ;;  %vm15118_vm7 = vmmov %vm15115_vm3 }
 0x245   :  { %15111 = vst [vmem:[#allocation40_spill] sm:$0xff] %v12165_v58 }
 0x248   :  { %v12180_v60 = vpop.permute.xlu1 %2846 }
 0x249   :  { %15114 = vst [vmem:[#allocation42_spill] sm:$0xff] %v12180_v60 }
 0x24b   :  { %9654 = vmatmul.mubr.msk.bf16.vlgmr.msra.gmra.mrb[100].mxu0 %vm15110_vm13, %v2255_v25  ;;  %v12175_v25 = vpop.permute.xlu0 %2843  ;;  %vm2849_vm13 = vcmp.eq.s32.totalorder %v15064_v11, %v12120_v30 }
 0x24c   :  { %9672 = vmatpush3.bf16.msra.mxu0 %v11595_v38  ;;  %9657 = vmatprep.mubr.msk.bf16.mxu0 %vm15112_vm14, %v2258_v39  ;;  %15113 = vst [vmem:[#allocation41_spill] sm:$0xff] %v12175_v25  ;;  %v2575_v39 = vpack.c.bf16 %v2554_v17, %v2551_v3  ;;  %v12189_v12 = vpop.permute.xlu1 %3151  ;;  %v2560_v17 = vsel %vm2536_vm6, 1.0, %v15059_v43  ;;  %v2563_v3 = vsel %vm2539_vm15, 1.0, %v15059_v43  ;;  %vm8108_vm14 = vmpackc.low %vm2852_vm12, %vm2849_vm13  ;;  %vm2855_vm6 = vcmp.eq.s32.totalorder %v15064_v11, %v12139_v10 }
 0x24d   :  { %9673 = vmatprep.subr.bf16.mxu0 %v11597_v2  ;;  %v2578_v23 = vpack.c.bf16 %v2560_v17, %v2557_v44  ;;  %v2569_v17 = vsel %vm2545_vm2, 1.0, %v15059_v43  ;;  %vm2858_vm15 = vcmp.eq.s32.totalorder %v15064_v11, %v12152_v16  ;;  %vm2861_vm12 = vcmp.eq.s32.totalorder %v15064_v11, %v12158_v8 }
 0x24e   :  { %vm2864_vm13 = vcmp.eq.s32.totalorder %v15064_v11, %v12165_v58 }
 0x24f   :  { %v12184_v45 = vpop.permute.xlu0 %3148 }
 0x250   :  { %9674 = vmatpush3.bf16.msra.mxu0 %v11597_v2  ;;  %v12198_v29 = vpop.permute.xlu1 %3154 }
 0x251   :  { %9675 = vmatprep.subr.bf16.mxu0 %v11600_v57 }
 0x253   :  { %9658 = vmatmul.mubr.msk.bf16.gmra.mrb[104].mxu0 %vm15115_vm3, %v2261_v61  ;;  %v12194_v59 = vpop.permute.xlu0 %3157  ;;  %v2566_v61 = vsel %vm2542_vm0, 1.0, %v15059_v43 }
 0x254   :  { %9676 = vmatpush3.bf16.msra.mxu0 %v11600_v57  ;;  %9683 = vmatprep.mubr.msk.bf16.mxu0 %vm15116_vm4, %v2575_v39  ;;  %v2581_v6 = vpack.c.bf16 %v2566_v61, %v2563_v3  ;;  %v2572_v3 = vsel %vm2548_vm8, 1.0, %v15059_v43  ;;  %v15121_v61 = vmov 0  ;;  %vm2848_vm4 = vcmp.eq.s32.totalorder %v15068_v24, %v12120_v30  ;;  %v12333_v30 = vld [vmem:[%s14754_s3 + $0x38] sm:$0xff]  ;;  %vm8112_vm8 = vmpackc.low %vm2858_vm15, %vm2855_vm6 }
 0x255   :  { %9677 = vmatprep.subr.bf16.mxu0 %v11602_v37  ;;  %v12214_v7 = vpop.permute.xlu1 %3160  ;;  %vm8110_vm2 = vmpackc.low %vm2851_vm5, %vm2848_vm4  ;;  %vm2860_vm15 = vcmp.eq.s32.totalorder %v15068_v24, %v12158_v8  ;;  %v12456_v8 = vld [vmem:[%s14754_s3 + $0x10] sm:$0xff] }
 0x256   :  { %vm8116_vm5 = vmpackc.low %vm2864_vm13, %vm2861_vm12  ;;  %vm2866_vm12 = vcmp.eq.s32.totalorder %v15068_v24, %v12175_v25  ;;  %vm2869_vm13 = vcmp.eq.s32.totalorder %v15068_v24, %v12180_v60 }
 0x257   :  { %v12206_v63 = vpop.permute.xlu0 %3163 }
 0x258   :  { %9678 = vmatpush3.bf16.msra.mxu0 %v11602_v37 }
 0x259   :  { %9679 = vmatprep.subr.bf16.mxu0 %v15057_v42 }
 0x25b   :  { %v12222_v39 = vpop.permute.xlu0 %3169 }
 0x25c   :  { %9680 = vmatpush3.bf16.msra.mxu0 %v15057_v42  ;;  %v12224_v40 = vpop.permute.xlu1 %3166 }
 0x25d   :  { %9681 = vmatprep.subr.bf16.mxu0 %v11604_v55 }
 0x25f   :  { %v12232_v49 = vpop.permute.xlu0 %3474 }
 0x260   :  { %9682 = vmatpush3.bf16.msra.mxu0 %v11604_v55  ;;  %15117 = vst [vmem:[#allocation43_spill] sm:$0xff] %v12232_v49  ;;  %vm3497_vm1 = vcmp.eq.s32.totalorder %v15068_v24, %v12232_v49 }
 0x261   :  { %8783 = vmatprep.subr.bf16.mxu0 %v11579_v31 }
 0x263   :  { %9684 = vmatmul.mubr.msk.bf16.vlgmr.msra.gmra.mrb[108].mxu0 %vm15118_vm7, %v2578_v23  ;;  %v12237_v44 = vpop.permute.xlu1 %3471  ;;  %v2584_v23 = vpack.c.bf16 %v2572_v3, %v2569_v17  ;;  %v10539_v17 = vld [vmem:[%s14756_s4 + $0x8] sm:$0xff]  }
 0x264   :  { %15119 = vst [vmem:[#allocation44_spill] sm:$0xff] %v12237_v44  ;;  %8784 = vmatpush3.bf16.msra.mxu0 %v11559_v52  ;;  %9687 = vmatprep.mubr.msk.bf16.mxu0 %vm15120_vm9, %v2581_v6  ;;  %vm3494_vm10 = vcmp.eq.s32.totalorder %v15068_v24, %v12237_v44  ;;  %vm2854_vm9 = vcmp.eq.s32.totalorder %v15068_v24, %v12139_v10 }
 0x265   :  { %8785 = vmatprep.subr.bf16.mxu0 %v11581_v36  ;;  %vm12246_vm11 = vmpackc.low %vm3497_vm1, %vm3494_vm10  ;;  %9561 = vmatprep.subr.bf16.mxu1 %v10539_v17  ;;  %vm2857_vm10 = vcmp.eq.s32.totalorder %v15068_v24, %v12152_v16 }
 0x266   :  { %v15122_v61 = vsel %vm12246_vm11, 4294967295, %v15121_v61  ;;  %9562 = vmatpush3.bf16.msra.mxu1 %v10539_v17  ;;  %vm8114_vm4 = vmpackc.low %vm2857_vm10, %vm2854_vm9 }
 0x267   :  { %15123 = vst [vmem:[#allocation45_spill] sm:$0xff] %v15122_v61  ;;  %v12260_v6 = vpop.permute.xlu1 %3477  ;;  %v14847_v61 = vmov 12  }
 0x268   :  { %8786 = vmatpush3.bf16.msra.mxu0 %v11563_v15  ;;  %15124 = vst [vmem:[#allocation46_spill] sm:$0xff] %v12260_v6  ;;  %10484 = vset.pattern.permute.xlu1 %v14847_v61 }
 0x269   :  { %8787 = vmatprep.subr.bf16.mxu0 %v11583_v26  ;;  %10485 = vset.pattern.permute.xlu0 %v14847_v61 }
 0x26a   :  { %4763 = vperm.xlu1 %10484, %v11618_v5   ;;  %4766 = vperm.xlu0 %10485, %v11625_v18   ;;  %v12281_v5 = vld [vmem:[%s14754_s3 + $0x20] sm:$0xff] }
 0x26b   :  { %9688 = vmatmul.mubr.msk.bf16.gmra.mrb[112].mxu0 %vm15115_vm3, %v2584_v23  ;;  %v12273_v23 = vpop.permute.xlu0 %3483  ;;  %v12287_v18 = vld [vmem:[%s14756_s4] sm:$0xff]  }
 0x26c   :  { %8788 = vmatpush3.bf16.msra.mxu0 %v11567_v21  ;;  %8109 = vmatprep.mubr.msk.bf16.mxu0 %vm8108_vm14, %v15070_v22  ;;  %v12271_v3 = vpop.permute.xlu1 %3480  ;;  %15126 = vst [vmem:[#allocation48_spill] sm:$0xff] %v12273_v23  ;;  %15127 = vst [vmem:[#allocation49_spill] sm:$0xff] %v12287_v18 }
 0x26d   :  { %8789 = vmatprep.subr.bf16.mxu0 %v11585_v19  ;;  %15125 = vst [vmem:[#allocation47_spill] sm:$0xff] %v12271_v3  ;;  %9571 = vmatprep.subr.bf16.mxu1 %v12287_v18 }
 0x26e   :  { %4769 = vperm.xlu1 %10484, %v11634_v47   ;;  %4775 = vperm.xlu0 %10485, %v12281_v5   ;;  %v12294_v47 = vld [vmem:[%s14754_s3 + $0x18] sm:$0xff] }
 0x26f   :  { %v12300_v17 = vpop.permute.xlu0 %3489 }
 0x270   :  { %8790 = vmatpush3.bf16.msra.mxu0 %v11569_v51  ;;  %15129 = vst [vmem:[#allocation51_spill] sm:$0xff] %v12300_v17 }
 0x271   :  { %8791 = vmatprep.subr.bf16.mxu0 %v11587_v35 }
 0x272   :  { %4772 = vperm.xlu1 %10484, %v12294_v47   ;;  %4781 = vperm.xlu0 %10485, %v12305_v20  }
 0x273   :  { %v12322_v53 = vpop.permute.xlu0 %3794 }
 0x274   :  { %8792 = vmatpush3.bf16.msra.mxu0 %v11571_v62  ;;  %v12289_v61 = vpop.permute.xlu1 %3486  ;;  %vm3819_vm0 = vcmp.eq.s32.totalorder %v15058_v46, %v12322_v53 }
 0x275   :  { %8793 = vmatprep.subr.bf16.mxu0 %v11589_v33  ;;  %15128 = vst [vmem:[#allocation50_spill] sm:$0xff] %v12289_v61  ;;  %v12341_v54 = vsel %vm3819_vm0, 1.0, %v15059_v43  ;;  %vm2863_vm0 = vcmp.eq.s32.totalorder %v15068_v24, %v12165_v58 }
 0x276   :  { %4778 = vperm.xlu1 %10484, %v12311_v34   ;;  %15131 = vst [vmem:[#allocation53_spill] sm:$0xff] %v12341_v54  ;;  %vm8118_vm9 = vmpackc.low %vm2863_vm0, %vm2860_vm15  ;;  %vm3171_vm15 = vcmp.eq.s32.totalorder %v15068_v24, %v12184_v45  ;;  %vm3181_vm0 = vcmp.eq.s32.totalorder %v15064_v11, %v12194_v59 }
 0x277   :  { %v12343_v50 = vpop.permute.xlu0 %3803 }
 0x278   :  { %8794 = vmatpush3.bf16.msra.mxu0 %v11573_v9  ;;  %15132 = vst [vmem:[#allocation54_spill] sm:$0xff] %v12343_v50  ;;  %vm3828_vm7 = vcmp.eq.s32.totalorder %v15058_v46, %v12343_v50 }
 0x279   :  { %8795 = vmatprep.subr.bf16.mxu0 %v11591_v4  ;;  %v12365_v27 = vsel %vm3828_vm7, 1.0, %v15059_v43 }
 0x27a   :  { %4784 = vperm.xlu1 %10484, %v12333_v30   ;;  %15135 = vst [vmem:[#allocation57_spill] sm:$0xff] %v12365_v27  ;;  %v14875_v27 = vmov 13  }
 0x27b   :  { %v12373_v56 = vpop.permute.xlu0 %3809  ;;  %10486 = vset.pattern.permute.xlu0 %v14875_v27 }
 0x27c   :  { %8796 = vmatpush3.bf16.msra.mxu0 %v11575_v32  ;;  %v12320_v28 = vpop.permute.xlu1 %3492  ;;  %15136 = vst [vmem:[#allocation58_spill] sm:$0xff] %v12373_v56  ;;  %vm3834_vm3 = vcmp.eq.s32.totalorder %v15058_v46, %v12373_v56  ;;  %v12428_v56 = vld [vmem:[%s14754_s3] sm:$0xff] }
 0x27d   :  { %8797 = vmatprep.subr.bf16.mxu0 %v11593_v1  ;;  %15130 = vst [vmem:[#allocation52_spill] sm:$0xff] %v12320_v28  ;;  %v12387_v10 = vsel %vm3834_vm3, 1.0, %v15059_v43  ;;  %5086 = vperm.xlu0 %10486, %v12428_v56   ;;  %vm3175_vm3 = vcmp.eq.s32.totalorder %v15064_v11, %v12189_v12 }
 0x27e   :  { %15139 = vst [vmem:[#allocation61_spill] sm:$0xff] %v12387_v10  ;;  %10487 = vset.pattern.permute.xlu1 %v14875_v27 }
 0x280   :  { %8798 = vmatpush3.bf16.msra.mxu0 %v11577_v0 }
 0x281   :  { %8838 = vmatprep.subr.bf16.mxu0 %v11579_v31  ;;  %v12338_v41 = vpop.permute.xlu1 %3797  ;;  %5095 = vperm.xlu0 %10486, %v12294_v47  }
 0x282   :  { %vm3822_vm1 = vcmp.eq.s32.totalorder %v15058_v46, %v12338_v41 }
 0x283   :  { %8111 = vmatmul.mubr.msk.bf16.vlgmr.msra.gmra.mrb[116].mxu0 %vm8110_vm2, %v15070_v22  ;;  %v12351_v48 = vsel %vm3822_vm1, 1.0, %v15059_v43  ;;  %vm2867_vm2 = vcmp.eq.s32.totalorder %v15064_v11, %v12175_v25 }
 0x284   :  { %15133 = vst [vmem:[#allocation55_spill] sm:$0xff] %v12351_v48  ;;  %8839 = vmatpush3.bf16.msra.mxu0 %v11559_v52  ;;  %8113 = vmatprep.mubr.msk.bf16.mxu0 %vm8112_vm8, %v15070_v22  ;;  %vm2870_vm8 = vcmp.eq.s32.totalorder %v15064_v11, %v12180_v60  ;;  %v12414_v48 = vpop.permute.xlu0 %3815 }
 0x285   :  { %8840 = vmatprep.subr.bf16.mxu0 %v11581_v36  ;;  %v12362_v14 = vpop.permute.xlu1 %3800  ;;  %15142 = vst [vmem:[#allocation64_spill] sm:$0xff] %v12414_v48  ;;  %vm3840_vm7 = vcmp.eq.s32.totalorder %v15058_v46, %v12414_v48  ;;  %vm8120_vm10 = vmpackc.low %vm2870_vm8, %vm2867_vm2  ;;  %5101 = vperm.xlu0 %10486, %v12311_v34   ;;  %vm3178_vm2 = vcmp.eq.s32.totalorder %v15064_v11, %v12198_v29 }
 0x286   :  { %15134 = vst [vmem:[#allocation56_spill] sm:$0xff] %v12362_v14  ;;  %vm3825_vm14 = vcmp.eq.s32.totalorder %v15058_v46, %v12362_v14  ;;  %v12441_v27 = vsel %vm3840_vm7, 1.0, %v15059_v43  ;;  %vm3180_vm7 = vcmp.eq.s32.totalorder %v15068_v24, %v12194_v59 }
 0x287   :  { %v12376_v54 = vsel %vm3825_vm14, 1.0, %v15059_v43  ;;  %15144 = vst [vmem:[#allocation66_spill] sm:$0xff] %v12441_v27  ;;  %vm3172_vm14 = vcmp.eq.s32.totalorder %v15064_v11, %v12184_v45 }
 0x288   :  { %15137 = vst [vmem:[#allocation59_spill] sm:$0xff] %v12376_v54  ;;  %8841 = vmatpush3.bf16.msra.mxu0 %v11563_v15 }
 0x289   :  { %8842 = vmatprep.subr.bf16.mxu0 %v11583_v26  ;;  %v12384_v16 = vpop.permute.xlu1 %3806  ;;  %5107 = vperm.xlu0 %10486, %v12333_v30  }
 0x28a   :  { %15138 = vst [vmem:[#allocation60_spill] sm:$0xff] %v12384_v16  ;;  %vm3831_vm6 = vcmp.eq.s32.totalorder %v15058_v46, %v12384_v16 }
 0x28b   :  { %8115 = vmatmul.mubr.msk.bf16.gmra.mrb[120].mxu0 %vm8114_vm4, %v15070_v22  ;;  %v12393_v13 = vsel %vm3831_vm6, 1.0, %v15059_v43  ;;  %vm8122_vm4 = vmpackc.low %vm2869_vm13, %vm2866_vm12  ;;  %vm3174_vm6 = vcmp.eq.s32.totalorder %v15068_v24, %v12189_v12  ;;  %vm3187_vm12 = vcmp.eq.s32.totalorder %v15064_v11, %v12206_v63 }
 0x28c   :  { %15140 = vst [vmem:[#allocation62_spill] sm:$0xff] %v12393_v13  ;;  %8843 = vmatpush3.bf16.msra.mxu0 %v11567_v21  ;;  %8117 = vmatprep.mubr.msk.bf16.mxu0 %vm8116_vm5, %v15070_v22  ;;  %v12419_v13 = vld [vmem:[%s14754_s3 + $0x8] sm:$0xff]  ;;  %vm8133_vm5 = vmpackc.low %vm3175_vm3, %vm3172_vm14  ;;  %vm3183_vm3 = vcmp.eq.s32.totalorder %v15068_v24, %v12214_v7 }
 0x28d   :  { %8844 = vmatprep.subr.bf16.mxu0 %v11585_v19  ;;  %v12404_v54 = vpop.permute.xlu1 %3812  ;;  %5089 = vperm.xlu1 %10487, %v12419_v13   ;;  %vm8135_vm8 = vmpackc.low %vm3174_vm6, %vm3171_vm15  ;;  %vm3193_vm6 = vcmp.eq.s32.totalorder %v15064_v11, %v12222_v39 }
 0x28e   :  { %15141 = vst [vmem:[#allocation63_spill] sm:$0xff] %v12404_v54  ;;  %vm3837_vm1 = vcmp.eq.s32.totalorder %v15058_v46, %v12404_v54 }
 0x28f   :  { %v12423_v10 = vsel %vm3837_vm1, 1.0, %v15059_v43  ;;  %vm8137_vm1 = vmpackc.low %vm3181_vm0, %vm3178_vm2  ;;  %vm3176_vm2 = vcmp.eq.s32.totalorder %v15058_v46, %v12189_v12 }
 0x290   :  { %15143 = vst [vmem:[#allocation65_spill] sm:$0xff] %v12423_v10  ;;  %8845 = vmatpush3.bf16.msra.mxu0 %v11569_v51 }
 0x291   :  { %8846 = vmatprep.subr.bf16.mxu0 %v11587_v35  ;;  %5092 = vperm.xlu1 %10487, %v12456_v8  }
 0x292   :  { %v12557_v12 = vpop.permute.xlu1 %4117 }
 0x293   :  { %8119 = vmatmul.mubr.msk.bf16.gmra.mrb[124].mxu0 %vm8118_vm9, %v15070_v22  ;;  %vm3177_vm9 = vcmp.eq.s32.totalorder %v15068_v24, %v12198_v29  ;;  %15150 = vst [vmem:[#allocation72_spill] sm:$0xff] %v12557_v12  ;;  %v14905_v12 = vmov 14  }
 0x294   :  { %8847 = vmatpush3.bf16.msra.mxu0 %v11571_v62  ;;  %8121 = vmatprep.mubr.msk.bf16.mxu0 %vm8120_vm10, %v15070_v22  ;;  %vm3184_vm10 = vcmp.eq.s32.totalorder %v15064_v11, %v12214_v7  ;;  %vm8139_vm13 = vmpackc.low %vm3180_vm7, %vm3177_vm9  ;;  %vm3192_vm7 = vcmp.eq.s32.totalorder %v15068_v24, %v12222_v39 }
 0x295   :  { %8848 = vmatprep.subr.bf16.mxu0 %v11589_v33  ;;  %5098 = vperm.xlu1 %10487, %v12281_v5   ;;  %vm8141_vm14 = vmpackc.low %vm3187_vm12, %vm3184_vm10  ;;  %vm3179_vm10 = vcmp.eq.s32.totalorder %v15058_v46, %v12198_v29  ;;  %vm3182_vm12 = vcmp.eq.s32.totalorder %v15058_v46, %v12194_v59 }
 0x296   :  { %10489 = vset.pattern.permute.xlu0 %v14905_v12 }
 0x297   :  { %5412 = vperm.xlu0 %10489, %v12419_v13  }
 0x298   :  { %8849 = vmatpush3.bf16.msra.mxu0 %v11573_v9 }
 0x299   :  { %8850 = vmatprep.subr.bf16.mxu0 %v11591_v4  ;;  %5104 = vperm.xlu1 %10487, %v12305_v20  }
 0x29b   :  { %8123 = vmatmul.mubr.msk.bf16.gmra.mrb[128].mxu0 %vm8122_vm4, %v15070_v22  ;;  %vm3186_vm4 = vcmp.eq.s32.totalorder %v15068_v24, %v12206_v63  ;;  %5421 = vperm.xlu0 %10489, %v12281_v5  }
 0x29c   :  { %8851 = vmatpush3.bf16.msra.mxu0 %v11575_v32  ;;  %8134 = vmatprep.mubr.msk.bf16.mxu0 %vm8133_vm5, %v15070_v22  ;;  %vm3190_vm5 = vcmp.eq.s32.totalorder %v15064_v11, %v12224_v40  ;;  %vm8143_vm15 = vmpackc.low %vm3186_vm4, %vm3183_vm3  ;;  %vm15152_vm3 = vcmask 785408   ;;  %vm3191_vm4 = vcmp.eq.s32.totalorder %v15058_v46, %v12224_v40 }
 0x29d   :  { %8852 = vmatprep.subr.bf16.mxu0 %v11593_v1  ;;  %v12489_v48 = vpop.f32.mrb[44].mxu0  ;;  %vm8145_vm0 = vmpackc.low %vm3193_vm6, %vm3190_vm5  ;;  %10488 = vset.pattern.permute.xlu1 %v14905_v12  ;;  %vm3194_vm5 = vcmp.eq.s32.totalorder %v15058_v46, %v12222_v39  ;;  %vm3496_vm6 = vcmp.eq.s32.totalorder %v15058_v46, %v12237_v44  ;;  %v3215_v13 = vsel %vm3191_vm4, 1.0, %v15059_v43  ;;  %vm3517_vm4 = vcmp.eq.s32.totalorder %v15058_v46, %v12320_v28 }
 0x29e   :  { %v12491_v10 = vpop.f32.mrb[45].mxu0  ;;  %5409 = vperm.xlu1 %10488, %v12428_v56   ;;  %v3218_v56 = vsel %vm3194_vm5, 1.0, %v15059_v43  ;;  %vm3514_vm5 = vcmp.eq.s32.totalorder %v15058_v46, %v12300_v17 }
 0x29f   :  { %v12494_v27 = vpop.f32.mrb[46].mxu0  ;;  %5427 = vperm.xlu0 %10489, %v12305_v20  }
 0x2a0   :  { %8853 = vmatpush3.bf16.msra.mxu0 %v11577_v0  ;;  %15145 = vst [vmem:[#allocation67_spill] sm:$0xff] %v12494_v27  ;;  %v12497_v25 = vpop.f32.mrb[47].mxu0 }
 0x2a1   :  { %9731 = vmatprep.subr.bf16.mxu0 %v11595_v38 }
 0x2a2   :  { %5415 = vperm.xlu1 %10488, %v12456_v8  }
 0x2a3   :  { %8136 = vmatmul.mubr.msk.bf16.vlgmr.msra.gmra.mrb[132].mxu0 %vm8135_vm8, %v15070_v22  ;;  %vm3173_vm8 = vcmp.eq.s32.totalorder %v15058_v46, %v12184_v45 }
 0x2a4   :  { %9732 = vmatpush3.bf16.msra.mxu0 %v11595_v38  ;;  %v8469_v60 = vpop.f32.mrb[0].mxu1  ;;  %8138 = vmatprep.mubr.msk.bf16.mxu0 %vm8137_vm1, %v15070_v22  ;;  %vm3189_vm1 = vcmp.eq.s32.totalorder %v15068_v24, %v12224_v40 }
 0x2a5   :  { %9733 = vmatprep.subr.bf16.mxu0 %v11597_v2  ;;  %v8470_v58 = vpop.f32.mrb[1].mxu1  ;;  %vm8147_vm9 = vmpackc.low %vm3192_vm7, %vm3189_vm1 }
 0x2a6   :  { %v12507_v54 = vadd.f32 %v8470_v58, %v8469_v60  ;;  %v8472_v16 = vpop.f32.mrb[2].mxu1  ;;  %v12513_v0 = vpop.f32.mrb[48].mxu0  ;;  %5418 = vperm.xlu1 %10488, %v12294_v47  }
 0x2a7   :  { %15146 = vst [vmem:[#allocation68_spill] sm:$0xff] %v12513_v0  ;;  %v8473_v18 = vpop.f32.mrb[3].mxu1  ;;  %v12515_v50 = vpop.f32.mrb[49].mxu0 }
 0x2a8   :  { %15147 = vst [vmem:[#allocation69_spill] sm:$0xff] %v12515_v50  ;;  %9734 = vmatpush3.bf16.msra.mxu0 %v11597_v2  ;;  %v12518_v14 = vadd.f32 %v8473_v18, %v8472_v16  ;;  %v12520_v1 = vpop.f32.mrb[50].mxu0 }
 0x2a9   :  { %15148 = vst [vmem:[#allocation70_spill] sm:$0xff] %v12520_v1  ;;  %9735 = vmatprep.subr.bf16.mxu0 %v11600_v57  ;;  %v12523_v60 = vpop.f32.mrb[51].mxu0 }
 0x2aa   :  { %15149 = vst [vmem:[#allocation71_spill] sm:$0xff] %v12523_v60  ;;  %5424 = vperm.xlu1 %10488, %v12311_v34  }
 0x2ab   :  { %8140 = vmatmul.mubr.msk.bf16.gmra.mrb[136].mxu0 %vm8139_vm13, %v15070_v22  ;;  %vm3185_vm13 = vcmp.eq.s32.totalorder %v15058_v46, %v12214_v7 }
 0x2ac   :  { %9736 = vmatpush3.bf16.msra.mxu0 %v11600_v57  ;;  %v8475_v58 = vpop.f32.mrb[4].mxu1  ;;  %8142 = vmatprep.mubr.msk.bf16.mxu0 %vm8141_vm14, %v15070_v22  ;;  %vm3188_vm14 = vcmp.eq.s32.totalorder %v15058_v46, %v12206_v63  ;;  %v3209_v59 = vsel %vm3185_vm13, 1.0, %v15059_v43  ;;  %vm3505_vm13 = vcmp.eq.s32.totalorder %v15058_v46, %v12271_v3 }
 0x2ad   :  { %9737 = vmatprep.subr.bf16.mxu0 %v11602_v37  ;;  %v8476_v16 = vpop.f32.mrb[5].mxu1 }
 0x2ae   :  { %v12533_v18 = vadd.f32 %v8476_v16, %v8475_v58  ;;  %v8478_v1 = vpop.f32.mrb[6].mxu1  ;;  %5430 = vperm.xlu1 %10488, %v12333_v30  }
 0x2af   :  { %v8479_v0 = vpop.f32.mrb[7].mxu1 }
 0x2b0   :  { %9738 = vmatpush3.bf16.msra.mxu0 %v11602_v37  ;;  %v12540_v60 = vadd.f32 %v8479_v0, %v8478_v1  ;;  %v3200_v0 = vsel %vm3176_vm2, 1.0, %v15059_v43  ;;  %v3197_v1 = vsel %vm3173_vm8, 1.0, %v15059_v43 }
 0x2b1   :  { %9739 = vmatprep.subr.bf16.mxu0 %v15057_v42  ;;  %v3221_v27 = vpack.c.bf16 %v3200_v0, %v3197_v1  ;;  %v3212_v0 = vsel %vm3188_vm14, 1.0, %v15059_v43  ;;  %vm3511_vm14 = vcmp.eq.s32.totalorder %v15058_v46, %v12289_v61 }
 0x2b2   :  { %v3227_v9 = vpack.c.bf16 %v3212_v0, %v3209_v59 }
 0x2b3   :  { %8144 = vmatmul.mubr.msk.bf16.gmra.mrb[140].mxu0 %vm8143_vm15, %v15070_v22  ;;  %vm3499_vm15 = vcmp.eq.s32.totalorder %v15058_v46, %v12232_v49 }
 0x2b4   :  { %9740 = vmatpush3.bf16.msra.mxu0 %v15057_v42  ;;  %v8481_v58 = vpop.f32.mrb[8].mxu1  ;;  %8146 = vmatprep.mubr.msk.bf16.mxu0 %vm8145_vm0, %v15070_v22  ;;  %vm15153_vm0 = vmmov %vm15152_vm3  ;;  %v3523_v59 = vsel %vm3499_vm15, 1.0, %v15059_v43 }
 0x2b5   :  { %9741 = vmatprep.subr.bf16.mxu0 %v11604_v55  ;;  %v8482_v45 = vpop.f32.mrb[9].mxu1  ;;  %vm15154_vm2 = vmmov %vm15153_vm0 }
 0x2b6   :  { %v12559_v16 = vadd.f32 %v8482_v45, %v8481_v58  ;;  %v8484_v50 = vpop.f32.mrb[10].mxu1  ;;  %v12574_v58 = vpop.permute.xlu1 %4123  ;;  %vm15155_vm8 = vmmov %vm15153_vm0 }
 0x2b7   :  { %v8485_v32 = vpop.f32.mrb[11].mxu1  ;;  %15151 = vst [vmem:[#allocation73_spill] sm:$0xff] %v12574_v58  ;;  %vm15156_vm1 = vmmov %vm15153_vm0 }
 0x2b8   :  { %9742 = vmatpush3.bf16.msra.mxu0 %v11604_v55  ;;  %v12562_v4 = vadd.f32 %v8485_v32, %v8484_v50  ;;  %v3203_v32 = vsel %vm3179_vm10, 1.0, %v15059_v43  ;;  %v3206_v50 = vsel %vm3182_vm12, 1.0, %v15059_v43  ;;  %vm3502_vm12 = vcmp.eq.s32.totalorder %v15058_v46, %v12260_v6  ;;  %vm15163_vm15 = vmmov %vm15153_vm0  ;;  %v15178_v6 = vld [vmem:[#allocation18_spill] sm:$0xff] }
 0x2b9   :  { %9761 = vmatprep.subr.bf16.mxu0 %v11595_v38  ;;  %v3224_v63 = vpack.c.bf16 %v3206_v50, %v3203_v32  ;;  %v12595_v32 = vpop.permute.xlu0 %4120  ;;  %v3520_v50 = vsel %vm3496_vm6, 1.0, %v15059_v43  ;;  %vm15162_vm6 = vmmov %vm15153_vm0 }
 0x2ba   :  { %v3544_v12 = vpack.c.bf16 %v3523_v59, %v3520_v50 }
 0x2bb   :  { %8148 = vmatmul.mubr.msk.bf16.gmra.mrb[144].mxu0 %vm8147_vm9, %v15070_v22 }
 0x2bc   :  { %v8487_v29 = vpop.f32.mrb[12].mxu1  ;;  %9743 = vmatprep.mubr.msk.bf16.mxu0 %vm15152_vm3, %v3221_v27  ;;  %vm3508_vm3 = vcmp.eq.s32.totalorder %v15058_v46, %v12273_v23 }
 0x2bd   :  { %v8488_v1 = vpop.f32.mrb[13].mxu1 }
 0x2be   :  { %v8489_v7 = vadd.f32 %v8488_v1, %v8487_v29  ;;  %v8490_v45 = vpop.f32.mrb[14].mxu1  ;;  %v12589_v29 = vpop.permute.xlu1 %4126 }
 0x2bf   :  { %v8491_v58 = vpop.f32.mrb[15].mxu1 }
 0x2c0   :  { %v8492_v27 = vadd.f32 %v8491_v58, %v8490_v45  ;;  %v12615_v45 = vpop.permute.xlu0 %4129 }
 0x2c2   :  { %v12609_v8 = vpop.permute.xlu1 %4132 }
 0x2c3   :  { %9744 = vmatmul.mubr.msk.bf16.vlgmr.msra.gmra.mrb[148].mxu0 %vm15153_vm0, %v3224_v63  ;;  %vm3821_vm0 = vcmp.eq.s32.totalorder %v15064_v11, %v12338_v41 }
 0x2c4   :  { %9762 = vmatpush3.bf16.msra.mxu0 %v11595_v38  ;;  %v9535_v39 = vpop.f32.mrb[16].mxu1  ;;  %9747 = vmatprep.mubr.msk.bf16.mxu0 %vm15154_vm2, %v3227_v9  ;;  %v3230_v9 = vpack.c.bf16 %v3218_v56, %v3215_v13  ;;  %v12633_v13 = vpop.permute.xlu0 %4135  ;;  %vm3818_vm2 = vcmp.eq.s32.totalorder %v15064_v11, %v12322_v53 }
 0x2c5   :  { %9763 = vmatprep.subr.bf16.mxu0 %v11597_v2  ;;  %v12605_v40 = vadd.f32 %v9535_v39, %v12533_v18  ;;  %v1096_v58 = vpop.f32.mrb[17].mxu1 }
 0x2c6   :  { %v12613_v0 = vadd.f32 %v12507_v54, %v1096_v58  ;;  %v9536_v1 = vpop.f32.mrb[18].mxu1  ;;  %v12628_v5 = vpop.permute.xlu1 %4138 }
 0x2c7   :  { %v12618_v63 = vadd.f32 %v9536_v1, %v12540_v60  ;;  %v1099_v18 = vpop.f32.mrb[19].mxu1 }
 0x2c8   :  { %9764 = vmatpush3.bf16.msra.mxu0 %v11597_v2  ;;  %v12623_v39 = vadd.f32 %v12518_v14, %v1099_v18  ;;  %v12649_v34 = vpop.permute.xlu0 %4440  ;;  %v3532_v18 = vsel %vm3508_vm3, 1.0, %v15059_v43  ;;  %vm3817_vm3 = vcmp.eq.s32.totalorder %v15068_v24, %v12322_v53  ;;  %v15184_v53 = vld [vmem:[#allocation69_spill] sm:$0xff] }
 0x2c9   :  { %9765 = vmatprep.subr.bf16.mxu0 %v11600_v57  ;;  %15158 = vst [vmem:[#allocation75_spill] sm:$0xff] %v12649_v34  ;;  %vm4463_vm9 = vcmp.eq.s32.totalorder %v15068_v24, %v12649_v34 }
 0x2ca   :  { %v12642_v20 = vpop.permute.xlu1 %4443 }
 0x2cb   :  { %9748 = vmatmul.mubr.msk.bf16.gmra.mrb[152].mxu0 %vm15155_vm8, %v3230_v9  ;;  %15157 = vst [vmem:[#allocation74_spill] sm:$0xff] %v12642_v20  ;;  %vm4466_vm7 = vcmp.eq.s32.totalorder %v15068_v24, %v12642_v20  ;;  %v3535_v9 = vsel %vm3511_vm14, 1.0, %v15059_v43  ;;  %vm8183_vm8 = vmpackc.low %vm3821_vm0, %vm3818_vm2  ;;  %vm3820_vm14 = vcmp.eq.s32.totalorder %v15068_v24, %v12338_v41  ;;  %v15183_v41 = vld [vmem:[#allocation49_spill] sm:$0xff] }
 0x2cc   :  { %9766 = vmatpush3.bf16.msra.mxu0 %v11600_v57  ;;  %v9539_v14 = vpop.f32.mrb[20].mxu1  ;;  %9773 = vmatprep.mubr.msk.bf16.mxu0 %vm15156_vm1, %v3544_v12  ;;  %vm12660_vm10 = vmpackc.low %vm4466_vm7, %vm4463_vm9  ;;  %vm14967_vm7 = vcmask 130048  }
 0x2cd   :  { %9767 = vmatprep.subr.bf16.mxu0 %v11602_v37  ;;  %v12640_v47 = vadd.f32 %v9539_v14, %v8489_v7  ;;  %v1112_v56 = vpop.f32.mrb[21].mxu1 }
 0x2ce   :  { %v12645_v58 = vadd.f32 %v12559_v16, %v1112_v56  ;;  %v9540_v50 = vpop.f32.mrb[22].mxu1  ;;  %v15159_v16 = vmov 0  ;;  %v3550_v56 = vpack.c.bf16 %v3535_v9, %v3532_v18  ;;  %v12703_v9 = vpop.permute.xlu0 %4449 }
 0x2cf   :  { %v12651_v59 = vadd.f32 %v9540_v50, %v8492_v27  ;;  %v1115_v1 = vpop.f32.mrb[23].mxu1  ;;  %v15160_v16 = vsel %vm12660_vm10, 4294967295, %v15159_v16  ;;  %v3529_v27 = vsel %vm3505_vm13, 1.0, %v15059_v43  ;;  %v3541_v50 = vsel %vm3517_vm4, 1.0, %v15059_v43  ;;  %15165 = vst [vmem:[#allocation78_spill] sm:$0xff] %v12703_v9 }
 0x2d0   :  { %9768 = vmatpush3.bf16.msra.mxu0 %v11602_v37  ;;  %v12658_v12 = vadd.f32 %v12562_v4, %v1115_v1  ;;  %15161 = vst [vmem:[#allocation76_spill] sm:$0xff] %v15160_v16  ;;  %v3526_v4 = vsel %vm3502_vm12, 1.0, %v15059_v43  ;;  %v3538_v1 = vsel %vm3514_vm5, 1.0, %v15059_v43 }
 0x2d1   :  { %9769 = vmatprep.subr.bf16.mxu0 %v15057_v42  ;;  %v3547_v14 = vpack.c.bf16 %v3529_v27, %v3526_v4  ;;  %v3553_v4 = vpack.c.bf16 %v3541_v50, %v3538_v1  ;;  %v12700_v27 = vpop.permute.xlu1 %4446 }
 0x2d2   :  { %15164 = vst [vmem:[#allocation77_spill] sm:$0xff] %v12700_v27  ;;  %v12711_v7 = vpop.permute.xlu0 %4455 }
 0x2d3   :  { %15167 = vst [vmem:[#allocation80_spill] sm:$0xff] %v12711_v7 }
 0x2d4   :  { %9770 = vmatpush3.bf16.msra.mxu0 %v15057_v42 }
 0x2d5   :  { %9771 = vmatprep.subr.bf16.mxu0 %v11604_v55 }
 0x2d8   :  { %9772 = vmatpush3.bf16.msra.mxu0 %v11604_v55 }
 0x2d9   :  { %8948 = vmatprep.subr.bf16.mxu0 %v11579_v31 }
 0x2db   :  { %9774 = vmatmul.mubr.msk.bf16.vlgmr.msra.gmra.mrb[156].mxu0 %vm15162_vm6, %v3547_v14  ;;  %v12708_v14 = vpop.permute.xlu1 %4452 }
 0x2dc   :  { %8949 = vmatpush3.bf16.msra.mxu0 %v11559_v52  ;;  %9777 = vmatprep.mubr.msk.bf16.mxu0 %vm15163_vm15, %v3550_v56  ;;  %15166 = vst [vmem:[#allocation79_spill] sm:$0xff] %v12708_v14  ;;  %vm8185_vm15 = vmpackc.low %vm3820_vm14, %vm3817_vm3 }
 0x2dd   :  { %8950 = vmatprep.subr.bf16.mxu0 %v11581_v36 }
 0x2df   :  { %v12717_v16 = vpop.permute.xlu1 %4458 }
 0x2e0   :  { %8951 = vmatpush3.bf16.msra.mxu0 %v11563_v15  ;;  %15168 = vst [vmem:[#allocation81_spill] sm:$0xff] %v12717_v16 }
 0x2e1   :  { %8952 = vmatprep.subr.bf16.mxu0 %v11583_v26 }
 0x2e3   :  { %9778 = vmatmul.mubr.msk.bf16.gmra.mrb[160].mxu0 %vm15156_vm1, %v3553_v4 }
 0x2e4   :  { %8953 = vmatpush3.bf16.msra.mxu0 %v11567_v21  ;;  %v8519_v18 = vpop.f32.mrb[24].mxu1  ;;  %8184 = vmatprep.mubr.msk.bf16.mxu0 %vm8183_vm8, %v15070_v22 }
 0x2e5   :  { %8954 = vmatprep.subr.bf16.mxu0 %v11585_v19  ;;  %v8520_v56 = vpop.f32.mrb[25].mxu1 }
 0x2e6   :  { %v8521_v50 = vadd.f32 %v8520_v56, %v8519_v18  ;;  %v8522_v1 = vpop.f32.mrb[26].mxu1  ;;  %v12720_v56 = vpop.permute.xlu0 %4461 }
 0x2e7   :  { %v8523_v30 = vpop.f32.mrb[27].mxu1  ;;  %15169 = vst [vmem:[#allocation82_spill] sm:$0xff] %v12720_v56 }
 0x2e8   :  { %v1329_v54 = vadd.f32 %v8521_v50, %v12491_v10  ;;  %8955 = vmatpush3.bf16.msra.mxu0 %v11569_v51  ;;  %v8524_v4 = vadd.f32 %v8523_v30, %v8522_v1 }
 0x2e9   :  { %8956 = vmatprep.subr.bf16.mxu0 %v11587_v35  ;;  %v12724_v30 = vpop.permute.xlu1 %4763 }
 0x2ea   :  { %v1332_v60 = vadd.f32 %v8524_v4, %v12497_v25  ;;  %vm4788_vm9 = vcmp.eq.s32.totalorder %v15058_v46, %v12724_v30  ;;  %v12733_v23 = vpop.permute.xlu0 %4766 }
 0x2eb   :  { %v12731_v4 = vsel %vm4788_vm9, 1.0, %v15059_v43  ;;  %15172 = vst [vmem:[#allocation84_spill] sm:$0xff] %v12733_v23  ;;  %vm4791_vm12 = vcmp.eq.s32.totalorder %v15058_v46, %v12733_v23 }
 0x2ec   :  { %v1359_v17 = vpack.c.bf16 %v1332_v60, %v1329_v54  ;;  %8957 = vmatpush3.bf16.msra.mxu0 %v11571_v62  ;;  %v8525_v18 = vpop.f32.mrb[28].mxu1  ;;  %v15170_v54 = vld [vmem:[#allocation8_spill] sm:$0xff]  ;;  %15171 = vst [vmem:[#allocation83_spill] sm:$0xff] %v12731_v4  ;;  %v12740_v61 = vsel %vm4791_vm12, 1.0, %v15059_v43 }
 0x2ed   :  { %8958 = vmatprep.subr.bf16.mxu0 %v11589_v33  ;;  %v8526_v28 = vpop.f32.mrb[29].mxu1  ;;  %v12742_v3 = vpop.permute.xlu1 %4769 }
 0x2ee   :  { %v8527_v10 = vadd.f32 %v8526_v28, %v8525_v18  ;;  %v8528_v50 = vpop.f32.mrb[30].mxu1  ;;  %9563 = vmatprep.mubr.msk.bf16.mxu1 %vm14967_vm7, %v1359_v17  ;;  %v15173_v28 = vld [vmem:[#allocation14_spill] sm:$0xff]  ;;  %v15174_v17 = vld [vmem:[#allocation67_spill] sm:$0xff]  ;;  %15176 = vst [vmem:[#allocation85_spill] sm:$0xff] %v12742_v3  ;;  %vm4794_vm13 = vcmp.eq.s32.totalorder %v15058_v46, %v12742_v3 }
 0x2ef   :  { %v8529_v1 = vpop.f32.mrb[31].mxu1  ;;  %15175 = vst [vmem:[#allocation67_spill] sm:$0xff] %v12740_v61  ;;  %v15187_v3 = vld [vmem:[#allocation71_spill] sm:$0xff] }
 0x2f0   :  { %v1337_v25 = vadd.f32 %v12489_v48, %v8527_v10  ;;  %8959 = vmatpush3.bf16.msra.mxu0 %v15170_v54  ;;  %v8530_v60 = vadd.f32 %v8529_v1, %v8528_v50  ;;  %v15177_v50 = vld [vmem:[#allocation4_spill] sm:$0xff] }
 0x2f1   :  { %8960 = vmatprep.subr.bf16.mxu0 %v15173_v28  ;;  %v15179_v48 = vld [vmem:[#allocation56_spill] sm:$0xff]  ;;  %v12762_v4 = vpop.permute.xlu1 %4772 }
 0x2f2   :  { %v1340_v18 = vadd.f32 %v15174_v17, %v8530_v60  ;;  %vm3824_vm4 = vcmp.eq.s32.totalorder %v15064_v11, %v15179_v48  ;;  %vm4797_vm6 = vcmp.eq.s32.totalorder %v15058_v46, %v12762_v4  ;;  %vm3823_vm2 = vcmp.eq.s32.totalorder %v15068_v24, %v15179_v48 }
 0x2f3   :  { %v12771_v44 = vsel %vm4797_vm6, 1.0, %v15059_v43 }
 0x2f4   :  { %v1360_v10 = vpack.c.bf16 %v1340_v18, %v1337_v25  ;;  %8961 = vmatpush3.bf16.msra.mxu0 %v15177_v50  ;;  %v8531_v1 = vpop.f32.mrb[32].mxu1  ;;  %v15180_v25 = vld [vmem:[#allocation54_spill] sm:$0xff]  ;;  %v12760_v18 = vsel %vm4794_vm13, 1.0, %v15059_v43  ;;  %15186 = vst [vmem:[#allocation49_spill] sm:$0xff] %v12771_v44 }
 0x2f5   :  { %8962 = vmatprep.subr.bf16.mxu0 %v15178_v6  ;;  %v8532_v60 = vpop.f32.mrb[33].mxu1  ;;  %vm3827_vm5 = vcmp.eq.s32.totalorder %v15064_v11, %v15180_v25  ;;  %15181 = vst [vmem:[#allocation56_spill] sm:$0xff] %v12760_v18  ;;  %15182 = vst [vmem:[#allocation54_spill] sm:$0xff] %v12762_v4  ;;  %vm3826_vm8 = vcmp.eq.s32.totalorder %v15068_v24, %v15180_v25  ;;  %v15195_v25 = vld [vmem:[#allocation63_spill] sm:$0xff] }
 0x2f6   :  { %v8533_v17 = vadd.f32 %v8532_v60, %v8531_v1  ;;  %v8534_v49 = vpop.f32.mrb[34].mxu1  ;;  %9564 = vmatmul.mubr.msk.bf16.vlgmr.msra.gmra.mrb[40].mxu1 %vm14967_vm7, %v1360_v10  ;;  %v15185_v1 = vld [vmem:[#allocation7_spill] sm:$0xff]  ;;  %vm8187_vm0 = vmpackc.low %vm3827_vm5, %vm3824_vm4  ;;  %vm3836_vm6 = vcmp.eq.s32.totalorder %v15064_v11, %v15195_v25 }
 0x2f7   :  { %9572 = vmatpush3.bf16.msra.mxu1 %v15183_v41  ;;  %v8535_v61 = vpop.f32.mrb[35].mxu1  ;;  %vm8189_vm14 = vmpackc.low %vm3826_vm8, %vm3823_vm2 }
 0x2f8   :  { %v1345_v10 = vadd.f32 %v8533_v17, %v15184_v53  ;;  %8963 = vmatpush3.bf16.msra.mxu0 %v15185_v1  ;;  %v8536_v60 = vadd.f32 %v8535_v61, %v8534_v49  ;;  %9581 = vmatprep.subr.bf16.mxu1 %v11595_v38  ;;  %v12785_v61 = vpop.permute.xlu1 %4778 }
 0x2f9   :  { %9003 = vmatprep.subr.bf16.mxu0 %v11579_v31  ;;  %vm4803_vm12 = vcmp.eq.s32.totalorder %v15058_v46, %v12785_v61 }
 0x2fa   :  { %v1348_v23 = vadd.f32 %v8536_v60, %v15187_v3  ;;  %v12794_v60 = vpop.permute.xlu0 %4775  ;;  %v12797_v18 = vsel %vm4803_vm12, 1.0, %v15059_v43 }
 0x2fb   :  { %8186 = vmatmul.mubr.msk.bf16.vlgmr.msra.gmra.mrb[164].mxu0 %vm8185_vm15, %v15070_v22  ;;  %15190 = vst [vmem:[#allocation69_spill] sm:$0xff] %v12794_v60  ;;  %15191 = vst [vmem:[#allocation71_spill] sm:$0xff] %v12797_v18  ;;  %vm4800_vm13 = vcmp.eq.s32.totalorder %v15058_v46, %v12794_v60 }
 0x2fc   :  { %v1361_v4 = vpack.c.bf16 %v1348_v23, %v1345_v10  ;;  %9004 = vmatpush3.bf16.msra.mxu0 %v11559_v52  ;;  %v8537_v17 = vpop.f32.mrb[36].mxu1  ;;  %8188 = vmatprep.mubr.msk.bf16.mxu0 %vm8187_vm0, %v15070_v22  ;;  %v15188_v23 = vld [vmem:[#allocation60_spill] sm:$0xff]  ;;  %v15189_v10 = vld [vmem:[#allocation58_spill] sm:$0xff]  ;;  %v12810_v44 = vsel %vm4800_vm13, 1.0, %v15059_v43  ;;  %v12824_v48 = vpop.permute.xlu1 %4784  ;;  %vm3835_vm13 = vcmp.eq.s32.totalorder %v15068_v24, %v15195_v25 }
 0x2fd   :  { %9005 = vmatprep.subr.bf16.mxu0 %v11581_v36  ;;  %v8538_v49 = vpop.f32.mrb[37].mxu1  ;;  %vm3830_vm1 = vcmp.eq.s32.totalorder %v15064_v11, %v15188_v23  ;;  %vm3833_vm9 = vcmp.eq.s32.totalorder %v15064_v11, %v15189_v10  ;;  %15193 = vst [vmem:[#allocation60_spill] sm:$0xff] %v12810_v44  ;;  %vm3829_vm4 = vcmp.eq.s32.totalorder %v15068_v24, %v15188_v23 }
 0x2fe   :  { %v8539_v3 = vadd.f32 %v8538_v49, %v8537_v17  ;;  %v8540_v53 = vpop.f32.mrb[38].mxu1  ;;  %9567 = vmatprep.mubr.msk.bf16.mxu1 %vm14967_vm7, %v1361_v4  ;;  %v15192_v17 = vld [vmem:[#allocation68_spill] sm:$0xff]  ;;  %vm8191_vm3 = vmpackc.low %vm3833_vm9, %vm3830_vm1  ;;  %vm3832_vm5 = vcmp.eq.s32.totalorder %v15068_v24, %v15189_v10  ;;  %vm4809_vm0 = vcmp.eq.s32.totalorder %v15058_v46, %v12824_v48  ;;  %v15197_v23 = vpack.c.bf16 %v12623_v39, %v12613_v0 }
 0x2ff   :  { %v8541_v41 = vpop.f32.mrb[39].mxu1  ;;  %v12840_v10 = vsel %vm4809_vm0, 1.0, %v15059_v43  ;;  %vm8193_vm8 = vmpackc.low %vm3832_vm5, %vm3829_vm4  ;;  %v15200_v39 = vld [vmem:[#allocation12_spill] sm:$0xff]  ;;  %vm4144_vm4 = vcmp.eq.s32.totalorder %v15064_v11, %v12595_v32  ;;  %vm4143_vm0 = vcmp.eq.s32.totalorder %v15068_v24, %v12595_v32 }
 0x300   :  { %v1353_v4 = vadd.f32 %v15192_v17, %v8539_v3  ;;  %9006 = vmatpush3.bf16.msra.mxu0 %v11563_v15  ;;  %v8542_v49 = vadd.f32 %v8541_v41, %v8540_v53  ;;  %v15194_v3 = vld [vmem:[#allocation70_spill] sm:$0xff]  ;;  %v15196_v53 = vld [vmem:[#allocation64_spill] sm:$0xff]  ;;  %15198 = vst [vmem:[#allocation58_spill] sm:$0xff] %v12840_v10  ;;  %vm1558_vm9 = vcmp.eq.s32.totalorder %v15058_v46, %v15200_v39  ;;  %v15211_v39 = vld [vmem:[#allocation27_spill] sm:$0xff] }
 0x301   :  { %9007 = vmatprep.subr.bf16.mxu0 %v11583_v26  ;;  %vm3839_vm15 = vcmp.eq.s32.totalorder %v15064_v11, %v15196_v53  ;;  %v1582_v25 = vsel %vm1558_vm9, 1.0, %v15059_v43 }
 0x302   :  { %v1356_v17 = vadd.f32 %v15194_v3, %v8542_v49  ;;  %vm8195_vm1 = vmpackc.low %vm3839_vm15, %vm3836_vm6  ;;  %v15201_v3 = vld [vmem:[#allocation17_spill] sm:$0xff] }
 0x303   :  { %8190 = vmatmul.mubr.msk.bf16.gmra.mrb[168].mxu0 %vm8189_vm14, %v15070_v22  ;;  %vm1561_vm12 = vcmp.eq.s32.totalorder %v15058_v46, %v15201_v3  ;;  %vm3838_vm14 = vcmp.eq.s32.totalorder %v15068_v24, %v15196_v53  ;;  %v10541_v3 = vld [vmem:[%s14756_s4 + $0x10] sm:$0xff]  }
 0x304   :  { %v1362_v41 = vpack.c.bf16 %v1356_v17, %v1353_v4  ;;  %9008 = vmatpush3.bf16.msra.mxu0 %v11567_v21  ;;  %8192 = vmatprep.mubr.msk.bf16.mxu0 %vm8191_vm3, %v15070_v22  ;;  %v12833_v4 = vpop.permute.xlu0 %4781  ;;  %v15202_v17 = vpack.c.bf16 %v12618_v63, %v12605_v40  ;;  %v1585_v53 = vsel %vm1561_vm12, 1.0, %v15059_v43  ;;  %vm8197_vm5 = vmpackc.low %vm3838_vm14, %vm3835_vm13  ;;  %v15205_v63 = vpack.c.bf16 %v12651_v59, %v12640_v47  ;;  %v15208_v47 = vld [vmem:[#allocation21_spill] sm:$0xff] }
 0x305   :  { %9009 = vmatprep.subr.bf16.mxu0 %v11585_v19  ;;  %vm4806_vm2 = vcmp.eq.s32.totalorder %v15058_v46, %v12833_v4  ;;  %v1606_v40 = vpack.c.bf16 %v1585_v53, %v1582_v25  ;;  %vm4149_vm14 = vcmp.eq.s32.totalorder %v15068_v24, %v12589_v29  ;;  %v15209_v59 = vld [vmem:[#allocation25_spill] sm:$0xff] }
 0x306   :  { %9568 = vmatmul.mubr.msk.bf16.gmra.mrb[44].mxu1 %vm14967_vm7, %v1362_v41  ;;  %v12846_v49 = vsel %vm4806_vm2, 1.0, %v15059_v43  ;;  %v15203_v41 = vpack.c.bf16 %v12658_v12, %v12645_v58  ;;  %v15206_v58 = vld [vmem:[#allocation73_spill] sm:$0xff]  ;;  %v15210_v12 = vld [vmem:[#allocation26_spill] sm:$0xff] }
 0x307   :  { %9573 = vmatprep.mubr.msk.bf16.mxu1 %vm14967_vm7, %v15197_v23  ;;  %15199 = vst [vmem:[#allocation68_spill] sm:$0xff] %v12846_v49  ;;  %v15204_v23 = vld [vmem:[#allocation72_spill] sm:$0xff]  ;;  %vm4147_vm2 = vcmp.eq.s32.totalorder %v15064_v11, %v15206_v58  ;;  %vm4146_vm13 = vcmp.eq.s32.totalorder %v15068_v24, %v15206_v58 }
 0x308   :  { %9010 = vmatpush3.bf16.msra.mxu0 %v11569_v51  ;;  %vm4141_vm3 = vcmp.eq.s32.totalorder %v15064_v11, %v15204_v23  ;;  %vm4140_vm15 = vcmp.eq.s32.totalorder %v15068_v24, %v15204_v23 }
 0x309   :  { %9011 = vmatprep.subr.bf16.mxu0 %v11587_v35  ;;  %vm8208_vm6 = vmpackc.low %vm4144_vm4, %vm4141_vm3  ;;  %vm1564_vm3 = vcmp.eq.s32.totalorder %v15058_v46, %v15208_v47  ;;  %vm1567_vm4 = vcmp.eq.s32.totalorder %v15058_v46, %v15209_v59  ;;  %v15212_v47 = vld [vmem:[#allocation28_spill] sm:$0xff]  ;;  %v15213_v59 = vld [vmem:[#allocation29_spill] sm:$0xff] }
 0x30a   :  { %vm8210_vm9 = vmpackc.low %vm4143_vm0, %vm4140_vm15  ;;  %vm4156_vm15 = vcmp.eq.s32.totalorder %v15064_v11, %v12609_v8  ;;  %vm4153_vm0 = vcmp.eq.s32.totalorder %v15064_v11, %v12615_v45 }
 0x30b   :  { %8194 = vmatmul.mubr.msk.bf16.gmra.mrb[172].mxu0 %vm8193_vm8, %v15070_v22  ;;  %vm4150_vm8 = vcmp.eq.s32.totalorder %v15064_v11, %v12589_v29 }
 0x30c   :  { %9012 = vmatpush3.bf16.msra.mxu0 %v11571_v62  ;;  %8196 = vmatprep.mubr.msk.bf16.mxu0 %vm8195_vm1, %v15070_v22  ;;  %vm15207_vm1 = vcmask 785408   ;;  %vm8212_vm12 = vmpackc.low %vm4150_vm8, %vm4147_vm2 }
 0x30d   :  { %9013 = vmatprep.subr.bf16.mxu0 %v11589_v33  ;;  %vm8214_vm2 = vmpackc.low %vm4149_vm14, %vm4146_vm13  ;;  %vm1576_vm13 = vcmp.eq.s32.totalorder %v15058_v46, %v15213_v59  ;;  %vm15214_vm14 = vcmask 785408  }
 0x30e   :  { %9574 = vmatmul.mubr.msk.bf16.vlgmr.msra.gmra.mrb[40].mxu1 %vm14967_vm7, %v15202_v17  ;;  %v1588_v17 = vsel %vm1564_vm3, 1.0, %v15059_v43  ;;  %vm8216_vm8 = vmpackc.low %vm4156_vm15, %vm4153_vm0  ;;  %vm4162_vm3 = vcmp.eq.s32.totalorder %v15064_v11, %v12628_v5  ;;  %vm4142_vm0 = vcmp.eq.s32.totalorder %v15058_v46, %v15204_v23 }
 0x30f   :  { %9582 = vmatpush3.bf16.msra.mxu1 %v11595_v38  ;;  %9577 = vmatprep.mubr.msk.bf16.mxu1 %vm14967_vm7, %v15203_v41  ;;  %v1591_v41 = vsel %vm1567_vm4, 1.0, %v15059_v43  ;;  %vm4159_vm4 = vcmp.eq.s32.totalorder %v15064_v11, %v12633_v13 }
 0x310   :  { %9014 = vmatpush3.bf16.msra.mxu0 %v15170_v54  ;;  %9583 = vmatprep.subr.bf16.mxu1 %v11597_v2  ;;  %vm8220_vm15 = vmpackc.low %vm4162_vm3, %vm4159_vm4  ;;  %vm4157_vm3 = vcmp.eq.s32.totalorder %v15058_v46, %v12609_v8  ;;  %vm4154_vm4 = vcmp.eq.s32.totalorder %v15058_v46, %v12615_v45 }
 0x311   :  { %9015 = vmatprep.subr.bf16.mxu0 %v15173_v28 }
 0x313   :  { %8198 = vmatmul.mubr.msk.bf16.gmra.mrb[176].mxu0 %vm8197_vm5, %v15070_v22  ;;  %9584 = vmatpush3.bf16.msra.mxu1 %v11597_v2  ;;  %vm1573_vm5 = vcmp.eq.s32.totalorder %v15058_v46, %v15210_v12 }
 0x314   :  { %9016 = vmatpush3.bf16.msra.mxu0 %v15177_v50  ;;  %9585 = vmatprep.subr.bf16.mxu1 %v11600_v57  ;;  %v1597_v25 = vsel %vm1573_vm5, 1.0, %v15059_v43  ;;  %vm15215_vm5 = vmmov %vm15214_vm14 }
 0x315   :  { %9017 = vmatprep.subr.bf16.mxu0 %v15178_v6  ;;  %8209 = vmatprep.mubr.msk.bf16.mxu0 %vm8208_vm6, %v15070_v22  ;;  %vm1570_vm6 = vcmp.eq.s32.totalorder %v15058_v46, %v15211_v39  ;;  %v1600_v39 = vsel %vm1576_vm13, 1.0, %v15059_v43  ;;  %vm4148_vm13 = vcmp.eq.s32.totalorder %v15058_v46, %v15206_v58  ;;  %v4181_v58 = vsel %vm4157_vm3, 1.0, %v15059_v43 }
 0x316   :  { %9578 = vmatmul.mubr.msk.bf16.gmra.mrb[44].mxu1 %vm14967_vm7, %v15205_v63  ;;  %v1594_v53 = vsel %vm1570_vm6, 1.0, %v15059_v43  ;;  %v4172_v23 = vsel %vm4148_vm13, 1.0, %v15059_v43  ;;  %vm4471_vm13 = vcmp.eq.s32.totalorder %v15058_v46, %v12700_v27  ;;  %vm4477_vm3 = vcmp.eq.s32.totalorder %v15058_v46, %v12708_v14 }
 0x317   :  { %9586 = vmatpush3.bf16.msra.mxu1 %v11600_v57  ;;  %9593 = vmatprep.mubr.msk.bf16.mxu1 %vm15207_vm1, %v1606_v40  ;;  %v1609_v40 = vpack.c.bf16 %v1591_v41, %v1588_v17  ;;  %vm4155_vm1 = vcmp.eq.s32.totalorder %v15068_v24, %v12609_v8  ;;  %v1612_v63 = vpack.c.bf16 %v1597_v25, %v1594_v53  ;;  %v4166_v17 = vsel %vm4142_vm0, 1.0, %v15059_v43 }
 0x318   :  { %9018 = vmatpush3.bf16.msra.mxu0 %v15185_v1  ;;  %9587 = vmatprep.subr.bf16.mxu1 %v11602_v37  ;;  %vm4468_vm0 = vcmp.eq.s32.totalorder %v15058_v46, %v12642_v20  ;;  %v4495_v59 = vsel %vm4471_vm13, 1.0, %v15059_v43 }
 0x319   :  { %9821 = vmatprep.subr.bf16.mxu0 %v11595_v38 }
 0x31b   :  { %8211 = vmatmul.mubr.msk.bf16.vlgmr.msra.gmra.mrb[180].mxu0 %vm8210_vm9, %v15070_v22  ;;  %9588 = vmatpush3.bf16.msra.mxu1 %v11602_v37  ;;  %vm4152_vm9 = vcmp.eq.s32.totalorder %v15068_v24, %v12615_v45 }
 0x31c   :  { %9822 = vmatpush3.bf16.msra.mxu0 %v11595_v38  ;;  %9589 = vmatprep.subr.bf16.mxu1 %v15057_v42  ;;  %vm8218_vm6 = vmpackc.low %vm4155_vm1, %vm4152_vm9  ;;  %vm4158_vm1 = vcmp.eq.s32.totalorder %v15068_v24, %v12633_v13 }
 0x31d   :  { %9823 = vmatprep.subr.bf16.mxu0 %v11597_v2  ;;  %8213 = vmatprep.mubr.msk.bf16.mxu0 %vm8212_vm12, %v15070_v22  ;;  %vm1579_vm12 = vcmp.eq.s32.totalorder %v15058_v46, %v15212_v47  ;;  %vm15216_vm9 = vmmov %vm15215_vm5 }
 0x31e   :  { %v1603_v12 = vsel %vm1579_vm12, 1.0, %v15059_v43 }
 0x31f   :  { %9590 = vmatpush3.bf16.msra.mxu1 %v15057_v42 }
 0x320   :  { %9824 = vmatpush3.bf16.msra.mxu0 %v11597_v2  ;;  %9591 = vmatprep.subr.bf16.mxu1 %v11604_v55 }
 0x321   :  { %9825 = vmatprep.subr.bf16.mxu0 %v11600_v57 }
 0x323   :  { %8215 = vmatmul.mubr.msk.bf16.gmra.mrb[184].mxu0 %vm8214_vm2, %v15070_v22  ;;  %9592 = vmatpush3.bf16.msra.mxu1 %v11604_v55  ;;  %vm4145_vm2 = vcmp.eq.s32.totalorder %v15058_v46, %v12595_v32 }
 0x324   :  { %9826 = vmatpush3.bf16.msra.mxu0 %v11600_v57  ;;  %9601 = vmatprep.subr.bf16.mxu1 %v10541_v3  ;;  %v4169_v41 = vsel %vm4145_vm2, 1.0, %v15059_v43  ;;  %vm4465_vm2 = vcmp.eq.s32.totalorder %v15058_v46, %v12649_v34 }
 0x325   :  { %9827 = vmatprep.subr.bf16.mxu0 %v11602_v37  ;;  %8217 = vmatprep.mubr.msk.bf16.mxu0 %vm8216_vm8, %v15070_v22  ;;  %vm4161_vm8 = vcmp.eq.s32.totalorder %v15068_v24, %v12628_v5  ;;  %v4190_v32 = vpack.c.bf16 %v4169_v41, %v4166_v17 }
 0x326   :  { %9594 = vmatmul.mubr.msk.bf16.vlgmr.msra.gmra.mrb[48].mxu1 %vm15214_vm14, %v1609_v40  ;;  %vm8222_vm12 = vmpackc.low %vm4161_vm8, %vm4158_vm1  ;;  %vm4151_vm14 = vcmp.eq.s32.totalorder %v15058_v46, %v12589_v29  ;;  %v4178_v29 = vsel %vm4154_vm4, 1.0, %v15059_v43  ;;  %vm4480_vm4 = vcmp.eq.s32.totalorder %v15058_v46, %v12711_v7 }
 0x327   :  { %9597 = vmatprep.mubr.msk.bf16.mxu1 %vm15215_vm5, %v1612_v63  ;;  %9602 = vmatpush3.bf16.msra.mxu1 %v10541_v3  ;;  %v1615_v3 = vpack.c.bf16 %v1603_v12, %v1600_v39  ;;  %v4175_v25 = vsel %vm4151_vm14, 1.0, %v15059_v43  ;;  %v4196_v40 = vpack.c.bf16 %v4181_v58, %v4178_v29  ;;  %vm15217_vm8 = vmmov %vm15215_vm5  ;;  %vm4474_vm14 = vcmp.eq.s32.totalorder %v15058_v46, %v12703_v9  ;;  %v8579_v29 = vpop.f32.mrb[52].mxu0 }
 0x328   :  { %9828 = vmatpush3.bf16.msra.mxu0 %v11602_v37  ;;  %9611 = vmatprep.subr.bf16.mxu1 %v11595_v38  ;;  %v4193_v53 = vpack.c.bf16 %v4175_v25, %v4172_v23  ;;  %vm15218_vm1 = vmmov %vm15215_vm5  ;;  %v4498_v12 = vsel %vm4474_vm14, 1.0, %v15059_v43  ;;  %v4501_v39 = vsel %vm4477_vm3, 1.0, %v15059_v43  ;;  %v15223_v25 = vld [vmem:[#allocation84_spill] sm:$0xff] }
 0x329   :  { %9829 = vmatprep.subr.bf16.mxu0 %v15057_v42  ;;  %v4516_v17 = vpack.c.bf16 %v4498_v12, %v4495_v59  ;;  %vm4789_vm13 = vcmp.eq.s32.totalorder %v15068_v24, %v15223_v25 }
 0x32b   :  { %8219 = vmatmul.mubr.msk.bf16.gmra.mrb[188].mxu0 %vm8218_vm6, %v15070_v22  ;;  %vm4163_vm6 = vcmp.eq.s32.totalorder %v15058_v46, %v12628_v5  ;;  %v4492_v5 = vsel %vm4468_vm0, 1.0, %v15059_v43  ;;  %vm15222_vm0 = vmmov %vm15218_vm1 }
 0x32c   :  { %9830 = vmatpush3.bf16.msra.mxu0 %v15057_v42  ;;  %8221 = vmatprep.mubr.msk.bf16.mxu0 %vm8220_vm15, %v15070_v22  ;;  %vm4160_vm15 = vcmp.eq.s32.totalorder %v15058_v46, %v12633_v13  ;;  %v4187_v8 = vsel %vm4163_vm6, 1.0, %v15059_v43  ;;  %v4489_v13 = vsel %vm4465_vm2, 1.0, %v15059_v43  ;;  %vm4486_vm6 = vcmp.eq.s32.totalorder %v15058_v46, %v12720_v56 }
 0x32d   :  { %9831 = vmatprep.subr.bf16.mxu0 %v11604_v55  ;;  %v4184_v45 = vsel %vm4160_vm15, 1.0, %v15059_v43  ;;  %v4513_v47 = vpack.c.bf16 %v4492_v5, %v4489_v13  ;;  %vm15221_vm15 = vmmov %vm15218_vm1  ;;  %v4510_v23 = vsel %vm4486_vm6, 1.0, %v15059_v43  ;;  %vm4787_vm2 = vcmp.eq.s32.totalorder %v15064_v11, %v12724_v30 }
 0x32e   :  { %9598 = vmatmul.mubr.msk.bf16.gmra.mrb[52].mxu1 %vm15216_vm9, %v1615_v3  ;;  %v4199_v63 = vpack.c.bf16 %v4187_v8, %v4184_v45  ;;  %vm15219_vm9 = vmmov %vm15218_vm1  ;;  %v4504_v3 = vsel %vm4480_vm4, 1.0, %v15059_v43 }
 0x32f   :  { %v4519_v41 = vpack.c.bf16 %v4504_v3, %v4501_v39 }
 0x330   :  { %9832 = vmatpush3.bf16.msra.mxu0 %v11604_v55 }
 0x331   :  { %9851 = vmatprep.subr.bf16.mxu0 %v11595_v38 }
 0x333   :  { %8223 = vmatmul.mubr.msk.bf16.gmra.mrb[192].mxu0 %vm8222_vm12, %v15070_v22  ;;  %vm15220_vm12 = vmmov %vm15218_vm1 }
 0x334   :  { %9833 = vmatprep.mubr.msk.bf16.mxu0 %vm15215_vm5, %v4190_v32  ;;  %vm4483_vm5 = vcmp.eq.s32.totalorder %v15058_v46, %v12717_v16 }
 0x335   :  { %v4507_v32 = vsel %vm4483_vm5, 1.0, %v15059_v43 }
 0x336   :  { %v4522_v58 = vpack.c.bf16 %v4510_v23, %v4507_v32 }
 0x33b   :  { %9834 = vmatmul.mubr.msk.bf16.vlgmr.msra.gmra.mrb[196].mxu0 %vm15217_vm8, %v4193_v53  ;;  %vm4790_vm8 = vcmp.eq.s32.totalorder %v15064_v11, %v15223_v25  ;;  %v8580_v53 = vpop.f32.mrb[53].mxu0 }
 0x33c   :  { %9852 = vmatpush3.bf16.msra.mxu0 %v11595_v38  ;;  %9837 = vmatprep.mubr.msk.bf16.mxu0 %vm15218_vm1, %v4196_v40  ;;  %vm8258_vm1 = vmpackc.low %vm4790_vm8, %vm4787_vm2  ;;  %v8582_v40 = vpop.f32.mrb[54].mxu0  ;;  %v13073_v25 = vadd.f32 %v8580_v53, %v8579_v29  ;;  %v15227_v29 = vld [vmem:[#allocation69_spill] sm:$0xff]  ;;  %v13115_v53 = vpop.permute.xlu1 %5089 }
 0x33d   :  { %9853 = vmatprep.subr.bf16.mxu0 %v11597_v2  ;;  %v8583_v8 = vpop.f32.mrb[55].mxu0  ;;  %vm4799_vm2 = vcmp.eq.s32.totalorder %v15064_v11, %v15227_v29 }
 0x33e   :  { %v8585_v45 = vpop.f32.mrb[56].mxu0 }
 0x33f   :  { %v8586_v5 = vpop.f32.mrb[57].mxu0 }
 0x340   :  { %9854 = vmatpush3.bf16.msra.mxu0 %v11597_v2  ;;  %v8588_v13 = vpop.f32.mrb[58].mxu0 }
 0x341   :  { %9855 = vmatprep.subr.bf16.mxu0 %v11600_v57 }
 0x343   :  { %9838 = vmatmul.mubr.msk.bf16.gmra.mrb[200].mxu0 %vm15219_vm9, %v4199_v63  ;;  %vm15224_vm9 = vmmov %vm15222_vm0  ;;  %v13057_v63 = vadd.f32 %v8586_v5, %v8585_v45  ;;  %v13077_v5 = vadd.f32 %v8583_v8, %v8582_v40  ;;  %v13133_v40 = vpop.permute.xlu1 %5092 }
 0x344   :  { %9856 = vmatpush3.bf16.msra.mxu0 %v11600_v57  ;;  %9863 = vmatprep.mubr.msk.bf16.mxu0 %vm15220_vm12, %v4513_v47  ;;  %v8589_v47 = vpop.f32.mrb[59].mxu0  ;;  %vm4786_vm12 = vcmp.eq.s32.totalorder %v15068_v24, %v12724_v30 }
 0x345   :  { %9857 = vmatprep.subr.bf16.mxu0 %v11602_v37  ;;  %v8591_v59 = vpop.f32.mrb[60].mxu0  ;;  %vm8260_vm4 = vmpackc.low %vm4789_vm13, %vm4786_vm12  ;;  %v13075_v45 = vadd.f32 %v8589_v47, %v8588_v13  ;;  %vm4798_vm12 = vcmp.eq.s32.totalorder %v15068_v24, %v15227_v29  ;;  %vm4808_vm13 = vcmp.eq.s32.totalorder %v15064_v11, %v12824_v48 }
 0x346   :  { %v8592_v12 = vpop.f32.mrb[61].mxu0 }
 0x347   :  { %v8594_v39 = vpop.f32.mrb[62].mxu0  ;;  %v13083_v60 = vadd.f32 %v8592_v12, %v8591_v59 }
 0x348   :  { %9858 = vmatpush3.bf16.msra.mxu0 %v11602_v37  ;;  %v8595_v3 = vpop.f32.mrb[63].mxu0 }
 0x349   :  { %9859 = vmatprep.subr.bf16.mxu0 %v15057_v42  ;;  %v8597_v32 = vpop.f32.mrb[64].mxu0  ;;  %v13087_v10 = vadd.f32 %v8595_v3, %v8594_v39 }
 0x34a   :  { %v8598_v23 = vpop.f32.mrb[65].mxu0 }
 0x34b   :  { %v13079_v0 = vadd.f32 %v8598_v23, %v8597_v32 }
 0x34c   :  { %9860 = vmatpush3.bf16.msra.mxu0 %v15057_v42 }
 0x34d   :  { %9861 = vmatprep.subr.bf16.mxu0 %v11604_v55 }
 0x350   :  { %9862 = vmatpush3.bf16.msra.mxu0 %v11604_v55 }
 0x351   :  { %9113 = vmatprep.subr.bf16.mxu0 %v11579_v31 }
 0x353   :  { %9864 = vmatmul.mubr.msk.bf16.vlgmr.msra.gmra.mrb[204].mxu0 %vm15221_vm15, %v4516_v17  ;;  %v15225_v17 = vld [vmem:[#allocation85_spill] sm:$0xff] }
 0x354   :  { %9114 = vmatpush3.bf16.msra.mxu0 %v11559_v52  ;;  %9867 = vmatprep.mubr.msk.bf16.mxu0 %vm15222_vm0, %v4519_v41  ;;  %vm4793_vm14 = vcmp.eq.s32.totalorder %v15064_v11, %v15225_v17  ;;  %v15226_v41 = vld [vmem:[#allocation54_spill] sm:$0xff]  ;;  %vm4792_vm6 = vcmp.eq.s32.totalorder %v15068_v24, %v15225_v17  ;;  %vm4802_vm0 = vcmp.eq.s32.totalorder %v15064_v11, %v12785_v61 }
 0x355   :  { %9115 = vmatprep.subr.bf16.mxu0 %v11581_v36  ;;  %vm4796_vm3 = vcmp.eq.s32.totalorder %v15064_v11, %v15226_v41  ;;  %vm4795_vm15 = vcmp.eq.s32.totalorder %v15068_v24, %v15226_v41 }
 0x356   :  { %vm8262_vm5 = vmpackc.low %vm4796_vm3, %vm4793_vm14  ;;  %vm4805_vm14 = vcmp.eq.s32.totalorder %v15064_v11, %v12833_v4 }
 0x357   :  { %vm8264_vm8 = vmpackc.low %vm4795_vm15, %vm4792_vm6  ;;  %vm4804_vm6 = vcmp.eq.s32.totalorder %v15068_v24, %v12833_v4  ;;  %vm5113_vm15 = vcmp.eq.s32.totalorder %v15064_v11, %v13115_v53  ;;  %v5099_v4 = vpop.permute.xlu1 %5098 }
 0x358   :  { %9116 = vmatpush3.bf16.msra.mxu0 %v11563_v15 }
 0x359   :  { %9117 = vmatprep.subr.bf16.mxu0 %v11583_v26 }
 0x35b   :  { %9868 = vmatmul.mubr.msk.bf16.gmra.mrb[208].mxu0 %vm15224_vm9, %v4522_v58  ;;  %v8600_v58 = vpop.f32.mrb[66].mxu0  ;;  %vm4801_vm9 = vcmp.eq.s32.totalorder %v15068_v24, %v12785_v61  ;;  %v13117_v61 = vpop.permute.xlu0 %5086 }
 0x35c   :  { %9118 = vmatpush3.bf16.msra.mxu0 %v11567_v21  ;;  %8259 = vmatprep.mubr.msk.bf16.mxu0 %vm8258_vm1, %v15070_v22  ;;  %v8601_v30 = vpop.f32.mrb[67].mxu0  ;;  %vm8266_vm1 = vmpackc.low %vm4802_vm0, %vm4799_vm2  ;;  %vm5110_vm0 = vcmp.eq.s32.totalorder %v15064_v11, %v13117_v61  ;;  %v13163_v13 = vpop.permute.xlu1 %5104 }
 0x35d   :  { %9119 = vmatprep.subr.bf16.mxu0 %v11585_v19  ;;  %v13085_v49 = vadd.f32 %v8601_v30, %v8600_v58  ;;  %vm8268_vm3 = vmpackc.low %vm4801_vm9, %vm4798_vm12  ;;  %vm5109_vm9 = vcmp.eq.s32.totalorder %v15068_v24, %v13117_v61  ;;  %vm5116_vm12 = vcmp.eq.s32.totalorder %v15064_v11, %v13133_v40  ;;  %v13182_v59 = vpop.f32.mrb[68].mxu0 }
 0x35e   :  { %v13185_v12 = vpop.f32.mrb[69].mxu0 }
 0x35f   :  { %v13189_v39 = vpop.f32.mrb[70].mxu0 }
 0x360   :  { %9120 = vmatpush3.bf16.msra.mxu0 %v11569_v51  ;;  %v13198_v41 = vpop.f32.mrb[71].mxu0 }
 0x361   :  { %9121 = vmatprep.subr.bf16.mxu0 %v11587_v35  ;;  %v8640_v32 = vpop.f32.mrb[72].mxu0 }
 0x362   :  { %v8641_v23 = vpop.f32.mrb[73].mxu0 }
 0x363   :  { %v13201_v30 = vpop.f32.mrb[74].mxu0  ;;  %v13203_v29 = vadd.f32 %v8641_v23, %v8640_v32 }
 0x364   :  { %9122 = vmatpush3.bf16.msra.mxu0 %v11571_v62 }
 0x365   :  { %9123 = vmatprep.subr.bf16.mxu0 %v11589_v33  ;;  %15228 = vst [vmem:[#allocation70_spill] sm:$0xff] %v13203_v29 }
 0x368   :  { %9124 = vmatpush3.bf16.msra.mxu0 %v15170_v54 }
 0x369   :  { %9125 = vmatprep.subr.bf16.mxu0 %v15173_v28 }
 0x36c   :  { %9126 = vmatpush3.bf16.msra.mxu0 %v15177_v50 }
 0x36d   :  { %9127 = vmatprep.subr.bf16.mxu0 %v15178_v6 }
 0x370   :  { %9128 = vmatpush3.bf16.msra.mxu0 %v15185_v1 }
 0x371   :  { %9168 = vmatprep.subr.bf16.mxu0 %v11579_v31 }
 0x373   :  { %8261 = vmatmul.mubr.msk.bf16.vlgmr.msra.gmra.mrb[212].mxu0 %vm8260_vm4, %v15070_v22  ;;  %vm8270_vm4 = vmpackc.low %vm4808_vm13, %vm4805_vm14 }
 0x374   :  { %9169 = vmatpush3.bf16.msra.mxu0 %v11559_v52  ;;  %8263 = vmatprep.mubr.msk.bf16.mxu0 %vm8262_vm5, %v15070_v22  ;;  %vm4807_vm5 = vcmp.eq.s32.totalorder %v15068_v24, %v12824_v48  ;;  %v13135_v48 = vpop.permute.xlu0 %5095 }
 0x375   :  { %9170 = vmatprep.subr.bf16.mxu0 %v11581_v36  ;;  %vm8272_vm2 = vmpackc.low %vm4807_vm5, %vm4804_vm6  ;;  %vm5119_vm13 = vcmp.eq.s32.totalorder %v15064_v11, %v13135_v48  ;;  %vm5118_vm5 = vcmp.eq.s32.totalorder %v15068_v24, %v13135_v48  ;;  %vm5122_vm6 = vcmp.eq.s32.totalorder %v15064_v11, %v5099_v4 }
 0x378   :  { %9171 = vmatpush3.bf16.msra.mxu0 %v11563_v15  ;;  %v5102_v8 = vpop.permute.xlu0 %5101 }
 0x379   :  { %9172 = vmatprep.subr.bf16.mxu0 %v11583_v26 }
 0x37b   :  { %8265 = vmatmul.mubr.msk.bf16.gmra.mrb[216].mxu0 %vm8264_vm8, %v15070_v22  ;;  %vm8283_vm8 = vmpackc.low %vm5113_vm15, %vm5110_vm0  ;;  %vm5125_vm15 = vcmp.eq.s32.totalorder %v15064_v11, %v5102_v8 }
 0x37c   :  { %9173 = vmatpush3.bf16.msra.mxu0 %v11567_v21  ;;  %8267 = vmatprep.mubr.msk.bf16.mxu0 %vm8266_vm1, %v15070_v22  ;;  %vm5112_vm1 = vcmp.eq.s32.totalorder %v15068_v24, %v13115_v53  ;;  %v13165_v47 = vpop.permute.xlu0 %5107 }
 0x37d   :  { %9174 = vmatprep.subr.bf16.mxu0 %v11585_v19  ;;  %vm8285_vm14 = vmpackc.low %vm5112_vm1, %vm5109_vm9  ;;  %vm5124_vm1 = vcmp.eq.s32.totalorder %v15068_v24, %v5102_v8  ;;  %vm5128_vm9 = vcmp.eq.s32.totalorder %v15064_v11, %v13163_v13 }
 0x380   :  { %9175 = vmatpush3.bf16.msra.mxu0 %v11569_v51  ;;  %v13230_v18 = vpop.permute.xlu0 %5412 }
 0x381   :  { %9176 = vmatprep.subr.bf16.mxu0 %v11587_v35  ;;  %15232 = vst [vmem:[#allocation12_spill] sm:$0xff] %v13230_v18 }
 0x383   :  { %8269 = vmatmul.mubr.msk.bf16.gmra.mrb[220].mxu0 %vm8268_vm3, %v15070_v22  ;;  %vm8287_vm3 = vmpackc.low %vm5119_vm13, %vm5116_vm12  ;;  %vm5131_vm12 = vcmp.eq.s32.totalorder %v15064_v11, %v13165_v47 }
 0x384   :  { %9177 = vmatpush3.bf16.msra.mxu0 %v11571_v62  ;;  %8271 = vmatprep.mubr.msk.bf16.mxu0 %vm8270_vm4, %v15070_v22  ;;  %vm5115_vm4 = vcmp.eq.s32.totalorder %v15068_v24, %v13133_v40 }
 0x385   :  { %9178 = vmatprep.subr.bf16.mxu0 %v11589_v33  ;;  %vm8289_vm0 = vmpackc.low %vm5118_vm5, %vm5115_vm4  ;;  %vm5111_vm4 = vcmp.eq.s32.totalorder %v15058_v46, %v13117_v61  ;;  %vm5127_vm5 = vcmp.eq.s32.totalorder %v15068_v24, %v13163_v13 }
 0x386   :  { %v5135_v17 = vsel %vm5111_vm4, 1.0, %v15059_v43 }
 0x388   :  { %9179 = vmatpush3.bf16.msra.mxu0 %v15170_v54 }
 0x389   :  { %9180 = vmatprep.subr.bf16.mxu0 %v15173_v28 }
 0x38b   :  { %8273 = vmatmul.mubr.msk.bf16.gmra.mrb[224].mxu0 %vm8272_vm2, %v15070_v22  ;;  %vm8291_vm2 = vmpackc.low %vm5125_vm15, %vm5122_vm6  ;;  %vm5130_vm6 = vcmp.eq.s32.totalorder %v15068_v24, %v13165_v47 }
 0x38c   :  { %9181 = vmatpush3.bf16.msra.mxu0 %v15177_v50  ;;  %8284 = vmatprep.mubr.msk.bf16.mxu0 %vm8283_vm8, %v15070_v22  ;;  %vm5121_vm8 = vcmp.eq.s32.totalorder %v15068_v24, %v5099_v4  ;;  %vm8297_vm15 = vmpackc.low %vm5130_vm6, %vm5127_vm5 }
 0x38d   :  { %9182 = vmatprep.subr.bf16.mxu0 %v15178_v6  ;;  %vm8293_vm13 = vmpackc.low %vm5124_vm1, %vm5121_vm8  ;;  %vm5123_vm8 = vcmp.eq.s32.totalorder %v15058_v46, %v5099_v4  ;;  %vm5126_vm1 = vcmp.eq.s32.totalorder %v15058_v46, %v5102_v8 }
 0x38e   :  { %v5147_v32 = vsel %vm5123_vm8, 1.0, %v15059_v43  ;;  %v5150_v4 = vsel %vm5126_vm1, 1.0, %v15059_v43 }
 0x38f   :  { %v5165_v16 = vpack.c.bf16 %v5150_v4, %v5147_v32 }
 0x390   :  { %9183 = vmatpush3.bf16.msra.mxu0 %v15185_v1 }
 0x391   :  { %9911 = vmatprep.subr.bf16.mxu0 %v11595_v38 }
 0x393   :  { %8286 = vmatmul.mubr.msk.bf16.vlgmr.msra.gmra.mrb[228].mxu0 %vm8285_vm14, %v15070_v22  ;;  %vm8295_vm14 = vmpackc.low %vm5131_vm12, %vm5128_vm9  ;;  %vm15229_vm9 = vcmask 785408   ;;  %vm5129_vm12 = vcmp.eq.s32.totalorder %v15058_v46, %v13163_v13 }
 0x394   :  { %9912 = vmatpush3.bf16.msra.mxu0 %v11595_v38  ;;  %8288 = vmatprep.mubr.msk.bf16.mxu0 %vm8287_vm3, %v15070_v22  ;;  %vm5114_vm3 = vcmp.eq.s32.totalorder %v15058_v46, %v13115_v53  ;;  %v13210_v53 = vpop.f32.mrb[75].mxu0  ;;  %vm15235_vm4 = vmmov %vm15229_vm9  ;;  %v5153_v32 = vsel %vm5129_vm12, 1.0, %v15059_v43 }
 0x395   :  { %9913 = vmatprep.subr.bf16.mxu0 %v11597_v2  ;;  %v5138_v3 = vsel %vm5114_vm3, 1.0, %v15059_v43  ;;  %v13214_v61 = vpop.f32.mrb[76].mxu0  ;;  %vm5437_vm3 = vcmp.eq.s32.totalorder %v15058_v46, %v13230_v18  ;;  %vm15236_vm5 = vmmov %vm15235_vm4 }
 0x396   :  { %v5159_v58 = vpack.c.bf16 %v5138_v3, %v5135_v17  ;;  %v13217_v3 = vpop.f32.mrb[77].mxu0  ;;  %v5461_v18 = vsel %vm5437_vm3, 1.0, %v15059_v43  ;;  %vm15238_vm6 = vmmov %vm15235_vm4 }
 0x397   :  { %vm15241_vm8 = vmmov %vm15235_vm4 }
 0x398   :  { %9914 = vmatpush3.bf16.msra.mxu0 %v11597_v2  ;;  %vm15244_vm12 = vmmov %vm15235_vm4 }
 0x399   :  { %9915 = vmatprep.subr.bf16.mxu0 %v11600_v57 }
 0x39b   :  { %8290 = vmatmul.mubr.msk.bf16.gmra.mrb[232].mxu0 %vm8289_vm0, %v15070_v22  ;;  %vm5117_vm0 = vcmp.eq.s32.totalorder %v15058_v46, %v13133_v40 }
 0x39c   :  { %9916 = vmatpush3.bf16.msra.mxu0 %v11600_v57  ;;  %8292 = vmatprep.mubr.msk.bf16.mxu0 %vm8291_vm2, %v15070_v22  ;;  %vm5120_vm2 = vcmp.eq.s32.totalorder %v15058_v46, %v13135_v48  ;;  %v5141_v17 = vsel %vm5117_vm0, 1.0, %v15059_v43  ;;  %v13222_v48 = vpop.f32.mrb[78].mxu0 }
 0x39d   :  { %9917 = vmatprep.subr.bf16.mxu0 %v11602_v37  ;;  %v5144_v40 = vsel %vm5120_vm2, 1.0, %v15059_v43  ;;  %15230 = vst [vmem:[#allocation63_spill] sm:$0xff] %v13222_v48  ;;  %v13226_v23 = vpop.f32.mrb[79].mxu0 }
 0x39e   :  { %15231 = vst [vmem:[#allocation64_spill] sm:$0xff] %v13226_v23  ;;  %v13228_v8 = vpop.f32.mrb[80].mxu0  ;;  %v5162_v44 = vpack.c.bf16 %v5144_v40, %v5141_v17 }
 0x39f   :  { %v13232_v56 = vpop.f32.mrb[81].mxu0 }
 0x3a0   :  { %9918 = vmatpush3.bf16.msra.mxu0 %v11602_v37  ;;  %v13234_v7 = vpop.f32.mrb[82].mxu0 }
 0x3a1   :  { %9919 = vmatprep.subr.bf16.mxu0 %v15057_v42  ;;  %v13242_v14 = vpop.f32.mrb[83].mxu0 }
 0x3a2   :  { %15234 = vst [vmem:[#allocation72_spill] sm:$0xff] %v13242_v14  ;;  %v8689_v17 = vpop.f32.mrb[84].mxu0 }
 0x3a3   :  { %8294 = vmatmul.mubr.msk.bf16.gmra.mrb[236].mxu0 %vm8293_vm13, %v15070_v22  ;;  %vm5132_vm13 = vcmp.eq.s32.totalorder %v15058_v46, %v13165_v47  ;;  %v8690_v40 = vpop.f32.mrb[85].mxu0 }
 0x3a4   :  { %9920 = vmatpush3.bf16.msra.mxu0 %v15057_v42  ;;  %8296 = vmatprep.mubr.msk.bf16.mxu0 %vm8295_vm14, %v15070_v22  ;;  %v5156_v13 = vsel %vm5132_vm13, 1.0, %v15059_v43  ;;  %v8692_v47 = vpop.f32.mrb[86].mxu0  ;;  %v8691_v4 = vadd.f32 %v8690_v40, %v8689_v17 }
 0x3a5   :  { %9921 = vmatprep.subr.bf16.mxu0 %v11604_v55  ;;  %v8693_v9 = vpop.f32.mrb[87].mxu0  ;;  %v5168_v34 = vpack.c.bf16 %v5156_v13, %v5153_v32 }
 0x3a6   :  { %v8695_v27 = vpop.f32.mrb[88].mxu0 }
 0x3a7   :  { %v8696_v20 = vpop.f32.mrb[89].mxu0 }
 0x3a8   :  { %9922 = vmatpush3.bf16.msra.mxu0 %v11604_v55  ;;  %v8697_v11 = vadd.f32 %v8696_v20, %v8695_v27 }
 0x3a9   :  { %9941 = vmatprep.subr.bf16.mxu0 %v11595_v38 }
 0x3ab   :  { %8298 = vmatmul.mubr.msk.bf16.gmra.mrb[240].mxu0 %vm8297_vm15, %v15070_v22  ;;  %vm15239_vm15 = vmmov %vm15235_vm4 }
 0x3ac   :  { %9923 = vmatprep.mubr.msk.bf16.mxu0 %vm15229_vm9, %v5159_v58  ;;  %v13240_v58 = vpop.permute.xlu1 %5409 }
 0x3ad   :  { %15233 = vst [vmem:[#allocation17_spill] sm:$0xff] %v13240_v58  ;;  %vm5434_vm14 = vcmp.eq.s32.totalorder %v15058_v46, %v13240_v58 }
 0x3ae   :  { %v5458_v58 = vsel %vm5434_vm14, 1.0, %v15059_v43 }
 0x3af   :  { %v5482_v22 = vpack.c.bf16 %v5461_v18, %v5458_v58 }
 0x3b0   :  { %v13257_v24 = vpop.permute.xlu1 %5415 }
 0x3b1   :  { %15237 = vst [vmem:[#allocation73_spill] sm:$0xff] %v13257_v24  ;;  %vm5440_vm0 = vcmp.eq.s32.totalorder %v15058_v46, %v13257_v24 }
 0x3b3   :  { %9924 = vmatmul.mubr.msk.bf16.vlgmr.msra.gmra.mrb[244].mxu0 %vm15235_vm4, %v5162_v44  ;;  %v8694_v44 = vadd.f32 %v8693_v9, %v8692_v47 }
 0x3b4   :  { %9942 = vmatpush3.bf16.msra.mxu0 %v11595_v38  ;;  %9927 = vmatprep.mubr.msk.bf16.mxu0 %vm15236_vm5, %v5165_v16  ;;  %v8698_v16 = vpop.f32.mrb[90].mxu0  ;;  %v13264_v18 = vpop.permute.xlu1 %5418 }
 0x3b5   :  { %9943 = vmatprep.subr.bf16.mxu0 %v11597_v2  ;;  %v8699_v17 = vpop.f32.mrb[91].mxu0  ;;  %15240 = vst [vmem:[#allocation21_spill] sm:$0xff] %v13264_v18  ;;  %vm5443_vm2 = vcmp.eq.s32.totalorder %v15058_v46, %v13264_v18 }
 0x3b6   :  { %v8700_v40 = vadd.f32 %v8699_v17, %v8698_v16  ;;  %v8701_v29 = vpop.f32.mrb[92].mxu0 }
 0x3b7   :  { %v8702_v23 = vpop.f32.mrb[93].mxu0 }
 0x3b8   :  { %9944 = vmatpush3.bf16.msra.mxu0 %v11597_v2  ;;  %v8703_v9 = vadd.f32 %v8702_v23, %v8701_v29  ;;  %v8704_v32 = vpop.f32.mrb[94].mxu0 }
 0x3b9   :  { %9945 = vmatprep.subr.bf16.mxu0 %v11600_v57  ;;  %v8705_v13 = vpop.f32.mrb[95].mxu0 }
 0x3ba   :  { %v8706_v20 = vadd.f32 %v8705_v13, %v8704_v32  ;;  %v8707_v27 = vpop.f32.mrb[96].mxu0  ;;  %v5464_v32 = vsel %vm5440_vm0, 1.0, %v15059_v43  ;;  %v5467_v13 = vsel %vm5443_vm2, 1.0, %v15059_v43  ;;  %vm15252_vm0 = vmmov %vm15241_vm8 }
 0x3bb   :  { %9928 = vmatmul.mubr.msk.bf16.gmra.mrb[248].mxu0 %vm15238_vm6, %v5168_v34  ;;  %v8708_v58 = vpop.f32.mrb[97].mxu0  ;;  %vm15253_vm2 = vmmov %vm15252_vm0 }
 0x3bc   :  { %9946 = vmatpush3.bf16.msra.mxu0 %v11600_v57  ;;  %9953 = vmatprep.mubr.msk.bf16.mxu0 %vm15239_vm15, %v5482_v22  ;;  %v8709_v47 = vadd.f32 %v8708_v58, %v8707_v27  ;;  %v8710_v16 = vpop.f32.mrb[98].mxu0  ;;  %vm15251_vm15 = vmmov %vm15241_vm8 }
 0x3bd   :  { %9947 = vmatprep.subr.bf16.mxu0 %v11602_v37  ;;  %v8711_v22 = vpop.f32.mrb[99].mxu0 }
 0x3be   :  { %v8712_v34 = vadd.f32 %v8711_v22, %v8710_v16  ;;  %v9655_v29 = vpop.f32.mrb[100].mxu0 }
 0x3bf   :  { %v13272_v23 = vadd.f32 %v9655_v29, %v8697_v11  ;;  %v2373_v17 = vpop.f32.mrb[101].mxu0  ;;  %v5485_v11 = vpack.c.bf16 %v5467_v13, %v5464_v32 }
 0x3c0   :  { %9948 = vmatpush3.bf16.msra.mxu0 %v11602_v37  ;;  %v13277_v27 = vadd.f32 %v8691_v4, %v2373_v17  ;;  %v9656_v58 = vpop.f32.mrb[102].mxu0 }
 0x3c1   :  { %9949 = vmatprep.subr.bf16.mxu0 %v15057_v42  ;;  %v13280_v24 = vadd.f32 %v9656_v58, %v8700_v40  ;;  %v2376_v18 = vpop.f32.mrb[103].mxu0 }
 0x3c2   :  { %v13282_v48 = vadd.f32 %v8694_v44, %v2376_v18  ;;  %v9659_v16 = vpop.f32.mrb[104].mxu0 }
 0x3c3   :  { %v13286_v29 = vadd.f32 %v9659_v16, %v8709_v47  ;;  %v2389_v14 = vpop.f32.mrb[105].mxu0 }
 0x3c4   :  { %9950 = vmatpush3.bf16.msra.mxu0 %v15057_v42  ;;  %v13291_v17 = vadd.f32 %v8703_v9, %v2389_v14  ;;  %v9660_v40 = vpop.f32.mrb[106].mxu0 }
 0x3c5   :  { %9951 = vmatprep.subr.bf16.mxu0 %v11604_v55  ;;  %v13294_v44 = vadd.f32 %v9660_v40, %v8712_v34  ;;  %v2392_v18 = vpop.f32.mrb[107].mxu0 }
 0x3c6   :  { %v13296_v32 = vadd.f32 %v8706_v20, %v2392_v18 }
 0x3c8   :  { %9952 = vmatpush3.bf16.msra.mxu0 %v11604_v55 }
 0x3c9   :  { %9278 = vmatprep.subr.bf16.mxu0 %v11579_v31 }
 0x3cb   :  { %9954 = vmatmul.mubr.msk.bf16.vlgmr.msra.gmra.mrb[252].mxu0 %vm15241_vm8, %v5485_v11 }
 0x3cc   :  { %9279 = vmatpush3.bf16.msra.mxu0 %v11559_v52 }
 0x3cd   :  { %9280 = vmatprep.subr.bf16.mxu0 %v11581_v36 }
 0x3d0   :  { %9281 = vmatpush3.bf16.msra.mxu0 %v11563_v15 }
 0x3d1   :  { %9282 = vmatprep.subr.bf16.mxu0 %v11583_v26 }
 0x3d4   :  { %9283 = vmatpush3.bf16.msra.mxu0 %v11567_v21 }
 0x3d5   :  { %9284 = vmatprep.subr.bf16.mxu0 %v11585_v19 }
 0x3d8   :  { %9285 = vmatpush3.bf16.msra.mxu0 %v11569_v51 }
 0x3d9   :  { %9286 = vmatprep.subr.bf16.mxu0 %v11587_v35 }
 0x3dc   :  { %9287 = vmatpush3.bf16.msra.mxu0 %v11571_v62 }
 0x3dd   :  { %9288 = vmatprep.subr.bf16.mxu0 %v11589_v33 }
 0x3e0   :  { %9289 = vmatpush3.bf16.msra.mxu0 %v15170_v54 }
 0x3e1   :  { %9290 = vmatprep.subr.bf16.mxu0 %v15173_v28 }
 0x3e4   :  { %9291 = vmatpush3.bf16.msra.mxu0 %v15177_v50 }
 0x3e5   :  { %9292 = vmatprep.subr.bf16.mxu0 %v15178_v6 }
 0x3e8   :  { %9293 = vmatpush3.bf16.msra.mxu0 %v15185_v1 }
 0x3e9   :  { %10001 = vmatprep.subr.bf16.mxu0 %v15059_v43 }
 0x3f9   :  { %v9595_v14 = vpop.f32.mrb[48].mxu1 }
 0x3fa   :  { %v1736_v9 = vadd.f32 %v9595_v14, %v13057_v63  ;;  %v1727_v20 = vpop.f32.mrb[49].mxu1  ;;  %v15242_v63 = vld [vmem:[#allocation30_spill] sm:$0xff] }
 0x3fb   :  { %v1728_v34 = vadd.f32 %v13073_v25, %v1727_v20  ;;  %v9596_v58 = vpop.f32.mrb[50].mxu1  ;;  %vm1884_vm1 = vcmp.eq.s32.totalorder %v15058_v46, %v15242_v63  ;;  %v15243_v25 = vld [vmem:[#allocation24_spill] sm:$0xff] }
 0x3fc   :  { %v1739_v16 = vadd.f32 %v9596_v58, %v13075_v45  ;;  %v1730_v11 = vpop.f32.mrb[51].mxu1  ;;  %vm1881_vm9 = vcmp.eq.s32.totalorder %v15058_v46, %v15243_v25  ;;  %v15249_v25 = vld [vmem:[#allocation11_spill] sm:$0xff] }
 0x3fd   :  { %v1731_v40 = vadd.f32 %v13077_v5, %v1730_v11  ;;  %vm1899_vm5 = vcmp.eq.s32.totalorder %v15058_v46, %v15249_v25 }
 0x3fe   :  { %v1759_v18 = vpack.c.bf16 %v1739_v16, %v1736_v9  ;;  %v1905_v9 = vsel %vm1881_vm9, 1.0, %v15059_v43 }
 0x3ff   :  { %v1758_v47 = vpack.c.bf16 %v1731_v40, %v1728_v34 }
 0x401   :  { %v9599_v13 = vpop.f32.mrb[52].mxu1  ;;  %9603 = vmatprep.mubr.msk.bf16.mxu1 %vm14967_vm7, %v1758_v47 }
 0x402   :  { %v1752_v22 = vadd.f32 %v9599_v13, %v13079_v0  ;;  %v1743_v4 = vpop.f32.mrb[53].mxu1  ;;  %9604 = vmatmul.mubr.msk.bf16.vlgmr.msra.gmra.mrb[40].mxu1 %vm14967_vm7, %v1759_v18  ;;  %v1908_v13 = vsel %vm1884_vm1, 1.0, %v15059_v43 }
 0x403   :  { %v1744_v45 = vadd.f32 %v13083_v60, %v1743_v4  ;;  %9612 = vmatpush3.bf16.msra.mxu1 %v11595_v38  ;;  %v9600_v5 = vpop.f32.mrb[54].mxu1  ;;  %v1929_v60 = vpack.c.bf16 %v1908_v13, %v1905_v9  ;;  %v15248_v4 = vld [vmem:[#allocation6_spill] sm:$0xff]  ;;  %v8645_v13 = vadd.f32 %v13210_v53, %v13201_v30  ;;  %v8639_v9 = vadd.f32 %v13198_v41, %v13189_v39 }
 0x404   :  { %v1755_v14 = vadd.f32 %v9600_v5, %v13085_v49  ;;  %9613 = vmatprep.subr.bf16.mxu1 %v11597_v2  ;;  %v1746_v47 = vpop.f32.mrb[55].mxu1  ;;  %v15246_v49 = vld [vmem:[#allocation5_spill] sm:$0xff]  ;;  %vm1896_vm4 = vcmp.eq.s32.totalorder %v15058_v46, %v15248_v4  ;;  %v1923_v5 = vsel %vm1899_vm5, 1.0, %v15059_v43 }
 0x405   :  { %v1747_v0 = vadd.f32 %v13087_v10, %v1746_v47  ;;  %v15245_v10 = vld [vmem:[#allocation2_spill] sm:$0xff]  ;;  %vm1890_vm14 = vcmp.eq.s32.totalorder %v15058_v46, %v15246_v49  ;;  %v1920_v40 = vsel %vm1896_vm4, 1.0, %v15059_v43  ;;  %v15255_v49 = vld [vmem:[#allocation63_spill] sm:$0xff] }
 0x406   :  { %v1761_v20 = vpack.c.bf16 %v1755_v14, %v1752_v22  ;;  %vm1887_vm13 = vcmp.eq.s32.totalorder %v15058_v46, %v15245_v10  ;;  %v15247_v22 = vld [vmem:[#allocation3_spill] sm:$0xff]  ;;  %v1914_v16 = vsel %vm1890_vm14, 1.0, %v15059_v43 }
 0x407   :  { %v1760_v34 = vpack.c.bf16 %v1747_v0, %v1744_v45  ;;  %9614 = vmatpush3.bf16.msra.mxu1 %v11597_v2  ;;  %vm1893_vm3 = vcmp.eq.s32.totalorder %v15058_v46, %v15247_v22  ;;  %v1911_v58 = vsel %vm1887_vm13, 1.0, %v15059_v43  ;;  %v15250_v45 = vld [vmem:[#allocation9_spill] sm:$0xff]  ;;  %v8636_v0 = vadd.f32 %v13185_v12, %v13182_v59  ;;  %v15256_v22 = vld [vmem:[#allocation64_spill] sm:$0xff]  ;;  %v10543_v12 = vld [vmem:[%s14756_s4 + $0x20] sm:$0xff]  }
 0x408   :  { %9615 = vmatprep.subr.bf16.mxu1 %v11600_v57  ;;  %v1917_v11 = vsel %vm1893_vm3, 1.0, %v15059_v43  ;;  %v1932_v18 = vpack.c.bf16 %v1914_v16, %v1911_v58  ;;  %vm1902_vm6 = vcmp.eq.s32.totalorder %v15058_v46, %v15250_v45  ;;  %v8651_v4 = vadd.f32 %v15256_v22, %v15255_v49  ;;  %v10542_v59 = vld [vmem:[%s14756_s4 + $0x18] sm:$0xff]  }
 0x409   :  { %9607 = vmatprep.mubr.msk.bf16.mxu1 %vm14967_vm7, %v1760_v34  ;;  %v1935_v63 = vpack.c.bf16 %v1920_v40, %v1917_v11  ;;  %v1926_v14 = vsel %vm1902_vm6, 1.0, %v15059_v43  ;;  %v8648_v34 = vadd.f32 %v13217_v3, %v13214_v61  ;;  %v15257_v3 = vld [vmem:[#allocation70_spill] sm:$0xff] }
 0x40a   :  { %9608 = vmatmul.mubr.msk.bf16.gmra.mrb[44].mxu1 %vm14967_vm7, %v1761_v20  ;;  %v1938_v47 = vpack.c.bf16 %v1926_v14, %v1923_v5  ;;  %v8654_v20 = vadd.f32 %v13232_v56, %v13228_v8  ;;  %v13390_v56 = vpop.f32.mrb[108].mxu0 }
 0x40b   :  { %9616 = vmatpush3.bf16.msra.mxu1 %v11600_v57  ;;  %9623 = vmatprep.mubr.msk.bf16.mxu1 %vm15244_vm12, %v1929_v60  ;;  %v15254_v60 = vld [vmem:[#allocation72_spill] sm:$0xff]  ;;  %v13392_v39 = vpop.f32.mrb[109].mxu0 }
 0x40c   :  { %9617 = vmatprep.subr.bf16.mxu1 %v11602_v37  ;;  %v8657_v10 = vadd.f32 %v15254_v60, %v13234_v7  ;;  %v13394_v41 = vpop.f32.mrb[110].mxu0 }
 0x40d   :  { %v13396_v7 = vpop.f32.mrb[111].mxu0 }
 0x40e   :  { %v13398_v30 = vpop.f32.mrb[112].mxu0 }
 0x40f   :  { %9618 = vmatpush3.bf16.msra.mxu1 %v11602_v37  ;;  %v13400_v53 = vpop.f32.mrb[113].mxu0 }
 0x410   :  { %9619 = vmatprep.subr.bf16.mxu1 %v15057_v42 }
 0x413   :  { %9620 = vmatpush3.bf16.msra.mxu1 %v15057_v42 }
 0x414   :  { %9621 = vmatprep.subr.bf16.mxu1 %v11604_v55 }
 0x417   :  { %9622 = vmatpush3.bf16.msra.mxu1 %v11604_v55 }
 0x418   :  { %9631 = vmatprep.subr.bf16.mxu1 %v10542_v59 }
 0x41a   :  { %9624 = vmatmul.mubr.msk.bf16.vlgmr.msra.gmra.mrb[56].mxu1 %vm15251_vm15, %v1932_v18 }
 0x41b   :  { %9627 = vmatprep.mubr.msk.bf16.mxu1 %vm15252_vm0, %v1935_v63  ;;  %9632 = vmatpush3.bf16.msra.mxu1 %v10542_v59 }
 0x41c   :  { %9661 = vmatprep.subr.bf16.mxu1 %v10543_v12 }
 0x422   :  { %9628 = vmatmul.mubr.msk.bf16.gmra.mrb[60].mxu1 %vm15253_vm2, %v1938_v47 }
 0x4ed   :  { %v9625_v61 = vpop.f32.mrb[56].mxu1 }
 0x4ee   :  { %v2059_v8 = vadd.f32 %v9625_v61, %v15257_v3  ;;  %v2050_v58 = vpop.f32.mrb[57].mxu1  ;;  %v15271_v3 = vld [vmem:[#allocation35_spill] sm:$0xff] }
 0x4ef   :  { %v2051_v16 = vadd.f32 %v8636_v0, %v2050_v58  ;;  %v9626_v11 = vpop.f32.mrb[58].mxu1  ;;  %v13483_v58 = vpop.f32.mrb[114].mxu0 }
 0x4f0   :  { %v2062_v40 = vadd.f32 %v9626_v11, %v8645_v13  ;;  %v2053_v18 = vpop.f32.mrb[59].mxu1 }
 0x4f1   :  { %v2054_v63 = vadd.f32 %v8639_v9, %v2053_v18  ;;  %v15258_v9 = vpack.c.bf16 %v13282_v48, %v13277_v27  ;;  %v15263_v48 = vld [vmem:[#allocation16_spill] sm:$0xff]  ;;  %v15266_v27 = vld [vmem:[#allocation10_spill] sm:$0xff] }
 0x4f2   :  { %v2082_v25 = vpack.c.bf16 %v2062_v40, %v2059_v8  ;;  %vm2528_vm12 = vcmp.eq.s32.totalorder %v15266_v27, %v15263_v48  ;;  %v15272_v8 = vld [vmem:[#allocation32_spill] sm:$0xff] }
 0x4f3   :  { %v2081_v45 = vpack.c.bf16 %v2054_v63, %v2051_v16  ;;  %v13485_v16 = vpop.f32.mrb[115].mxu0 }
 0x4f4   :  { %v8799_v11 = vpop.f32.mrb[116].mxu0 }
 0x4f5   :  { %v9629_v5 = vpop.f32.mrb[60].mxu1  ;;  %9633 = vmatprep.mubr.msk.bf16.mxu1 %vm14967_vm7, %v2081_v45  ;;  %v8800_v40 = vpop.f32.mrb[117].mxu0 }
 0x4f6   :  { %v2075_v14 = vadd.f32 %v9629_v5, %v8654_v20  ;;  %v2066_v47 = vpop.f32.mrb[61].mxu1  ;;  %9634 = vmatmul.mubr.msk.bf16.vlgmr.msra.gmra.mrb[40].mxu1 %vm14967_vm7, %v2082_v25  ;;  %v15259_v20 = vpack.c.bf16 %v13280_v24, %v13272_v23  ;;  %v15264_v24 = vpack.c.bf16 %v13294_v44, %v13286_v29  ;;  %v15265_v23 = vmov 1.0|1.0   ;;  %v10544_v29 = vld [vmem:[%s14756_s4 + $0x28] sm:$0xff]   ;;  %v15268_v44 = vld [vmem:[#allocation13_spill] sm:$0xff]  ;;  %v8802_v63 = vpop.f32.mrb[118].mxu0 }
 0x4f7   :  { %v2067_v60 = vadd.f32 %v8648_v34, %v2066_v47  ;;  %9662 = vmatpush3.bf16.msra.mxu1 %v10543_v12  ;;  %v9630_v49 = vpop.f32.mrb[62].mxu1  ;;  %v15260_v34 = vpack.c.bf16 %v13296_v32, %v13291_v17  ;;  %v15267_v17 = vld [vmem:[#allocation31_spill] sm:$0xff]  ;;  %vm2531_vm15 = vcmp.eq.s32.totalorder %v15266_v27, %v15268_v44  ;;  %v15269_v32 = vld [vmem:[#allocation33_spill] sm:$0xff]  ;;  %v13487_v18 = vadd.f32 %v8800_v40, %v8799_v11  ;;  %v8803_v25 = vpop.f32.mrb[119].mxu0 }
 0x4f8   :  { %v2078_v22 = vadd.f32 %v9630_v49, %v8657_v10  ;;  %8728 = vmatprep.subr.bf16.mxu1 %v11579_v31  ;;  %v2069_v0 = vpop.f32.mrb[63].mxu1  ;;  %v15261_v10 = vld [vmem:[#allocation20_spill] sm:$0xff]  ;;  %vm2534_vm6 = vcmp.eq.s32.totalorder %v15266_v27, %v15267_v17  ;;  %v15270_v12 = vld [vmem:[#allocation19_spill] sm:$0xff]  ;;  %v13489_v45 = vadd.f32 %v8803_v25, %v8802_v63  ;;  %v8805_v5 = vpop.f32.mrb[120].mxu0 }
 0x4f9   :  { %v2070_v59 = vadd.f32 %v8651_v4, %v2069_v0  ;;  %v15262_v4 = vld [vmem:[#allocation22_spill] sm:$0xff]  ;;  %vm2525_vm13 = vcmp.eq.s32.totalorder %v15266_v27, %v15261_v10 }
 0x4fa   :  { %v2084_v13 = vpack.c.bf16 %v2078_v22, %v2075_v14  ;;  %vm2526_vm8 = vcmp.eq.s32.totalorder %v15262_v4, %v15261_v10  ;;  %vm2529_vm1 = vcmp.eq.s32.totalorder %v15262_v4, %v15263_v48  ;;  %vm8085_vm14 = vmpackc.low %vm2528_vm12, %vm2525_vm13  ;;  %vm2535_vm3 = vcmp.eq.s32.totalorder %v15262_v4, %v15267_v17  ;;  %v8806_v14 = vpop.f32.mrb[121].mxu0 }
 0x4fb   :  { %v2083_v61 = vpack.c.bf16 %v2070_v59, %v2067_v60  ;;  %vm8083_vm9 = vmpackc.low %vm2529_vm1, %vm2526_vm8  ;;  %vm2532_vm4 = vcmp.eq.s32.totalorder %v15262_v4, %v15268_v44  ;;  %vm2541_vm0 = vcmp.eq.s32.totalorder %v15262_v4, %v15269_v32  ;;  %vm2538_vm2 = vcmp.eq.s32.totalorder %v15262_v4, %v15270_v12  ;;  %v8808_v60 = vpop.f32.mrb[122].mxu0 }
 0x4fc   :  { %vm8087_vm5 = vmpackc.low %vm2535_vm3, %vm2532_vm4  ;;  %vm2537_vm12 = vcmp.eq.s32.totalorder %v15266_v27, %v15270_v12  ;;  %vm2547_vm13 = vcmp.eq.s32.totalorder %v15262_v4, %v15271_v3  ;;  %v13491_v47 = vadd.f32 %v8806_v14, %v8805_v5  ;;  %v8809_v49 = vpop.f32.mrb[123].mxu0 }
 0x4fd   :  { %9637 = vmatprep.mubr.msk.bf16.mxu1 %vm14967_vm7, %v2083_v61  ;;  %vm8089_vm8 = vmpackc.low %vm2534_vm6, %vm2531_vm15  ;;  %vm2543_vm6 = vcmp.eq.s32.totalorder %v15266_v27, %v15272_v8  ;;  %v13493_v22 = vadd.f32 %v8809_v49, %v8808_v60  ;;  %v8811_v0 = vpop.f32.mrb[124].mxu0 }
 0x4fe   :  { %9638 = vmatmul.mubr.msk.bf16.gmra.mrb[44].mxu1 %vm14967_vm7, %v2084_v13  ;;  %vm8091_vm1 = vmpackc.low %vm2541_vm0, %vm2538_vm2  ;;  %v8812_v59 = vpop.f32.mrb[125].mxu0 }
 0x4ff   :  { %9663 = vmatprep.mubr.msk.bf16.mxu1 %vm14967_vm7, %v15258_v9  ;;  %v13495_v13 = vadd.f32 %v8812_v59, %v8811_v0  ;;  %v8814_v61 = vpop.f32.mrb[126].mxu0 }
 0x500   :  { %v8815_v9 = vpop.f32.mrb[127].mxu0 }
 0x506   :  { %9664 = vmatmul.mubr.msk.bf16.vlgmr.msra.gmra.mrb[40].mxu1 %vm14967_vm7, %v15259_v20  ;;  %v13497_v20 = vadd.f32 %v8815_v9, %v8814_v61 }
 0x507   :  { %8729 = vmatpush3.bf16.msra.mxu1 %v11559_v52  ;;  %9667 = vmatprep.mubr.msk.bf16.mxu1 %vm14967_vm7, %v15260_v34  ;;  %v8817_v34 = vpop.f32.mrb[128].mxu0 }
 0x508   :  { %8730 = vmatprep.subr.bf16.mxu1 %v11581_v36  ;;  %v8818_v10 = vpop.f32.mrb[129].mxu0 }
 0x509   :  { %v13499_v48 = vadd.f32 %v8818_v10, %v8817_v34 }
 0x50b   :  { %8731 = vmatpush3.bf16.msra.mxu1 %v11563_v15 }
 0x50c   :  { %8732 = vmatprep.subr.bf16.mxu1 %v11583_v26 }
 0x50e   :  { %9668 = vmatmul.mubr.msk.bf16.gmra.mrb[44].mxu1 %vm14967_vm7, %v15264_v24  ;;  %v8820_v24 = vpop.f32.mrb[130].mxu0 }
 0x50f   :  { %8733 = vmatpush3.bf16.msra.mxu1 %v11567_v21  ;;  %8084 = vmatprep.mubr.msk.bf16.mxu1 %vm8083_vm9, %v15265_v23  ;;  %vm2540_vm9 = vcmp.eq.s32.totalorder %v15266_v27, %v15269_v32 }
 0x510   :  { %8734 = vmatprep.subr.bf16.mxu1 %v11585_v19  ;;  %vm8093_vm3 = vmpackc.low %vm2540_vm9, %vm2537_vm12 }
 0x513   :  { %8735 = vmatpush3.bf16.msra.mxu1 %v11569_v51 }
 0x514   :  { %8736 = vmatprep.subr.bf16.mxu1 %v11587_v35 }
 0x517   :  { %8737 = vmatpush3.bf16.msra.mxu1 %v11571_v62 }
 0x518   :  { %8738 = vmatprep.subr.bf16.mxu1 %v11589_v33 }
 0x51b   :  { %8739 = vmatpush3.bf16.msra.mxu1 %v15170_v54 }
 0x51c   :  { %8740 = vmatprep.subr.bf16.mxu1 %v15173_v28 }
 0x51f   :  { %8741 = vmatpush3.bf16.msra.mxu1 %v15177_v50 }
 0x520   :  { %8742 = vmatprep.subr.bf16.mxu1 %v15178_v6 }
 0x523   :  { %8743 = vmatpush3.bf16.msra.mxu1 %v15185_v1 }
 0x524   :  { %9691 = vmatprep.subr.bf16.mxu1 %v10544_v29 }
 0x526   :  { %8086 = vmatmul.mubr.msk.bf16.vlgmr.msra.gmra.mrb[64].mxu1 %vm8085_vm14, %v15265_v23  ;;  %vm2544_vm14 = vcmp.eq.s32.totalorder %v15262_v4, %v15272_v8 }
 0x527   :  { %8088 = vmatprep.mubr.msk.bf16.mxu1 %vm8087_vm5, %v15265_v23  ;;  %9692 = vmatpush3.bf16.msra.mxu1 %v10544_v29  ;;  %vm8095_vm4 = vmpackc.low %vm2547_vm13, %vm2544_vm14  ;;  %vm2546_vm5 = vcmp.eq.s32.totalorder %v15266_v27, %v15271_v3  ;;  %v8821_v29 = vpop.f32.mrb[131].mxu0  ;;  %vm15279_vm13 = vcmask 785408  }
 0x528   :  { %9701 = vmatprep.subr.bf16.mxu1 %v11595_v38  ;;  %vm8097_vm15 = vmpackc.low %vm2546_vm5, %vm2543_vm6  ;;  %v13501_v17 = vadd.f32 %v8821_v29, %v8820_v24  ;;  %v8854_v44 = vpop.f32.mrb[132].mxu0 }
 0x529   :  { %v8855_v32 = vpop.f32.mrb[133].mxu0 }
 0x52a   :  { %v8856_v12 = vadd.f32 %v8855_v32, %v8854_v44  ;;  %v8857_v3 = vpop.f32.mrb[134].mxu0 }
 0x52b   :  { %v8858_v8 = vpop.f32.mrb[135].mxu0 }
 0x52c   :  { %v8859_v11 = vadd.f32 %v8858_v8, %v8857_v3  ;;  %v8860_v40 = vpop.f32.mrb[136].mxu0 }
 0x52d   :  { %v8861_v63 = vpop.f32.mrb[137].mxu0 }
 0x52e   :  { %8090 = vmatmul.mubr.msk.bf16.gmra.mrb[68].mxu1 %vm8089_vm8, %v15265_v23  ;;  %v8862_v25 = vadd.f32 %v8861_v63, %v8860_v40  ;;  %v8863_v5 = vpop.f32.mrb[138].mxu0 }
 0x52f   :  { %8092 = vmatprep.mubr.msk.bf16.mxu1 %vm8091_vm1, %v15265_v23  ;;  %v8864_v14 = vpop.f32.mrb[139].mxu0 }
 0x530   :  { %v8865_v60 = vadd.f32 %v8864_v14, %v8863_v5  ;;  %v8866_v49 = vpop.f32.mrb[140].mxu0 }
 0x531   :  { %v8867_v0 = vpop.f32.mrb[141].mxu0 }
 0x532   :  { %v8868_v59 = vadd.f32 %v8867_v0, %v8866_v49  ;;  %v8869_v61 = vpop.f32.mrb[142].mxu0 }
 0x533   :  { %v8870_v9 = vpop.f32.mrb[143].mxu0 }
 0x534   :  { %v8871_v34 = vadd.f32 %v8870_v9, %v8869_v61  ;;  %v8872_v10 = vpop.f32.mrb[144].mxu0 }
 0x535   :  { %v8873_v24 = vpop.f32.mrb[145].mxu0 }
 0x536   :  { %8094 = vmatmul.mubr.msk.bf16.gmra.mrb[72].mxu1 %vm8093_vm3, %v15265_v23  ;;  %v8874_v29 = vadd.f32 %v8873_v24, %v8872_v10  ;;  %v8875_v1 = vpop.f32.mrb[146].mxu0 }
 0x537   :  { %8096 = vmatprep.mubr.msk.bf16.mxu1 %vm8095_vm4, %v15265_v23  ;;  %v8876_v44 = vpop.f32.mrb[147].mxu0  ;;  %vm15282_vm4 = vmmov %vm15279_vm13 }
 0x538   :  { %v8877_v32 = vadd.f32 %v8876_v44, %v8875_v1  ;;  %v9745_v6 = vpop.f32.mrb[148].mxu0  ;;  %vm15283_vm5 = vmmov %vm15282_vm4 }
 0x539   :  { %v13503_v3 = vadd.f32 %v9745_v6, %v8862_v25  ;;  %v3342_v8 = vpop.f32.mrb[149].mxu0  ;;  %vm15284_vm6 = vmmov %vm15282_vm4 }
 0x53a   :  { %v13505_v40 = vadd.f32 %v8856_v12, %v3342_v8  ;;  %v9746_v63 = vpop.f32.mrb[150].mxu0 }
 0x53b   :  { %v13507_v5 = vadd.f32 %v9746_v63, %v8865_v60  ;;  %v3345_v14 = vpop.f32.mrb[151].mxu0 }
 0x53c   :  { %v13509_v49 = vadd.f32 %v8859_v11, %v3345_v14  ;;  %v9749_v0 = vpop.f32.mrb[152].mxu0 }
 0x53d   :  { %v13513_v9 = vadd.f32 %v9749_v0, %v8874_v29  ;;  %v3358_v10 = vpop.f32.mrb[153].mxu0 }
 0x53e   :  { %8098 = vmatmul.mubr.msk.bf16.gmra.mrb[76].mxu1 %vm8097_vm15, %v15265_v23  ;;  %v13517_v1 = vadd.f32 %v8868_v59, %v3358_v10  ;;  %v9750_v12 = vpop.f32.mrb[154].mxu0 }
 0x53f   :  { %v13519_v25 = vadd.f32 %v9750_v12, %v8877_v32  ;;  %v3361_v60 = vpop.f32.mrb[155].mxu0 }
 0x540   :  { %v13521_v24 = vadd.f32 %v8871_v34, %v3361_v60 }
 0x5f9   :  { %v8744_v29 = vpop.f32.mrb[64].mxu1 }
 0x5fa   :  { %v8745_v8 = vpop.f32.mrb[65].mxu1 }
 0x5fb   :  { %v8746_v63 = vadd.f32 %v8745_v8, %v8744_v29  ;;  %v8747_v14 = vpop.f32.mrb[66].mxu1 }
 0x5fc   :  { %v8748_v0 = vpop.f32.mrb[67].mxu1 }
 0x5fd   :  { %v2697_v59 = vadd.f32 %v8746_v63, %v13392_v39  ;;  %v8749_v10 = vadd.f32 %v8748_v0, %v8747_v14 }
 0x5ff   :  { %v2700_v32 = vadd.f32 %v8749_v10, %v13396_v7 }
 0x601   :  { %v2727_v12 = vpack.c.bf16 %v2700_v32, %v2697_v59  ;;  %v8750_v61 = vpop.f32.mrb[68].mxu1 }
 0x602   :  { %v8751_v34 = vpop.f32.mrb[69].mxu1 }
 0x603   :  { %v8752_v60 = vadd.f32 %v8751_v34, %v8750_v61  ;;  %v8753_v6 = vpop.f32.mrb[70].mxu1  ;;  %9693 = vmatprep.mubr.msk.bf16.mxu1 %vm14967_vm7, %v2727_v12 }
 0x604   :  { %v8754_v11 = vpop.f32.mrb[71].mxu1 }
 0x605   :  { %v2705_v44 = vadd.f32 %v13390_v56, %v8752_v60  ;;  %v8755_v50 = vadd.f32 %v8754_v11, %v8753_v6  ;;  %v15273_v11 = vld [vmem:[#allocation34_spill] sm:$0xff]  ;;  %v15275_v60 = vld [vmem:[#allocation36_spill] sm:$0xff] }
 0x606   :  { %vm2850_vm0 = vcmp.eq.s32.totalorder %v15058_v46, %v15273_v11  ;;  %vm2856_vm8 = vcmp.eq.s32.totalorder %v15058_v46, %v15275_v60  ;;  %v10546_v11 = vld [vmem:[%s14756_s4 + $0x38] sm:$0xff]   ;;  %v15296_v60 = vld [vmem:[#allocation51_spill] sm:$0xff] }
 0x607   :  { %v2708_v29 = vadd.f32 %v13394_v41, %v8755_v50  ;;  %v2874_v59 = vsel %vm2850_vm0, 1.0, %v15059_v43  ;;  %vm3512_vm10 = vcmp.eq.s32.totalorder %v15266_v27, %v15296_v60 }
 0x609   :  { %v2728_v8 = vpack.c.bf16 %v2708_v29, %v2705_v44  ;;  %v8756_v28 = vpop.f32.mrb[72].mxu1  ;;  %v15276_v29 = vld [vmem:[#allocation38_spill] sm:$0xff] }
 0x60a   :  { %v8757_v54 = vpop.f32.mrb[73].mxu1  ;;  %vm2859_vm1 = vcmp.eq.s32.totalorder %v15058_v46, %v15276_v29 }
 0x60b   :  { %v8758_v39 = vadd.f32 %v8757_v54, %v8756_v28  ;;  %v8759_v63 = vpop.f32.mrb[74].mxu1  ;;  %9694 = vmatmul.mubr.msk.bf16.vlgmr.msra.gmra.mrb[40].mxu1 %vm14967_vm7, %v2728_v8  ;;  %v15278_v8 = vld [vmem:[#allocation39_spill] sm:$0xff] }
 0x60c   :  { %9702 = vmatpush3.bf16.msra.mxu1 %v11595_v38  ;;  %v8760_v7 = vpop.f32.mrb[75].mxu1  ;;  %vm2862_vm12 = vcmp.eq.s32.totalorder %v15058_v46, %v15278_v8 }
 0x60d   :  { %v2713_v61 = vadd.f32 %v8758_v39, %v13400_v53  ;;  %v8761_v14 = vadd.f32 %v8760_v7, %v8759_v63  ;;  %9703 = vmatprep.subr.bf16.mxu1 %v11597_v2  ;;  %v15274_v53 = vld [vmem:[#allocation37_spill] sm:$0xff]  ;;  %v2883_v39 = vsel %vm2859_vm1, 1.0, %v15059_v43  ;;  %v2886_v7 = vsel %vm2862_vm12, 1.0, %v15059_v43 }
 0x60e   :  { %vm2853_vm2 = vcmp.eq.s32.totalorder %v15058_v46, %v15274_v53  ;;  %v15285_v53 = vld [vmem:[#allocation44_spill] sm:$0xff] }
 0x60f   :  { %v2716_v56 = vadd.f32 %v8761_v14, %v13485_v16  ;;  %v2877_v10 = vsel %vm2853_vm2, 1.0, %v15059_v43  ;;  %vm3495_vm15 = vcmp.eq.s32.totalorder %v15262_v4, %v15285_v53 }
 0x610   :  { %9704 = vmatpush3.bf16.msra.mxu1 %v11597_v2  ;;  %v2898_v34 = vpack.c.bf16 %v2877_v10, %v2874_v59  ;;  %v15291_v10 = vld [vmem:[#allocation50_spill] sm:$0xff] }
 0x611   :  { %v2729_v50 = vpack.c.bf16 %v2716_v56, %v2713_v61  ;;  %9705 = vmatprep.subr.bf16.mxu1 %v11600_v57  ;;  %v8762_v41 = vpop.f32.mrb[76].mxu1  ;;  %v15280_v56 = vld [vmem:[#allocation42_spill] sm:$0xff] }
 0x612   :  { %v8763_v54 = vpop.f32.mrb[77].mxu1  ;;  %vm2871_vm14 = vcmp.eq.s32.totalorder %v15058_v46, %v15280_v56 }
 0x613   :  { %v8764_v28 = vadd.f32 %v8763_v54, %v8762_v41  ;;  %v8765_v6 = vpop.f32.mrb[78].mxu1  ;;  %9697 = vmatprep.mubr.msk.bf16.mxu1 %vm14967_vm7, %v2729_v50  ;;  %v15281_v50 = vld [vmem:[#allocation41_spill] sm:$0xff]  ;;  %v2895_v41 = vsel %vm2871_vm14, 1.0, %v15059_v43 }
 0x614   :  { %9706 = vmatpush3.bf16.msra.mxu1 %v11600_v57  ;;  %v8766_v16 = vpop.f32.mrb[79].mxu1  ;;  %vm2868_vm3 = vcmp.eq.s32.totalorder %v15058_v46, %v15281_v50 }
 0x615   :  { %v2721_v44 = vadd.f32 %v13398_v30, %v8764_v28  ;;  %v8767_v0 = vadd.f32 %v8766_v16, %v8765_v6  ;;  %9707 = vmatprep.subr.bf16.mxu1 %v11602_v37  ;;  %v15277_v30 = vld [vmem:[#allocation40_spill] sm:$0xff]  ;;  %v2892_v54 = vsel %vm2868_vm3, 1.0, %v15059_v43  ;;  %v15286_v16 = vld [vmem:[#allocation43_spill] sm:$0xff]  ;;  %vm3509_vm3 = vcmp.eq.s32.totalorder %v15266_v27, %v15291_v10 }
 0x616   :  { %vm2865_vm9 = vcmp.eq.s32.totalorder %v15058_v46, %v15277_v30  ;;  %v2907_v28 = vpack.c.bf16 %v2895_v41, %v2892_v54  ;;  %v10545_v6 = vld [vmem:[%s14756_s4 + $0x30] sm:$0xff]   ;;  %vm3498_vm0 = vcmp.eq.s32.totalorder %v15262_v4, %v15286_v16 }
 0x617   :  { %v2724_v32 = vadd.f32 %v13483_v58, %v8767_v0  ;;  %v2880_v58 = vsel %vm2856_vm8, 1.0, %v15059_v43  ;;  %v2889_v63 = vsel %vm2865_vm9, 1.0, %v15059_v43  ;;  %v15288_v0 = vld [vmem:[#allocation47_spill] sm:$0xff]  ;;  %vm13596_vm12 = vmpackc.low %vm3498_vm0, %vm3495_vm15  ;;  %vm3513_vm15 = vcmp.eq.s32.totalorder %v15262_v4, %v15296_v60 }
 0x618   :  { %9708 = vmatpush3.bf16.msra.mxu1 %v11602_v37  ;;  %v2901_v61 = vpack.c.bf16 %v2883_v39, %v2880_v58  ;;  %v2904_v14 = vpack.c.bf16 %v2889_v63, %v2886_v7  ;;  %vm3504_vm8 = vcmp.eq.s32.totalorder %v15262_v4, %v15288_v0  ;;  %vm3503_vm9 = vcmp.eq.s32.totalorder %v15266_v27, %v15288_v0  ;;  %v13640_v63 = vpop.f32.mrb[156].mxu0 }
 0x619   :  { %v2730_v12 = vpack.c.bf16 %v2724_v32, %v2721_v44  ;;  %9709 = vmatprep.subr.bf16.mxu1 %v15057_v42  ;;  %v15287_v44 = vld [vmem:[#allocation46_spill] sm:$0xff]  ;;  %v15292_v32 = vld [vmem:[#allocation48_spill] sm:$0xff]  ;;  %v13642_v7 = vpop.f32.mrb[157].mxu0 }
 0x61a   :  { %vm3501_vm2 = vcmp.eq.s32.totalorder %v15262_v4, %v15287_v44  ;;  %vm3500_vm1 = vcmp.eq.s32.totalorder %v15266_v27, %v15287_v44  ;;  %vm3507_vm14 = vcmp.eq.s32.totalorder %v15262_v4, %v15292_v32 }
 0x61b   :  { %9698 = vmatmul.mubr.msk.bf16.gmra.mrb[44].mxu1 %vm14967_vm7, %v2730_v12  ;;  %v15293_v12 = vmov 0  ;;  %vm13616_vm0 = vmpackc.low %vm3503_vm9, %vm3500_vm1 }
 0x61c   :  { %9710 = vmatpush3.bf16.msra.mxu1 %v15057_v42  ;;  %9713 = vmatprep.mubr.msk.bf16.mxu1 %vm15279_vm13, %v2898_v34  ;;  %vm3510_vm13 = vcmp.eq.s32.totalorder %v15262_v4, %v15291_v10  ;;  %v15295_v34 = vld [vmem:[#allocation52_spill] sm:$0xff] }
 0x61d   :  { %9711 = vmatprep.subr.bf16.mxu1 %v11604_v55  ;;  %vm3515_vm7 = vcmp.eq.s32.totalorder %v15266_v27, %v15295_v34 }
 0x61e   :  { %vm13636_vm1 = vmpackc.low %vm3515_vm7, %vm3512_vm10  ;;  %vm15307_vm10 = vcmask 130048  }
 0x61f   :  { %vm15308_vm7 = vmmov %vm15307_vm10 }
 0x620   :  { %9712 = vmatpush3.bf16.msra.mxu1 %v11604_v55  ;;  %vm15309_vm9 = vmmov %vm15308_vm7 }
 0x621   :  { %9721 = vmatprep.subr.bf16.mxu1 %v10545_v6 }
 0x623   :  { %9714 = vmatmul.mubr.msk.bf16.vlgmr.msra.gmra.mrb[80].mxu1 %vm15282_vm4, %v2901_v61  ;;  %vm3506_vm4 = vcmp.eq.s32.totalorder %v15266_v27, %v15292_v32  ;;  %v13644_v61 = vpop.f32.mrb[158].mxu0 }
 0x624   :  { %9717 = vmatprep.mubr.msk.bf16.mxu1 %vm15283_vm5, %v2904_v14  ;;  %9722 = vmatpush3.bf16.msra.mxu1 %v10545_v6  ;;  %vm13608_vm5 = vmpackc.low %vm3504_vm8, %vm3501_vm2  ;;  %v13646_v14 = vpop.f32.mrb[159].mxu0 }
 0x625   :  { %9751 = vmatprep.subr.bf16.mxu1 %v10546_v11  ;;  %v15294_v12 = vsel %vm13608_vm5, 4294967295, %v15293_v12  ;;  %vm13624_vm2 = vmpackc.low %vm3510_vm13, %vm3507_vm14  ;;  %v13648_v56 = vpop.f32.mrb[160].mxu0 }
 0x626   :  { %vm13628_vm8 = vmpackc.low %vm3509_vm3, %vm3506_vm4  ;;  %v13650_v50 = vpop.f32.mrb[161].mxu0 }
 0x627   :  { %vm15310_vm13 = vmmov %vm15308_vm7 }
 0x628   :  { %vm15312_vm14 = vmmov %vm15308_vm7 }
 0x629   :  { %vm15314_vm3 = vmmov %vm15308_vm7 }
 0x62a   :  { %vm15316_vm4 = vmmov %vm15314_vm3 }
 0x62b   :  { %9718 = vmatmul.mubr.msk.bf16.gmra.mrb[84].mxu1 %vm15284_vm6, %v2907_v28  ;;  %vm3516_vm6 = vcmp.eq.s32.totalorder %v15262_v4, %v15295_v34 }
 0x62c   :  { %vm13632_vm5 = vmpackc.low %vm3516_vm6, %vm3513_vm15 }
 0x62d   :  { %vm15318_vm6 = vmmov %vm15314_vm3 }
 0x62e   :  { %vm15328_vm15 = vmmov %vm15314_vm3 }
 0x6f6   :  { %v9715_v41 = vpop.f32.mrb[80].mxu1 }
 0x6f7   :  { %v3028_v54 = vadd.f32 %v9715_v41, %v13491_v47  ;;  %v3019_v28 = vpop.f32.mrb[81].mxu1 }
 0x6f8   :  { %v3020_v6 = vadd.f32 %v13487_v18, %v3019_v28  ;;  %v9716_v53 = vpop.f32.mrb[82].mxu1 }
 0x6f9   :  { %v3031_v16 = vadd.f32 %v9716_v53, %v13493_v22  ;;  %v3022_v44 = vpop.f32.mrb[83].mxu1 }
 0x6fa   :  { %v3023_v0 = vadd.f32 %v13489_v45, %v3022_v44 }
 0x6fb   :  { %v3051_v10 = vpack.c.bf16 %v3031_v16, %v3028_v54 }
 0x6fc   :  { %v3050_v32 = vpack.c.bf16 %v3023_v0, %v3020_v6 }
 0x6fe   :  { %v9719_v34 = vpop.f32.mrb[84].mxu1  ;;  %9723 = vmatprep.mubr.msk.bf16.mxu1 %vm15307_vm10, %v3050_v32 }
 0x6ff   :  { %v3044_v60 = vadd.f32 %v9719_v34, %v13499_v48  ;;  %v3035_v43 = vpop.f32.mrb[85].mxu1  ;;  %9724 = vmatmul.mubr.msk.bf16.vlgmr.msra.gmra.mrb[40].mxu1 %vm15308_vm7, %v3051_v10  ;;  %v15311_v48 = vpack.c.bf16 %v13509_v49, %v13505_v40  ;;  %v15321_v40 = vld [vmem:[#allocation4_spill] sm:$0xff]  ;;  %v10547_v49 = vld [vmem:[%s14756_s4 + $0x40] sm:$0xff]  }
 0x700   :  { %v3036_v47 = vadd.f32 %v13495_v13, %v3035_v43  ;;  %9752 = vmatpush3.bf16.msra.mxu1 %v10546_v11  ;;  %v9720_v18 = vpop.f32.mrb[86].mxu1  ;;  %v15313_v43 = vpack.c.bf16 %v13507_v5, %v13503_v3  ;;  %v15315_v13 = vpack.c.bf16 %v13521_v24, %v13517_v1  ;;  %v15320_v3 = vld [vmem:[#allocation14_spill] sm:$0xff] }
 0x701   :  { %v3047_v41 = vadd.f32 %v9720_v18, %v13501_v17  ;;  %8893 = vmatprep.subr.bf16.mxu1 %v11579_v31  ;;  %v3038_v22 = vpop.f32.mrb[87].mxu1  ;;  %v15319_v17 = vld [vmem:[#allocation8_spill] sm:$0xff]  ;;  %v15322_v5 = vld [vmem:[#allocation18_spill] sm:$0xff] }
 0x702   :  { %v3039_v45 = vadd.f32 %v13497_v20, %v3038_v22  ;;  %v15317_v20 = vpack.c.bf16 %v13519_v25, %v13513_v9  ;;  %v15323_v9 = vld [vmem:[#allocation7_spill] sm:$0xff]  ;;  %v13724_v25 = vpop.f32.mrb[162].mxu0 }
 0x703   :  { %v3053_v54 = vpack.c.bf16 %v3047_v41, %v3044_v60  ;;  %v13726_v24 = vpop.f32.mrb[163].mxu0 }
 0x704   :  { %v3052_v28 = vpack.c.bf16 %v3039_v45, %v3036_v47  ;;  %v8964_v11 = vpop.f32.mrb[164].mxu0 }
 0x705   :  { %v8965_v59 = vpop.f32.mrb[165].mxu0 }
 0x706   :  { %9727 = vmatprep.mubr.msk.bf16.mxu1 %vm15309_vm9, %v3052_v28  ;;  %v8967_v29 = vpop.f32.mrb[166].mxu0 }
 0x707   :  { %9728 = vmatmul.mubr.msk.bf16.gmra.mrb[44].mxu1 %vm15310_vm13, %v3053_v54  ;;  %v8968_v30 = vpop.f32.mrb[167].mxu0 }
 0x708   :  { %9753 = vmatprep.mubr.msk.bf16.mxu1 %vm15312_vm14, %v15311_v48  ;;  %v13730_v8 = vadd.f32 %v8968_v30, %v8967_v29  ;;  %v8970_v6 = vpop.f32.mrb[168].mxu0 }
 0x709   :  { %v8971_v53 = vpop.f32.mrb[169].mxu0 }
 0x70a   :  { %v13732_v58 = vadd.f32 %v8971_v53, %v8970_v6  ;;  %v8973_v16 = vpop.f32.mrb[170].mxu0 }
 0x70b   :  { %v8974_v44 = vpop.f32.mrb[171].mxu0 }
 0x70c   :  { %v13734_v39 = vadd.f32 %v8974_v44, %v8973_v16  ;;  %v8976_v0 = vpop.f32.mrb[172].mxu0 }
 0x70d   :  { %v8977_v10 = vpop.f32.mrb[173].mxu0 }
 0x70e   :  { %v13736_v32 = vadd.f32 %v8977_v10, %v8976_v0  ;;  %v8979_v34 = vpop.f32.mrb[174].mxu0 }
 0x70f   :  { %9754 = vmatmul.mubr.msk.bf16.vlgmr.msra.gmra.mrb[40].mxu1 %vm15314_vm3, %v15313_v43  ;;  %v8980_v60 = vpop.f32.mrb[175].mxu0 }
 0x710   :  { %8894 = vmatpush3.bf16.msra.mxu1 %v11559_v52  ;;  %9757 = vmatprep.mubr.msk.bf16.mxu1 %vm15316_vm4, %v15315_v13  ;;  %v13738_v47 = vadd.f32 %v8980_v60, %v8979_v34  ;;  %v8982_v18 = vpop.f32.mrb[176].mxu0 }
 0x711   :  { %8895 = vmatprep.subr.bf16.mxu1 %v11581_v36  ;;  %v8983_v41 = vpop.f32.mrb[177].mxu0 }
 0x712   :  { %v13740_v22 = vadd.f32 %v8983_v41, %v8982_v18  ;;  %v8985_v45 = vpop.f32.mrb[178].mxu0 }
 0x713   :  { %v8986_v54 = vpop.f32.mrb[179].mxu0 }
 0x714   :  { %8896 = vmatpush3.bf16.msra.mxu1 %v11563_v15  ;;  %v13742_v28 = vadd.f32 %v8986_v54, %v8985_v45  ;;  %v9019_v48 = vpop.f32.mrb[180].mxu0 }
 0x715   :  { %8897 = vmatprep.subr.bf16.mxu1 %v11583_v26  ;;  %v9020_v43 = vpop.f32.mrb[181].mxu0 }
 0x716   :  { %v9021_v13 = vadd.f32 %v9020_v43, %v9019_v48 }
 0x717   :  { %9758 = vmatmul.mubr.msk.bf16.gmra.mrb[44].mxu1 %vm15318_vm6, %v15317_v20  ;;  %v9022_v20 = vpop.f32.mrb[182].mxu0 }
 0x718   :  { %8898 = vmatpush3.bf16.msra.mxu1 %v11567_v21  ;;  %8159 = vmatprep.mubr.msk.bf16.mxu1 %vm13596_vm12, %v15265_v23  ;;  %vm15325_vm12 = vnez %v15294_v12  ;;  %v13728_v12 = vadd.f32 %v8965_v59, %v8964_v11 }
 0x719   :  { %8899 = vmatprep.subr.bf16.mxu1 %v11585_v19 }
 0x71c   :  { %8900 = vmatpush3.bf16.msra.mxu1 %v11569_v51 }
 0x71d   :  { %8901 = vmatprep.subr.bf16.mxu1 %v11587_v35 }
 0x720   :  { %8902 = vmatpush3.bf16.msra.mxu1 %v11571_v62 }
 0x721   :  { %8903 = vmatprep.subr.bf16.mxu1 %v11589_v33 }
 0x724   :  { %8904 = vmatpush3.bf16.msra.mxu1 %v15319_v17 }
 0x725   :  { %8905 = vmatprep.subr.bf16.mxu1 %v15320_v3 }
 0x728   :  { %8906 = vmatpush3.bf16.msra.mxu1 %v15321_v40 }
 0x729   :  { %8907 = vmatprep.subr.bf16.mxu1 %v15322_v5 }
 0x72c   :  { %8908 = vmatpush3.bf16.msra.mxu1 %v15323_v9 }
 0x72d   :  { %9781 = vmatprep.subr.bf16.mxu1 %v10547_v49 }
 0x72f   :  { %8161 = vmatmul.mubr.msk.bf16.vlgmr.msra.gmra.mrb[88].mxu1 %vm12246_vm11, %v15265_v23  ;;  %vm15326_vm11 = vmmov %vm15314_vm3 }
 0x730   :  { %8163 = vmatprep.mubr.msk.bf16.mxu1 %vm15325_vm12, %v15265_v23  ;;  %9782 = vmatpush3.bf16.msra.mxu1 %v10547_v49  ;;  %v9023_v49 = vpop.f32.mrb[183].mxu0 }
 0x731   :  { %9791 = vmatprep.subr.bf16.mxu1 %v11595_v38  ;;  %v9024_v1 = vadd.f32 %v9023_v49, %v9022_v20  ;;  %v9025_v11 = vpop.f32.mrb[184].mxu0 }
 0x732   :  { %v9026_v59 = vpop.f32.mrb[185].mxu0 }
 0x733   :  { %v9027_v29 = vadd.f32 %v9026_v59, %v9025_v11  ;;  %v9028_v30 = vpop.f32.mrb[186].mxu0 }
 0x734   :  { %v9029_v6 = vpop.f32.mrb[187].mxu0 }
 0x735   :  { %v9030_v53 = vadd.f32 %v9029_v6, %v9028_v30  ;;  %v9031_v16 = vpop.f32.mrb[188].mxu0 }
 0x736   :  { %v9032_v44 = vpop.f32.mrb[189].mxu0 }
 0x737   :  { %8165 = vmatmul.mubr.msk.bf16.gmra.mrb[92].mxu1 %vm13616_vm0, %v15265_v23  ;;  %v9033_v0 = vadd.f32 %v9032_v44, %v9031_v16  ;;  %v9034_v10 = vpop.f32.mrb[190].mxu0  ;;  %vm15329_vm0 = vmmov %vm15314_vm3 }
 0x738   :  { %8167 = vmatprep.mubr.msk.bf16.mxu1 %vm13624_vm2, %v15265_v23  ;;  %v9035_v34 = vpop.f32.mrb[191].mxu0  ;;  %vm15333_vm2 = vcmask 785408  }
 0x739   :  { %v9036_v60 = vadd.f32 %v9035_v34, %v9034_v10  ;;  %v9037_v18 = vpop.f32.mrb[192].mxu0 }
 0x73a   :  { %v9038_v41 = vpop.f32.mrb[193].mxu0 }
 0x73b   :  { %v9039_v45 = vadd.f32 %v9038_v41, %v9037_v18  ;;  %v9040_v54 = vpop.f32.mrb[194].mxu0 }
 0x73c   :  { %v9041_v48 = vpop.f32.mrb[195].mxu0 }
 0x73d   :  { %v9042_v43 = vadd.f32 %v9041_v48, %v9040_v54  ;;  %v9835_v46 = vpop.f32.mrb[196].mxu0 }
 0x73e   :  { %v13744_v20 = vadd.f32 %v9835_v46, %v9027_v29  ;;  %v4311_v49 = vpop.f32.mrb[197].mxu0 }
 0x73f   :  { %8169 = vmatmul.mubr.msk.bf16.gmra.mrb[96].mxu1 %vm13628_vm8, %v15265_v23  ;;  %v13746_v11 = vadd.f32 %v9021_v13, %v4311_v49  ;;  %v9836_v59 = vpop.f32.mrb[198].mxu0  ;;  %vm15337_vm8 = vmmov %vm15333_vm2 }
 0x740   :  { %8171 = vmatprep.mubr.msk.bf16.mxu1 %vm13632_vm5, %v15265_v23  ;;  %v13748_v30 = vadd.f32 %v9836_v59, %v9030_v53  ;;  %v4314_v6 = vpop.f32.mrb[199].mxu0  ;;  %vm15327_vm5 = vmmov %vm15314_vm3 }
 0x741   :  { %v13750_v16 = vadd.f32 %v9024_v1, %v4314_v6  ;;  %v9839_v44 = vpop.f32.mrb[200].mxu0 }
 0x742   :  { %v13754_v34 = vadd.f32 %v9839_v44, %v9039_v45  ;;  %v4327_v18 = vpop.f32.mrb[201].mxu0 }
 0x743   :  { %v13758_v29 = vadd.f32 %v9033_v0, %v4327_v18  ;;  %v9840_v13 = vpop.f32.mrb[202].mxu0 }
 0x744   :  { %v13760_v41 = vadd.f32 %v9840_v13, %v9042_v43  ;;  %v4330_v53 = vpop.f32.mrb[203].mxu0 }
 0x745   :  { %v13762_v54 = vadd.f32 %v9036_v60, %v4330_v53 }
 0x747   :  { %8173 = vmatmul.mubr.msk.bf16.gmra.mrb[100].mxu1 %vm13636_vm1, %v15265_v23  ;;  %vm15341_vm1 = vmmov %vm15333_vm2 }
 0x748   :  { %vm15345_vm10 = vmmov %vm15341_vm1 }
 0x802   :  { %v8909_v45 = vpop.f32.mrb[88].mxu1 }
 0x803   :  { %v8910_v49 = vpop.f32.mrb[89].mxu1 }
 0x804   :  { %v8911_v59 = vadd.f32 %v8910_v49, %v8909_v45  ;;  %v8912_v6 = vpop.f32.mrb[90].mxu1 }
 0x805   :  { %v8913_v44 = vpop.f32.mrb[91].mxu1 }
 0x806   :  { %v3666_v0 = vadd.f32 %v8911_v59, %v13642_v7  ;;  %v8914_v18 = vadd.f32 %v8913_v44, %v8912_v6 }
 0x808   :  { %v3669_v43 = vadd.f32 %v8914_v18, %v13646_v14  ;;  %v15331_v18 = vld [vmem:[#allocation53_spill] sm:$0xff] }
 0x80a   :  { %v3696_v13 = vpack.c.bf16 %v3669_v43, %v3666_v0  ;;  %v8915_v10 = vpop.f32.mrb[92].mxu1  ;;  %v15330_v0 = vld [vmem:[#allocation55_spill] sm:$0xff] }
 0x80b   :  { %v8916_v60 = vpop.f32.mrb[93].mxu1  ;;  %v15332_v43 = vpack.c.bf16 %v15330_v0, %v15331_v18 }
 0x80c   :  { %v8917_v53 = vadd.f32 %v8916_v60, %v8915_v10  ;;  %v8918_v46 = vpop.f32.mrb[94].mxu1  ;;  %9783 = vmatprep.mubr.msk.bf16.mxu1 %vm15326_vm11, %v3696_v13  ;;  %v15338_v60 = vld [vmem:[#allocation61_spill] sm:$0xff] }
 0x80d   :  { %v8919_v1 = vpop.f32.mrb[95].mxu1 }
 0x80e   :  { %v3674_v48 = vadd.f32 %v13640_v63, %v8917_v53  ;;  %v8920_v9 = vadd.f32 %v8919_v1, %v8918_v46  ;;  %v15339_v53 = vld [vmem:[#allocation62_spill] sm:$0xff] }
 0x810   :  { %v3677_v45 = vadd.f32 %v13644_v61, %v8920_v9 }
 0x812   :  { %v3697_v49 = vpack.c.bf16 %v3677_v45, %v3674_v48  ;;  %v8921_v5 = vpop.f32.mrb[96].mxu1  ;;  %v15340_v45 = vpack.c.bf16 %v15338_v60, %v15339_v53 }
 0x813   :  { %v8922_v40 = vpop.f32.mrb[97].mxu1 }
 0x814   :  { %v8923_v7 = vadd.f32 %v8922_v40, %v8921_v5  ;;  %v8924_v59 = vpop.f32.mrb[98].mxu1  ;;  %9784 = vmatmul.mubr.msk.bf16.vlgmr.msra.gmra.mrb[40].mxu1 %vm15327_vm5, %v3697_v49  ;;  %v15342_v49 = vld [vmem:[#allocation66_spill] sm:$0xff] }
 0x815   :  { %9792 = vmatpush3.bf16.msra.mxu1 %v11595_v38  ;;  %v8925_v14 = vpop.f32.mrb[99].mxu1 }
 0x816   :  { %v3682_v10 = vadd.f32 %v8923_v7, %v13650_v50  ;;  %v8926_v6 = vadd.f32 %v8925_v14, %v8924_v59  ;;  %9793 = vmatprep.subr.bf16.mxu1 %v11597_v2  ;;  %v15343_v7 = vld [vmem:[#allocation65_spill] sm:$0xff]  ;;  %v10548_v14 = vld [vmem:[%s14756_s4 + $0x48] sm:$0xff]  }
 0x817   :  { %v15344_v59 = vpack.c.bf16 %v15342_v49, %v15343_v7 }
 0x818   :  { %v3685_v63 = vadd.f32 %v8926_v6, %v13726_v24  ;;  %v15346_v6 = vld [vmem:[#allocation74_spill] sm:$0xff] }
 0x819   :  { %9794 = vmatpush3.bf16.msra.mxu1 %v11597_v2  ;;  %vm4467_vm7 = vcmp.eq.s32.totalorder %v15262_v4, %v15346_v6 }
 0x81a   :  { %v3698_v61 = vpack.c.bf16 %v3685_v63, %v3682_v10  ;;  %9795 = vmatprep.subr.bf16.mxu1 %v11600_v57  ;;  %v8927_v9 = vpop.f32.mrb[100].mxu1  ;;  %v10549_v10 = vld [vmem:[%s14756_s4 + $0x50] sm:$0xff]   ;;  %v15347_v63 = vld [vmem:[#allocation75_spill] sm:$0xff] }
 0x81b   :  { %v8928_v40 = vpop.f32.mrb[101].mxu1  ;;  %vm4464_vm9 = vcmp.eq.s32.totalorder %v15262_v4, %v15347_v63 }
 0x81c   :  { %v8929_v5 = vadd.f32 %v8928_v40, %v8927_v9  ;;  %v8930_v46 = vpop.f32.mrb[102].mxu1  ;;  %9787 = vmatprep.mubr.msk.bf16.mxu1 %vm15328_vm15, %v3698_v61  ;;  %v15348_v61 = vld [vmem:[#allocation77_spill] sm:$0xff]  ;;  %v15349_v9 = vld [vmem:[#allocation78_spill] sm:$0xff]  ;;  %v15350_v40 = vld [vmem:[#allocation79_spill] sm:$0xff] }
 0x81d   :  { %9796 = vmatpush3.bf16.msra.mxu1 %v11600_v57  ;;  %v8931_v1 = vpop.f32.mrb[103].mxu1  ;;  %vm4470_vm13 = vcmp.eq.s32.totalorder %v15262_v4, %v15348_v61  ;;  %vm4473_vm14 = vcmp.eq.s32.totalorder %v15262_v4, %v15349_v9  ;;  %vm4469_vm3 = vcmp.eq.s32.totalorder %v15266_v27, %v15348_v61  ;;  %vm4472_vm4 = vcmp.eq.s32.totalorder %v15266_v27, %v15349_v9  ;;  %vm13829_vm11 = vmpackc.low %vm4467_vm7, %vm4464_vm9 }
 0x81e   :  { %v3690_v50 = vadd.f32 %v13648_v56, %v8929_v5  ;;  %v8932_v48 = vadd.f32 %v8931_v1, %v8930_v46  ;;  %9797 = vmatprep.subr.bf16.mxu1 %v11602_v37  ;;  %v15334_v56 = vld [vmem:[#allocation57_spill] sm:$0xff]  ;;  %vm4476_vm6 = vcmp.eq.s32.totalorder %v15262_v4, %v15350_v40  ;;  %v15351_v5 = vld [vmem:[#allocation80_spill] sm:$0xff]  ;;  %vm4475_vm5 = vcmp.eq.s32.totalorder %v15266_v27, %v15350_v40 }
 0x81f   :  { %vm4479_vm12 = vcmp.eq.s32.totalorder %v15262_v4, %v15351_v5  ;;  %vm4478_vm15 = vcmp.eq.s32.totalorder %v15266_v27, %v15351_v5 }
 0x820   :  { %v3693_v24 = vadd.f32 %v13724_v25, %v8932_v48  ;;  %v15335_v25 = vld [vmem:[#allocation59_spill] sm:$0xff]  ;;  %v15357_v48 = vld [vmem:[#allocation82_spill] sm:$0xff]  ;;  %vm13853_vm9 = vmpackc.low %vm4479_vm12, %vm4476_vm6 }
 0x821   :  { %9798 = vmatpush3.bf16.msra.mxu1 %v11602_v37  ;;  %v15336_v13 = vpack.c.bf16 %v15334_v56, %v15335_v25  ;;  %vm4484_vm7 = vcmp.eq.s32.totalorder %v15266_v27, %v15357_v48  ;;  %v13869_v56 = vpop.f32.mrb[204].mxu0 }
 0x822   :  { %v3699_v44 = vpack.c.bf16 %v3693_v24, %v3690_v50  ;;  %9799 = vmatprep.subr.bf16.mxu1 %v15057_v42  ;;  %v15356_v50 = vld [vmem:[#allocation81_spill] sm:$0xff]  ;;  %v13871_v25 = vpop.f32.mrb[205].mxu0 }
 0x824   :  { %9788 = vmatmul.mubr.msk.bf16.gmra.mrb[44].mxu1 %vm15329_vm0, %v3699_v44  ;;  %vm13837_vm0 = vmpackc.low %vm4473_vm14, %vm4470_vm13 }
 0x825   :  { %9800 = vmatpush3.bf16.msra.mxu1 %v15057_v42  ;;  %9803 = vmatprep.mubr.msk.bf16.mxu1 %vm15333_vm2, %v15332_v43  ;;  %vm4482_vm2 = vcmp.eq.s32.totalorder %v15262_v4, %v15356_v50  ;;  %vm13857_vm13 = vmpackc.low %vm4478_vm15, %vm4475_vm5 }
 0x826   :  { %9801 = vmatprep.subr.bf16.mxu1 %v11604_v55 }
 0x829   :  { %9802 = vmatpush3.bf16.msra.mxu1 %v11604_v55 }
 0x82a   :  { %9811 = vmatprep.subr.bf16.mxu1 %v10548_v14 }
 0x82c   :  { %9804 = vmatmul.mubr.msk.bf16.vlgmr.msra.gmra.mrb[104].mxu1 %vm15337_vm8, %v15336_v13  ;;  %vm4485_vm8 = vcmp.eq.s32.totalorder %v15262_v4, %v15357_v48  ;;  %v13873_v13 = vpop.f32.mrb[206].mxu0 }
 0x82d   :  { %9807 = vmatprep.mubr.msk.bf16.mxu1 %vm15341_vm1, %v15340_v45  ;;  %9812 = vmatpush3.bf16.msra.mxu1 %v10548_v14  ;;  %vm13845_vm1 = vmpackc.low %vm4472_vm4, %vm4469_vm3  ;;  %v13875_v60 = vpop.f32.mrb[207].mxu0  ;;  %vm15368_vm4 = vcmask 130048  }
 0x82e   :  { %9841 = vmatprep.subr.bf16.mxu1 %v10549_v10  ;;  %vm13861_vm14 = vmpackc.low %vm4485_vm8, %vm4482_vm2  ;;  %v13877_v53 = vpop.f32.mrb[208].mxu0 }
 0x82f   :  { %v13879_v45 = vpop.f32.mrb[209].mxu0  ;;  %vm15369_vm6 = vmmov %vm15368_vm4 }
 0x830   :  { %vm15370_vm12 = vmmov %vm15368_vm4 }
 0x831   :  { %vm15371_vm5 = vmmov %vm15368_vm4 }
 0x832   :  { %vm15373_vm15 = vmmov %vm15368_vm4 }
 0x833   :  { %vm15375_vm2 = vmmov %vm15368_vm4 }
 0x834   :  { %9808 = vmatmul.mubr.msk.bf16.gmra.mrb[108].mxu1 %vm15345_vm10, %v15344_v59  ;;  %vm4481_vm10 = vcmp.eq.s32.totalorder %v15266_v27, %v15356_v50  ;;  %vm15377_vm8 = vmmov %vm15375_vm2 }
 0x835   :  { %vm13865_vm3 = vmpackc.low %vm4484_vm7, %vm4481_vm10 }
 0x836   :  { %vm15379_vm10 = vmmov %vm15375_vm2 }
 0x8ff   :  { %v9805_v49 = vpop.f32.mrb[104].mxu1 }
 0x900   :  { %v3997_v7 = vadd.f32 %v9805_v49, %v13732_v58  ;;  %v3988_v59 = vpop.f32.mrb[105].mxu1 }
 0x901   :  { %v3989_v14 = vadd.f32 %v13728_v12, %v3988_v59  ;;  %v9806_v6 = vpop.f32.mrb[106].mxu1 }
 0x902   :  { %v4000_v63 = vadd.f32 %v9806_v6, %v13734_v39  ;;  %v3991_v61 = vpop.f32.mrb[107].mxu1 }
 0x903   :  { %v3992_v9 = vadd.f32 %v13730_v8, %v3991_v61 }
 0x904   :  { %v4020_v40 = vpack.c.bf16 %v4000_v63, %v3997_v7 }
 0x905   :  { %v4019_v5 = vpack.c.bf16 %v3992_v9, %v3989_v14 }
 0x907   :  { %v9809_v50 = vpop.f32.mrb[108].mxu1  ;;  %9813 = vmatprep.mubr.msk.bf16.mxu1 %vm15368_vm4, %v4019_v5 }
 0x908   :  { %v4013_v48 = vadd.f32 %v9809_v50, %v13740_v22  ;;  %v4004_v27 = vpop.f32.mrb[109].mxu1  ;;  %9814 = vmatmul.mubr.msk.bf16.vlgmr.msra.gmra.mrb[40].mxu1 %vm15369_vm6, %v4020_v40  ;;  %v15372_v22 = vpack.c.bf16 %v13750_v16, %v13746_v11  ;;  %v10550_v11 = vld [vmem:[%s14756_s4 + $0x58] sm:$0xff]   ;;  %v15383_v16 = vld [vmem:[#allocation76_spill] sm:$0xff] }
 0x909   :  { %v4005_v58 = vadd.f32 %v13736_v32, %v4004_v27  ;;  %9842 = vmatpush3.bf16.msra.mxu1 %v10549_v10  ;;  %v9810_v12 = vpop.f32.mrb[110].mxu1  ;;  %v15374_v27 = vpack.c.bf16 %v13748_v30, %v13744_v20  ;;  %v15376_v32 = vpack.c.bf16 %v13762_v54, %v13758_v29  ;;  %v15381_v20 = vld [vmem:[#allocation18_spill] sm:$0xff]  ;;  %v15382_v30 = vld [vmem:[#allocation7_spill] sm:$0xff] }
 0x90a   :  { %v4016_v49 = vadd.f32 %v9810_v12, %v13742_v28  ;;  %9058 = vmatprep.subr.bf16.mxu1 %v11579_v31  ;;  %v4007_v39 = vpop.f32.mrb[111].mxu1  ;;  %v15380_v28 = vld [vmem:[#allocation4_spill] sm:$0xff] }
 0x90b   :  { %v4008_v8 = vadd.f32 %v13738_v47, %v4007_v39  ;;  %v15378_v47 = vpack.c.bf16 %v13760_v41, %v13754_v34  ;;  %v13953_v34 = vpop.f32.mrb[210].mxu0 }
 0x90c   :  { %v4022_v7 = vpack.c.bf16 %v4016_v49, %v4013_v48  ;;  %v13955_v29 = vpop.f32.mrb[211].mxu0 }
 0x90d   :  { %v4021_v59 = vpack.c.bf16 %v4008_v8, %v4005_v58  ;;  %v9129_v41 = vpop.f32.mrb[212].mxu0 }
 0x90e   :  { %v9130_v54 = vpop.f32.mrb[213].mxu0 }
 0x90f   :  { %9817 = vmatprep.mubr.msk.bf16.mxu1 %vm15370_vm12, %v4021_v59  ;;  %v13957_v10 = vadd.f32 %v9130_v54, %v9129_v41  ;;  %v9132_v46 = vpop.f32.mrb[214].mxu0 }
 0x910   :  { %9818 = vmatmul.mubr.msk.bf16.gmra.mrb[44].mxu1 %vm15371_vm5, %v4022_v7  ;;  %v9133_v1 = vpop.f32.mrb[215].mxu0 }
 0x911   :  { %9843 = vmatprep.mubr.msk.bf16.mxu1 %vm15373_vm15, %v15372_v22  ;;  %v13959_v24 = vadd.f32 %v9133_v1, %v9132_v46  ;;  %v9135_v44 = vpop.f32.mrb[216].mxu0 }
 0x912   :  { %v9136_v0 = vpop.f32.mrb[217].mxu0 }
 0x913   :  { %v13961_v18 = vadd.f32 %v9136_v0, %v9135_v44  ;;  %v9138_v14 = vpop.f32.mrb[218].mxu0 }
 0x914   :  { %v9139_v6 = vpop.f32.mrb[219].mxu0 }
 0x915   :  { %v13963_v43 = vadd.f32 %v9139_v6, %v9138_v14  ;;  %v9141_v63 = vpop.f32.mrb[220].mxu0 }
 0x916   :  { %v9142_v61 = vpop.f32.mrb[221].mxu0 }
 0x917   :  { %v13965_v9 = vadd.f32 %v9142_v61, %v9141_v63  ;;  %v9144_v40 = vpop.f32.mrb[222].mxu0 }
 0x918   :  { %9844 = vmatmul.mubr.msk.bf16.vlgmr.msra.gmra.mrb[40].mxu1 %vm15375_vm2, %v15374_v27  ;;  %v9145_v5 = vpop.f32.mrb[223].mxu0 }
 0x919   :  { %9059 = vmatpush3.bf16.msra.mxu1 %v11559_v52  ;;  %9847 = vmatprep.mubr.msk.bf16.mxu1 %vm15377_vm8, %v15376_v32  ;;  %v13967_v50 = vadd.f32 %v9145_v5, %v9144_v40  ;;  %v9147_v48 = vpop.f32.mrb[224].mxu0 }
 0x91a   :  { %9060 = vmatprep.subr.bf16.mxu1 %v11581_v36  ;;  %v9148_v58 = vpop.f32.mrb[225].mxu0 }
 0x91b   :  { %v13969_v12 = vadd.f32 %v9148_v58, %v9147_v48  ;;  %v9150_v49 = vpop.f32.mrb[226].mxu0 }
 0x91c   :  { %v9151_v39 = vpop.f32.mrb[227].mxu0 }
 0x91d   :  { %9061 = vmatpush3.bf16.msra.mxu1 %v11563_v15  ;;  %v13971_v8 = vadd.f32 %v9151_v39, %v9150_v49  ;;  %v9184_v7 = vpop.f32.mrb[228].mxu0 }
 0x91e   :  { %9062 = vmatprep.subr.bf16.mxu1 %v11583_v26  ;;  %v9185_v59 = vpop.f32.mrb[229].mxu0 }
 0x91f   :  { %v9186_v22 = vadd.f32 %v9185_v59, %v9184_v7  ;;  %v9187_v27 = vpop.f32.mrb[230].mxu0 }
 0x920   :  { %9848 = vmatmul.mubr.msk.bf16.gmra.mrb[44].mxu1 %vm15379_vm10, %v15378_v47  ;;  %v9188_v32 = vpop.f32.mrb[231].mxu0 }
 0x921   :  { %9063 = vmatpush3.bf16.msra.mxu1 %v11567_v21  ;;  %8234 = vmatprep.mubr.msk.bf16.mxu1 %vm13829_vm11, %v15265_v23  ;;  %vm15384_vm11 = vnez %v15383_v16  ;;  %v9189_v47 = vadd.f32 %v9188_v32, %v9187_v27 }
 0x922   :  { %9064 = vmatprep.subr.bf16.mxu1 %v11585_v19 }
 0x925   :  { %9065 = vmatpush3.bf16.msra.mxu1 %v11569_v51 }
 0x926   :  { %9066 = vmatprep.subr.bf16.mxu1 %v11587_v35 }
 0x929   :  { %9067 = vmatpush3.bf16.msra.mxu1 %v11571_v62 }
 0x92a   :  { %9068 = vmatprep.subr.bf16.mxu1 %v11589_v33 }
 0x92d   :  { %9069 = vmatpush3.bf16.msra.mxu1 %v15319_v17 }
 0x92e   :  { %9070 = vmatprep.subr.bf16.mxu1 %v15320_v3 }
 0x931   :  { %9071 = vmatpush3.bf16.msra.mxu1 %v15380_v28 }
 0x932   :  { %9072 = vmatprep.subr.bf16.mxu1 %v15381_v20 }
 0x935   :  { %9073 = vmatpush3.bf16.msra.mxu1 %v15382_v30 }
 0x936   :  { %9871 = vmatprep.subr.bf16.mxu1 %v10550_v11 }
 0x938   :  { %8236 = vmatmul.mubr.msk.bf16.vlgmr.msra.gmra.mrb[112].mxu1 %vm15384_vm11, %v15265_v23 }
 0x939   :  { %8238 = vmatprep.mubr.msk.bf16.mxu1 %vm13837_vm0, %v15265_v23  ;;  %9872 = vmatpush3.bf16.msra.mxu1 %v10550_v11  ;;  %v9190_v11 = vpop.f32.mrb[232].mxu0  ;;  %vm15385_vm0 = vmmov %vm15375_vm2 }
 0x93a   :  { %9881 = vmatprep.subr.bf16.mxu1 %v11595_v38  ;;  %v9191_v16 = vpop.f32.mrb[233].mxu0  ;;  %vm15387_vm7 = vmmov %vm15385_vm0 }
 0x93b   :  { %v9192_v41 = vadd.f32 %v9191_v16, %v9190_v11  ;;  %v9193_v54 = vpop.f32.mrb[234].mxu0 }
 0x93c   :  { %v9194_v46 = vpop.f32.mrb[235].mxu0 }
 0x93d   :  { %v9195_v1 = vadd.f32 %v9194_v46, %v9193_v54  ;;  %v9196_v44 = vpop.f32.mrb[236].mxu0 }
 0x93e   :  { %v9197_v0 = vpop.f32.mrb[237].mxu0 }
 0x93f   :  { %v9198_v14 = vadd.f32 %v9197_v0, %v9196_v44  ;;  %v9199_v6 = vpop.f32.mrb[238].mxu0 }
 0x940   :  { %8240 = vmatmul.mubr.msk.bf16.gmra.mrb[116].mxu1 %vm13845_vm1, %v15265_v23  ;;  %v9200_v63 = vpop.f32.mrb[239].mxu0  ;;  %vm15386_vm1 = vmmov %vm15385_vm0 }
 0x941   :  { %8242 = vmatprep.mubr.msk.bf16.mxu1 %vm13853_vm9, %v15265_v23  ;;  %v9201_v61 = vadd.f32 %v9200_v63, %v9199_v6  ;;  %v9202_v40 = vpop.f32.mrb[240].mxu0  ;;  %vm15388_vm9 = vmmov %vm15385_vm0 }
 0x942   :  { %v9203_v5 = vpop.f32.mrb[241].mxu0 }
 0x943   :  { %v9204_v48 = vadd.f32 %v9203_v5, %v9202_v40  ;;  %v9205_v58 = vpop.f32.mrb[242].mxu0 }
 0x944   :  { %v9206_v49 = vpop.f32.mrb[243].mxu0 }
 0x945   :  { %v9207_v39 = vadd.f32 %v9206_v49, %v9205_v58  ;;  %v9925_v7 = vpop.f32.mrb[244].mxu0 }
 0x946   :  { %v13973_v59 = vadd.f32 %v9925_v7, %v9192_v41  ;;  %v5280_v27 = vpop.f32.mrb[245].mxu0 }
 0x947   :  { %v13975_v32 = vadd.f32 %v9186_v22, %v5280_v27  ;;  %v9926_v11 = vpop.f32.mrb[246].mxu0 }
 0x948   :  { %8244 = vmatmul.mubr.msk.bf16.gmra.mrb[120].mxu1 %vm13857_vm13, %v15265_v23  ;;  %v13977_v16 = vadd.f32 %v9926_v11, %v9195_v1  ;;  %v5283_v54 = vpop.f32.mrb[247].mxu0  ;;  %vm15392_vm13 = vcmask 785408  }
 0x949   :  { %8246 = vmatprep.mubr.msk.bf16.mxu1 %vm13861_vm14, %v15265_v23  ;;  %v13979_v46 = vadd.f32 %v9189_v47, %v5283_v54  ;;  %v9929_v44 = vpop.f32.mrb[248].mxu0  ;;  %vm15396_vm14 = vmmov %vm15392_vm13 }
 0x94a   :  { %v13983_v6 = vadd.f32 %v9929_v44, %v9204_v48  ;;  %v5296_v63 = vpop.f32.mrb[249].mxu0 }
 0x94b   :  { %v13987_v40 = vadd.f32 %v9198_v14, %v5296_v63  ;;  %v9930_v22 = vpop.f32.mrb[250].mxu0 }
 0x94c   :  { %v13989_v5 = vadd.f32 %v9930_v22, %v9207_v39  ;;  %v5299_v1 = vpop.f32.mrb[251].mxu0 }
 0x94d   :  { %v13991_v58 = vadd.f32 %v9201_v61, %v5299_v1 }
 0x950   :  { %8248 = vmatmul.mubr.msk.bf16.gmra.mrb[124].mxu1 %vm13865_vm3, %v15265_v23  ;;  %vm15400_vm3 = vmmov %vm15392_vm13 }
 0x951   :  { %vm15404_vm4 = vmmov %vm15400_vm3 }
 0x952   :  { %vm15407_vm2 = vmmov %vm15400_vm3 }
 0x953   :  { %vm15408_vm8 = vmmov %vm15407_vm2 }
 0xa0b   :  { %v9074_v48 = vpop.f32.mrb[112].mxu1 }
 0xa0c   :  { %v9075_v7 = vpop.f32.mrb[113].mxu1 }
 0xa0d   :  { %v9076_v27 = vadd.f32 %v9075_v7, %v9074_v48  ;;  %v9077_v11 = vpop.f32.mrb[114].mxu1 }
 0xa0e   :  { %v9078_v54 = vpop.f32.mrb[115].mxu1 }
 0xa0f   :  { %v4635_v14 = vadd.f32 %v9076_v27, %v13871_v25  ;;  %v9079_v44 = vadd.f32 %v9078_v54, %v9077_v11 }
 0xa11   :  { %v4638_v39 = vadd.f32 %v9079_v44, %v13875_v60  ;;  %v15389_v44 = vld [vmem:[#allocation67_spill] sm:$0xff] }
 0xa13   :  { %v4665_v63 = vpack.c.bf16 %v4638_v39, %v4635_v14  ;;  %v9080_v22 = vpop.f32.mrb[116].mxu1  ;;  %v15390_v39 = vld [vmem:[#allocation83_spill] sm:$0xff] }
 0xa14   :  { %v9081_v61 = vpop.f32.mrb[117].mxu1 }
 0xa15   :  { %v9082_v1 = vadd.f32 %v9081_v61, %v9080_v22  ;;  %v9083_v0 = vpop.f32.mrb[118].mxu1  ;;  %9873 = vmatprep.mubr.msk.bf16.mxu1 %vm15385_vm0, %v4665_v63  ;;  %v15391_v63 = vpack.c.bf16 %v15389_v44, %v15390_v39  ;;  %v15397_v61 = vld [vmem:[#allocation71_spill] sm:$0xff]  ;;  %v15409_v44 = vld [vmem:[#allocation10_spill] sm:$0xff] }
 0xa16   :  { %v9084_v47 = vpop.f32.mrb[119].mxu1 }
 0xa17   :  { %v4643_v49 = vadd.f32 %v13869_v56, %v9082_v1  ;;  %v9085_v41 = vadd.f32 %v9084_v47, %v9083_v0  ;;  %v15398_v1 = vld [vmem:[#allocation60_spill] sm:$0xff] }
 0xa19   :  { %v4646_v48 = vadd.f32 %v13873_v13, %v9085_v41 }
 0xa1b   :  { %v4666_v7 = vpack.c.bf16 %v4646_v48, %v4643_v49  ;;  %v9086_v30 = vpop.f32.mrb[120].mxu1  ;;  %v15399_v48 = vpack.c.bf16 %v15397_v61, %v15398_v1  ;;  %v14081_v61 = vpop.f32.mrb[252].mxu0  ;;  %v10609_v1 = vld [vmem:[%s14754_s3 + $0x10] sm:$0xff] }
 0xa1c   :  { %v9087_v20 = vpop.f32.mrb[121].mxu1 }
 0xa1d   :  { %v9088_v25 = vadd.f32 %v9087_v20, %v9086_v30  ;;  %v9089_v27 = vpop.f32.mrb[122].mxu1  ;;  %9874 = vmatmul.mubr.msk.bf16.vlgmr.msra.gmra.mrb[40].mxu1 %vm15386_vm1, %v4666_v7  ;;  %v15401_v7 = vld [vmem:[#allocation58_spill] sm:$0xff] }
 0xa1e   :  { %9882 = vmatpush3.bf16.msra.mxu1 %v11595_v38  ;;  %v9090_v60 = vpop.f32.mrb[123].mxu1 }
 0xa1f   :  { %v4651_v11 = vadd.f32 %v9088_v25, %v13879_v45  ;;  %v9091_v54 = vadd.f32 %v9090_v60, %v9089_v27  ;;  %9883 = vmatprep.subr.bf16.mxu1 %v11597_v2  ;;  %v15402_v25 = vld [vmem:[#allocation68_spill] sm:$0xff]  ;;  %v10551_v60 = vld [vmem:[%s14756_s4 + $0x60] sm:$0xff]  }
 0xa20   :  { %v15403_v27 = vpack.c.bf16 %v15401_v7, %v15402_v25  ;;  %v14089_v7 = vpop.f32.mrb[253].mxu0 }
 0xa21   :  { %v4654_v56 = vadd.f32 %v9091_v54, %v13955_v29  ;;  %v5425_v54 = vpop.permute.xlu1 %5424  ;;  %v14091_v25 = vpop.f32.mrb[254].mxu0 }
 0xa22   :  { %9884 = vmatpush3.bf16.msra.mxu1 %v11597_v2  ;;  %vm5448_vm10 = vcmp.eq.s32.totalorder %v15262_v4, %v5425_v54  ;;  %vm5447_vm0 = vcmp.eq.s32.totalorder %v15409_v44, %v5425_v54 }
 0xa23   :  { %v4667_v13 = vpack.c.bf16 %v4654_v56, %v4651_v11  ;;  %9885 = vmatprep.subr.bf16.mxu1 %v11600_v57  ;;  %v9092_v0 = vpop.f32.mrb[124].mxu1  ;;  %v14042_v11 = vld [vmem:[%s14756_s4 + $0x68] sm:$0xff]   ;;  %v5422_v56 = vpop.permute.xlu0 %5421 }
 0xa24   :  { %v9093_v20 = vpop.f32.mrb[125].mxu1  ;;  %vm5445_vm11 = vcmp.eq.s32.totalorder %v15262_v4, %v5422_v56  ;;  %vm5444_vm1 = vcmp.eq.s32.totalorder %v15409_v44, %v5422_v56 }
 0xa25   :  { %v9094_v30 = vadd.f32 %v9093_v20, %v9092_v0  ;;  %v9095_v41 = vpop.f32.mrb[126].mxu1  ;;  %9877 = vmatprep.mubr.msk.bf16.mxu1 %vm15387_vm7, %v4667_v13  ;;  %v15405_v13 = vld [vmem:[#allocation15_spill] sm:$0xff]  ;;  %v15406_v0 = vmov 0.0   ;;  %vm14065_vm7 = vmpackc.low %vm5448_vm10, %vm5445_vm11 }
 0xa26   :  { %9886 = vmatpush3.bf16.msra.mxu1 %v11600_v57  ;;  %v9096_v47 = vpop.f32.mrb[127].mxu1  ;;  %vm5449_vm6 = vcmp.eq.s32.totalorder %v15405_v13, %v5425_v54  ;;  %vm5446_vm12 = vcmp.eq.s32.totalorder %v15405_v13, %v5422_v56  ;;  %v10612_v54 = vld [vmem:[%s14754_s3 + $0x28] sm:$0xff]  ;;  %v10613_v56 = vld [vmem:[%s14754_s3 + $0x30] sm:$0xff] }
 0xa27   :  { %v4659_v45 = vadd.f32 %v13877_v53, %v9094_v30  ;;  %v9097_v49 = vadd.f32 %v9096_v47, %v9095_v41  ;;  %9887 = vmatprep.subr.bf16.mxu1 %v11602_v37  ;;  %v15393_v53 = vld [vmem:[#allocation49_spill] sm:$0xff]  ;;  %v5473_v20 = vsel %vm5449_vm6, 1.0, %v15406_v0  ;;  %v5470_v30 = vsel %vm5446_vm12, 1.0, %v15406_v0  ;;  %v14049_v47 = vpop.permute.xlu1 %5430 }
 0xa28   :  { %v5488_v41 = vpack.c.bf16 %v5473_v20, %v5470_v30  ;;  %vm5455_vm5 = vcmp.eq.s32.totalorder %v15405_v13, %v14049_v47  ;;  %v10614_v20 = vld [vmem:[%s14754_s3 + $0x38] sm:$0xff]  ;;  %v15414_v30 = vmov 0  }
 0xa29   :  { %v4662_v29 = vadd.f32 %v13953_v34, %v9097_v49  ;;  %v15394_v34 = vld [vmem:[#allocation56_spill] sm:$0xff]  ;;  %v5479_v49 = vsel %vm5455_vm5, 1.0, %v15406_v0 }
 0xa2a   :  { %9888 = vmatpush3.bf16.msra.mxu1 %v11602_v37  ;;  %v15395_v22 = vpack.c.bf16 %v15393_v53, %v15394_v34  ;;  %9957 = vmatprep.mubr.msk.bf16.mxu0 %vm15407_vm2, %v5488_v41  ;;  %v14971_v53 = vmov 15   ;;  %v10607_v34 = vld [vmem:[%s14754_s3 + $0x8] sm:$0xff]  ;;  %v15415_v41 = vmov 1  }
 0xa2b   :  { %v4668_v14 = vpack.c.bf16 %v4662_v29, %v4659_v45  ;;  %9889 = vmatprep.subr.bf16.mxu1 %v15057_v42  ;;  %v14051_v45 = vpop.permute.xlu0 %5427  ;;  %10491 = vset.pattern.permute.xlu1 %v14971_v53 }
 0xa2c   :  { %vm5452_vm15 = vcmp.eq.s32.totalorder %v15405_v13, %v14051_v45  ;;  %10490 = vset.pattern.permute.xlu0 %v14971_v53  ;;  %5735 = vperm.xlu1 %10491, %v10607_v34  }
 0xa2d   :  { %9878 = vmatmul.mubr.msk.bf16.gmra.mrb[44].mxu1 %vm15388_vm9, %v4668_v14  ;;  %v5476_v29 = vsel %vm5452_vm15, 1.0, %v15406_v0  ;;  %vm14069_vm9 = vmpackc.low %vm5447_vm0, %vm5444_vm1 }
 0xa2e   :  { %9890 = vmatpush3.bf16.msra.mxu1 %v15057_v42  ;;  %9893 = vmatprep.mubr.msk.bf16.mxu1 %vm15392_vm13, %v15391_v63  ;;  %v5491_v14 = vpack.c.bf16 %v5479_v49, %v5476_v29  ;;  %vm15416_vm13 = vcmask 130048  }
 0xa2f   :  { %9891 = vmatprep.subr.bf16.mxu1 %v11604_v55 }
 0xa30   :  { %9958 = vmatmul.mubr.msk.bf16.gmra.mrb[0].mxu0 %vm15408_vm8, %v5491_v14  ;;  %5738 = vperm.xlu1 %10491, %v10609_v1  }
 0xa32   :  { %9892 = vmatpush3.bf16.msra.mxu1 %v11604_v55 }
 0xa33   :  { %9901 = vmatprep.subr.bf16.mxu1 %v10551_v60 }
 0xa35   :  { %9894 = vmatmul.mubr.msk.bf16.vlgmr.msra.gmra.mrb[128].mxu1 %vm15396_vm14, %v15395_v22  ;;  %v10608_v22 = vld [vmem:[%s14754_s3] sm:$0xff]  ;;  %vm15417_vm14 = vmmov %vm15416_vm13 }
 0xa36   :  { %9897 = vmatprep.mubr.msk.bf16.mxu1 %vm15400_vm3, %v15399_v48  ;;  %9902 = vmatpush3.bf16.msra.mxu1 %v10551_v60  ;;  %v10610_v48 = vld [vmem:[%s14754_s3 + $0x18] sm:$0xff]  ;;  %v10611_v60 = vld [vmem:[%s14754_s3 + $0x20] sm:$0xff]  ;;  %vm15418_vm3 = vmmov %vm15416_vm13 }
 0xa37   :  { %9931 = vmatprep.subr.bf16.mxu1 %v14042_v11  ;;  %5732 = vperm.xlu0 %10490, %v10608_v22   ;;  %vm15421_vm6 = vmmov %vm15418_vm3 }
 0xa38   :  { %5744 = vperm.xlu1 %10491, %v10611_v60   ;;  %vm15423_vm12 = vmmov %vm15418_vm3 }
 0xa39   :  { %vm15425_vm5 = vmmov %vm15418_vm3 }
 0xa3a   :  { %vm15429_vm10 = vmmov %vm15418_vm3 }
 0xa3b   :  { %5741 = vperm.xlu0 %10490, %v10610_v48  }
 0xa3c   :  { %5750 = vperm.xlu1 %10491, %v10613_v56  }
 0xa3d   :  { %9898 = vmatmul.mubr.msk.bf16.gmra.mrb[132].mxu1 %vm15404_vm4, %v15403_v27  ;;  %v14093_v27 = vpop.f32.mrb[255].mxu0  ;;  %vm15419_vm4 = vmmov %vm15418_vm3 }
 0xa3f   :  { %5747 = vperm.xlu0 %10490, %v10612_v54  }
 0xa40   :  { %10492 = vset.pattern.permute.xlu1 %v15414_v30 }
 0xa43   :  { %5753 = vperm.xlu0 %10490, %v10614_v20  }
 0xa47   :  { %10493 = vset.pattern.permute.xlu0 %v15415_v41 }
 0xb08   :  { %v9895_v49 = vpop.f32.mrb[128].mxu1 }
 0xb09   :  { %v4966_v29 = vadd.f32 %v9895_v49, %v13961_v18  ;;  %v4957_v14 = vpop.f32.mrb[129].mxu1 }
 0xb0a   :  { %v4958_v34 = vadd.f32 %v13957_v10, %v4957_v14  ;;  %v9896_v22 = vpop.f32.mrb[130].mxu1 }
 0xb0b   :  { %v4969_v1 = vadd.f32 %v9896_v22, %v13963_v43  ;;  %v4960_v48 = vpop.f32.mrb[131].mxu1 }
 0xb0c   :  { %v4961_v60 = vadd.f32 %v13959_v24, %v4960_v48 }
 0xb0d   :  { %v4989_v54 = vpack.c.bf16 %v4969_v1, %v4966_v29 }
 0xb0e   :  { %v4988_v56 = vpack.c.bf16 %v4961_v60, %v4958_v34 }
 0xb10   :  { %v9899_v53 = vpop.f32.mrb[132].mxu1  ;;  %9903 = vmatprep.mubr.msk.bf16.mxu1 %vm15416_vm13, %v4988_v56 }
 0xb11   :  { %v4982_v20 = vadd.f32 %v9899_v53, %v13969_v12  ;;  %v4973_v30 = vpop.f32.mrb[133].mxu1  ;;  %9904 = vmatmul.mubr.msk.bf16.vlgmr.msra.gmra.mrb[40].mxu1 %vm15417_vm14, %v4989_v54  ;;  %v15420_v12 = vpack.c.bf16 %v13979_v46, %v13975_v32 }
 0xb12   :  { %v4974_v18 = vadd.f32 %v13965_v9, %v4973_v30  ;;  %9932 = vmatpush3.bf16.msra.mxu1 %v14042_v11  ;;  %v9900_v10 = vpop.f32.mrb[134].mxu1  ;;  %v15422_v9 = vpack.c.bf16 %v13977_v16, %v13973_v59 }
 0xb13   :  { %v4985_v43 = vadd.f32 %v9900_v10, %v13971_v8  ;;  %9223 = vmatprep.subr.bf16.mxu1 %v11579_v31  ;;  %v4976_v24 = vpop.f32.mrb[135].mxu1  ;;  %v15424_v31 = vpack.c.bf16 %v13991_v58, %v13987_v40  ;;  %v15427_v8 = vld [vmem:[#allocation12_spill] sm:$0xff] }
 0xb14   :  { %v4977_v41 = vadd.f32 %v13967_v50, %v4976_v24  ;;  %v15426_v50 = vld [vmem:[#allocation17_spill] sm:$0xff]  ;;  %vm5436_vm2 = vcmp.eq.s32.totalorder %v15262_v4, %v15427_v8  ;;  %vm5435_vm0 = vcmp.eq.s32.totalorder %v15409_v44, %v15427_v8 }
 0xb15   :  { %v4991_v49 = vpack.c.bf16 %v4985_v43, %v4982_v20  ;;  %vm5433_vm15 = vcmp.eq.s32.totalorder %v15262_v4, %v15426_v50  ;;  %vm5432_vm11 = vcmp.eq.s32.totalorder %v15409_v44, %v15426_v50 }
 0xb16   :  { %v4990_v29 = vpack.c.bf16 %v4977_v41, %v4974_v18  ;;  %vm8308_vm8 = vmpackc.low %vm5436_vm2, %vm5433_vm15  ;;  %vm5451_vm15 = vcmp.eq.s32.totalorder %v15262_v4, %v14051_v45 }
 0xb17   :  { %vm8310_vm13 = vmpackc.low %vm5435_vm0, %vm5432_vm11 }
 0xb18   :  { %9907 = vmatprep.mubr.msk.bf16.mxu1 %vm15418_vm3, %v4990_v29 }
 0xb19   :  { %9908 = vmatmul.mubr.msk.bf16.gmra.mrb[44].mxu1 %vm15419_vm4, %v4991_v49 }
 0xb1a   :  { %9933 = vmatprep.mubr.msk.bf16.mxu1 %vm15421_vm6, %v15420_v12 }
 0xb21   :  { %9934 = vmatmul.mubr.msk.bf16.vlgmr.msra.gmra.mrb[40].mxu1 %vm15423_vm12, %v15422_v9 }
 0xb22   :  { %9224 = vmatpush3.bf16.msra.mxu1 %v11559_v52  ;;  %9937 = vmatprep.mubr.msk.bf16.mxu1 %vm15425_vm5, %v15424_v31  ;;  %v15428_v52 = vpack.c.bf16 %v13989_v5, %v13983_v6  ;;  %vm5454_vm5 = vcmp.eq.s32.totalorder %v15262_v4, %v14049_v47 }
 0xb23   :  { %9225 = vmatprep.subr.bf16.mxu1 %v11581_v36  ;;  %v15433_v36 = vld [vmem:[#allocation7_spill] sm:$0xff]  ;;  %vm8320_vm2 = vmpackc.low %vm5454_vm5, %vm5451_vm15 }
 0xb26   :  { %9226 = vmatpush3.bf16.msra.mxu1 %v11563_v15  ;;  %v15430_v15 = vld [vmem:[#allocation18_spill] sm:$0xff] }
 0xb27   :  { %9227 = vmatprep.subr.bf16.mxu1 %v11583_v26  ;;  %v5736_v26 = vpop.permute.xlu1 %5735 }
 0xb28   :  { %vm5758_vm11 = vcmp.eq.s32.totalorder %v15409_v44, %v5736_v26  ;;  %vm5759_vm0 = vcmp.eq.s32.totalorder %v15262_v4, %v5736_v26 }
 0xb29   :  { %9938 = vmatmul.mubr.msk.bf16.gmra.mrb[44].mxu1 %vm15429_vm10, %v15428_v52  ;;  %vm5450_vm10 = vcmp.eq.s32.totalorder %v15409_v44, %v14051_v45 }
 0xb2a   :  { %9228 = vmatpush3.bf16.msra.mxu1 %v11567_v21  ;;  %8309 = vmatprep.mubr.msk.bf16.mxu1 %vm8308_vm8, %v15265_v23  ;;  %v10553_v21 = vld [vmem:[%s14756_s4 + $0x70] sm:$0xff]   ;;  %vm5453_vm8 = vcmp.eq.s32.totalorder %v15409_v44, %v14049_v47 }
 0xb2b   :  { %9229 = vmatprep.subr.bf16.mxu1 %v11585_v19  ;;  %v5733_v19 = vpop.permute.xlu0 %5732  ;;  %v5739_v32 = vpop.permute.xlu1 %5738 }
 0xb2c   :  { %vm5763_vm5 = vcmp.eq.s32.totalorder %v15405_v13, %v5739_v32 }
 0xb2d   :  { %v14222_v6 = vsel %vm5763_vm5, 1.0, %v15406_v0 }
 0xb2e   :  { %9230 = vmatpush3.bf16.msra.mxu1 %v11569_v51  ;;  %v15431_v51 = vld [vmem:[#allocation73_spill] sm:$0xff] }
 0xb2f   :  { %9231 = vmatprep.subr.bf16.mxu1 %v11587_v35  ;;  %vm5439_vm1 = vcmp.eq.s32.totalorder %v15262_v4, %v15431_v51  ;;  %vm5438_vm4 = vcmp.eq.s32.totalorder %v15409_v44, %v15431_v51  ;;  %v5742_v16 = vpop.permute.xlu0 %5741  ;;  %v5745_v58 = vpop.permute.xlu1 %5744 }
 0xb30   :  { %vm5764_vm15 = vcmp.eq.s32.totalorder %v15409_v44, %v5742_v16 }
 0xb32   :  { %9232 = vmatpush3.bf16.msra.mxu1 %v11571_v62  ;;  %v15432_v62 = vld [vmem:[#allocation21_spill] sm:$0xff] }
 0xb33   :  { %9233 = vmatprep.subr.bf16.mxu1 %v11589_v33  ;;  %vm5442_vm14 = vcmp.eq.s32.totalorder %v15262_v4, %v15432_v62  ;;  %vm5441_vm6 = vcmp.eq.s32.totalorder %v15409_v44, %v15432_v62  ;;  %v5748_v11 = vpop.permute.xlu0 %5747  ;;  %v14250_v63 = vpop.permute.xlu1 %5750 }
 0xb34   :  { %vm8312_vm3 = vmpackc.low %vm5442_vm14, %vm5439_vm1  ;;  %vm5755_vm1 = vcmp.eq.s32.totalorder %v15409_v44, %v5733_v19  ;;  %vm5757_vm14 = vcmp.eq.s32.totalorder %v15405_v13, %v5733_v19 }
 0xb35   :  { %vm8314_vm12 = vmpackc.low %vm5441_vm6, %vm5438_vm4  ;;  %v14204_v33 = vsel %vm5757_vm14, 1.0, %v15406_v0  ;;  %vm5761_vm6 = vcmp.eq.s32.totalorder %v15409_v44, %v5739_v32  ;;  %vm5772_vm14 = vcmp.eq.s32.totalorder %v15405_v13, %v5748_v11 }
 0xb36   :  { %9234 = vmatpush3.bf16.msra.mxu1 %v15319_v17  ;;  %v14244_v45 = vsel %vm5772_vm14, 1.0, %v15406_v0 }
 0xb37   :  { %9235 = vmatprep.subr.bf16.mxu1 %v15320_v3  ;;  %v14210_v3 = vpop.f32.mrb[0].mxu0  ;;  %v14252_v53 = vpop.permute.xlu0 %5753 }
 0xb38   :  { %vm5776_vm5 = vcmp.eq.s32.totalorder %v15409_v44, %v14252_v53 }
 0xb3a   :  { %9236 = vmatpush3.bf16.msra.mxu1 %v15380_v28  ;;  %v14212_v28 = vpop.f32.mrb[1].mxu0 }
 0xb3b   :  { %9237 = vmatprep.subr.bf16.mxu1 %v15430_v15  ;;  %v14214_v59 = vpop.f32.mrb[2].mxu0 }
 0xb3c   :  { %v14219_v46 = vpop.f32.mrb[3].mxu0 }
 0xb3e   :  { %9238 = vmatpush3.bf16.msra.mxu1 %v15433_v36 }
 0xb3f   :  { %9961 = vmatprep.subr.bf16.mxu1 %v10553_v21 }
 0xb41   :  { %8311 = vmatmul.mubr.msk.bf16.vlgmr.msra.gmra.mrb[136].mxu1 %vm8310_vm13, %v15265_v23  ;;  %vm5756_vm13 = vcmp.eq.s32.totalorder %v15262_v4, %v5733_v19 }
 0xb42   :  { %8313 = vmatprep.mubr.msk.bf16.mxu1 %vm8312_vm3, %v15265_v23  ;;  %9962 = vmatpush3.bf16.msra.mxu1 %v10553_v21  ;;  %vm8335_vm3 = vmpackc.low %vm5758_vm11, %vm5755_vm1  ;;  %vm5767_vm11 = vcmp.eq.s32.totalorder %v15409_v44, %v5745_v58  ;;  %vm5770_vm1 = vcmp.eq.s32.totalorder %v15409_v44, %v5748_v11 }
 0xb43   :  { %9971 = vmatprep.subr.bf16.mxu1 %v11595_v38  ;;  %vm8333_vm4 = vmpackc.low %vm5759_vm0, %vm5756_vm13  ;;  %vm5768_vm0 = vcmp.eq.s32.totalorder %v15262_v4, %v5745_v58  ;;  %vm5771_vm13 = vcmp.eq.s32.totalorder %v15262_v4, %v5748_v11 }
 0xb44   :  { %8334 = vmatprep.mubr.msk.bf16.mxu0 %vm8333_vm4, %v15265_v23  ;;  %vm8341_vm4 = vmpackc.low %vm5771_vm13, %vm5768_vm0  ;;  %vm5778_vm13 = vcmp.eq.s32.totalorder %v15405_v13, %v14252_v53 }
 0xb45   :  { %8336 = vmatmul.mubr.msk.bf16.vlgmr.msra.gmra.mrb[4].mxu0 %vm8335_vm3, %v15265_v23  ;;  %vm8343_vm3 = vmpackc.low %vm5770_vm1, %vm5767_vm11  ;;  %vm5775_vm1 = vcmp.eq.s32.totalorder %v15405_v13, %v14250_v63 }
 0xb49   :  { %8315 = vmatmul.mubr.msk.bf16.gmra.mrb[140].mxu1 %vm8314_vm12, %v15265_v23  ;;  %vm5762_vm12 = vcmp.eq.s32.totalorder %v15262_v4, %v5739_v32 }
 0xb4a   :  { %8317 = vmatprep.mubr.msk.bf16.mxu1 %vm14065_vm7, %v15265_v23  ;;  %vm8322_vm7 = vmpackc.low %vm5453_vm8, %vm5450_vm10  ;;  %vm5766_vm8 = vcmp.eq.s32.totalorder %v15405_v13, %v5742_v16 }
 0xb4b   :  { %v14228_v40 = vsel %vm5766_vm8, 1.0, %v15406_v0  ;;  %vm8339_vm10 = vmpackc.low %vm5764_vm15, %vm5761_vm6  ;;  %vm5773_vm6 = vcmp.eq.s32.totalorder %v15409_v44, %v14250_v63  ;;  %vm5777_vm15 = vcmp.eq.s32.totalorder %v15262_v4, %v14252_v53 }
 0xb4c   :  { %v5808_v5 = vpack.c.bf16 %v14228_v40, %v14222_v6 }
 0xb51   :  { %8319 = vmatmul.mubr.msk.bf16.gmra.mrb[144].mxu1 %vm14069_vm9, %v15265_v23  ;;  %vm5760_vm9 = vcmp.eq.s32.totalorder %v15405_v13, %v5736_v26 }
 0xb52   :  { %8321 = vmatprep.mubr.msk.bf16.mxu1 %vm8320_vm2, %v15265_v23  ;;  %v14199_v35 = vsel %vm5760_vm9, 1.0, %v15406_v0  ;;  %vm5765_vm2 = vcmp.eq.s32.totalorder %v15262_v4, %v5742_v16  ;;  %vm5769_vm9 = vcmp.eq.s32.totalorder %v15405_v13, %v5745_v58 }
 0xb53   :  { %v5805_v17 = vpack.c.bf16 %v14199_v35, %v14204_v33  ;;  %v14239_v47 = vsel %vm5769_vm9, 1.0, %v15406_v0  ;;  %vm15438_vm9 = vcmask 785408  }
 0xb54   :  { %v5811_v39 = vpack.c.bf16 %v14244_v45, %v14239_v47  ;;  %vm15439_vm14 = vmmov %vm15438_vm9 }
 0xb59   :  { %8323 = vmatmul.mubr.msk.bf16.gmra.mrb[148].mxu1 %vm8322_vm7, %v15265_v23  ;;  %vm8337_vm7 = vmpackc.low %vm5765_vm2, %vm5762_vm12  ;;  %vm5774_vm12 = vcmp.eq.s32.totalorder %v15262_v4, %v14250_v63 }
 0xb5a   :  { %8338 = vmatprep.mubr.msk.bf16.mxu0 %vm8337_vm7, %v15265_v23  ;;  %vm8347_vm2 = vmpackc.low %vm5776_vm5, %vm5773_vm6 }
 0xb5b   :  { %8340 = vmatmul.mubr.msk.bf16.gmra.mrb[8].mxu0 %vm8339_vm10, %v15265_v23  ;;  %vm8345_vm8 = vmpackc.low %vm5777_vm15, %vm5774_vm12  ;;  %vm15434_vm10 = vcmask 130048  }
 0xb5c   :  { %8342 = vmatprep.mubr.msk.bf16.mxu0 %vm8341_vm4, %v15265_v23  ;;  %vm15435_vm7 = vmmov %vm15434_vm10 }
 0xb5d   :  { %vm15436_vm11 = vmmov %vm15435_vm7 }
 0xb5e   :  { %vm15437_vm0 = vmmov %vm15435_vm7 }
 0xb5f   :  { %vm15456_vm6 = vmmov %vm15437_vm0 }
 0xb60   :  { %vm15457_vm12 = vmmov %vm15437_vm0 }
 0xb61   :  { %vm15458_vm5 = vmmov %vm15437_vm0 }
 0xb62   :  { %vm15459_vm15 = vmmov %vm15437_vm0 }
 0xb63   :  { %8344 = vmatmul.mubr.msk.bf16.gmra.mrb[12].mxu0 %vm8343_vm3, %v15265_v23  ;;  %vm15440_vm3 = vmmov %vm15438_vm9 }
 0xb64   :  { %8346 = vmatprep.mubr.msk.bf16.mxu0 %vm8345_vm8, %v15265_v23  ;;  %vm15441_vm4 = vmmov %vm15440_vm3 }
 0xb6b   :  { %8348 = vmatmul.mubr.msk.bf16.gmra.mrb[16].mxu0 %vm8347_vm2, %v15265_v23  ;;  %vm10633_vm2 = vmmov 0  }
 0xb6c   :  { %10009 = vmatprep.mubr.msk.bf16.mxu0 %vm10633_vm2, %v15406_v0 }
 0xc14   :  { %v9239_v14 = vpop.f32.mrb[136].mxu1 }
 0xc15   :  { %v9240_v34 = vpop.f32.mrb[137].mxu1 }
 0xc16   :  { %v9241_v22 = vadd.f32 %v9240_v34, %v9239_v14  ;;  %v9242_v1 = vpop.f32.mrb[138].mxu1  ;;  %v10554_v34 = vld [vmem:[%s14756_s4 + $0x78] sm:$0xff]  }
 0xc17   :  { %v9243_v48 = vpop.f32.mrb[139].mxu1 }
 0xc18   :  { %v5604_v60 = vadd.f32 %v9241_v22, %v14089_v7  ;;  %v9244_v54 = vadd.f32 %v9243_v48, %v9242_v1  ;;  %v6154_v22 = vld [vmem:[%s14757_s6] sm:$0xff]  ;;  %v15442_v1 = vmov 2   ;;  %v15443_v48 = vmov 4  }
 0xc19   :  { %6156 = vperm.xlu1 %10492, %v6154_v22   ;;  %6211 = vperm.xlu0 %10493, %v6154_v22  }
 0xc1a   :  { %v5607_v56 = vadd.f32 %v9244_v54, %v14093_v27  ;;  %v15445_v54 = vmov 7  }
 0xc1c   :  { %v5634_v20 = vpack.c.bf16 %v5607_v56, %v5604_v60  ;;  %v9245_v30 = vpop.f32.mrb[140].mxu1  ;;  %v15444_v60 = vmov 3   ;;  %v15446_v56 = vmov 5  }
 0xc1d   :  { %v9246_v18 = vpop.f32.mrb[141].mxu1  ;;  %10494 = vset.pattern.permute.xlu1 %v15442_v1  ;;  %10496 = vset.pattern.permute.xlu0 %v15443_v48 }
 0xc1e   :  { %v9247_v4 = vadd.f32 %v9246_v18, %v9245_v30  ;;  %v9248_v10 = vpop.f32.mrb[142].mxu1  ;;  %9963 = vmatprep.mubr.msk.bf16.mxu1 %vm15434_vm10, %v5634_v20  ;;  %6376 = vperm.xlu1 %10494, %v6154_v22   ;;  %v15447_v20 = vmov 10   ;;  %v15448_v30 = vmov 6   ;;  %v15449_v18 = vmov 13  }
 0xc1f   :  { %v9249_v43 = vpop.f32.mrb[143].mxu1  ;;  %6596 = vperm.xlu0 %10496, %v6154_v22  }
 0xc20   :  { %v5612_v23 = vadd.f32 %v14081_v61, %v9247_v4  ;;  %v9250_v24 = vadd.f32 %v9249_v43, %v9248_v10  ;;  %v15450_v4 = vmov 8   ;;  %v15451_v10 = vmov 15  }
 0xc21   :  { %v15452_v43 = vmov 9  }
 0xc22   :  { %v5615_v41 = vadd.f32 %v14091_v25, %v9250_v24  ;;  %10495 = vset.pattern.permute.xlu1 %v15444_v60  ;;  %v15454_v24 = vmov 12  }
 0xc23   :  { %10499 = vset.pattern.permute.xlu0 %v15445_v54  ;;  %6486 = vperm.xlu1 %10495, %v6154_v22  }
 0xc24   :  { %v5635_v49 = vpack.c.bf16 %v5615_v41, %v5612_v23  ;;  %v9251_v29 = vpop.f32.mrb[144].mxu1  ;;  %6926 = vperm.xlu0 %10499, %v6154_v22   ;;  %v15453_v23 = vmov 11   ;;  %v15455_v41 = vmov 14  }
 0xc25   :  { %v9252_v12 = vpop.f32.mrb[145].mxu1 }
 0xc26   :  { %v9253_v7 = vadd.f32 %v9252_v12, %v9251_v29  ;;  %v9254_v9 = vpop.f32.mrb[146].mxu1  ;;  %9964 = vmatmul.mubr.msk.bf16.vlgmr.msra.gmra.mrb[40].mxu1 %vm15435_vm7, %v5635_v49 }
 0xc27   :  { %9972 = vmatpush3.bf16.msra.mxu1 %v11595_v38  ;;  %v9255_v27 = vpop.f32.mrb[147].mxu1  ;;  %10497 = vset.pattern.permute.xlu1 %v15446_v56 }
 0xc28   :  { %v5620_v31 = vadd.f32 %v9253_v7, %v14212_v28  ;;  %v9256_v50 = vadd.f32 %v9255_v27, %v9254_v9  ;;  %9973 = vmatprep.subr.bf16.mxu1 %v11597_v2  ;;  %10502 = vset.pattern.permute.xlu0 %v15447_v20 }
 0xc29   :  { %6706 = vperm.xlu1 %10497, %v6154_v22   ;;  %7256 = vperm.xlu0 %10502, %v6154_v22  }
 0xc2a   :  { %v5623_v61 = vadd.f32 %v9256_v50, %v14219_v46 }
 0xc2b   :  { %9974 = vmatpush3.bf16.msra.mxu1 %v11597_v2  ;;  %v9294_v2 = vpop.f32.mrb[4].mxu0 }
 0xc2c   :  { %v5636_v25 = vpack.c.bf16 %v5623_v61, %v5620_v31  ;;  %9975 = vmatprep.subr.bf16.mxu1 %v11600_v57  ;;  %v9257_v8 = vpop.f32.mrb[148].mxu1  ;;  %v9295_v26 = vpop.f32.mrb[5].mxu0 }
 0xc2d   :  { %v9258_v52 = vpop.f32.mrb[149].mxu1  ;;  %v14283_v28 = vadd.f32 %v9295_v26, %v9294_v2  ;;  %v9297_v32 = vpop.f32.mrb[6].mxu0  ;;  %10498 = vset.pattern.permute.xlu1 %v15448_v30  ;;  %10505 = vset.pattern.permute.xlu0 %v15449_v18 }
 0xc2e   :  { %v9259_v15 = vadd.f32 %v9258_v52, %v9257_v8  ;;  %v9260_v21 = vpop.f32.mrb[150].mxu1  ;;  %9967 = vmatprep.mubr.msk.bf16.mxu1 %vm15436_vm11, %v5636_v25  ;;  %v9298_v16 = vpop.f32.mrb[7].mxu0  ;;  %6816 = vperm.xlu1 %10498, %v6154_v22  }
 0xc2f   :  { %9976 = vmatpush3.bf16.msra.mxu1 %v11600_v57  ;;  %v9261_v38 = vpop.f32.mrb[151].mxu1  ;;  %v14286_v57 = vadd.f32 %v9298_v16, %v9297_v32  ;;  %v9300_v35 = vpop.f32.mrb[8].mxu0  ;;  %7586 = vperm.xlu0 %10505, %v6154_v22  }
 0xc30   :  { %v5628_v51 = vadd.f32 %v14210_v3, %v9259_v15  ;;  %v9262_v62 = vadd.f32 %v9261_v38, %v9260_v21  ;;  %9977 = vmatprep.subr.bf16.mxu1 %v11602_v37  ;;  %v9301_v33 = vpop.f32.mrb[9].mxu0 }
 0xc31   :  { %v9302_v13 = vadd.f32 %v9301_v33, %v9300_v35 }
 0xc32   :  { %v5631_v36 = vadd.f32 %v14214_v59, %v9262_v62  ;;  %10500 = vset.pattern.permute.xlu1 %v15450_v4 }
 0xc33   :  { %9978 = vmatpush3.bf16.msra.mxu1 %v11602_v37  ;;  %v5799_v37 = vsel %vm5775_vm1, 1.0, %v15406_v0  ;;  %10508 = vset.pattern.permute.xlu0 %v15451_v10 }
 0xc34   :  { %v5637_v19 = vpack.c.bf16 %v5631_v36, %v5628_v51  ;;  %9979 = vmatprep.subr.bf16.mxu1 %v15057_v42  ;;  %7036 = vperm.xlu1 %10500, %v6154_v22  }
 0xc36   :  { %9968 = vmatmul.mubr.msk.bf16.gmra.mrb[44].mxu1 %vm15437_vm0, %v5637_v19  ;;  %v10555_v19 = vld [vmem:[%s14758_s7] sm:$0xff]  }
 0xc37   :  { %9980 = vmatpush3.bf16.msra.mxu1 %v15057_v42  ;;  %9983 = vmatprep.mubr.msk.bf16.mxu1 %vm15438_vm9, %v5805_v17  ;;  %v9303_v17 = vpop.f32.mrb[10].mxu0 }
 0xc38   :  { %9981 = vmatprep.subr.bf16.mxu1 %v11604_v55  ;;  %v9304_v3 = vpop.f32.mrb[11].mxu0  ;;  %10501 = vset.pattern.permute.xlu1 %v15452_v43 }
 0xc39   :  { %v9305_v59 = vadd.f32 %v9304_v3, %v9303_v17  ;;  %v9306_v46 = vpop.f32.mrb[12].mxu0  ;;  %7146 = vperm.xlu1 %10501, %v6154_v22  }
 0xc3a   :  { %v9307_v6 = vpop.f32.mrb[13].mxu0 }
 0xc3b   :  { %9982 = vmatpush3.bf16.msra.mxu1 %v11604_v55  ;;  %v5802_v55 = vsel %vm5778_vm13, 1.0, %v15406_v0  ;;  %v9308_v40 = vadd.f32 %v9307_v6, %v9306_v46 }
 0xc3c   :  { %v5814_v42 = vpack.c.bf16 %v5802_v55, %v5799_v37  ;;  %9991 = vmatprep.subr.bf16.mxu1 %v10554_v34 }
 0xc3d   :  { %10503 = vset.pattern.permute.xlu1 %v15453_v23 }
 0xc3e   :  { %9984 = vmatmul.mubr.msk.bf16.vlgmr.msra.gmra.mrb[152].mxu1 %vm15439_vm14, %v5808_v5  ;;  %v9309_v5 = vpop.f32.mrb[14].mxu0  ;;  %7366 = vperm.xlu1 %10503, %v6154_v22  }
 0xc3f   :  { %9987 = vmatprep.mubr.msk.bf16.mxu1 %vm15440_vm3, %v5811_v39  ;;  %v9310_v58 = vpop.f32.mrb[15].mxu0  ;;  %9992 = vmatpush3.bf16.msra.mxu1 %v10554_v34  ;;  %vm6161_vm3 = vcmask 523264  }
 0xc40   :  { %v14310_v11 = vadd.f32 %v9310_v58, %v9309_v5  ;;  %v9312_v47 = vpop.f32.mrb[16].mxu0  ;;  %10033 = vmatprep.subr.bf16.mxu1 %v15406_v0 }
 0xc41   :  { %v9313_v45 = vpop.f32.mrb[17].mxu0 }
 0xc42   :  { %v9314_v39 = vadd.f32 %v9313_v45, %v9312_v47  ;;  %v9315_v63 = vpop.f32.mrb[18].mxu0  ;;  %10504 = vset.pattern.permute.xlu1 %v15454_v24 }
 0xc43   :  { %v9316_v53 = vpop.f32.mrb[19].mxu0  ;;  %7476 = vperm.xlu1 %10504, %v6154_v22  }
 0xc44   :  { %v9317_v14 = vadd.f32 %v9316_v53, %v9315_v63 }
 0xc46   :  { %9988 = vmatmul.mubr.msk.bf16.gmra.mrb[156].mxu1 %vm15441_vm4, %v5814_v42 }
 0xc47   :  { %10506 = vset.pattern.permute.xlu1 %v15455_v41 }
 0xc48   :  { %7696 = vperm.xlu1 %10506, %v6154_v22  }
 0xc4c   :  { %10507 = vset.pattern.permute.xlu1 %v15451_v10 }
 0xc4d   :  { %7806 = vperm.xlu1 %10507, %v6154_v22  }
 0xd11   :  { %v9985_v49 = vpop.f32.mrb[152].mxu1 }
 0xd12   :  { %v5935_v29 = vadd.f32 %v9985_v49, %v9302_v13  ;;  %v5926_v12 = vpop.f32.mrb[153].mxu1 }
 0xd13   :  { %v5927_v7 = vadd.f32 %v14283_v28, %v5926_v12  ;;  %v9986_v9 = vpop.f32.mrb[154].mxu1 }
 0xd14   :  { %v5938_v27 = vadd.f32 %v9986_v9, %v9305_v59  ;;  %v5929_v31 = vpop.f32.mrb[155].mxu1 }
 0xd15   :  { %v5930_v50 = vadd.f32 %v14286_v57, %v5929_v31 }
 0xd16   :  { %v5958_v61 = vpack.c.bf16 %v5938_v27, %v5935_v29 }
 0xd17   :  { %v5957_v25 = vpack.c.bf16 %v5930_v50, %v5927_v7  ;;  %v6054_v50 = vld [vmem:[%s14759_s5] sm:$0x3] }
 0xd19   :  { %v9989_v8 = vpop.f32.mrb[156].mxu1  ;;  %9993 = vmatprep.mubr.msk.bf16.mxu1 %vm15456_vm6, %v5957_v25  ;;  %vm6276_vm6 = vcmask 261120  }
 0xd1a   :  { %v5951_v52 = vadd.f32 %v9989_v8, %v9314_v39  ;;  %v5942_v15 = vpop.f32.mrb[157].mxu1  ;;  %9994 = vmatmul.mubr.msk.bf16.vlgmr.msra.gmra.mrb[40].mxu1 %vm15457_vm12, %v5958_v61 }
 0xd1b   :  { %v5943_v21 = vadd.f32 %v9308_v40, %v5942_v15  ;;  %v9990_v38 = vpop.f32.mrb[158].mxu1  ;;  %10034 = vmatpush3.bf16.msra.mxu1 %v10555_v19 }
 0xd1c   :  { %v5954_v51 = vadd.f32 %v9990_v38, %v9317_v14  ;;  %v5945_v62 = vpop.f32.mrb[159].mxu1  ;;  %10035 = vmatprep.subr.bf16.mxu1 %v15406_v0 }
 0xd1d   :  { %v5946_v36 = vadd.f32 %v14310_v11, %v5945_v62 }
 0xd1e   :  { %v5960_v2 = vpack.c.bf16 %v5954_v51, %v5951_v52  ;;  %v15460_v52 = vld [vmem:[#allocation23_spill] sm:$0xff] }
 0xd1f   :  { %v5959_v26 = vpack.c.bf16 %v5946_v36, %v5943_v21  ;;  %v15461_v15 = vsub.s32 0, %v15460_v52 }
 0xd21   :  { %9997 = vmatprep.mubr.msk.bf16.mxu1 %vm15458_vm5, %v5959_v26 }
 0xd22   :  { %9998 = vmatmul.mubr.msk.bf16.gmra.mrb[44].mxu1 %vm15459_vm15, %v5960_v2 }
 0xd23   :  { %10037 = vmatprep.mubr.msk.bf16.mxu1 %vm10633_vm2, %v15406_v0 }
 0xded   :  { %v9995_v28 = vpop.f32.mrb[40].mxu1 }
 0xdee   :  { %v6015_v32 = vpop.f32.mrb[41].mxu1  ;;  %v6070_v35 = vmul.f32 %v9995_v28, %v9995_v28 }
 0xdef   :  { %v9996_v16 = vpop.f32.mrb[42].mxu1  ;;  %v6068_v37 = vmul.f32 %v6015_v32, %v6015_v32 }
 0xdf0   :  { %v6018_v57 = vpop.f32.mrb[43].mxu1  ;;  %v6071_v17 = vmul.f32 %v9996_v16, %v9996_v16 }
 0xdf1   :  { %v6055_v55 = vadd.f32 %v6018_v57, %v6015_v32  ;;  %v6069_v42 = vmul.f32 %v6018_v57, %v6018_v57 }
 0xdf3   :  { %v6056_v33 = vadd.f32 %v9995_v28, %v6055_v55  ;;  %v6076_v13 = vadd.f32 %v6069_v42, %v6068_v37 }
 0xdf5   :  { %v6077_v3 = vadd.f32 %v6076_v13, %v6070_v35  ;;  %v9999_v59 = vpop.f32.mrb[44].mxu1  ;;  %v6057_v46 = vadd.f32 %v9996_v16, %v6056_v33  ;;  %v15462_v35 = vsub.s32 1, %v15460_v52 }
 0xdf6   :  { %v6031_v6 = vpop.f32.mrb[45].mxu1  ;;  %v6074_v53 = vmul.f32 %v9999_v59, %v9999_v59 }
 0xdf7   :  { %v6058_v40 = vadd.f32 %v6057_v46, %v6031_v6  ;;  %v6072_v5 = vmul.f32 %v6031_v6, %v6031_v6  ;;  %v6078_v58 = vadd.f32 %v6077_v3, %v6071_v17  ;;  %v10000_v11 = vpop.f32.mrb[46].mxu1 }
 0xdf8   :  { %v6034_v47 = vpop.f32.mrb[47].mxu1  ;;  %v6075_v22 = vmul.f32 %v10000_v11, %v10000_v11 }
 0xdf9   :  { %v6079_v45 = vadd.f32 %v6078_v58, %v6072_v5  ;;  %v6059_v39 = vadd.f32 %v6058_v40, %v6034_v47  ;;  %v6073_v63 = vmul.f32 %v6034_v47, %v6034_v47 }
 0xdfb   :  { %v6060_v14 = vadd.f32 %v9999_v59, %v6059_v39  ;;  %v6080_v34 = vadd.f32 %v6079_v45, %v6073_v63 }
 0xdfd   :  { %v6061_v1 = vadd.f32 %v10000_v11, %v6060_v14  ;;  %v6081_v48 = vadd.f32 %v6080_v34, %v6074_v53 }
 0xdff   :  { %v6062_v60 = vrot.slane %v6061_v1, 4  ;;  %v6082_v54 = vadd.f32 %v6081_v48, %v6075_v22 }
 0xe01   :  { %v6063_v56 = vadd.f32 %v6062_v60, %v6061_v1  ;;  %v6083_v20 = vrot.slane %v6082_v54, 4 }
 0xe03   :  { %v6064_v30 = vrot.slane %v6063_v56, 2  ;;  %v6084_v18 = vadd.f32 %v6083_v20, %v6082_v54 }
 0xe05   :  { %v6065_v4 = vadd.f32 %v6064_v30, %v6063_v56  ;;  %v6085_v10 = vrot.slane %v6084_v18, 2  ;;  %v6157_v30 = vpop.permute.xlu1 %6156 }
 0xe06   :  { %vm6158_vm14 = vcmp.eq.s32.totalorder %v15409_v44, %v6157_v30 }
 0xe07   :  { %v6066_v43 = vrot.slane %v6065_v4, 1  ;;  %v6086_v23 = vadd.f32 %v6085_v10, %v6084_v18  ;;  %v6159_v18 = vsel %vm6158_vm14, 1.0, %v15406_v0  ;;  %v6212_v10 = vpop.permute.xlu0 %6211 }
 0xe08   :  { %vm6213_vm4 = vcmp.eq.s32.totalorder %v15409_v44, %v6212_v10 }
 0xe09   :  { %v6067_v24 = vadd.f32 %v6066_v43, %v6065_v4  ;;  %v6087_v41 = vrot.slane %v6086_v23, 1  ;;  %v6160_v4 = vpack.c.bf16 %v6159_v18, %v6159_v18  ;;  %v6214_v43 = vsel %vm6213_vm4, 1.0, %v15406_v0  ;;  %v6377_v52 = vpop.permute.xlu1 %6376 }
 0xe0a   :  { %vm6378_vm12 = vcmp.eq.s32.totalorder %v15409_v44, %v6377_v52 }
 0xe0b   :  { %v6088_v49 = vadd.f32 %v6087_v41, %v6086_v23  ;;  %v6089_v29 = vmul.f32 0.02, %v6067_v24  ;;  %v6215_v23 = vpack.c.bf16 %v6214_v43, %v6214_v43  ;;  %v10556_v24 = vld [vmem:[%s14758_s7 + $0x10] sm:$0xff]   ;;  %v10557_v41 = vld [vmem:[%s14758_s7 + $0x8] sm:$0xff]  }
 0xe0c   :  { %10036 = vmatpush3.bf16.msra.mxu1 %v10557_v41 }
 0xe0d   :  { %v6090_v12 = vmul.f32 0.02, %v6088_v49  ;;  %v6091_v7 = vmul.f32 %v6089_v29, %v6089_v29  ;;  %10053 = vmatprep.subr.bf16.mxu1 %v15406_v0  ;;  %v10558_v49 = vld [vmem:[%s14758_s7 + $0x18] sm:$0xff]  }
 0xe0f   :  { %v6092_v9 = vsub.f32 %v6090_v12, %v6091_v7 }
 0xe11   :  { %v6093_v27 = vmax.f32 %v6092_v9, 0.0 }
 0xe13   :  { %v6094_v31 = vadd.f32 1e-05, %v6093_v27 }
 0xe15   :  { %10589 = vrsqrt.f32 %v6094_v31 }
 0xe1f   :  { %v10590_v61 = vpop.eup %10589 }
 0xe20   :  { %v6096_v25 = vmul.f32 %v10590_v61, %v6054_v50 }
 0xe22   :  { %v6097_v8 = vmul.f32 %v6096_v25, %v6089_v29  ;;  %v6105_v21 = vrot.slane %v6096_v25, %v15461_v15  ;;  %v6379_v15 = vsel %vm6378_vm12, 1.0, %v15406_v0 }
 0xe24   :  { %v6099_v38 = vrot.slane %v6097_v8, 7  ;;  %v6106_v51 = vmul.f32 %v6105_v21, %v6015_v32  ;;  %v6107_v62 = vmul.f32 %v6105_v21, %v6018_v57  ;;  %v6108_v36 = vmul.f32 %v9995_v28, %v6105_v21 }
 0xe25   :  { %v6109_v2 = vmul.f32 %v9996_v16, %v6105_v21  ;;  %v6110_v26 = vmul.f32 %v6105_v21, %v6031_v6  ;;  %v6111_v19 = vmul.f32 %v6105_v21, %v6034_v47  ;;  %v6112_v37 = vmul.f32 %v9999_v59, %v6105_v21 }
 0xe26   :  { %v6101_v55 = vsub.f32 %v6054_v50, %v6099_v38  ;;  %v6113_v42 = vmul.f32 %v10000_v11, %v6105_v21  ;;  %v6380_v21 = vpack.c.bf16 %v6379_v15, %v6379_v15  ;;  %v10559_v38 = vld [vmem:[%s14758_s7 + $0x20] sm:$0xff]  }
 0xe28   :  { %v6117_v33 = vrot.slane %v6101_v55, %v15462_v35 }
 0xe2a   :  { %v6118_v13 = vadd.f32 %v6117_v33, %v6106_v51  ;;  %v6119_v17 = vadd.f32 %v6117_v33, %v6107_v62  ;;  %v6120_v3 = vadd.f32 %v6117_v33, %v6108_v36  ;;  %v6121_v46 = vadd.f32 %v6117_v33, %v6109_v2  ;;  %v10560_v51 = vld [vmem:[%s14758_s7 + $0x28] sm:$0xff]  }
 0xe2b   :  { %v6122_v40 = vadd.f32 %v6117_v33, %v6110_v26  ;;  %v6123_v5 = vadd.f32 %v6117_v33, %v6111_v19  ;;  %v6124_v58 = vadd.f32 %v6117_v33, %v6112_v37  ;;  %v6125_v45 = vadd.f32 %v6117_v33, %v6113_v42 }
 0xe2c   :  { %vm6126_vm8 = vcmp.gt.f32.partialorder %v6118_v13, 0.0  ;;  %vm6127_vm10 = vcmp.gt.f32.partialorder %v6119_v17, 0.0  ;;  %vm6128_vm7 = vcmp.gt.f32.partialorder %v6120_v3, 0.0  ;;  %vm6129_vm11 = vcmp.gt.f32.partialorder %v6121_v46, 0.0 }
 0xe2d   :  { %vm6130_vm0 = vcmp.gt.f32.partialorder %v6122_v40, 0.0  ;;  %vm6131_vm9 = vcmp.gt.f32.partialorder %v6123_v5, 0.0  ;;  %vm6132_vm1 = vcmp.gt.f32.partialorder %v6124_v58, 0.0  ;;  %vm6133_vm13 = vcmp.gt.f32.partialorder %v6125_v45, 0.0 }
 0xe2e   :  { %v6134_v28 = vmul.f32 0.2, %v6118_v13  ;;  %v6135_v32 = vmul.f32 0.2, %v6119_v17  ;;  %v6136_v16 = vmul.f32 0.2, %v6120_v3 }
 0xe2f   :  { %v6137_v57 = vmul.f32 0.2, %v6121_v46  ;;  %v6138_v59 = vmul.f32 0.2, %v6122_v40  ;;  %v6139_v6 = vmul.f32 0.2, %v6123_v5 }
 0xe30   :  { %v6140_v11 = vmul.f32 0.2, %v6124_v58  ;;  %v6141_v47 = vmul.f32 0.2, %v6125_v45  ;;  %v6142_v39 = vsel %vm6126_vm8, %v6118_v13, %v6134_v28  ;;  %v6143_v63 = vsel %vm6127_vm10, %v6119_v17, %v6135_v32  ;;  %v10562_v28 = vld [vmem:[%s14758_s7 + $0x38] sm:$0xff]  }
 0xe31   :  { %v6144_v53 = vsel %vm6128_vm7, %v6120_v3, %v6136_v16  ;;  %v6145_v14 = vsel %vm6129_vm11, %v6121_v46, %v6137_v57  ;;  %v6146_v34 = vsel %vm6130_vm0, %v6122_v40, %v6138_v59  ;;  %v6147_v22 = vsel %vm6131_vm9, %v6123_v5, %v6139_v6  ;;  %v6487_v40 = vpop.permute.xlu1 %6486 }
 0xe32   :  { %v6148_v1 = vsel %vm6132_vm1, %v6124_v58, %v6140_v11  ;;  %v6149_v48 = vsel %vm6133_vm13, %v6125_v45, %v6141_v47  ;;  %v14364_v60 = vpack.c.bf16 %v6143_v63, %v6142_v39  ;;  %v14366_v54 = vpack.c.bf16 %v6145_v14, %v6144_v53  ;;  %v10561_v45 = vld [vmem:[%s14758_s7 + $0x30] sm:$0xff]   ;;  %v6597_v14 = vpop.permute.xlu0 %6596 }
 0xe33   :  { %v14368_v56 = vpack.c.bf16 %v6147_v22, %v6146_v34  ;;  %v14370_v20 = vpack.c.bf16 %v6149_v48, %v6148_v1  ;;  %vm6488_vm5 = vcmp.eq.s32.totalorder %v15409_v44, %v6487_v40  ;;  %vm6598_vm15 = vcmp.eq.s32.totalorder %v15409_v44, %v6597_v14  ;;  %v10563_v1 = vld [vmem:[%s14758_s7 + $0x40] sm:$0xff]   ;;  %v10564_v48 = vld [vmem:[%s14758_s7 + $0x48] sm:$0xff]  }
 0xe34   :  { %10002 = vmatpush3.bf16.msra.mxu0 %v14364_v60  ;;  %v6489_v5 = vsel %vm6488_vm5, 1.0, %v15406_v0  ;;  %v6599_v34 = vsel %vm6598_vm15, 1.0, %v15406_v0 }
 0xe35   :  { %10003 = vmatprep.subr.bf16.mxu0 %v15406_v0  ;;  %v6490_v58 = vpack.c.bf16 %v6489_v5, %v6489_v5  ;;  %v6600_v22 = vpack.c.bf16 %v6599_v34, %v6599_v34 }
 0xe38   :  { %10004 = vmatpush3.bf16.msra.mxu0 %v14366_v54 }
 0xe39   :  { %10005 = vmatprep.subr.bf16.mxu0 %v15406_v0 }
 0xe3c   :  { %10006 = vmatpush3.bf16.msra.mxu0 %v14368_v56 }
 0xe3d   :  { %10007 = vmatprep.subr.bf16.mxu0 %v15406_v0 }
 0xe40   :  { %10008 = vmatpush3.bf16.msra.mxu0 %v14370_v20 }
 0xe41   :  { %10013 = vmatprep.subr.bf16.mxu0 %v15406_v0 }
 0xe43   :  { %10010 = vmatmul.mubr.msk.bf16.vlgmr.msra.gmra.mrb[20].mxu0 %vm6161_vm3, %v6160_v4 }
 0xe44   :  { %10014 = vmatpush3.bf16.msra.mxu0 %v14364_v60  ;;  %10021 = vmatprep.mubr.msk.bf16.mxu0 %vm10633_vm2, %v15406_v0 }
 0xe45   :  { %10015 = vmatprep.subr.bf16.mxu0 %v15406_v0 }
 0xe48   :  { %10016 = vmatpush3.bf16.msra.mxu0 %v14366_v54 }
 0xe49   :  { %10017 = vmatprep.subr.bf16.mxu0 %v15406_v0 }
 0xe4c   :  { %10018 = vmatpush3.bf16.msra.mxu0 %v14368_v56 }
 0xe4d   :  { %10019 = vmatprep.subr.bf16.mxu0 %v15406_v0 }
 0xe50   :  { %10020 = vmatpush3.bf16.msra.mxu0 %v14370_v20 }
 0xe51   :  { %10025 = vmatprep.subr.bf16.mxu0 %v15406_v0 }
 0xe53   :  { %10022 = vmatmul.mubr.msk.bf16.vlgmr.msra.gmra.mrb[24].mxu0 %vm6161_vm3, %v6215_v23 }
 0xe54   :  { %10026 = vmatpush3.bf16.msra.mxu0 %v10556_v24  ;;  %10029 = vmatprep.mubr.msk.bf16.mxu0 %vm10633_vm2, %v15406_v0 }
 0xe55   :  { %10027 = vmatprep.subr.bf16.mxu0 %v15406_v0 }
 0xe58   :  { %10028 = vmatpush3.bf16.msra.mxu0 %v10558_v49 }
 0xe59   :  { %10041 = vmatprep.subr.bf16.mxu0 %v15406_v0 }
 0xf16   :  { %v6199_v29 = vpop.f32.mrb[20].mxu0 }
 0xf17   :  { %v6205_v12 = vpack.c.bf16 %v6199_v29, %v6199_v29  ;;  %v10011_v7 = vpop.f32.mrb[21].mxu0 }
 0xf18   :  { %v6202_v9 = vpop.f32.mrb[22].mxu0 }
 0xf19   :  { %v10012_v27 = vpop.f32.mrb[23].mxu0  ;;  %10038 = vmatmul.mubr.msk.bf16.vlgmr.msra.gmra.mrb[160].mxu1 %vm6276_vm6, %v6205_v12  ;;  %v6707_v12 = vpop.permute.xlu1 %6706 }
 0xf1a   :  { %10057 = vmatprep.mubr.msk.bf16.mxu1 %vm10633_vm2, %v15406_v0  ;;  %10054 = vmatpush3.bf16.msra.mxu1 %v10559_v38  ;;  %vm6708_vm8 = vcmp.eq.s32.totalorder %v15409_v44, %v6707_v12  ;;  %v10565_v27 = vld [vmem:[%s14758_s7 + $0x50] sm:$0xff]  }
 0xf1b   :  { %10055 = vmatprep.subr.bf16.mxu1 %v15406_v0  ;;  %v6709_v7 = vsel %vm6708_vm8, 1.0, %v15406_v0 }
 0xf1c   :  { %v6710_v9 = vpack.c.bf16 %v6709_v7, %v6709_v7 }
 0xf1e   :  { %10056 = vmatpush3.bf16.msra.mxu1 %v10560_v51 }
 0xf1f   :  { %10061 = vmatprep.subr.bf16.mxu1 %v15406_v0 }
 0xf26   :  { %v6253_v31 = vpop.f32.mrb[24].mxu0 }
 0xf27   :  { %v6259_v50 = vpack.c.bf16 %v6253_v31, %v6253_v31  ;;  %v10023_v61 = vpop.f32.mrb[25].mxu0  ;;  %v10566_v31 = vld [vmem:[%s14758_s7 + $0x58] sm:$0xff]  }
 0xf28   :  { %v6256_v25 = vpop.f32.mrb[26].mxu0 }
 0xf29   :  { %10030 = vmatmul.mubr.msk.bf16.vlgmr.msra.gmra.mrb[28].mxu0 %vm6276_vm6, %v6259_v50  ;;  %v10024_v8 = vpop.f32.mrb[27].mxu0 }
 0xf2a   :  { %10042 = vmatpush3.bf16.msra.mxu0 %v14364_v60  ;;  %10049 = vmatprep.mubr.msk.bf16.mxu0 %vm10633_vm2, %v15406_v0 }
 0xf2b   :  { %10043 = vmatprep.subr.bf16.mxu0 %v15406_v0 }
 0xf2e   :  { %10044 = vmatpush3.bf16.msra.mxu0 %v14366_v54 }
 0xf2f   :  { %10045 = vmatprep.subr.bf16.mxu0 %v15406_v0 }
 0xf32   :  { %10046 = vmatpush3.bf16.msra.mxu0 %v14368_v56 }
 0xf33   :  { %10047 = vmatprep.subr.bf16.mxu0 %v15406_v0 }
 0xf36   :  { %10048 = vmatpush3.bf16.msra.mxu0 %v14370_v20 }
 0xf37   :  { %10073 = vmatprep.subr.bf16.mxu0 %v15406_v0 }
 0xf39   :  { %10050 = vmatmul.mubr.msk.bf16.vlgmr.msra.gmra.mrb[32].mxu0 %vm6161_vm3, %v6380_v21 }
 0xf3a   :  { %10077 = vmatprep.mubr.msk.bf16.mxu0 %vm10633_vm2, %v15406_v0  ;;  %10074 = vmatpush3.bf16.msra.mxu0 %v10561_v45 }
 0xf3b   :  { %10075 = vmatprep.subr.bf16.mxu0 %v15406_v0 }
 0xf3e   :  { %10076 = vmatpush3.bf16.msra.mxu0 %v10562_v28 }
 0xf3f   :  { %10081 = vmatprep.subr.bf16.mxu0 %v15406_v0 }
 0xfec   :  { %v6369_v62 = vpop.f32.mrb[160].mxu1 }
 0xfed   :  { %v10039_v36 = vpop.f32.mrb[161].mxu1 }
 0xfee   :  { %v6372_v2 = vpop.f32.mrb[162].mxu1  ;;  %v6817_v36 = vpop.permute.xlu1 %6816 }
 0xfef   :  { %v10040_v26 = vpop.f32.mrb[163].mxu1  ;;  %vm6818_vm10 = vcmp.eq.s32.totalorder %v15409_v44, %v6817_v36 }
 0xff0   :  { %v6819_v2 = vsel %vm6818_vm10, 1.0, %v15406_v0 }
 0xff1   :  { %v6820_v26 = vpack.c.bf16 %v6819_v2, %v6819_v2 }
 0xffc   :  { %v6314_v19 = vpop.f32.mrb[28].mxu0 }
 0xffd   :  { %v6370_v37 = vadd.f32 %v6369_v62, %v6314_v19  ;;  %v10031_v55 = vpop.f32.mrb[29].mxu0  ;;  %v10567_v19 = vld [vmem:[%s14758_s7 + $0x60] sm:$0xff]  }
 0xffe   :  { %v6317_v42 = vpop.f32.mrb[30].mxu0 }
 0xfff   :  { %v10032_v35 = vpop.f32.mrb[31].mxu0 }
0x100c   :  { %v6418_v33 = vpop.f32.mrb[32].mxu0 }
0x100d   :  { %v6424_v13 = vpack.c.bf16 %v6418_v33, %v6418_v33  ;;  %v10051_v17 = vpop.f32.mrb[33].mxu0 }
0x100e   :  { %v6421_v3 = vpop.f32.mrb[34].mxu0 }
0x100f   :  { %10058 = vmatmul.mubr.msk.bf16.vlgmr.msra.gmra.mrb[164].mxu1 %vm6276_vm6, %v6424_v13  ;;  %v10052_v46 = vpop.f32.mrb[35].mxu0 }
0x1010   :  { %10062 = vmatpush3.bf16.msra.mxu1 %v14364_v60  ;;  %10069 = vmatprep.mubr.msk.bf16.mxu1 %vm10633_vm2, %v15406_v0 }
0x1011   :  { %10063 = vmatprep.subr.bf16.mxu1 %v15406_v0 }
0x1014   :  { %10064 = vmatpush3.bf16.msra.mxu1 %v14366_v54 }
0x1015   :  { %10065 = vmatprep.subr.bf16.mxu1 %v15406_v0 }
0x1018   :  { %10066 = vmatpush3.bf16.msra.mxu1 %v14368_v56 }
0x1019   :  { %10067 = vmatprep.subr.bf16.mxu1 %v15406_v0 }
0x101c   :  { %10068 = vmatpush3.bf16.msra.mxu1 %v14370_v20 }
0x101d   :  { %10093 = vmatprep.subr.bf16.mxu1 %v15406_v0 }
0x101f   :  { %10070 = vmatmul.mubr.msk.bf16.vlgmr.msra.gmra.mrb[168].mxu1 %vm6161_vm3, %v6490_v58  ;;  %v6927_v58 = vpop.permute.xlu0 %6926 }
0x1020   :  { %10097 = vmatprep.mubr.msk.bf16.mxu1 %vm10633_vm2, %v15406_v0  ;;  %10094 = vmatpush3.bf16.msra.mxu1 %v10563_v1  ;;  %vm6928_vm7 = vcmp.eq.s32.totalorder %v15409_v44, %v6927_v58 }
0x1021   :  { %10095 = vmatprep.subr.bf16.mxu1 %v15406_v0  ;;  %v6929_v45 = vsel %vm6928_vm7, 1.0, %v15406_v0 }
0x1022   :  { %v6930_v28 = vpack.c.bf16 %v6929_v45, %v6929_v45 }
0x1024   :  { %10096 = vmatpush3.bf16.msra.mxu1 %v10564_v48 }
0x1025   :  { %10101 = vmatprep.subr.bf16.mxu1 %v15406_v0 }
0x10e2   :  { %v6478_v32 = vpop.f32.mrb[164].mxu1 }
0x10e3   :  { %v6484_v16 = vadd.f32 %v6478_v32, %v6370_v37  ;;  %v10059_v57 = vpop.f32.mrb[165].mxu1  ;;  %v10568_v37 = vld [vmem:[%s14758_s7 + $0x68] sm:$0xff]   ;;  %v10569_v32 = vld [vmem:[%s14758_s7 + $0x70] sm:$0xff]  }
0x10e4   :  { %v6481_v59 = vpop.f32.mrb[166].mxu1 }
0x10e5   :  { %v10060_v6 = vpop.f32.mrb[167].mxu1 }
0x10f2   :  { %v6528_v11 = vpop.f32.mrb[168].mxu1 }
0x10f3   :  { %v6534_v47 = vpack.c.bf16 %v6528_v11, %v6528_v11  ;;  %v10071_v39 = vpop.f32.mrb[169].mxu1 }
0x10f4   :  { %v6531_v63 = vpop.f32.mrb[170].mxu1 }
0x10f5   :  { %10078 = vmatmul.mubr.msk.bf16.vlgmr.msra.gmra.mrb[36].mxu0 %vm6276_vm6, %v6534_v47  ;;  %v10072_v53 = vpop.f32.mrb[171].mxu1 }
0x10f6   :  { %10082 = vmatpush3.bf16.msra.mxu0 %v14364_v60  ;;  %10089 = vmatprep.mubr.msk.bf16.mxu0 %vm10633_vm2, %v15406_v0 }
0x10f7   :  { %10083 = vmatprep.subr.bf16.mxu0 %v15406_v0 }
0x10fa   :  { %10084 = vmatpush3.bf16.msra.mxu0 %v14366_v54 }
0x10fb   :  { %10085 = vmatprep.subr.bf16.mxu0 %v15406_v0 }
0x10fe   :  { %10086 = vmatpush3.bf16.msra.mxu0 %v14368_v56 }
0x10ff   :  { %10087 = vmatprep.subr.bf16.mxu0 %v15406_v0 }
0x1102   :  { %10088 = vmatpush3.bf16.msra.mxu0 %v14370_v20 }
0x1103   :  { %10113 = vmatprep.subr.bf16.mxu0 %v15406_v0 }
0x1105   :  { %10090 = vmatmul.mubr.msk.bf16.vlgmr.msra.gmra.mrb[40].mxu0 %vm6161_vm3, %v6600_v22  ;;  %v7037_v22 = vpop.permute.xlu1 %7036 }
0x1106   :  { %10117 = vmatprep.mubr.msk.bf16.mxu0 %vm10633_vm2, %v15406_v0  ;;  %10114 = vmatpush3.bf16.msra.mxu0 %v10565_v27  ;;  %vm7038_vm11 = vcmp.eq.s32.totalorder %v15409_v44, %v7037_v22 }
0x1107   :  { %10115 = vmatprep.subr.bf16.mxu0 %v15406_v0  ;;  %v7039_v1 = vsel %vm7038_vm11, 1.0, %v15406_v0 }
0x1108   :  { %v7040_v48 = vpack.c.bf16 %v7039_v1, %v7039_v1 }
0x110a   :  { %10116 = vmatpush3.bf16.msra.mxu0 %v10566_v31 }
0x110b   :  { %10121 = vmatprep.subr.bf16.mxu0 %v15406_v0 }
0x11c8   :  { %v6588_v30 = vpop.f32.mrb[36].mxu0 }
0x11c9   :  { %v6594_v18 = vadd.f32 %v6588_v30, %v6484_v16  ;;  %v10079_v4 = vpop.f32.mrb[37].mxu0  ;;  %v10570_v16 = vld [vmem:[%s14758_s7 + $0x78] sm:$0xff]   ;;  %v10571_v30 = vld [vmem:[%s14758_s7 + $0x80] sm:$0xff]  }
0x11ca   :  { %v6591_v10 = vpop.f32.mrb[38].mxu0 }
0x11cb   :  { %v10080_v43 = vpop.f32.mrb[39].mxu0 }
0x11d8   :  { %v6638_v23 = vpop.f32.mrb[40].mxu0 }
0x11d9   :  { %v6644_v24 = vpack.c.bf16 %v6638_v23, %v6638_v23  ;;  %v10091_v41 = vpop.f32.mrb[41].mxu0 }
0x11da   :  { %v6641_v49 = vpop.f32.mrb[42].mxu0 }
0x11db   :  { %10098 = vmatmul.mubr.msk.bf16.vlgmr.msra.gmra.mrb[172].mxu1 %vm6276_vm6, %v6644_v24  ;;  %v10092_v29 = vpop.f32.mrb[43].mxu0 }
0x11dc   :  { %10102 = vmatpush3.bf16.msra.mxu1 %v14364_v60  ;;  %10109 = vmatprep.mubr.msk.bf16.mxu1 %vm10633_vm2, %v15406_v0 }
0x11dd   :  { %10103 = vmatprep.subr.bf16.mxu1 %v15406_v0 }
0x11e0   :  { %10104 = vmatpush3.bf16.msra.mxu1 %v14366_v54 }
0x11e1   :  { %10105 = vmatprep.subr.bf16.mxu1 %v15406_v0 }
0x11e4   :  { %10106 = vmatpush3.bf16.msra.mxu1 %v14368_v56 }
0x11e5   :  { %10107 = vmatprep.subr.bf16.mxu1 %v15406_v0 }
0x11e8   :  { %10108 = vmatpush3.bf16.msra.mxu1 %v14370_v20 }
0x11e9   :  { %10133 = vmatprep.subr.bf16.mxu1 %v15406_v0 }
0x11eb   :  { %10110 = vmatmul.mubr.msk.bf16.vlgmr.msra.gmra.mrb[176].mxu1 %vm6161_vm3, %v6710_v9  ;;  %v7147_v9 = vpop.permute.xlu1 %7146 }
0x11ec   :  { %10137 = vmatprep.mubr.msk.bf16.mxu1 %vm10633_vm2, %v15406_v0  ;;  %10134 = vmatpush3.bf16.msra.mxu1 %v10567_v19  ;;  %vm7148_vm0 = vcmp.eq.s32.totalorder %v15409_v44, %v7147_v9 }
0x11ed   :  { %10135 = vmatprep.subr.bf16.mxu1 %v15406_v0  ;;  %v7149_v27 = vsel %vm7148_vm0, 1.0, %v15406_v0 }
0x11ee   :  { %v7150_v31 = vpack.c.bf16 %v7149_v27, %v7149_v27 }
0x11f0   :  { %10136 = vmatpush3.bf16.msra.mxu1 %v10568_v37 }
0x11f1   :  { %10141 = vmatprep.subr.bf16.mxu1 %v15406_v0 }
0x12ae   :  { %v6698_v50 = vpop.f32.mrb[172].mxu1 }
0x12af   :  { %v6704_v61 = vadd.f32 %v6698_v50, %v6594_v18  ;;  %v10099_v25 = vpop.f32.mrb[173].mxu1  ;;  %v10572_v18 = vld [vmem:[%s14758_s7 + $0x88] sm:$0xff]   ;;  %v10573_v50 = vld [vmem:[%s14758_s7 + $0x90] sm:$0xff]  }
0x12b0   :  { %v6701_v8 = vpop.f32.mrb[174].mxu1 }
0x12b1   :  { %v10100_v52 = vpop.f32.mrb[175].mxu1 }
0x12be   :  { %v6748_v15 = vpop.f32.mrb[176].mxu1 }
0x12bf   :  { %v6754_v21 = vpack.c.bf16 %v6748_v15, %v6748_v15  ;;  %v10111_v38 = vpop.f32.mrb[177].mxu1 }
0x12c0   :  { %v6751_v51 = vpop.f32.mrb[178].mxu1 }
0x12c1   :  { %10118 = vmatmul.mubr.msk.bf16.vlgmr.msra.gmra.mrb[44].mxu0 %vm6276_vm6, %v6754_v21  ;;  %v10112_v62 = vpop.f32.mrb[179].mxu1 }
0x12c2   :  { %10122 = vmatpush3.bf16.msra.mxu0 %v14364_v60  ;;  %10129 = vmatprep.mubr.msk.bf16.mxu0 %vm10633_vm2, %v15406_v0 }
0x12c3   :  { %10123 = vmatprep.subr.bf16.mxu0 %v15406_v0 }
0x12c6   :  { %10124 = vmatpush3.bf16.msra.mxu0 %v14366_v54 }
0x12c7   :  { %10125 = vmatprep.subr.bf16.mxu0 %v15406_v0 }
0x12ca   :  { %10126 = vmatpush3.bf16.msra.mxu0 %v14368_v56 }
0x12cb   :  { %10127 = vmatprep.subr.bf16.mxu0 %v15406_v0 }
0x12ce   :  { %10128 = vmatpush3.bf16.msra.mxu0 %v14370_v20 }
0x12cf   :  { %10153 = vmatprep.subr.bf16.mxu0 %v15406_v0 }
0x12d1   :  { %10130 = vmatmul.mubr.msk.bf16.vlgmr.msra.gmra.mrb[48].mxu0 %vm6161_vm3, %v6820_v26  ;;  %v7257_v26 = vpop.permute.xlu0 %7256 }
0x12d2   :  { %10157 = vmatprep.mubr.msk.bf16.mxu0 %vm10633_vm2, %v15406_v0  ;;  %10154 = vmatpush3.bf16.msra.mxu0 %v10569_v32  ;;  %vm7258_vm9 = vcmp.eq.s32.totalorder %v15409_v44, %v7257_v26 }
0x12d3   :  { %10155 = vmatprep.subr.bf16.mxu0 %v15406_v0  ;;  %v7259_v19 = vsel %vm7258_vm9, 1.0, %v15406_v0 }
0x12d4   :  { %v7260_v37 = vpack.c.bf16 %v7259_v19, %v7259_v19 }
0x12d6   :  { %10156 = vmatpush3.bf16.msra.mxu0 %v10570_v16 }
0x12d7   :  { %10161 = vmatprep.subr.bf16.mxu0 %v15406_v0 }
0x1394   :  { %v6808_v55 = vpop.f32.mrb[44].mxu0 }
0x1395   :  { %v6814_v42 = vadd.f32 %v6808_v55, %v6704_v61  ;;  %v10119_v35 = vpop.f32.mrb[45].mxu0  ;;  %v10574_v61 = vld [vmem:[%s14758_s7 + $0x98] sm:$0xff]   ;;  %v10575_v55 = vld [vmem:[%s14758_s7 + $0xa0] sm:$0xff]  }
0x1396   :  { %v6811_v33 = vpop.f32.mrb[46].mxu0 }
0x1397   :  { %v10120_v13 = vpop.f32.mrb[47].mxu0 }
0x13a4   :  { %v6858_v17 = vpop.f32.mrb[48].mxu0 }
0x13a5   :  { %v6864_v3 = vpack.c.bf16 %v6858_v17, %v6858_v17  ;;  %v10131_v46 = vpop.f32.mrb[49].mxu0 }
0x13a6   :  { %v6861_v40 = vpop.f32.mrb[50].mxu0 }
0x13a7   :  { %10138 = vmatmul.mubr.msk.bf16.vlgmr.msra.gmra.mrb[180].mxu1 %vm6276_vm6, %v6864_v3  ;;  %v10132_v5 = vpop.f32.mrb[51].mxu0 }
0x13a8   :  { %10142 = vmatpush3.bf16.msra.mxu1 %v14364_v60  ;;  %10149 = vmatprep.mubr.msk.bf16.mxu1 %vm10633_vm2, %v15406_v0 }
0x13a9   :  { %10143 = vmatprep.subr.bf16.mxu1 %v15406_v0 }
0x13ac   :  { %10144 = vmatpush3.bf16.msra.mxu1 %v14366_v54 }
0x13ad   :  { %10145 = vmatprep.subr.bf16.mxu1 %v15406_v0 }
0x13b0   :  { %10146 = vmatpush3.bf16.msra.mxu1 %v14368_v56 }
0x13b1   :  { %10147 = vmatprep.subr.bf16.mxu1 %v15406_v0 }
0x13b4   :  { %10148 = vmatpush3.bf16.msra.mxu1 %v14370_v20 }
0x13b5   :  { %10173 = vmatprep.subr.bf16.mxu1 %v15406_v0 }
0x13b7   :  { %10150 = vmatmul.mubr.msk.bf16.vlgmr.msra.gmra.mrb[184].mxu1 %vm6161_vm3, %v6930_v28  ;;  %v7367_v28 = vpop.permute.xlu1 %7366 }
0x13b8   :  { %10177 = vmatprep.mubr.msk.bf16.mxu1 %vm10633_vm2, %v15406_v0  ;;  %10174 = vmatpush3.bf16.msra.mxu1 %v10571_v30  ;;  %vm7368_vm1 = vcmp.eq.s32.totalorder %v15409_v44, %v7367_v28 }
0x13b9   :  { %10175 = vmatprep.subr.bf16.mxu1 %v15406_v0  ;;  %v7369_v32 = vsel %vm7368_vm1, 1.0, %v15406_v0 }
0x13ba   :  { %v7370_v16 = vpack.c.bf16 %v7369_v32, %v7369_v32 }
0x13bc   :  { %10176 = vmatpush3.bf16.msra.mxu1 %v10572_v18 }
0x13bd   :  { %10181 = vmatprep.subr.bf16.mxu1 %v15406_v0 }
0x147a   :  { %v6918_v57 = vpop.f32.mrb[180].mxu1 }
0x147b   :  { %v6924_v59 = vadd.f32 %v6918_v57, %v6814_v42  ;;  %v10139_v6 = vpop.f32.mrb[181].mxu1  ;;  %v10576_v42 = vld [vmem:[%s14758_s7 + $0xa8] sm:$0xff]   ;;  %v10577_v57 = vld [vmem:[%s14758_s7 + $0xb0] sm:$0xff]  }
0x147c   :  { %v6921_v11 = vpop.f32.mrb[182].mxu1 }
0x147d   :  { %v10140_v47 = vpop.f32.mrb[183].mxu1 }
0x148a   :  { %v6968_v39 = vpop.f32.mrb[184].mxu1 }
0x148b   :  { %v6974_v63 = vpack.c.bf16 %v6968_v39, %v6968_v39  ;;  %v10151_v53 = vpop.f32.mrb[185].mxu1 }
0x148c   :  { %v6971_v14 = vpop.f32.mrb[186].mxu1 }
0x148d   :  { %10158 = vmatmul.mubr.msk.bf16.vlgmr.msra.gmra.mrb[52].mxu0 %vm6276_vm6, %v6974_v63  ;;  %v10152_v34 = vpop.f32.mrb[187].mxu1 }
0x148e   :  { %10162 = vmatpush3.bf16.msra.mxu0 %v14364_v60  ;;  %10169 = vmatprep.mubr.msk.bf16.mxu0 %vm10633_vm2, %v15406_v0 }
0x148f   :  { %10163 = vmatprep.subr.bf16.mxu0 %v15406_v0 }
0x1492   :  { %10164 = vmatpush3.bf16.msra.mxu0 %v14366_v54 }
0x1493   :  { %10165 = vmatprep.subr.bf16.mxu0 %v15406_v0 }
0x1496   :  { %10166 = vmatpush3.bf16.msra.mxu0 %v14368_v56 }
0x1497   :  { %10167 = vmatprep.subr.bf16.mxu0 %v15406_v0 }
0x149a   :  { %10168 = vmatpush3.bf16.msra.mxu0 %v14370_v20 }
0x149b   :  { %10193 = vmatprep.subr.bf16.mxu0 %v15406_v0 }
0x149d   :  { %10170 = vmatmul.mubr.msk.bf16.vlgmr.msra.gmra.mrb[56].mxu0 %vm6161_vm3, %v7040_v48  ;;  %v7477_v48 = vpop.permute.xlu1 %7476 }
0x149e   :  { %10197 = vmatprep.mubr.msk.bf16.mxu0 %vm10633_vm2, %v15406_v0  ;;  %10194 = vmatpush3.bf16.msra.mxu0 %v10573_v50  ;;  %vm7478_vm13 = vcmp.eq.s32.totalorder %v15409_v44, %v7477_v48 }
0x149f   :  { %10195 = vmatprep.subr.bf16.mxu0 %v15406_v0  ;;  %v7479_v30 = vsel %vm7478_vm13, 1.0, %v15406_v0 }
0x14a0   :  { %v7480_v18 = vpack.c.bf16 %v7479_v30, %v7479_v30 }
0x14a2   :  { %10196 = vmatpush3.bf16.msra.mxu0 %v10574_v61 }
0x14a3   :  { %10201 = vmatprep.subr.bf16.mxu0 %v15406_v0 }
0x1560   :  { %v7028_v4 = vpop.f32.mrb[52].mxu0 }
0x1561   :  { %v7034_v10 = vadd.f32 %v7028_v4, %v6924_v59  ;;  %v10159_v43 = vpop.f32.mrb[53].mxu0  ;;  %v10578_v59 = vld [vmem:[%s14758_s7 + $0xb8] sm:$0xff]   ;;  %v10579_v4 = vld [vmem:[%s14758_s7 + $0xc0] sm:$0xff]  }
0x1562   :  { %v7031_v23 = vpop.f32.mrb[54].mxu0 }
0x1563   :  { %v10160_v24 = vpop.f32.mrb[55].mxu0 }
0x1570   :  { %v7078_v41 = vpop.f32.mrb[56].mxu0 }
0x1571   :  { %v7084_v49 = vpack.c.bf16 %v7078_v41, %v7078_v41  ;;  %v10171_v29 = vpop.f32.mrb[57].mxu0 }
0x1572   :  { %v7081_v12 = vpop.f32.mrb[58].mxu0 }
0x1573   :  { %10178 = vmatmul.mubr.msk.bf16.vlgmr.msra.gmra.mrb[188].mxu1 %vm6276_vm6, %v7084_v49  ;;  %v10172_v7 = vpop.f32.mrb[59].mxu0 }
0x1574   :  { %10182 = vmatpush3.bf16.msra.mxu1 %v14364_v60  ;;  %10189 = vmatprep.mubr.msk.bf16.mxu1 %vm10633_vm2, %v15406_v0 }
0x1575   :  { %10183 = vmatprep.subr.bf16.mxu1 %v15406_v0 }
0x1578   :  { %10184 = vmatpush3.bf16.msra.mxu1 %v14366_v54 }
0x1579   :  { %10185 = vmatprep.subr.bf16.mxu1 %v15406_v0 }
0x157c   :  { %10186 = vmatpush3.bf16.msra.mxu1 %v14368_v56 }
0x157d   :  { %10187 = vmatprep.subr.bf16.mxu1 %v15406_v0 }
0x1580   :  { %10188 = vmatpush3.bf16.msra.mxu1 %v14370_v20 }
0x1581   :  { %10213 = vmatprep.subr.bf16.mxu1 %v15406_v0 }
0x1583   :  { %10190 = vmatmul.mubr.msk.bf16.vlgmr.msra.gmra.mrb[192].mxu1 %vm6161_vm3, %v7150_v31  ;;  %v7587_v31 = vpop.permute.xlu0 %7586 }
0x1584   :  { %10217 = vmatprep.mubr.msk.bf16.mxu1 %vm10633_vm2, %v15406_v0  ;;  %10214 = vmatpush3.bf16.msra.mxu1 %v10575_v55  ;;  %vm7588_vm14 = vcmp.eq.s32.totalorder %v15409_v44, %v7587_v31 }
0x1585   :  { %10215 = vmatprep.subr.bf16.mxu1 %v15406_v0  ;;  %v7589_v50 = vsel %vm7588_vm14, 1.0, %v15406_v0 }
0x1586   :  { %v7590_v61 = vpack.c.bf16 %v7589_v50, %v7589_v50 }
0x1588   :  { %10216 = vmatpush3.bf16.msra.mxu1 %v10576_v42 }
0x1589   :  { %10221 = vmatprep.subr.bf16.mxu1 %v15406_v0 }
0x1646   :  { %v7138_v25 = vpop.f32.mrb[188].mxu1 }
0x1647   :  { %v7144_v8 = vadd.f32 %v7138_v25, %v7034_v10  ;;  %v10179_v52 = vpop.f32.mrb[189].mxu1  ;;  %v10580_v10 = vld [vmem:[%s14758_s7 + $0xc8] sm:$0xff]   ;;  %v10581_v25 = vld [vmem:[%s14758_s7 + $0xd0] sm:$0xff]  }
0x1648   :  { %v7141_v15 = vpop.f32.mrb[190].mxu1 }
0x1649   :  { %v10180_v21 = vpop.f32.mrb[191].mxu1 }
0x1656   :  { %v7188_v38 = vpop.f32.mrb[192].mxu1 }
0x1657   :  { %v7194_v51 = vpack.c.bf16 %v7188_v38, %v7188_v38  ;;  %v10191_v62 = vpop.f32.mrb[193].mxu1 }
0x1658   :  { %v7191_v36 = vpop.f32.mrb[194].mxu1 }
0x1659   :  { %10198 = vmatmul.mubr.msk.bf16.vlgmr.msra.gmra.mrb[60].mxu0 %vm6276_vm6, %v7194_v51  ;;  %v10192_v2 = vpop.f32.mrb[195].mxu1 }
0x165a   :  { %10202 = vmatpush3.bf16.msra.mxu0 %v14364_v60  ;;  %10209 = vmatprep.mubr.msk.bf16.mxu0 %vm10633_vm2, %v15406_v0 }
0x165b   :  { %10203 = vmatprep.subr.bf16.mxu0 %v15406_v0 }
0x165e   :  { %10204 = vmatpush3.bf16.msra.mxu0 %v14366_v54 }
0x165f   :  { %10205 = vmatprep.subr.bf16.mxu0 %v15406_v0 }
0x1662   :  { %10206 = vmatpush3.bf16.msra.mxu0 %v14368_v56 }
0x1663   :  { %10207 = vmatprep.subr.bf16.mxu0 %v15406_v0 }
0x1666   :  { %10208 = vmatpush3.bf16.msra.mxu0 %v14370_v20 }
0x1667   :  { %10233 = vmatprep.subr.bf16.mxu0 %v15406_v0 }
0x1669   :  { %10210 = vmatmul.mubr.msk.bf16.vlgmr.msra.gmra.mrb[64].mxu0 %vm6161_vm3, %v7260_v37  ;;  %v7697_v37 = vpop.permute.xlu1 %7696 }
0x166a   :  { %10237 = vmatprep.mubr.msk.bf16.mxu0 %vm10633_vm2, %v15406_v0  ;;  %10234 = vmatpush3.bf16.msra.mxu0 %v10577_v57  ;;  %vm7698_vm4 = vcmp.eq.s32.totalorder %v15409_v44, %v7697_v37 }
0x166b   :  { %10235 = vmatprep.subr.bf16.mxu0 %v15406_v0  ;;  %v7699_v55 = vsel %vm7698_vm4, 1.0, %v15406_v0 }
0x166c   :  { %v7700_v42 = vpack.c.bf16 %v7699_v55, %v7699_v55 }
0x166e   :  { %10236 = vmatpush3.bf16.msra.mxu0 %v10578_v59 }
0x166f   :  { %10241 = vmatprep.subr.bf16.mxu0 %v15406_v0 }
0x172c   :  { %v7248_v35 = vpop.f32.mrb[60].mxu0 }
0x172d   :  { %v7254_v33 = vadd.f32 %v7248_v35, %v7144_v8  ;;  %v10199_v13 = vpop.f32.mrb[61].mxu0  ;;  %v10582_v8 = vld [vmem:[%s14758_s7 + $0xd8] sm:$0xff]   ;;  %v10583_v35 = vld [vmem:[%s14758_s7 + $0xe0] sm:$0xff]  }
0x172e   :  { %v7251_v17 = vpop.f32.mrb[62].mxu0 }
0x172f   :  { %v10200_v3 = vpop.f32.mrb[63].mxu0 }
0x173c   :  { %v7298_v46 = vpop.f32.mrb[64].mxu0 }
0x173d   :  { %v7304_v40 = vpack.c.bf16 %v7298_v46, %v7298_v46  ;;  %v10211_v5 = vpop.f32.mrb[65].mxu0 }
0x173e   :  { %v7301_v58 = vpop.f32.mrb[66].mxu0 }
0x173f   :  { %10218 = vmatmul.mubr.msk.bf16.vlgmr.msra.gmra.mrb[196].mxu1 %vm6276_vm6, %v7304_v40  ;;  %v10212_v45 = vpop.f32.mrb[67].mxu0 }
0x1740   :  { %10222 = vmatpush3.bf16.msra.mxu1 %v14364_v60  ;;  %10229 = vmatprep.mubr.msk.bf16.mxu1 %vm10633_vm2, %v15406_v0 }
0x1741   :  { %10223 = vmatprep.subr.bf16.mxu1 %v15406_v0 }
0x1744   :  { %10224 = vmatpush3.bf16.msra.mxu1 %v14366_v54 }
0x1745   :  { %10225 = vmatprep.subr.bf16.mxu1 %v15406_v0 }
0x1748   :  { %10226 = vmatpush3.bf16.msra.mxu1 %v14368_v56 }
0x1749   :  { %10227 = vmatprep.subr.bf16.mxu1 %v15406_v0 }
0x174c   :  { %10228 = vmatpush3.bf16.msra.mxu1 %v14370_v20 }
0x174d   :  { %10253 = vmatprep.subr.bf16.mxu1 %v15406_v0 }
0x174f   :  { %10230 = vmatmul.mubr.msk.bf16.vlgmr.msra.gmra.mrb[200].mxu1 %vm6161_vm3, %v7370_v16  ;;  %v7807_v16 = vpop.permute.xlu1 %7806 }
0x1750   :  { %10257 = vmatprep.mubr.msk.bf16.mxu1 %vm10633_vm2, %v15406_v0  ;;  %10254 = vmatpush3.bf16.msra.mxu1 %v10579_v4  ;;  %vm7808_vm12 = vcmp.eq.s32.totalorder %v15409_v44, %v7807_v16  ;;  %v10586_v44 = vld [vmem:[%s14758_s7 + $0xf8] sm:$0xff]  }
0x1751   :  { %10255 = vmatprep.subr.bf16.mxu1 %v15406_v0  ;;  %v7809_v57 = vsel %vm7808_vm12, 1.0, %v15406_v0 }
0x1752   :  { %v7810_v59 = vpack.c.bf16 %v7809_v57, %v7809_v57 }
0x1754   :  { %10256 = vmatpush3.bf16.msra.mxu1 %v10580_v10 }
0x1755   :  { %10261 = vmatprep.subr.bf16.mxu1 %v15406_v0 }
0x1812   :  { %v7358_v6 = vpop.f32.mrb[196].mxu1 }
0x1813   :  { %v7364_v11 = vadd.f32 %v7358_v6, %v7254_v33  ;;  %v10219_v47 = vpop.f32.mrb[197].mxu1  ;;  %v10584_v33 = vld [vmem:[%s14758_s7 + $0xe8] sm:$0xff]  }
0x1814   :  { %v7361_v39 = vpop.f32.mrb[198].mxu1 }
0x1815   :  { %v10220_v63 = vpop.f32.mrb[199].mxu1 }
0x1822   :  { %v7408_v53 = vpop.f32.mrb[200].mxu1 }
0x1823   :  { %v7414_v14 = vpack.c.bf16 %v7408_v53, %v7408_v53  ;;  %v10231_v34 = vpop.f32.mrb[201].mxu1 }
0x1824   :  { %v7411_v22 = vpop.f32.mrb[202].mxu1 }
0x1825   :  { %10238 = vmatmul.mubr.msk.bf16.vlgmr.msra.gmra.mrb[68].mxu0 %vm6276_vm6, %v7414_v14  ;;  %v10232_v1 = vpop.f32.mrb[203].mxu1 }
0x1826   :  { %10242 = vmatpush3.bf16.msra.mxu0 %v14364_v60  ;;  %10249 = vmatprep.mubr.msk.bf16.mxu0 %vm10633_vm2, %v15406_v0 }
0x1827   :  { %10243 = vmatprep.subr.bf16.mxu0 %v15406_v0 }
0x182a   :  { %10244 = vmatpush3.bf16.msra.mxu0 %v14366_v54 }
0x182b   :  { %10245 = vmatprep.subr.bf16.mxu0 %v15406_v0 }
0x182e   :  { %10246 = vmatpush3.bf16.msra.mxu0 %v14368_v56 }
0x182f   :  { %10247 = vmatprep.subr.bf16.mxu0 %v15406_v0 }
0x1832   :  { %10248 = vmatpush3.bf16.msra.mxu0 %v14370_v20 }
0x1833   :  { %10273 = vmatprep.subr.bf16.mxu0 %v15406_v0 }
0x1835   :  { %10250 = vmatmul.mubr.msk.bf16.vlgmr.msra.gmra.mrb[72].mxu0 %vm6161_vm3, %v7480_v18 }
0x1836   :  { %10277 = vmatprep.mubr.msk.bf16.mxu0 %vm10633_vm2, %v15406_v0  ;;  %10274 = vmatpush3.bf16.msra.mxu0 %v10581_v25 }
0x1837   :  { %10275 = vmatprep.subr.bf16.mxu0 %v15406_v0 }
0x183a   :  { %10276 = vmatpush3.bf16.msra.mxu0 %v10582_v8 }
0x183b   :  { %10281 = vmatprep.subr.bf16.mxu0 %v15406_v0 }
0x18f8   :  { %v7468_v43 = vpop.f32.mrb[68].mxu0 }
0x18f9   :  { %v7474_v23 = vadd.f32 %v7468_v43, %v7364_v11  ;;  %v10239_v24 = vpop.f32.mrb[69].mxu0 }
0x18fa   :  { %v7471_v41 = vpop.f32.mrb[70].mxu0 }
0x18fb   :  { %v10240_v49 = vpop.f32.mrb[71].mxu0 }
0x1908   :  { %v7518_v29 = vpop.f32.mrb[72].mxu0 }
0x1909   :  { %v7524_v12 = vpack.c.bf16 %v7518_v29, %v7518_v29  ;;  %v10251_v7 = vpop.f32.mrb[73].mxu0 }
0x190a   :  { %v7521_v9 = vpop.f32.mrb[74].mxu0 }
0x190b   :  { %10258 = vmatmul.mubr.msk.bf16.vlgmr.msra.gmra.mrb[204].mxu1 %vm6276_vm6, %v7524_v12  ;;  %v10252_v27 = vpop.f32.mrb[75].mxu0 }
0x190c   :  { %10262 = vmatpush3.bf16.msra.mxu1 %v14364_v60  ;;  %10269 = vmatprep.mubr.msk.bf16.mxu1 %vm10633_vm2, %v15406_v0 }
0x190d   :  { %10263 = vmatprep.subr.bf16.mxu1 %v15406_v0 }
0x1910   :  { %10264 = vmatpush3.bf16.msra.mxu1 %v14366_v54 }
0x1911   :  { %10265 = vmatprep.subr.bf16.mxu1 %v15406_v0 }
0x1914   :  { %10266 = vmatpush3.bf16.msra.mxu1 %v14368_v56 }
0x1915   :  { %10267 = vmatprep.subr.bf16.mxu1 %v15406_v0 }
0x1918   :  { %10268 = vmatpush3.bf16.msra.mxu1 %v14370_v20 }
0x1919   :  { %10293 = vmatprep.subr.bf16.mxu1 %v15406_v0 }
0x191b   :  { %10270 = vmatmul.mubr.msk.bf16.vlgmr.msra.gmra.mrb[208].mxu1 %vm6161_vm3, %v7590_v61 }
0x191c   :  { %10297 = vmatprep.mubr.msk.bf16.mxu1 %vm10633_vm2, %v15406_v0  ;;  %10294 = vmatpush3.bf16.msra.mxu1 %v10583_v35 }
0x191d   :  { %10295 = vmatprep.subr.bf16.mxu1 %v15406_v0 }
0x1920   :  { %10296 = vmatpush3.bf16.msra.mxu1 %v10584_v33 }
0x1921   :  { %10301 = vmatprep.subr.bf16.mxu1 %v15406_v0 }
0x19de   :  { %v7578_v52 = vpop.f32.mrb[204].mxu1 }
0x19df   :  { %v7584_v15 = vadd.f32 %v7578_v52, %v7474_v23  ;;  %v10259_v21 = vpop.f32.mrb[205].mxu1 }
0x19e0   :  { %v7581_v38 = vpop.f32.mrb[206].mxu1 }
0x19e1   :  { %v10260_v51 = vpop.f32.mrb[207].mxu1 }
0x19ee   :  { %v7628_v62 = vpop.f32.mrb[208].mxu1 }
0x19ef   :  { %v7634_v36 = vpack.c.bf16 %v7628_v62, %v7628_v62  ;;  %v10271_v2 = vpop.f32.mrb[209].mxu1 }
0x19f0   :  { %v7631_v26 = vpop.f32.mrb[210].mxu1 }
0x19f1   :  { %10278 = vmatmul.mubr.msk.bf16.vlgmr.msra.gmra.mrb[76].mxu0 %vm6276_vm6, %v7634_v36  ;;  %v10272_v19 = vpop.f32.mrb[211].mxu1 }
0x19f2   :  { %10282 = vmatpush3.bf16.msra.mxu0 %v14364_v60  ;;  %10289 = vmatprep.mubr.msk.bf16.mxu0 %vm10633_vm2, %v15406_v0 }
0x19f3   :  { %10283 = vmatprep.subr.bf16.mxu0 %v15406_v0 }
0x19f6   :  { %10284 = vmatpush3.bf16.msra.mxu0 %v14366_v54 }
0x19f7   :  { %10285 = vmatprep.subr.bf16.mxu0 %v15406_v0 }
0x19fa   :  { %10286 = vmatpush3.bf16.msra.mxu0 %v14368_v56 }
0x19fb   :  { %10287 = vmatprep.subr.bf16.mxu0 %v15406_v0 }
0x19fe   :  { %10288 = vmatpush3.bf16.msra.mxu0 %v14370_v20 }
0x19ff   :  { %10313 = vmatprep.subr.bf16.mxu0 %v15406_v0 }
0x1a01   :  { %10290 = vmatmul.mubr.msk.bf16.vlgmr.msra.gmra.mrb[80].mxu0 %vm6161_vm3, %v7700_v42 }
0x1a02   :  { %10317 = vmatprep.mubr.msk.bf16.mxu0 %vm10633_vm2, %v15406_v0 }
0x1ac4   :  { %v7688_v13 = vpop.f32.mrb[76].mxu0 }
0x1ac5   :  { %v7694_v17 = vadd.f32 %v7688_v13, %v7584_v15  ;;  %v10279_v3 = vpop.f32.mrb[77].mxu0 }
0x1ac6   :  { %v7691_v46 = vpop.f32.mrb[78].mxu0 }
0x1ac7   :  { %v10280_v40 = vpop.f32.mrb[79].mxu0 }
0x1ad4   :  { %v7738_v5 = vpop.f32.mrb[80].mxu0 }
0x1ad5   :  { %v7744_v58 = vpack.c.bf16 %v7738_v5, %v7738_v5  ;;  %v10291_v45 = vpop.f32.mrb[81].mxu0 }
0x1ad6   :  { %v7741_v28 = vpop.f32.mrb[82].mxu0 }
0x1ad7   :  { %10298 = vmatmul.mubr.msk.bf16.vlgmr.msra.gmra.mrb[212].mxu1 %vm6276_vm6, %v7744_v58  ;;  %v10292_v32 = vpop.f32.mrb[83].mxu0 }
0x1ad8   :  { %10302 = vmatpush3.bf16.msra.mxu1 %v14364_v60  ;;  %10309 = vmatprep.mubr.msk.bf16.mxu1 %vm10633_vm2, %v15406_v0  ;;  %v10585_v60 = vld [vmem:[%s14758_s7 + $0xf0] sm:$0xff]  }
0x1ad9   :  { %10303 = vmatprep.subr.bf16.mxu1 %v15406_v0  ;;  %10314 = vmatpush3.bf16.msra.mxu0 %v10585_v60 }
0x1ada   :  { %10315 = vmatprep.subr.bf16.mxu0 %v15406_v0 }
0x1adc   :  { %10304 = vmatpush3.bf16.msra.mxu1 %v14366_v54 }
0x1add   :  { %10305 = vmatprep.subr.bf16.mxu1 %v15406_v0  ;;  %10316 = vmatpush3.bf16.msra.mxu0 %v10586_v44 }
0x1ae0   :  { %10306 = vmatpush3.bf16.msra.mxu1 %v14368_v56 }
0x1ae1   :  { %10307 = vmatprep.subr.bf16.mxu1 %v15406_v0  ;;  %v8422_v0 = vld [vmem:[%s14760_s8] ss:$0 sm:$0xff] }
0x1ae4   :  { %10308 = vmatpush3.bf16.msra.mxu1 %v14370_v20 }
0x1ae7   :  { %10310 = vmatmul.mubr.msk.bf16.vlgmr.msra.gmra.mrb[216].mxu1 %vm6161_vm3, %v7810_v59 }
0x1baa   :  { %v7798_v54 = vpop.f32.mrb[212].mxu1 }
0x1bab   :  { %v7804_v56 = vadd.f32 %v7798_v54, %v7694_v17  ;;  %v10299_v6 = vpop.f32.mrb[213].mxu1 }
0x1bac   :  { %v7801_v11 = vpop.f32.mrb[214].mxu1 }
0x1bad   :  { %v10300_v47 = vpop.f32.mrb[215].mxu1 }
0x1bba   :  { %v7848_v20 = vpop.f32.mrb[216].mxu1 }
0x1bbb   :  { %v7854_v39 = vpack.c.bf16 %v7848_v20, %v7848_v20  ;;  %v10311_v63 = vpop.f32.mrb[217].mxu1 }
0x1bbc   :  { %v7851_v53 = vpop.f32.mrb[218].mxu1 }
0x1bbd   :  { %10318 = vmatmul.mubr.msk.bf16.vlgmr.msra.gmra.mrb[84].mxu0 %vm6276_vm6, %v7854_v39  ;;  %v10312_v14 = vpop.f32.mrb[219].mxu1 }
0x1c90   :  { %v7908_v34 = vpop.f32.mrb[84].mxu0 }
0x1c91   :  { %v7914_v22 = vadd.f32 %v7908_v34, %v7804_v56  ;;  %v10319_v1 = vpop.f32.mrb[85].mxu0 }
0x1c92   :  { %v7911_v48 = vpop.f32.mrb[86].mxu0 }
0x1c93   :  { %v7922_v30 = vadd.f32 %v8422_v0, %v7914_v22  ;;  %v10320_v18 = vpop.f32.mrb[87].mxu0 }
0x1c95   :  { %7923 = vst [vmem:[%s14761_s9] sm:$0xff] %v7922_v30 }

</bundles_post_ra>
